<compile_context>
chip_gen: v7x
topology: tpu7x:2x2x1
jax: 0.10.0
libtpu: 0.0.40
codegen_flags: <defaults>
</compile_context>

<pallas_src>
import functools

import jax
import jax.numpy as jnp
from jax import lax
from jax.experimental import pallas as pl
from jax.experimental.pallas import tpu as pltpu


def _siren_kernel(x_ref, wr_ref, br_ref,
                  w1_ref, b1_ref, w2_ref, b2_ref, w3_ref, b3_ref,
                  w4_ref, b4_ref, o_ref, *, n_chunks, dot_dtype, bf16_sin):
    # Loop-invariant weight loads, hoisted once per grid step. Biases are kept
    # (H, 1) and broadcast implicitly in the epilogue (no (H, tc) constants).
    wr = wr_ref[...]          # (H, 1) f32   root weight (Linear(1, H))
    br = br_ref[...]          # (H, 1) f32
    w1 = w1_ref[...]          # (H, H) dot_dtype (pre-cast in the wrapper)
    b1 = b1_ref[...]          # (H, 1) f32
    w2 = w2_ref[...]
    b2 = b2_ref[...]
    w3 = w3_ref[...]
    b3 = b3_ref[...]
    w4 = w4_ref[...]          # (1, H) dot_dtype
    b4 = b4_ref[...]          # (1, 1) f32

    sin_dtype = jnp.bfloat16 if bf16_sin else jnp.float32

    def sin_act(h):
        # sin is the saturating slot for small H; bf16 sin (v6e/v7x) roughly
        # doubles its throughput and halves the vreg footprint of `s`.
        return jnp.sin(h.astype(sin_dtype)).astype(dot_dtype)

    def chunk(c, carry):
        xc = x_ref[pl.ds(c, 1), :]                        # (1, tc) lane-dense
        # root Linear(1, H): K == 1 -> broadcasted scale + bias on the VPU.
        h = wr * xc + br                                  # (H, tc) f32
        for w, b in ((w1, b1), (w2, b2), (w3, b3)):
            h = jnp.dot(w, sin_act(h),
                        preferred_element_type=jnp.float32) + b
        oc = jnp.dot(w4, sin_act(h),
                     preferred_element_type=jnp.float32) + b4      # (1, tc)
        o_ref[pl.ds(c, 1), :] = oc.astype(o_ref.dtype)
        return carry

    # Bounded live set (vs. a tm-scaled static unroll) while keeping two
    # chunks in flight so MXU and VPU/EUP work overlap.
    lax.fori_loop(0, n_chunks, chunk, None, unroll=min(2, n_chunks))


def _bf16_sin_ok():
    """Enable bf16 sin only where the VPU/EUP supports bf16 (v6e / v7x)."""
    try:
        kind = jax.devices()[0].device_kind.lower()
    except Exception:
        return False
    return ("v6" in kind) or ("v7" in kind)


def siren_mlp_pallas(x, params, *, tm=8192, tc=256, use_bf16=True,
                     bf16_sin=None):
    """x: any array with N total elements (module passes (1, N)). Returns (N, 1)."""
    (wr, br), (w1, b1), (w2, b2), (w3, b3), (w4, b4) = params
    N = x.size
    H = wr.shape[0]

    dot_dtype = jnp.bfloat16 if use_bf16 else jnp.float32
    if bf16_sin is None:
        bf16_sin = bool(use_bf16) and _bf16_sin_ok()
    if use_bf16:
        # Pre-cast matmul operands once in the wrapper: halves resident weight
        # VMEM + the one-time DMA and removes per-step cast churn.
        w1, w2, w3, w4 = (w.astype(jnp.bfloat16) for w in (w1, w2, w3, w4))

    # Lane-aligned sizing. tm is the per-grid-step slab (amortizes ~0.35 us of
    # per-step overhead); for small N it is split so the grid has >= 2
    # "parallel" steps (both v7x TensorCores get work).
    n_lane = pl.cdiv(N, 128) * 128
    tm = max(128, (min(tm, n_lane) // 128) * 128)
    if n_lane // tm < 2 and n_lane >= 256:
        tm = pl.cdiv(n_lane, 256) * 128
    # Chunk width is fixed (decoupled from tm) to bound in-kernel live ranges.
    tc = max(128, (min(tc, tm) // 128) * 128)
    if tm % tc != 0:
        tc = 128
    n_chunks = tm // tc
    n_pad = pl.cdiv(n_lane, tm) * tm
    n_blocks = n_pad // tm

    x_flat = jnp.zeros((n_pad,), jnp.float32).at[:N].set(
        x.reshape(-1).astype(jnp.float32))
    x3 = x_flat.reshape(n_blocks, n_chunks, tc)

    kernel = functools.partial(_siren_kernel, n_chunks=n_chunks,
                               dot_dtype=dot_dtype, bf16_sin=bf16_sin)

    def full2(shape):
        # whole-array block, same block every grid step (weights stay resident)
        return pl.BlockSpec(shape, lambda i: (0, 0))

    weight_args = (wr, br, w1, b1, w2, b2, w3, b3, w4, b4)
    param_bytes = sum(int(a.size) * a.dtype.itemsize for a in weight_args)
    cost = pl.CostEstimate(
        flops=int(N * (6 * H * H + 4 * H)),
        transcendentals=int(N * 4 * H),
        bytes_accessed=int(8 * n_pad + param_bytes))

    out3 = pl.pallas_call(
        kernel,
        out_shape=jax.ShapeDtypeStruct((n_blocks, n_chunks, tc), jnp.float32),
        grid_spec=pltpu.PrefetchScalarGridSpec(
            num_scalar_prefetch=0,
            grid=(n_blocks,),
            in_specs=[
                pl.BlockSpec((None, n_chunks, tc), lambda i: (i, 0, 0)),
                *(full2(a.shape) for a in weight_args),
            ],
            out_specs=pl.BlockSpec((None, n_chunks, tc), lambda i: (i, 0, 0)),
        ),
        compiler_params=pltpu.CompilerParams(
            dimension_semantics=("parallel",)),          # megacore-shardable
        cost_estimate=cost,
    )(x3, *weight_args)
    return out3.reshape(-1)[:N].reshape(N, 1)


def init_params(key, hidden_size):
    """Deterministic synthetic init; weights (out, in), biases (out, 1) — PyTorch layout."""
    ks = jax.random.split(key, 10)

    def lin(kw, kb, fin, fout):
        bound = 1.0 / jnp.sqrt(fin)
        w = jax.random.uniform(kw, (fout, fin), jnp.float32, -bound, bound)
        b = jax.random.uniform(kb, (fout, 1), jnp.float32, -bound, bound)
        return w, b

    return (lin(ks[0], ks[1], 1, hidden_size),
            lin(ks[2], ks[3], hidden_size, hidden_size),
            lin(ks[4], ks[5], hidden_size, hidden_size),
            lin(ks[6], ks[7], hidden_size, hidden_size),
            lin(ks[8], ks[9], hidden_size, 1))


def siren_mlp_ref(x, params):
    (wr, br), *stem = params
    h = x.reshape(-1, 1).astype(jnp.float32)        # (N, 1)
    h = h @ wr.T + br.T                             # (N, H)
    for w, b in stem:
        h = jnp.sin(h) @ w.T + b.T
    return h                                        # (N, 1)


if __name__ == "__main__":
    # small shapes consistent with the module: input_size=256, hidden_size=128
    INPUT_SIZE, HIDDEN = 256, 128
    key = jax.random.PRNGKey(0)
    kx, kp = jax.random.split(key)
    x = jax.random.normal(kx, (1, INPUT_SIZE), jnp.float32)   # module's input_shape
    params = init_params(kp, HIDDEN)

    ref = siren_mlp_ref(x, params)

    # f32 path: tight check of kernel structure / layout flip.
    out_f32 = jax.block_until_ready(siren_mlp_pallas(x, params, use_bf16=False))
    assert out_f32.shape == (INPUT_SIZE, 1), out_f32.shape
    assert jnp.allclose(out_f32, ref, atol=1e-4, rtol=1e-4), \
        float(jnp.max(jnp.abs(out_f32 - ref)))

    # v5e-style path: bf16 matmul operands, f32 sin, f32 accumulation.
    out_v5e = jax.block_until_ready(
        siren_mlp_pallas(x, params, use_bf16=True, bf16_sin=False))
    assert out_v5e.shape == (INPUT_SIZE, 1), out_v5e.shape
    assert jnp.allclose(out_v5e, ref, atol=5e-2, rtol=5e-2), \
        float(jnp.max(jnp.abs(out_v5e - ref)))

    # v6e/v7x fast path: bf16 matmul operands and (where supported) bf16 sin.
    out_fast = jax.block_until_ready(siren_mlp_pallas(x, params, use_bf16=True))
    assert out_fast.shape == (INPUT_SIZE, 1), out_fast.shape
    assert jnp.allclose(out_fast, ref, atol=1e-1, rtol=1e-1), \
        float(jnp.max(jnp.abs(out_fast - ref)))

    print("KERNEL_OK")
</pallas_src>

<mosaic_0001>
module attributes {stable_mosaic.version = 11 : i64} {
  func.func @_siren_kernel(%arg0: i32, %arg1: memref<1x1x128xf32, #tpu.memory_space<vmem>>, %arg2: memref<128x1xf32, #tpu.memory_space<vmem>>, %arg3: memref<128x1xf32, #tpu.memory_space<vmem>>, %arg4: memref<128x128xf32, #tpu.memory_space<vmem>>, %arg5: memref<128x1xf32, #tpu.memory_space<vmem>>, %arg6: memref<128x128xf32, #tpu.memory_space<vmem>>, %arg7: memref<128x1xf32, #tpu.memory_space<vmem>>, %arg8: memref<128x128xf32, #tpu.memory_space<vmem>>, %arg9: memref<128x1xf32, #tpu.memory_space<vmem>>, %arg10: memref<1x128xf32, #tpu.memory_space<vmem>>, %arg11: memref<1x1xf32, #tpu.memory_space<vmem>>, %arg12: memref<1x1x128xf32, #tpu.memory_space<vmem>>) attributes {dimension_semantics = [#tpu.dimension_semantics<parallel>], iteration_bounds = array<i64: 2>, scalar_prefetch = 0 : i64, scratch_operands = 0 : i64, tpu.core_type = #tpu.core_type<tc>, window_params = [{transform_indices = @transform_0, window_bounds = array<i64: 1, 1, 128>}, {pipeline_mode = #tpu.pipeline_mode<synchronous>, transform_indices = @transform_1, window_bounds = array<i64: 128, 1>}, {pipeline_mode = #tpu.pipeline_mode<synchronous>, transform_indices = @transform_2, window_bounds = array<i64: 128, 1>}, {pipeline_mode = #tpu.pipeline_mode<synchronous>, transform_indices = @transform_3, window_bounds = array<i64: 128, 128>}, {pipeline_mode = #tpu.pipeline_mode<synchronous>, transform_indices = @transform_4, window_bounds = array<i64: 128, 1>}, {pipeline_mode = #tpu.pipeline_mode<synchronous>, transform_indices = @transform_5, window_bounds = array<i64: 128, 128>}, {pipeline_mode = #tpu.pipeline_mode<synchronous>, transform_indices = @transform_6, window_bounds = array<i64: 128, 1>}, {pipeline_mode = #tpu.pipeline_mode<synchronous>, transform_indices = @transform_7, window_bounds = array<i64: 128, 128>}, {pipeline_mode = #tpu.pipeline_mode<synchronous>, transform_indices = @transform_8, window_bounds = array<i64: 128, 1>}, {pipeline_mode = #tpu.pipeline_mode<synchronous>, transform_indices = @transform_9, window_bounds = array<i64: 1, 128>}, {pipeline_mode = #tpu.pipeline_mode<synchronous>, transform_indices = @transform_10, window_bounds = array<i64: 1, 1>}, {transform_indices = @transform_11, window_bounds = array<i64: 1, 1, 128>}]} {
    %c0 = arith.constant 0 : index
    %c0_0 = arith.constant 0 : index
    %0 = vector.load %arg2[%c0, %c0_0] : memref<128x1xf32, #tpu.memory_space<vmem>>, vector<128x1xf32>
    %c0_1 = arith.constant 0 : index
    %c0_2 = arith.constant 0 : index
    %1 = vector.load %arg3[%c0_1, %c0_2] : memref<128x1xf32, #tpu.memory_space<vmem>>, vector<128x1xf32>
    %c0_3 = arith.constant 0 : index
    %c0_4 = arith.constant 0 : index
    %2 = vector.load %arg4[%c0_3, %c0_4] : memref<128x128xf32, #tpu.memory_space<vmem>>, vector<128x128xf32>
    %c0_5 = arith.constant 0 : index
    %c0_6 = arith.constant 0 : index
    %3 = vector.load %arg5[%c0_5, %c0_6] : memref<128x1xf32, #tpu.memory_space<vmem>>, vector<128x1xf32>
    %c0_7 = arith.constant 0 : index
    %c0_8 = arith.constant 0 : index
    %4 = vector.load %arg6[%c0_7, %c0_8] : memref<128x128xf32, #tpu.memory_space<vmem>>, vector<128x128xf32>
    %c0_9 = arith.constant 0 : index
    %c0_10 = arith.constant 0 : index
    %5 = vector.load %arg7[%c0_9, %c0_10] : memref<128x1xf32, #tpu.memory_space<vmem>>, vector<128x1xf32>
    %c0_11 = arith.constant 0 : index
    %c0_12 = arith.constant 0 : index
    %6 = vector.load %arg8[%c0_11, %c0_12] : memref<128x128xf32, #tpu.memory_space<vmem>>, vector<128x128xf32>
    %c0_13 = arith.constant 0 : index
    %c0_14 = arith.constant 0 : index
    %7 = vector.load %arg9[%c0_13, %c0_14] : memref<128x1xf32, #tpu.memory_space<vmem>>, vector<128x1xf32>
    %c0_15 = arith.constant 0 : index
    %c0_16 = arith.constant 0 : index
    %8 = vector.load %arg10[%c0_15, %c0_16] : memref<1x128xf32, #tpu.memory_space<vmem>>, vector<1x128xf32>
    %c0_17 = arith.constant 0 : index
    %c0_18 = arith.constant 0 : index
    %9 = vector.load %arg11[%c0_17, %c0_18] : memref<1x1xf32, #tpu.memory_space<vmem>>, vector<1x1xf32>
    %c0_i32 = arith.constant 0 : i32
    %c0_19 = arith.constant 0 : index
    %10 = arith.index_cast %c0_i32 : i32 to index
    %c0_20 = arith.constant 0 : index
    %11 = vector.load %arg1[%c0_19, %10, %c0_20] : memref<1x1x128xf32, #tpu.memory_space<vmem>>, vector<1x1x128xf32>
    %12 = vector.shape_cast %11 : vector<1x1x128xf32> to vector<1x128xf32>
    %13 = vector.broadcast %0 : vector<128x1xf32> to vector<128x128xf32>
    %14 = vector.broadcast %12 : vector<1x128xf32> to vector<128x128xf32>
    %15 = arith.mulf %13, %14 : vector<128x128xf32>
    %16 = vector.broadcast %1 : vector<128x1xf32> to vector<128x128xf32>
    %17 = arith.addf %15, %16 : vector<128x128xf32>
    %18 = math.sin %17 : vector<128x128xf32>
    %cst = arith.constant dense<0.000000e+00> : vector<128x128xf32>
    %19 = tpu.matmul %2, %18, %cst {dimension_numbers = #tpu.dot_dimension_numbers<[1], [0], [0], [1], [0, 0, 1, 1], [], []>} : vector<128x128xf32>, vector<128x128xf32>, vector<128x128xf32> -> vector<128x128xf32>
    %20 = vector.broadcast %3 : vector<128x1xf32> to vector<128x128xf32>
    %21 = arith.addf %19, %20 : vector<128x128xf32>
    %22 = math.sin %21 : vector<128x128xf32>
    %cst_21 = arith.constant dense<0.000000e+00> : vector<128x128xf32>
    %23 = tpu.matmul %4, %22, %cst_21 {dimension_numbers = #tpu.dot_dimension_numbers<[1], [0], [0], [1], [0, 0, 1, 1], [], []>} : vector<128x128xf32>, vector<128x128xf32>, vector<128x128xf32> -> vector<128x128xf32>
    %24 = vector.broadcast %5 : vector<128x1xf32> to vector<128x128xf32>
    %25 = arith.addf %23, %24 : vector<128x128xf32>
    %26 = math.sin %25 : vector<128x128xf32>
    %cst_22 = arith.constant dense<0.000000e+00> : vector<128x128xf32>
    %27 = tpu.matmul %6, %26, %cst_22 {dimension_numbers = #tpu.dot_dimension_numbers<[1], [0], [0], [1], [0, 0, 1, 1], [], []>} : vector<128x128xf32>, vector<128x128xf32>, vector<128x128xf32> -> vector<128x128xf32>
    %28 = vector.broadcast %7 : vector<128x1xf32> to vector<128x128xf32>
    %29 = arith.addf %27, %28 : vector<128x128xf32>
    %30 = math.sin %29 : vector<128x128xf32>
    %cst_23 = arith.constant dense<0.000000e+00> : vector<1x128xf32>
    %31 = tpu.matmul %8, %30, %cst_23 {dimension_numbers = #tpu.dot_dimension_numbers<[1], [0], [0], [1], [0, 0, 1, 1], [], []>} : vector<1x128xf32>, vector<128x128xf32>, vector<1x128xf32> -> vector<1x128xf32>
    %32 = vector.broadcast %9 : vector<1x1xf32> to vector<1x128xf32>
    %33 = arith.addf %31, %32 : vector<1x128xf32>
    %c0_24 = arith.constant 0 : index
    %34 = arith.index_cast %c0_i32 : i32 to index
    %c0_25 = arith.constant 0 : index
    %35 = vector.load %arg12[%c0_24, %34, %c0_25] : memref<1x1x128xf32, #tpu.memory_space<vmem>>, vector<1x1x128xf32>
    %36 = vector.shape_cast %35 : vector<1x1x128xf32> to vector<1x128xf32>
    %37 = vector.shape_cast %33 : vector<1x128xf32> to vector<1x1x128xf32>
    tpu.vector_store %arg12[%c0_24, %34, %c0_25], %37 {strides = array<i32>} : memref<1x1x128xf32, #tpu.memory_space<vmem>>, vector<1x1x128xf32>,
    %c1_i32 = arith.constant 1 : i32
    return
  }
  func.func @transform_0(%arg0: i32) -> (i32, i32, i32) {
    %c0_i32 = arith.constant 0 : i32
    %c0_i32_0 = arith.constant 0 : i32
    %c0_i32_1 = arith.constant 0 : i32
    return %arg0, %c0_i32, %c0_i32_0 : i32, i32, i32
  }
  func.func @transform_1(%arg0: i32) -> (i32, i32) {
    %c0_i32 = arith.constant 0 : i32
    %c0_i32_0 = arith.constant 0 : i32
    %c0_i32_1 = arith.constant 0 : i32
    return %c0_i32, %c0_i32_0 : i32, i32
  }
  func.func @transform_2(%arg0: i32) -> (i32, i32) {
    %c0_i32 = arith.constant 0 : i32
    %c0_i32_0 = arith.constant 0 : i32
    %c0_i32_1 = arith.constant 0 : i32
    return %c0_i32, %c0_i32_0 : i32, i32
  }
  func.func @transform_3(%arg0: i32) -> (i32, i32) {
    %c0_i32 = arith.constant 0 : i32
    %c0_i32_0 = arith.constant 0 : i32
    %c0_i32_1 = arith.constant 0 : i32
    return %c0_i32, %c0_i32_0 : i32, i32
  }
  func.func @transform_4(%arg0: i32) -> (i32, i32) {
    %c0_i32 = arith.constant 0 : i32
    %c0_i32_0 = arith.constant 0 : i32
    %c0_i32_1 = arith.constant 0 : i32
    return %c0_i32, %c0_i32_0 : i32, i32
  }
  func.func @transform_5(%arg0: i32) -> (i32, i32) {
    %c0_i32 = arith.constant 0 : i32
    %c0_i32_0 = arith.constant 0 : i32
    %c0_i32_1 = arith.constant 0 : i32
    return %c0_i32, %c0_i32_0 : i32, i32
  }
  func.func @transform_6(%arg0: i32) -> (i32, i32) {
    %c0_i32 = arith.constant 0 : i32
    %c0_i32_0 = arith.constant 0 : i32
    %c0_i32_1 = arith.constant 0 : i32
    return %c0_i32, %c0_i32_0 : i32, i32
  }
  func.func @transform_7(%arg0: i32) -> (i32, i32) {
    %c0_i32 = arith.constant 0 : i32
    %c0_i32_0 = arith.constant 0 : i32
    %c0_i32_1 = arith.constant 0 : i32
    return %c0_i32, %c0_i32_0 : i32, i32
  }
  func.func @transform_8(%arg0: i32) -> (i32, i32) {
    %c0_i32 = arith.constant 0 : i32
    %c0_i32_0 = arith.constant 0 : i32
    %c0_i32_1 = arith.constant 0 : i32
    return %c0_i32, %c0_i32_0 : i32, i32
  }
  func.func @transform_9(%arg0: i32) -> (i32, i32) {
    %c0_i32 = arith.constant 0 : i32
    %c0_i32_0 = arith.constant 0 : i32
    %c0_i32_1 = arith.constant 0 : i32
    return %c0_i32, %c0_i32_0 : i32, i32
  }
  func.func @transform_10(%arg0: i32) -> (i32, i32) {
    %c0_i32 = arith.constant 0 : i32
    %c0_i32_0 = arith.constant 0 : i32
    %c0_i32_1 = arith.constant 0 : i32
    return %c0_i32, %c0_i32_0 : i32, i32
  }
  func.func @transform_11(%arg0: i32) -> (i32, i32, i32) {
    %c0_i32 = arith.constant 0 : i32
    %c0_i32_0 = arith.constant 0 : i32
    %c0_i32_1 = arith.constant 0 : i32
    return %arg0, %c0_i32, %c0_i32_0 : i32, i32, i32
  }
}

</mosaic_0001>

<bundles_post_ra>
// kernel: tpu_custom_call.1
= control target key start
LH: loop header
LB: loop body
LE: loop exit
PB: predicated region body
PF: predicated region fallthrough
CT: control target
= control target key end

     0   :  { %s16028_s0 = inlined_call_operand.vmem [shape: f32[2,1,128], index: 0, kind: input, shape index: {}]   ;;  %s16029_s1 = inlined_call_operand.vmem [shape: f32[128,1], index: 1, kind: input, shape index: {}]   ;;  %s16030_s2 = inlined_call_operand.vmem [shape: f32[128,1], index: 2, kind: input, shape index: {}]   ;;  %s16031_s3 = inlined_call_operand.vmem [shape: f32[128,128], index: 3, kind: input, shape index: {}]   ;;  %s16032_s4 = inlined_call_operand.vmem [shape: f32[128,1], index: 4, kind: input, shape index: {}]   ;;  %s16033_s5 = inlined_call_operand.vmem [shape: f32[128,128], index: 5, kind: input, shape index: {}]   ;;  %s16034_s6 = inlined_call_operand.vmem [shape: f32[128,1], index: 6, kind: input, shape index: {}]   ;;  %s16035_s7 = inlined_call_operand.vmem [shape: f32[128,128], index: 7, kind: input, shape index: {}]   ;;  %s16036_s8 = inlined_call_operand.vmem [shape: f32[128,1], index: 8, kind: input, shape index: {}]   ;;  %s16037_s9 = inlined_call_operand.vmem [shape: f32[1,128], index: 9, kind: input, shape index: {}]   ;;  %s16038_s10 = inlined_call_operand.<no memory space> [shape: f32[1,1], index: 10, kind: input, shape index: {}]   ;;  %s16039_s11 = inlined_call_operand.hbm [shape: f32[2,1,128], index: 11, kind: output, shape index: {}]  }
   0x1   :  { %v16_v0 = vstv %s16038_s10 }
   0x2   :  { %17 = vst [vmem:[#allocation2] sm:$0x1] %v16_v0 }
   0x3   :  { %18 = vsyncpa [#allocation4], 0 }
   0x4   :  { %20 = vsyncpa [#allocation4 + $0x1], 0  ;;  %s9587_s19 = smov 0   ;;  %s9589_s20 = smov 0  }
   0x5   :  { %s9591_s21 = smov 0   ;;  %s9593_s22 = smov 0  }
   0x6 LB: > { %s9608_s10 = sadd.s32 4294967295, %s9511_s22   ;;  %s8185_s23 = sadd.s32 4294967294, %s9511_s22   ;;  %s9511_s22 = sphi %s9593_s22, %s16963_s22   ;;  %s9507_s21 = sphi %s9591_s21, %s16962_s21   ;;  %s9503_s20 = sphi %s9589_s20, %s16961_s20   ;;  %s9499_s19 = sphi %s9587_s19, %s16960_s19  }
   0x7   : > { %s9612_s24 = sadd.s32 1, %s9511_s22   ;;  %s269_s25 = sadd.s32 1, %s9507_s21 }
   0x8   : > { %s266_s26 = ssub.s32 %s9511_s22, %s9612_s24  ;;  %p279_p0 = scmp.ne.s32.totalorder %s9507_s21, %s9503_s20 }
   0x9   : > { %p267_p1 = scmp.eq.s32.totalorder %s266_s26, 0  ;;  %p280_p2 = scmp.eq.s32.totalorder %s9608_s10, 1 }
   0xa   : > { %p285_p3 = scmp.ne.s32.totalorder %s9503_s20, %s9499_s19  ;;  %p286_p4 = scmp.eq.s32.totalorder %s8185_s23, 1 }
   0xb   : > { %s9623_s27 = scalar_select %p267_p1, %s9507_s21, %s269_s25  }
   0xc   : > { %p9625_p5 = por %p280_p2, %p279_p0  ;;  %p9629_p6 = por %p286_p4, %p285_p3 }
   0xd   : > { %p8188_p7 = scmp.ge.s32.totalorder %s9511_s22, 1  ;;  %p340_p8 = scmp.lt.s32.totalorder %s9511_s22, 3 }
   0xf   : > { %p341_p9 = pnand %p8188_p7, %p340_p8 }
  0x11   : > { %344 = sbr.rel (%p341_p9) target bundleno = 2728 (0xaa8), region = 64 }
  0x18   : > { %v396_v1 = vld [vmem:[%s16030_s2] sm:$0xff]  ;;  %v9513_v3 = vmov 0   ;;  %v397_v4 = vld [vmem:[%s16030_s2 + $0x8] sm:$0xff]  ;;  %v383_v6 = vld [vmem:[%s16029_s1 + $0x18] sm:$0xff]  ;;  %p377_p10 = scmp.lt.s32.totalorder %s9608_s10, 1  ;;  %s375_s30 = sand.u32 1, %s9503_s20  }
  0x19   : > { %v380_v2 = vld [vmem:[%s16029_s1] sm:$0xff]  ;;  %9191 = vset.pattern.permute.xlu1 %v9513_v3  ;;  %9190 = vset.pattern.permute.xlu0 %v9513_v3  ;;  %v381_v5 = vld [vmem:[%s16029_s1 + $0x8] sm:$0xff]  ;;  %v382_v7 = vld [vmem:[%s16029_s1 + $0x10] sm:$0xff]  ;;  %s376_s12 = scalar_lea.vmem [#allocation3], %s375_s30  ;;  %s8121_s23 = scalar_lea.sflag [#allocation4], %s375_s30 }
  0x1a   : > { %615 = vperm.xlu1 %9191, %v396_v1   ;;  %513 = vperm.xlu0 %9190, %v380_v2   ;;  %v399_v8 = vld [vmem:[%s16030_s2 + $0x18] sm:$0xff]  ;;  %v398_v9 = vld [vmem:[%s16030_s2 + $0x10] sm:$0xff]  ;;  %v385_v10 = vld [vmem:[%s16029_s1 + $0x28] sm:$0xff]  ;;  %s378_s18 = scalar_select %p377_p10, %s9608_s10, 1 }
  0x1b   : > { %v384_v11 = vld [vmem:[%s16029_s1 + $0x20] sm:$0xff]  ;;  %v401_v12 = vld [vmem:[%s16030_s2 + $0x28] sm:$0xff]  ;;  %v387_v14 = vld [vmem:[%s16029_s1 + $0x38] sm:$0xff]  ;;  %s8133_s13 = sshll.u32 %s376_s12, 4  ;;  %s15988_s13 = int_to_ptr.vmem [resolvable:$true] %s8133_s13 }
  0x1c   : > { %v400_v13 = vld [vmem:[%s16030_s2 + $0x20] sm:$0xff]  ;;  %v386_v15 = vld [vmem:[%s16029_s1 + $0x30] sm:$0xff]  ;;  %v403_v16 = vld [vmem:[%s16030_s2 + $0x38] sm:$0xff]  ;;  %s9838_s14 = scalar_lea.vmem %s16028_s0, %s378_s18  ;;  %s9449_s25 = scalar_lea.vmem %s15988_s13, 16 }
  0x1d   : > { %v402_v17 = vld [vmem:[%s16030_s2 + $0x30] sm:$0xff]  ;;  %v389_v18 = vld [vmem:[%s16029_s1 + $0x48] sm:$0xff]  ;;  %v388_v19 = vld [vmem:[%s16029_s1 + $0x40] sm:$0xff]  ;;  %p9450_p11 = scmp.ne.s32.totalorder %s15988_s13, %s9449_s25 }
  0x1e   : > { %620 = vperm.xlu1 %9191, %v397_v4   ;;  %518 = vperm.xlu0 %9190, %v381_v5   ;;  %v405_v20 = vld [vmem:[%s16030_s2 + $0x48] sm:$0xff]  ;;  %v404_v21 = vld [vmem:[%s16030_s2 + $0x40] sm:$0xff]  ;;  %v391_v22 = vld [vmem:[%s16029_s1 + $0x58] sm:$0xff] }
  0x1f   : > { %v390_v23 = vld [vmem:[%s16029_s1 + $0x50] sm:$0xff]  ;;  %v407_v24 = vld [vmem:[%s16030_s2 + $0x58] sm:$0xff]  ;;  %v393_v26 = vld [vmem:[%s16029_s1 + $0x68] sm:$0xff]  ;;  %p9451_p12 = pnand %p9450_p11, %p9625_p5 }
  0x20   : > { %v406_v25 = vld [vmem:[%s16030_s2 + $0x50] sm:$0xff]  ;;  %v392_v27 = vld [vmem:[%s16029_s1 + $0x60] sm:$0xff]  ;;  %v409_v28 = vld [vmem:[%s16030_s2 + $0x68] sm:$0xff] }
  0x21   : > { %v408_v29 = vld [vmem:[%s16030_s2 + $0x60] sm:$0xff]  ;;  %v395_v30 = vld [vmem:[%s16029_s1 + $0x78] sm:$0xff]  ;;  %v394_v31 = vld [vmem:[%s16029_s1 + $0x70] sm:$0xff]  ;;  %p9452_p13 = pneg %p9451_p12 }
  0x22   : > { %528 = vperm.xlu1 %9191, %v383_v6   ;;  %523 = vperm.xlu0 %9190, %v382_v7   ;;  %v411_v32 = vld [vmem:[%s16030_s2 + $0x78] sm:$0xff]  ;;  %v410_v33 = vld [vmem:[%s16030_s2 + $0x70] sm:$0xff]  ;;  %v429_v34 = vld [vmem:[%s16032_s4 + $0x8] sm:$0xff] }
  0x23   : > { %v428_v35 = vld [vmem:[%s16032_s4] sm:$0xff]  ;;  %v431_v36 = vld [vmem:[%s16032_s4 + $0x18] sm:$0xff]  ;;  %v430_v37 = vld [vmem:[%s16032_s4 + $0x10] sm:$0xff] }
  0x24   : > { %v433_v38 = vld [vmem:[%s16032_s4 + $0x28] sm:$0xff]  ;;  %v432_v39 = vld [vmem:[%s16032_s4 + $0x20] sm:$0xff]  ;;  %v435_v40 = vld [vmem:[%s16032_s4 + $0x38] sm:$0xff] }
  0x25   : > { %v434_v41 = vld [vmem:[%s16032_s4 + $0x30] sm:$0xff]  ;;  %v437_v42 = vld [vmem:[%s16032_s4 + $0x48] sm:$0xff]  ;;  %v436_v43 = vld [vmem:[%s16032_s4 + $0x40] sm:$0xff] }
  0x26   : > { %630 = vperm.xlu1 %9191, %v399_v8   ;;  %625 = vperm.xlu0 %9190, %v398_v9   ;;  %v439_v44 = vld [vmem:[%s16032_s4 + $0x58] sm:$0xff]  ;;  %v438_v45 = vld [vmem:[%s16032_s4 + $0x50] sm:$0xff]  ;;  %v441_v46 = vld [vmem:[%s16032_s4 + $0x68] sm:$0xff] }
  0x27   : > { %v440_v47 = vld [vmem:[%s16032_s4 + $0x60] sm:$0xff]  ;;  %v443_v48 = vld [vmem:[%s16032_s4 + $0x78] sm:$0xff]  ;;  %v442_v49 = vld [vmem:[%s16032_s4 + $0x70] sm:$0xff] }
  0x28   : > { %v461_v50 = vld [vmem:[%s16034_s6 + $0x8] sm:$0xff]  ;;  %v460_v51 = vld [vmem:[%s16034_s6] sm:$0xff]  ;;  %v463_v52 = vld [vmem:[%s16034_s6 + $0x18] sm:$0xff] }
  0x29   : > { %v462_v53 = vld [vmem:[%s16034_s6 + $0x10] sm:$0xff]  ;;  %v465_v54 = vld [vmem:[%s16034_s6 + $0x28] sm:$0xff]  ;;  %v464_v55 = vld [vmem:[%s16034_s6 + $0x20] sm:$0xff] }
  0x2a   : > { %538 = vperm.xlu1 %9191, %v385_v10   ;;  %533 = vperm.xlu0 %9190, %v384_v11   ;;  %v467_v56 = vld [vmem:[%s16034_s6 + $0x38] sm:$0xff]  ;;  %v466_v57 = vld [vmem:[%s16034_s6 + $0x30] sm:$0xff]  ;;  %v469_v58 = vld [vmem:[%s16034_s6 + $0x48] sm:$0xff] }
  0x2b   : > { %v468_v59 = vld [vmem:[%s16034_s6 + $0x40] sm:$0xff]  ;;  %v471_v60 = vld [vmem:[%s16034_s6 + $0x58] sm:$0xff]  ;;  %v470_v61 = vld [vmem:[%s16034_s6 + $0x50] sm:$0xff] }
  0x2c   : > { %v473_v62 = vld [vmem:[%s16034_s6 + $0x68] sm:$0xff]  ;;  %v472_v63 = vld [vmem:[%s16034_s6 + $0x60] sm:$0xff]  ;;  %v475_v0 = vld [vmem:[%s16034_s6 + $0x78] sm:$0xff] }
  0x2d   : > { %v474_v1 = vld [vmem:[%s16034_s6 + $0x70] sm:$0xff]  ;;  %v493_v2 = vld [vmem:[%s16036_s8 + $0x8] sm:$0xff]  ;;  %v492_v3 = vld [vmem:[%s16036_s8] sm:$0xff] }
  0x2e   : > { %640 = vperm.xlu1 %9191, %v401_v12   ;;  %635 = vperm.xlu0 %9190, %v400_v13   ;;  %v495_v6 = vld [vmem:[%s16036_s8 + $0x18] sm:$0xff]  ;;  %v494_v7 = vld [vmem:[%s16036_s8 + $0x10] sm:$0xff]  ;;  %v9847_v8 = vld [vmem:[%s9838_s14] ss:$0 sm:$0xff] }
  0x2f   : > { %v497_v11 = vld [vmem:[%s16036_s8 + $0x28] sm:$0xff]  ;;  %v496_v12 = vld [vmem:[%s16036_s8 + $0x20] sm:$0xff] }
  0x32   : > { %548 = vperm.xlu1 %9191, %v387_v14   ;;  %543 = vperm.xlu0 %9190, %v386_v15  }
  0x36   : > { %650 = vperm.xlu1 %9191, %v403_v16   ;;  %645 = vperm.xlu0 %9190, %v402_v17   ;;  %v499_v16 = vld [vmem:[%s16036_s8 + $0x38] sm:$0xff]  ;;  %v498_v17 = vld [vmem:[%s16036_s8 + $0x30] sm:$0xff] }
  0x3a   : > { %558 = vperm.xlu1 %9191, %v389_v18   ;;  %553 = vperm.xlu0 %9190, %v388_v19  }
  0x3e   : > { %660 = vperm.xlu1 %9191, %v405_v20   ;;  %655 = vperm.xlu0 %9190, %v404_v21  }
  0x42   : > { %568 = vperm.xlu1 %9191, %v391_v22   ;;  %563 = vperm.xlu0 %9190, %v390_v23  }
  0x46   : > { %670 = vperm.xlu1 %9191, %v407_v24   ;;  %665 = vperm.xlu0 %9190, %v406_v25   ;;  %v501_v25 = vld [vmem:[%s16036_s8 + $0x48] sm:$0xff] }
  0x4a   : > { %578 = vperm.xlu1 %9191, %v393_v26   ;;  %573 = vperm.xlu0 %9190, %v392_v27   ;;  %v500_v26 = vld [vmem:[%s16036_s8 + $0x40] sm:$0xff] }
  0x4e   : > { %680 = vperm.xlu1 %9191, %v409_v28   ;;  %675 = vperm.xlu0 %9190, %v408_v29  }
  0x52   : > { %588 = vperm.xlu1 %9191, %v395_v30   ;;  %583 = vperm.xlu0 %9190, %v394_v31  }
  0x56   : > { %690 = vperm.xlu1 %9191, %v411_v32   ;;  %685 = vperm.xlu0 %9190, %v410_v33   ;;  %v503_v33 = vld [vmem:[%s16036_s8 + $0x58] sm:$0xff] }
  0x5a   : > { %2380 = vperm.xlu1 %9191, %v429_v34   ;;  %2375 = vperm.xlu0 %9190, %v428_v35   ;;  %v502_v34 = vld [vmem:[%s16036_s8 + $0x50] sm:$0xff] }
  0x5e   : > { %2390 = vperm.xlu1 %9191, %v431_v36   ;;  %2385 = vperm.xlu0 %9190, %v430_v37  }
  0x62   : > { %2400 = vperm.xlu1 %9191, %v433_v38   ;;  %2395 = vperm.xlu0 %9190, %v432_v39  }
  0x66   : > { %2410 = vperm.xlu1 %9191, %v435_v40   ;;  %2405 = vperm.xlu0 %9190, %v434_v41   ;;  %v505_v41 = vld [vmem:[%s16036_s8 + $0x68] sm:$0xff] }
  0x6a   : > { %2420 = vperm.xlu1 %9191, %v437_v42   ;;  %2415 = vperm.xlu0 %9190, %v436_v43   ;;  %v504_v42 = vld [vmem:[%s16036_s8 + $0x60] sm:$0xff] }
  0x6e   : > { %2430 = vperm.xlu1 %9191, %v439_v44   ;;  %2425 = vperm.xlu0 %9190, %v438_v45  }
  0x72   : > { %2440 = vperm.xlu1 %9191, %v441_v46   ;;  %2435 = vperm.xlu0 %9190, %v440_v47  }
  0x76   : > { %2450 = vperm.xlu1 %9191, %v443_v48   ;;  %2445 = vperm.xlu0 %9190, %v442_v49  }
  0x7a   : > { %4269 = vperm.xlu1 %9191, %v461_v50   ;;  %4264 = vperm.xlu0 %9190, %v460_v51  }
  0x7e   : > { %4279 = vperm.xlu1 %9191, %v463_v52   ;;  %4274 = vperm.xlu0 %9190, %v462_v53   ;;  %v507_v52 = vld [vmem:[%s16036_s8 + $0x78] sm:$0xff]  ;;  %v506_v53 = vld [vmem:[%s16036_s8 + $0x70] sm:$0xff] }
  0x82   : > { %4289 = vperm.xlu1 %9191, %v465_v54   ;;  %4284 = vperm.xlu0 %9190, %v464_v55  }
  0x86   : > { %4299 = vperm.xlu1 %9191, %v467_v56   ;;  %4294 = vperm.xlu0 %9190, %v466_v57  }
  0x8a   : > { %4309 = vperm.xlu1 %9191, %v469_v58   ;;  %4304 = vperm.xlu0 %9190, %v468_v59  }
  0x8e   : > { %4319 = vperm.xlu1 %9191, %v471_v60   ;;  %4314 = vperm.xlu0 %9190, %v470_v61   ;;  %v16045_v61 = vmov 683565275  }
  0x92   : > { %4329 = vperm.xlu1 %9191, %v473_v62   ;;  %4324 = vperm.xlu0 %9190, %v472_v63  }
  0x96   : > { %4339 = vperm.xlu1 %9191, %v475_v0   ;;  %4334 = vperm.xlu0 %9190, %v474_v1   ;;  %v16047_v1 = vmov 2475754826  }
  0x99   : > { %v616_v4 = vpop.permute.xlu1 %615  ;;  %v514_v5 = vpop.permute.xlu0 %513 }
  0x9a   : > { %6158 = vperm.xlu1 %9191, %v493_v2   ;;  %6153 = vperm.xlu0 %9190, %v492_v3   ;;  %v597_v13 = vmul.f32 %v9847_v8, %v514_v5  ;;  %v16053_v3 = vmov 2131351028   ;;  %v16059_v5 = vmov 2102212464  }
  0x9c   : > { %v9862_v18 = vadd.f32 %v616_v4, %v597_v13 }
  0x9d   : > { %v621_v9 = vpop.permute.xlu1 %620  ;;  %v519_v10 = vpop.permute.xlu0 %518 }
  0x9e   : > { %6168 = vperm.xlu1 %9191, %v495_v6   ;;  %6163 = vperm.xlu0 %9190, %v494_v7   ;;  %v598_v20 = vmul.f32 %v9847_v8, %v519_v10  ;;  %v712_v27 = vand.u32 2139095040, %v9862_v18  ;;  %v16069_v7 = vmov 920167782   ;;  %v509_v10 = vld [vmem:[#allocation2] sm:$0x1] }
  0xa0   : > { %v9876_v28 = vadd.f32 %v621_v9, %v598_v20  ;;  %v713_v35 = vshrl.u32 %v712_v27, 23 }
  0xa1   : > { %v529_v14 = vpop.permute.xlu1 %528  ;;  %v524_v15 = vpop.permute.xlu0 %523 }
  0xa2   : > { %6178 = vperm.xlu1 %9191, %v497_v11   ;;  %6173 = vperm.xlu0 %9190, %v496_v12   ;;  %v600_v19 = vmul.f32 %v9847_v8, %v529_v14  ;;  %v599_v24 = vmul.f32 %v9847_v8, %v524_v15  ;;  %16354 = vst [vmem:[#allocation7_spill] sm:$0xff] %v9876_v28  ;;  %v816_v36 = vand.u32 2139095040, %v9876_v28  ;;  %v8190_v43 = vadd.s32 4294967169, %v713_v35 }
  0xa4   : > { %v817_v45 = vshrl.u32 %v816_v36, 23  ;;  %v9909_v56 = vadd.s32 1, %v8190_v43 }
  0xa5   : > { %v631_v21 = vpop.permute.xlu1 %630  ;;  %v626_v23 = vpop.permute.xlu0 %625 }
  0xa6   : > { %v9866_v22 = vadd.f32 %v631_v21, %v600_v19  ;;  %6188 = vperm.xlu1 %9191, %v499_v16   ;;  %6183 = vperm.xlu0 %9190, %v498_v17   ;;  %v9880_v31 = vadd.f32 %v626_v23, %v599_v24  ;;  %v9911_v57 = vadd.s32 4294967169, %v817_v45  ;;  %v16067_v17 = vmov 1326507024  }
  0xa7   : > { %vm720_vm6 = vcmp.gt.s32.totalorder %v9909_v56, 0 }
  0xa8   : > { %16353 = vst [vmem:[#allocation6_spill] sm:$0xff] %v9866_v22  ;;  %v16044_v29 = vand.u32 2147483647, %v9866_v22  ;;  %v1024_v30 = vand.u32 2139095040, %v9866_v22  ;;  %16355 = vst [vmem:[#allocation8_spill] sm:$0xff] %v9880_v31  ;;  %v920_v40 = vand.u32 2139095040, %v9880_v31 }
  0xa9   : > { %v16042_v39 = vand.u32 2147483647, %v9880_v31  ;;  %v539_v51 = vpop.permute.xlu1 %538  ;;  %v534_v14 = vpop.permute.xlu0 %533 }
  0xaa   : > { %6198 = vperm.xlu1 %9191, %v501_v25   ;;  %6193 = vperm.xlu0 %9190, %v500_v26   ;;  %v1025_v32 = vshrl.u32 %v1024_v30, 23  ;;  %v1028_v38 = vand.u32 8388607, %v16044_v29  ;;  %v921_v47 = vshrl.u32 %v920_v40, 23  ;;  %v602_v0 = vmul.f32 %v9847_v8, %v539_v51 }
  0xab   : > { %v9901_v48 = vand.u32 8388607, %v16042_v39 }
  0xac   : > { %v8202_v37 = vadd.s32 4294967169, %v1025_v32  ;;  %v1029_v46 = vor.u32 8388608, %v1028_v38  ;;  %v8198_v50 = vadd.s32 4294967169, %v921_v47 }
  0xad   : > { %v925_v59 = vor.u32 8388608, %v9901_v48  ;;  %v636_v43 = vpop.permute.xlu0 %635 }
  0xae   : > { %6208 = vperm.xlu1 %9191, %v503_v33   ;;  %6203 = vperm.xlu0 %9190, %v502_v34   ;;  %v1031_v44 = vadd.s32 1, %v8202_v37  ;;  %v9913_v58 = vshll.u32 %v1029_v46, 8  ;;  %v927_v63 = vadd.s32 1, %v8198_v50  ;;  %v601_v37 = vmul.f32 %v9847_v8, %v534_v14 }
  0xaf   : > { %v9935_v47 = vshll.u32 %v925_v59, 8 }
  0xb0   : > { %vm1032_vm0 = vcmp.gt.s32.totalorder %v1031_v44, 0  ;;  %vm928_vm3 = vcmp.gt.s32.totalorder %v927_v63, 0 }
  0xb1   : > { %v1033_v49 = vsel %vm1032_vm0, %v1031_v44, 0  ;;  %v929_v26 = vsel %vm928_vm3, %v927_v63, 0 }
  0xb2   : > { %6218 = vperm.xlu1 %9191, %v505_v41   ;;  %6213 = vperm.xlu0 %9190, %v504_v42   ;;  %v1034_v54 = vshrl.u32 %v1033_v49, 5  ;;  %v1035_v55 = vand.u32 31, %v1033_v49  ;;  %v931_v41 = vand.u32 31, %v929_v26  ;;  %v641_v42 = vpop.permute.xlu1 %640 }
  0xb4   : > { %v1036_v60 = vsub.s32 32, %v1035_v55  ;;  %v1038_v62 = vshll.u32 %v16045_v61, %v1035_v55  ;;  %v1041_v2 = vshll.u32 %v16047_v1, %v1035_v55  ;;  %v1044_v4 = vshll.u32 %v16053_v3, %v1035_v55 }
  0xb5   : > { %v1047_v6 = vshll.u32 %v16059_v5, %v1035_v55  ;;  %v1050_v9 = vshll.u32 %v16069_v7, %v1035_v55  ;;  %vm1053_vm1 = vcmp.lt.s32.totalorder %v1034_v54, 1  ;;  %vm1055_vm2 = vcmp.lt.s32.totalorder %v1034_v54, 3 }
  0xb6   : > { %6228 = vperm.xlu1 %9191, %v507_v52   ;;  %6223 = vperm.xlu0 %9190, %v506_v53   ;;  %v1039_v11 = vshrl.u32 %v16047_v1, %v1036_v60  ;;  %v1042_v12 = vshrl.u32 %v16053_v3, %v1036_v60  ;;  %v1045_v13 = vshrl.u32 %v16059_v5, %v1036_v60  ;;  %vm1056_vm4 = vcmp.lt.s32.totalorder %v1034_v54, 4 }
  0xb7   : > { %v1037_v15 = vshrl.u32 %v16045_v61, %v1036_v60  ;;  %v1048_v16 = vshrl.u32 %v16069_v7, %v1036_v60  ;;  %v1051_v19 = vshrl.u32 %v16067_v17, %v1036_v60  ;;  %vm1054_vm5 = vcmp.lt.s32.totalorder %v1034_v54, 2 }
  0xb8   : > { %v1040_v20 = vor.u32 %v1039_v11, %v1038_v62  ;;  %v1043_v21 = vor.u32 %v1042_v12, %v1041_v2  ;;  %v1046_v23 = vor.u32 %v1045_v13, %v1044_v4  ;;  %v930_v52 = vshrl.u32 %v929_v26, 5 }
  0xb9   : > { %v1049_v24 = vor.u32 %v1048_v16, %v1047_v6  ;;  %v1052_v25 = vor.u32 %v1051_v19, %v1050_v9  ;;  %v932_v53 = vsub.s32 32, %v931_v41  ;;  %v9946_v54 = vadd.f32 %v641_v42, %v602_v0 }
  0xba   : > { %8042 = vperm.xlu0 %9190, %v509_v10   ;;  %v1057_v27 = vsel %vm1053_vm1, %v1037_v15, %v1040_v20  ;;  %v1058_v30 = vsel %vm1056_vm4, %v1046_v23, 2102212464  ;;  %v1061_v32 = vsel %vm1053_vm1, %v1040_v20, %v1043_v21  ;;  %v1065_v33 = vsel %vm1053_vm1, %v1043_v21, %v1046_v23 }
  0xbb   : > { %v1059_v34 = vsel %vm1055_vm2, %v1043_v21, %v1058_v30  ;;  %v1062_v35 = vsel %vm1056_vm4, %v1049_v24, 920167782  ;;  %v1066_v36 = vsel %vm1056_vm4, %v1052_v25, 1326507024  ;;  %16356 = vst [vmem:[#allocation9_spill] sm:$0xff] %v9946_v54  ;;  %v9948_v55 = vadd.f32 %v636_v43, %v601_v37 }
  0xbc   : > { %v1063_v38 = vsel %vm1055_vm2, %v1046_v23, %v1062_v35  ;;  %v1067_v40 = vsel %vm1055_vm2, %v1049_v24, %v1066_v36  ;;  %v1060_v44 = vsel %vm1054_vm5, %v1057_v27, %v1059_v34  ;;  %v934_v59 = vshll.u32 %v16045_v61, %v931_v41 }
  0xbd   : > { %v1064_v45 = vsel %vm1054_vm5, %v1061_v32, %v1063_v38  ;;  %v1068_v46 = vsel %vm1054_vm5, %v1065_v33, %v1067_v40  ;;  %16357 = vst [vmem:[#allocation10_spill] sm:$0xff] %v9948_v55  ;;  %v1076_v60 = vmul.u32 %v9913_v58, %v1060_v44  ;;  %v937_v62 = vshll.u32 %v16047_v1, %v931_v41 }
  0xbe   : > { %v9938_v48 = vmul.u32.u64.low %v9913_v58, %v1068_v46  ;;  %v9939_v49 = vmul.u32.u64.high %v9913_v58, %v1068_v46, %v9938_v48  ;;  %v9942_v50 = vmul.u32.u64.low %v9913_v58, %v1064_v45  ;;  %v9943_v51 = vmul.u32.u64.high %v9913_v58, %v1064_v45, %v9942_v50 }
  0xbf   : > { %v940_v63 = vshll.u32 %v16053_v3, %v931_v41  ;;  %v935_v2 = vshrl.u32 %v16047_v1, %v932_v53  ;;  %v938_v4 = vshrl.u32 %v16053_v3, %v932_v53  ;;  %v941_v6 = vshrl.u32 %v16059_v5, %v932_v53 }
  0xc0   : > { %v943_v0 = vshll.u32 %v16059_v5, %v931_v41  ;;  %vm1078_vm7 = vc.u32 %v9939_v49, %v9942_v50  ;;  %v1079_v58 = vadd.s32 1, %v9943_v51  ;;  %v944_v9 = vshrl.u32 %v16069_v7, %v932_v53 }
  0xc1   : > { %v946_v10 = vshll.u32 %v16069_v7, %v931_v41  ;;  %v936_v11 = vor.u32 %v935_v2, %v934_v59  ;;  %v939_v12 = vor.u32 %v938_v4, %v937_v62  ;;  %v942_v13 = vor.u32 %v941_v6, %v940_v63 }
  0xc2   : > { %v947_v14 = vshrl.u32 %v16067_v17, %v932_v53  ;;  %v1080_v15 = vsel %vm1078_vm7, %v1079_v58, %v9943_v51  ;;  %v945_v16 = vor.u32 %v944_v9, %v943_v0  ;;  %vm949_vm8 = vcmp.lt.s32.totalorder %v930_v52, 1 }
  0xc3   : > { %vm952_vm9 = vcmp.lt.s32.totalorder %v930_v52, 4  ;;  %v1081_v19 = vadd.s32 %v1080_v15, %v1076_v60  ;;  %vm951_vm10 = vcmp.lt.s32.totalorder %v930_v52, 3  ;;  %v933_v23 = vshrl.u32 %v16045_v61, %v932_v53 }
  0xc4   : > { %v948_v20 = vor.u32 %v947_v14, %v946_v10  ;;  %v954_v21 = vsel %vm952_vm9, %v942_v13, 2102212464  ;;  %v957_v24 = vsel %vm949_vm8, %v936_v11, %v939_v12  ;;  %v958_v25 = vsel %vm952_vm9, %v945_v16, 920167782 }
  0xc5   : > { %v961_v26 = vsel %vm949_vm8, %v939_v12, %v942_v13  ;;  %v1082_v27 = vadd.s32 536870912, %v1081_v19  ;;  %vm950_vm11 = vcmp.lt.s32.totalorder %v930_v52, 2  ;;  %v959_v30 = vsel %vm951_vm10, %v942_v13, %v958_v25 }
  0xc6   : > { %v962_v32 = vsel %vm952_vm9, %v948_v20, 1326507024  ;;  %v953_v33 = vsel %vm949_vm8, %v933_v23, %v936_v11  ;;  %v955_v34 = vsel %vm951_vm10, %v939_v12, %v954_v21  ;;  %v960_v35 = vsel %vm950_vm11, %v957_v24, %v959_v30 }
  0xc7   : > { %v963_v36 = vsel %vm951_vm10, %v945_v16, %v962_v32  ;;  %v9967_v37 = vshrl.u32 %v1082_v27, 30  ;;  %v9970_v40 = vmul.u32.u64.low %v9935_v47, %v960_v35  ;;  %v9971_v41 = vmul.u32.u64.high %v9935_v47, %v960_v35, %v9970_v40 }
  0xc8   : > { %v964_v38 = vsel %vm950_vm11, %v961_v26, %v963_v36  ;;  %v1232_v44 = vand.u32 2139095040, %v9946_v54  ;;  %v956_v46 = vsel %vm950_vm11, %v953_v33, %v955_v34  ;;  %v1128_v48 = vand.u32 2139095040, %v9948_v55 }
  0xc9   : > { %16358 = vst [vmem:[#allocation11_spill] sm:$0xff] %v9967_v37  ;;  %v9975_v42 = vmul.u32.u64.low %v9935_v47, %v964_v38  ;;  %v9976_v43 = vmul.u32.u64.high %v9935_v47, %v964_v38, %v9975_v42  ;;  %v1084_v45 = vshll.u32 %v9967_v37, 30  ;;  %v721_v51 = vsel %vm720_vm6, %v9909_v56, 0 }
  0xca   : > { %v1233_v52 = vshrl.u32 %v1232_v44, 23  ;;  %v823_v53 = vadd.s32 1, %v9911_v57  ;;  %v975_v59 = vadd.s32 1, %v9971_v41  ;;  %v1129_v62 = vshrl.u32 %v1128_v48, 23 }
  0xcb   : > { %v9985_v60 = vsub.s32 %v1081_v19, %v1084_v45  ;;  %v972_v63 = vmul.u32 %v9935_v47, %v956_v46  ;;  %vm974_vm12 = vc.u32 %v9976_v43, %v9970_v40  ;;  %v9991_v4 = vand.u32 31, %v721_v51 }
  0xcc   : > { %v8210_v2 = vadd.s32 4294967169, %v1233_v52  ;;  %v976_v6 = vsel %vm974_vm12, %v975_v59, %v9971_v41  ;;  %v8206_v57 = vadd.s32 4294967169, %v1129_v62  ;;  %vm824_vm13 = vcmp.gt.s32.totalorder %v823_v53, 0 }
  0xcd   : > { %v1087_v56 = vsub.s32 0, %v9985_v60  ;;  %v977_v0 = vadd.s32 %v976_v6, %v972_v63  ;;  %v9996_v10 = vsub.s32 32, %v9991_v4  ;;  %v16041_v47 = vand.u32 2147483647, %v9946_v54 }
  0xce   : > { %v1239_v58 = vadd.s32 1, %v8210_v2  ;;  %v825_v12 = vsel %vm824_vm13, %v823_v53, 0  ;;  %v1135_v15 = vadd.s32 1, %v8206_v57  ;;  %v10002_v19 = vshrl.u32 %v721_v51, 5  ;;  %v549_v53 = vpop.permute.xlu1 %548 }
  0xcf   : > { %v978_v9 = vadd.s32 536870912, %v977_v0  ;;  %v8203_v13 = vmin.u32 %v1087_v56, %v9985_v60  ;;  %v735_v20 = vshll.u32 %v16059_v5, %v9991_v4  ;;  %v10008_v21 = vshll.u32 %v16069_v7, %v9991_v4 }
  0xd0   : > { %vm1240_vm14 = vcmp.gt.s32.totalorder %v1239_v58, 0  ;;  %v736_v24 = vshrl.u32 %v16069_v7, %v9996_v10  ;;  %v10014_v25 = vshrl.u32 %v16067_v17, %v9996_v10  ;;  %v10016_v26 = vshrl.u32 %v825_v12, 5 }
  0xd1   : > { %v1241_v11 = vsel %vm1240_vm14, %v1239_v58, 0  ;;  %v10000_v16 = vshrl.u32 %v978_v9, 30  ;;  %v1236_v27 = vand.u32 8388607, %v16041_v47  ;;  %v1089_v30 = vclz %v8203_v13 }
  0xd2   : > { %v1243_v14 = vand.u32 31, %v1241_v11  ;;  %v16040_v33 = vand.u32 2147483647, %v9948_v55  ;;  %vm1136_vm15 = vcmp.gt.s32.totalorder %v1135_v15, 0  ;;  %v1242_v46 = vshrl.u32 %v1241_v11, 5 }
  0xd3   : > { %16359 = vst [vmem:[#allocation12_spill] sm:$0xff] %v10000_v16  ;;  %v980_v34 = vshll.u32 %v10000_v16, 30  ;;  %v1137_v52 = vsel %vm1136_vm15, %v1135_v15, 0  ;;  %v10032_v6 = vor.u32 %v736_v24, %v735_v20  ;;  %v10034_v56 = vand.u32 31, %v825_v12 }
  0xd4   : > { %v1244_v23 = vsub.s32 32, %v1243_v14  ;;  %v1246_v35 = vshll.u32 %v16045_v61, %v1243_v14  ;;  %v1249_v36 = vshll.u32 %v16047_v1, %v1243_v14  ;;  %v1252_v41 = vshll.u32 %v16053_v3, %v1243_v14 }
  0xd5   : > { %v1255_v44 = vshll.u32 %v16059_v5, %v1243_v14  ;;  %v1258_v48 = vshll.u32 %v16069_v7, %v1243_v14  ;;  %16360 = vst [vmem:[#allocation13_spill] sm:$0xff] %v10034_v56  ;;  %v10036_v58 = vsub.s32 %v977_v0, %v980_v34  ;;  %v1237_v11 = vor.u32 8388608, %v1236_v27 }
  0xd6   : > { %v1247_v32 = vshrl.u32 %v16047_v1, %v1244_v23  ;;  %v1250_v38 = vshrl.u32 %v16053_v3, %v1244_v23  ;;  %v1253_v42 = vshrl.u32 %v16059_v5, %v1244_v23  ;;  %v1256_v45 = vshrl.u32 %v16069_v7, %v1244_v23 }
  0xd7   : > { %v1259_v51 = vshrl.u32 %v16067_v17, %v1244_v23  ;;  %v1132_v13 = vand.u32 8388607, %v16040_v33  ;;  %v604_v14 = vmul.f32 %v9847_v8, %v549_v53  ;;  %v8204_v15 = vadd.s32 4294967294, %v1089_v30 }
  0xd8   : > { %v1248_v59 = vor.u32 %v1247_v32, %v1246_v35  ;;  %v1251_v62 = vor.u32 %v1250_v38, %v1249_v36  ;;  %v1254_v63 = vor.u32 %v1253_v42, %v1252_v41  ;;  %v1257_v2 = vor.u32 %v1256_v45, %v1255_v44  ;;  %v651_v36 = vpop.permute.xlu1 %650 }
  0xd9   : > { %v1260_v57 = vor.u32 %v1259_v51, %v1258_v48  ;;  %vm1261_vm0 = vcmp.lt.s32.totalorder %v1242_v46, 1  ;;  %vm1264_vm1 = vcmp.lt.s32.totalorder %v1242_v46, 4  ;;  %v1139_v32 = vand.u32 31, %v1137_v52 }
  0xda   : > { %vm1263_vm2 = vcmp.lt.s32.totalorder %v1242_v46, 3  ;;  %v1269_v12 = vsel %vm1261_vm0, %v1248_v59, %v1251_v62  ;;  %v1270_v20 = vsel %vm1264_vm1, %v1257_v2, 920167782  ;;  %v1273_v0 = vsel %vm1261_vm0, %v1251_v62, %v1254_v63 }
  0xdb   : > { %v983_v24 = vsub.s32 0, %v10036_v58  ;;  %v1266_v34 = vsel %vm1264_vm1, %v1254_v63, 2102212464  ;;  %v1271_v27 = vsel %vm1263_vm2, %v1254_v63, %v1270_v20  ;;  %v1274_v35 = vsel %vm1264_vm1, %v1260_v57, 1326507024 }
  0xdc   : > { %v1245_v38 = vshrl.u32 %v16045_v61, %v1244_v23  ;;  %vm1262_vm3 = vcmp.lt.s32.totalorder %v1242_v46, 2  ;;  %v1275_v30 = vsel %vm1263_vm2, %v1257_v2, %v1274_v35  ;;  %v1277_v41 = vshll.u32 %v1237_v11, 8  ;;  %v559_v29 = vpop.permute.xlu1 %558 }
  0xdd   : > { %vm8205_vm4 = vcmp.lt.s32.totalorder %v8204_v15, 0  ;;  %v1272_v42 = vsel %vm1262_vm3, %v1269_v12, %v1271_v27  ;;  %v1276_v44 = vsel %vm1262_vm3, %v1273_v0, %v1275_v30  ;;  %v1140_v45 = vsub.s32 32, %v1139_v32 }
  0xde   : > { %v1265_v48 = vsel %vm1261_vm0, %v1245_v38, %v1248_v59  ;;  %v1267_v51 = vsel %vm1263_vm2, %v1251_v62, %v1266_v34  ;;  %v1133_v53 = vor.u32 8388608, %v1132_v13  ;;  %v10053_v63 = vadd.f32 %v651_v36, %v604_v14 }
  0xdf   : > { %v10056_v57 = vsub.s32 32, %v10034_v56  ;;  %v8199_v23 = vmin.u32 %v983_v24, %v10036_v58  ;;  %v10059_v2 = vmul.u32.u64.low %v1277_v41, %v1276_v44  ;;  %v10060_v11 = vmul.u32.u64.high %v1277_v41, %v1276_v44, %v10059_v2 }
  0xe0   : > { %16361 = vst [vmem:[#allocation14_spill] sm:$0xff] %v10053_v63  ;;  %v10064_v12 = vshll.u32 %v16059_v5, %v10034_v56  ;;  %v10066_v20 = vsel %vm8205_vm4, 0, %v8204_v15  ;;  %v10068_v59 = vmul.u32.u64.low %v1277_v41, %v1272_v42  ;;  %v10069_v0 = vmul.u32.u64.high %v1277_v41, %v1272_v42, %v10068_v59 }
  0xe1   : > { %16362 = vst [vmem:[#allocation15_spill] sm:$0xff] %v10056_v57  ;;  %v1077_v62 = vadd.s32 %v9942_v50, %v9939_v49  ;;  %v1268_v13 = vsel %vm1262_vm3, %v1265_v48, %v1267_v51  ;;  %v1143_v14 = vshrl.u32 %v16047_v1, %v1140_v45  ;;  %v1146_v24 = vshrl.u32 %v16053_v3, %v1140_v45 }
  0xe2   : > { %v10077_v34 = vshrl.u32 %v1137_v52, 5  ;;  %v1142_v27 = vshll.u32 %v16045_v61, %v1139_v32  ;;  %v10080_v35 = vshll.u32 %v1133_v53, 8  ;;  %v1440_v15 = vand.u32 2139095040, %v10053_v63 }
  0xe3   : > { %v1097_v36 = vsub.s32 4294967266, %v10066_v20  ;;  %v985_v38 = vclz %v8199_v23  ;;  %vm1286_vm5 = vc.u32 %v10060_v11, %v10068_v59  ;;  %v1145_v49 = vshll.u32 %v16047_v1, %v1139_v32 }
  0xe4   : > { %v1284_v50 = vmul.u32 %v1277_v41, %v1268_v13  ;;  %v1287_v46 = vadd.s32 1, %v10069_v0  ;;  %v1144_v30 = vor.u32 %v1143_v14, %v1142_v27  ;;  %v1148_v52 = vshll.u32 %v16053_v3, %v1139_v32 }
  0xe5   : > { %v1147_v42 = vor.u32 %v1146_v24, %v1145_v49  ;;  %v1149_v44 = vshrl.u32 %v16059_v5, %v1140_v45  ;;  %v1151_v48 = vshll.u32 %v16059_v5, %v1139_v32  ;;  %v1152_v51 = vshrl.u32 %v16069_v7, %v1140_v45 }
  0xe6   : > { %v1288_v53 = vsel %vm1286_vm5, %v1287_v46, %v10069_v0  ;;  %v1154_v23 = vshll.u32 %v16069_v7, %v1139_v32  ;;  %v1155_v2 = vshrl.u32 %v16067_v17, %v1140_v45  ;;  %v1441_v33 = vshrl.u32 %v1440_v15, 23 }
  0xe7   : > { %vm744_vm6 = vcmp.lt.s32.totalorder %v10002_v19, 4  ;;  %v1093_v41 = vsub.s32 32, %v10066_v20  ;;  %v1289_v13 = vadd.s32 %v1288_v53, %v1284_v50  ;;  %v1150_v14 = vor.u32 %v1149_v44, %v1148_v52 }
  0xe8   : > { %v1153_v24 = vor.u32 %v1152_v51, %v1151_v48  ;;  %v1098_v27 = vadd.s32 127, %v1097_v36  ;;  %v8200_v49 = vadd.s32 4294967294, %v985_v38  ;;  %v1156_v47 = vor.u32 %v1155_v2, %v1154_v23 }
  0xe9   : > { %vm1157_vm7 = vcmp.lt.s32.totalorder %v10077_v34, 1  ;;  %v1290_v39 = vadd.s32 536870912, %v1289_v13  ;;  %v1141_v0 = vshrl.u32 %v16045_v61, %v1140_v45  ;;  %vm1160_vm8 = vcmp.lt.s32.totalorder %v10077_v34, 4 }
  0xea   : > { %v1165_v32 = vsel %vm1157_vm7, %v1144_v30, %v1147_v42  ;;  %vm1158_vm9 = vcmp.lt.s32.totalorder %v10077_v34, 2  ;;  %vm1159_vm10 = vcmp.lt.s32.totalorder %v10077_v34, 3  ;;  %v1166_v15 = vsel %vm1160_vm8, %v1153_v24, 920167782 }
  0xeb   : > { %v1169_v36 = vsel %vm1157_vm7, %v1147_v42, %v1150_v14  ;;  %v10106_v38 = vshrl.u32 %v1290_v39, 30  ;;  %v1162_v50 = vsel %vm1160_vm8, %v1150_v14, 2102212464  ;;  %v1167_v46 = vsel %vm1159_vm10, %v1150_v14, %v1166_v15 }
  0xec   : > { %v1170_v52 = vsel %vm1160_vm8, %v1156_v47, 1326507024  ;;  %v1095_v44 = vshrl.u32 %v1077_v62, %v1093_v41  ;;  %v1099_v45 = vshll.u32 %v1098_v27, 23  ;;  %v1168_v48 = vsel %vm1158_vm9, %v1165_v32, %v1167_v46 }
  0xed   : > { %16363 = vst [vmem:[#allocation16_spill] sm:$0xff] %v10106_v38  ;;  %v1171_v51 = vsel %vm1159_vm10, %v1153_v24, %v1170_v52  ;;  %vm8201_vm11 = vcmp.lt.s32.totalorder %v8200_v49, 0  ;;  %v1292_v53 = vshll.u32 %v10106_v38, 30  ;;  %v1161_v23 = vsel %vm1157_vm7, %v1141_v0, %v1144_v30  ;;  %v544_v0 = vpop.permute.xlu0 %543 }
  0xee   : > { %v1172_v2 = vsel %vm1158_vm9, %v1169_v36, %v1171_v51  ;;  %v1163_v39 = vsel %vm1159_vm10, %v1147_v42, %v1162_v50  ;;  %v8218_v47 = vadd.s32 4294967169, %v1441_v33  ;;  %v1094_v62 = vshll.u32 %v9985_v60, %v10066_v20 }
  0xef   : > { %v10116_v9 = vmul.u32.u64.low %v10080_v35, %v1172_v2  ;;  %v10117_v14 = vmul.u32.u64.high %v10080_v35, %v1172_v2, %v10116_v9  ;;  %v10121_v41 = vsub.s32 %v1289_v13, %v1292_v53  ;;  %v10131_v30 = vsel %vm744_vm6, %v10032_v6, 920167782 }
  0xf0   : > { %v10124_v24 = vmul.u32.u64.low %v10080_v35, %v1168_v48  ;;  %v10125_v27 = vmul.u32.u64.high %v10080_v35, %v1168_v48, %v10124_v24  ;;  %v10135_v42 = vshll.u32 %v16069_v7, %v10034_v56  ;;  %v10137_v33 = vsel %vm8201_vm11, 0, %v8200_v49 }
  0xf1   : > { %v1447_v9 = vadd.s32 1, %v8218_v47  ;;  %v1096_v60 = vor.u32 %v1095_v44, %v1094_v62  ;;  %v1295_v20 = vsub.s32 0, %v10121_v41  ;;  %v1164_v13 = vsel %vm1158_vm9, %v1161_v23, %v1163_v39 }
  0xf2   : > { %v16043_v32 = vand.u32 2147483647, %v10053_v63  ;;  %v10145_v15 = vshrl.u32 %v16069_v7, %v10056_v57  ;;  %v1100_v36 = vor.u32 4788187, %v1099_v45  ;;  %vm1182_vm12 = vc.u32 %v10117_v14, %v10124_v24 }
  0xf3   : > { %vm1448_vm13 = vcmp.gt.s32.totalorder %v1447_v9, 0  ;;  %v993_v49 = vsub.s32 4294967266, %v10137_v33  ;;  %v8211_v50 = vmin.u32 %v1295_v20, %v10121_v41  ;;  %v1183_v46 = vadd.s32 1, %v10125_v27 }
  0xf4   : > { %v1449_v34 = vsel %vm1448_vm13, %v1447_v9, 0  ;;  %v973_v52 = vadd.s32 %v9970_v40, %v9976_v43  ;;  %v1180_v44 = vmul.u32 %v10080_v35, %v1164_v13  ;;  %v603_v48 = vmul.f32 %v9847_v8, %v544_v0 }
  0xf5   : > { %v1451_v51 = vand.u32 31, %v1449_v34  ;;  %v1103_v45 = vcvt.s32.f32 %v1096_v60  ;;  %v1297_v53 = vclz %v8211_v50  ;;  %v1184_v23 = vsel %vm1182_vm12, %v1183_v46, %v10125_v27  ;;  %v646_v50 = vpop.permute.xlu0 %645 }
  0xf6   : > { %v1444_v2 = vand.u32 8388607, %v16043_v32  ;;  %v1101_v39 = vand.u32 2147483647, %v1100_v36  ;;  %v989_v47 = vsub.s32 32, %v10137_v33  ;;  %v1185_v62 = vadd.s32 %v1184_v23, %v1180_v44 }
  0xf7   : > { %v1452_v9 = vsub.s32 32, %v1451_v51  ;;  %v10160_v20 = vadd.s32 127, %v993_v49  ;;  %v10162_v40 = vshrl.u32 %v1449_v34, 5  ;;  %v1454_v43 = vshll.u32 %v16045_v61, %v1451_v51 }
  0xf8   : > { %v1457_v35 = vshll.u32 %v16047_v1, %v1451_v51  ;;  %v8212_v60 = vadd.s32 4294967294, %v1297_v53  ;;  %v1186_v13 = vadd.s32 536870912, %v1185_v62  ;;  %v1460_v36 = vshll.u32 %v16053_v3, %v1451_v51 }
  0xf9   : > { %v1455_v27 = vshrl.u32 %v16047_v1, %v1452_v9  ;;  %v1458_v0 = vshrl.u32 %v16053_v3, %v1452_v9  ;;  %v1461_v46 = vshrl.u32 %v16059_v5, %v1452_v9  ;;  %v1463_v49 = vshll.u32 %v16059_v5, %v1451_v51 }
  0xfa   : > { %v1464_v34 = vshrl.u32 %v16069_v7, %v1452_v9  ;;  %v10172_v44 = vshrl.u32 %v1186_v13, 30  ;;  %v1467_v53 = vshrl.u32 %v16067_v17, %v1452_v9  ;;  %v10175_v61 = vmul.f32 %v1103_v45, %v1101_v39 }
  0xfb   : > { %v1456_v23 = vor.u32 %v1455_v27, %v1454_v43  ;;  %v1459_v32 = vor.u32 %v1458_v0, %v1457_v35  ;;  %v991_v1 = vshrl.u32 %v973_v52, %v989_v47  ;;  %v1445_v38 = vor.u32 8388608, %v1444_v2 }
  0xfc   : > { %16364 = vst [vmem:[#allocation17_spill] sm:$0xff] %v10172_v44  ;;  %v10177_v37 = vadd.f32 %v646_v50, %v603_v48  ;;  %v1188_v3 = vshll.u32 %v10172_v44, 30  ;;  %v1462_v16 = vor.u32 %v1461_v46, %v1460_v36  ;;  %v1465_v56 = vor.u32 %v1464_v34, %v1463_v49  ;;  %v661_v36 = vpop.permute.xlu1 %660 }
  0xfd   : > { %v1466_v5 = vshll.u32 %v16069_v7, %v1451_v51  ;;  %v995_v13 = vshll.u32 %v10160_v20, 23  ;;  %vm8213_vm14 = vcmp.lt.s32.totalorder %v8212_v60, 0  ;;  %vm1469_vm15 = vcmp.lt.s32.totalorder %v10162_v40, 1 }
  0xfe   : > { %16365 = vst [vmem:[#allocation18_spill] sm:$0xff] %v10177_v37  ;;  %v606_v43 = vmul.f32 %v9847_v8, %v559_v29  ;;  %v10184_v35 = vsub.s32 %v1185_v62, %v1188_v3  ;;  %vm1472_vm0 = vcmp.lt.s32.totalorder %v10162_v40, 4  ;;  %v1477_v52 = vsel %vm1469_vm15, %v1456_v23, %v1459_v32 }
  0xff   : > { %v1468_v45 = vor.u32 %v1467_v53, %v1466_v5  ;;  %vm1471_vm1 = vcmp.lt.s32.totalorder %v10162_v40, 3  ;;  %v1478_v48 = vsel %vm1472_vm0, %v1465_v56, 920167782  ;;  %v1485_v51 = vshll.u32 %v1445_v38, 8 }
 0x100   : > { %v1336_v2 = vand.u32 2139095040, %v10177_v37  ;;  %v10193_v39 = vsel %vm8213_vm14, 0, %v8212_v60  ;;  %v1191_v29 = vsub.s32 0, %v10184_v35  ;;  %vm1470_vm2 = vcmp.lt.s32.totalorder %v10162_v40, 2 }
 0x101   : > { %v1479_v3 = vsel %vm1471_vm1, %v1462_v16, %v1478_v48  ;;  %vm16117_vm3 = vcmp.lt.s32.totalorder %v9866_v22, 0  ;;  %v16366_v5 = vmov 683565275   ;;  %v1474_v62 = vsel %vm1472_vm0, %v1462_v16, 2102212464 }
 0x102   : > { %v1453_v47 = vshrl.u32 %v16366_v5, %v1452_v9  ;;  %v1480_v38 = vsel %vm1470_vm2, %v1477_v52, %v1479_v3  ;;  %v1481_v20 = vsel %vm1469_vm15, %v1459_v32, %v1462_v16  ;;  %v8207_v60 = vmin.u32 %v1191_v29, %v10184_v35 }
 0x103   : > { %v1482_v27 = vsel %vm1472_vm0, %v1468_v45, 1326507024  ;;  %v10210_v0 = vmul.u32.u64.low %v1485_v51, %v1480_v38  ;;  %v10211_v50 = vmul.u32.u64.high %v1485_v51, %v1480_v38, %v10210_v0  ;;  %v1305_v9 = vsub.s32 4294967266, %v10193_v39 }
 0x104   : > { %v1483_v46 = vsel %vm1471_vm1, %v1465_v56, %v1482_v27  ;;  %v16061_v49 = vand.u32 2147483647, %v10177_v37  ;;  %v1337_v34 = vshrl.u32 %v1336_v2, 23  ;;  %vm16142_vm4 = vcmp.lt.s32.totalorder %v10016_v26, 4 }
 0x105   : > { %v1193_v16 = vclz %v8207_v60  ;;  %v1473_v53 = vsel %vm1469_vm15, %v1453_v47, %v1456_v23  ;;  %v1475_v45 = vsel %vm1471_vm1, %v1459_v32, %v1474_v62  ;;  %v1484_v52 = vsel %vm1470_vm2, %v1481_v20, %v1483_v46 }
 0x106   : > { %v16367_v48 = vand.u32 2147483647, %v9866_v22  ;;  %v16368_v29 = vmov 0  ;;  %v10231_v56 = vmul.u32.u64.low %v1485_v51, %v1484_v52  ;;  %v10232_v2 = vmul.u32.u64.high %v1485_v51, %v1484_v52, %v10231_v56 }
 0x107   : > { %v8214_v3 = vadd.s32 4294967169, %v1337_v34  ;;  %v10234_v38 = vadd.f32 %v661_v36, %v606_v43  ;;  %v10238_v23 = vshrl.u32 %v16067_v17, %v10056_v57  ;;  %v1105_v32 = vxor.u32 2147483648, %v10175_v61  ;;  %v554_v56 = vpop.permute.xlu0 %553 }
 0x108   : > { %vm10227_vm5 = vcmp.le.f32.partialorder %v16367_v48, 0.7853982  ;;  %v990_v47 = vshll.u32 %v10036_v58, %v10137_v33  ;;  %v996_v62 = vor.u32 4788187, %v995_v13  ;;  %v8208_v20 = vadd.s32 4294967294, %v1193_v16 }
 0x109   : > { %v16369_v29 = vsel %vm10227_vm5, 4294967295, %v16368_v29  ;;  %16371 = vst [vmem:[#allocation20_spill] sm:$0xff] %v10234_v38  ;;  %v1476_v60 = vsel %vm1470_vm2, %v1473_v53, %v1475_v45  ;;  %v1495_v27 = vadd.s32 1, %v10211_v50  ;;  %v1343_v46 = vadd.s32 1, %v8214_v3 }
 0x10a   : > { %16370 = vst [vmem:[#allocation19_spill] sm:$0xff] %v16369_v29  ;;  %v16372_v43 = vor.u32 %v10014_v25, %v10008_v21  ;;  %v1301_v34 = vsub.s32 32, %v10193_v39  ;;  %v1306_v52 = vadd.s32 127, %v1305_v9  ;;  %v1340_v58 = vand.u32 8388607, %v16061_v49 }
 0x10b   : > { %v10258_v33 = vor.u32 %v10145_v15, %v10064_v12  ;;  %v992_v40 = vor.u32 %v991_v1, %v990_v47  ;;  %vm1494_vm7 = vc.u32 %v10232_v2, %v10210_v0  ;;  %v1648_v21 = vand.u32 2139095040, %v10234_v38 }
 0x10c   : > { %v10251_v36 = vsel %vm744_vm6, %v16372_v43, 1326507024  ;;  %v1106_v13 = vsel %vm16117_vm3, %v1105_v32, %v10175_v61  ;;  %v1285_v9 = vadd.s32 %v10068_v59, %v10060_v11  ;;  %v1492_v16 = vmul.u32 %v1485_v51, %v1476_v60 }
 0x10d   : > { %16373 = vst [vmem:[#allocation21_spill] sm:$0xff] %v10258_v33  ;;  %v997_v53 = vand.u32 2147483647, %v996_v62  ;;  %vm8209_vm8 = vcmp.lt.s32.totalorder %v8208_v20, 0  ;;  %v1496_v1 = vsel %vm1494_vm7, %v1495_v27, %v10211_v50  ;;  %vm1344_vm9 = vcmp.gt.s32.totalorder %v1343_v46, 0 }
 0x10e   : > { %v1303_v12 = vshrl.u32 %v1285_v9, %v1301_v34  ;;  %v1307_v15 = vshll.u32 %v1306_v52, 23  ;;  %v1497_v45 = vadd.s32 %v1496_v1, %v1492_v16  ;;  %v1341_v48 = vor.u32 8388608, %v1340_v58 }
 0x10f   : > { %v10274_v3 = vsel %vm16142_vm4, %v10258_v33, 920167782  ;;  %v999_v61 = vcvt.s32.f32 %v992_v40  ;;  %v1345_v32 = vsel %vm1344_vm9, %v1343_v46, 0  ;;  %v1649_v47 = vshrl.u32 %v1648_v21, 23 }
 0x110   : > { %16374 = vst [vmem:[#allocation22_spill] sm:$0xff] %v10274_v3  ;;  %v10279_v11 = vsel %vm10227_vm5, %v9866_v22, %v1106_v13  ;;  %v1302_v59 = vshll.u32 %v10121_v41, %v10193_v39  ;;  %v10283_v51 = vsel %vm8209_vm8, 0, %v8208_v20  ;;  %v1498_v50 = vadd.s32 536870912, %v1497_v45 }
 0x111   : > { %v10285_v62 = vmul.f32 %v999_v61, %v997_v53  ;;  %v10289_v60 = vadd.s32 %v10124_v24, %v10117_v14  ;;  %v1347_v27 = vand.u32 31, %v1345_v32  ;;  %v605_v46 = vmul.f32 %v9847_v8, %v554_v56 }
 0x112   : > { %v10292_v43 = vor.u32 %v1303_v12, %v1302_v59  ;;  %v10294_v34 = vor.u32 4788187, %v1307_v15  ;;  %v10296_v52 = vshrl.u32 %v1498_v50, 30  ;;  %v10298_v58 = vshll.u32 %v1341_v48, 8 }
 0x113   : > { %v1201_v41 = vsub.s32 4294967266, %v10283_v51  ;;  %v1348_v39 = vsub.s32 32, %v1347_v27  ;;  %v8226_v40 = vadd.s32 4294967169, %v1649_v47  ;;  %v1346_v24 = vshrl.u32 %v1345_v32, 5 }
 0x114   : > { %16375 = vst [vmem:[#allocation23_spill] sm:$0xff] %v10296_v52  ;;  %v1500_v14 = vshll.u32 %v10296_v52, 30  ;;  %v1350_v21 = vshll.u32 %v16366_v5, %v1347_v27  ;;  %v16376_v8 = vmov 2475754826   ;;  %v16377_v16 = vmov 2131351028  }
 0x115   : > { %v1353_v13 = vshll.u32 %v16376_v8, %v1347_v27  ;;  %v1351_v9 = vshrl.u32 %v16376_v8, %v1348_v39  ;;  %v1354_v53 = vshrl.u32 %v16377_v16, %v1348_v39  ;;  %v1356_v1 = vshll.u32 %v16377_v16, %v1347_v27 }
 0x116   : > { %v16378_v12 = vmov 2102212464   ;;  %v10309_v48 = vsub.s32 %v1497_v45, %v1500_v14  ;;  %v1360_v61 = vshrl.u32 %v16069_v7, %v1348_v39  ;;  %v1363_v32 = vshrl.u32 %v16067_v17, %v1348_v39 }
 0x117   : > { %v1357_v15 = vshrl.u32 %v16378_v12, %v1348_v39  ;;  %v1359_v56 = vshll.u32 %v16378_v12, %v1347_v27  ;;  %v1352_v47 = vor.u32 %v1351_v9, %v1350_v21  ;;  %v1355_v59 = vor.u32 %v1354_v53, %v1353_v13 }
 0x118   : > { %v1362_v49 = vshll.u32 %v16069_v7, %v1347_v27  ;;  %v1503_v25 = vsub.s32 0, %v10309_v48  ;;  %vm1365_vm10 = vcmp.lt.s32.totalorder %v1346_v24, 1  ;;  %v1655_v52 = vadd.s32 1, %v8226_v40 }
 0x119   : > { %v1358_v50 = vor.u32 %v1357_v15, %v1356_v1  ;;  %v1361_v20 = vor.u32 %v1360_v61, %v1359_v56  ;;  %v1349_v44 = vshrl.u32 %v16366_v5, %v1348_v39  ;;  %vm1368_vm11 = vcmp.lt.s32.totalorder %v1346_v24, 4  ;;  %v656_v15 = vpop.permute.xlu0 %655 }
 0x11a   : > { %v1364_v45 = vor.u32 %v1363_v32, %v1362_v49  ;;  %v1373_v14 = vsel %vm1365_vm10, %v1352_v47, %v1355_v59  ;;  %v8219_v29 = vmin.u32 %v1503_v25, %v10309_v48  ;;  %vm1367_vm12 = vcmp.lt.s32.totalorder %v1346_v24, 3 }
 0x11b   : > { %v1370_v21 = vsel %vm1368_vm11, %v1358_v50, 2102212464  ;;  %v1374_v13 = vsel %vm1368_vm11, %v1361_v20, 920167782  ;;  %v1197_v27 = vsub.s32 32, %v10283_v51  ;;  %vm1366_vm13 = vcmp.lt.s32.totalorder %v1346_v24, 2 }
 0x11c   : > { %v1375_v9 = vsel %vm1367_vm12, %v1358_v50, %v1374_v13  ;;  %v16379_v40 = vand.u32 2147483647, %v10234_v38  ;;  %v1505_v39 = vclz %v8219_v29  ;;  %v1369_v49 = vsel %vm1365_vm10, %v1349_v44, %v1352_v47 }
 0x11d   : > { %v1376_v1 = vsel %vm1366_vm13, %v1373_v14, %v1375_v9  ;;  %v1377_v25 = vsel %vm1365_vm10, %v1355_v59, %v1358_v50  ;;  %v1371_v56 = vsel %vm1367_vm12, %v1355_v59, %v1370_v21  ;;  %v1378_v61 = vsel %vm1368_vm11, %v1364_v45, 1326507024 }
 0x11e   : > { %v1652_v53 = vand.u32 8388607, %v16379_v40  ;;  %v10331_v32 = vmul.u32.u64.low %v10298_v58, %v1376_v1  ;;  %v10332_v17 = vmul.u32.u64.high %v10298_v58, %v1376_v1, %v10331_v32  ;;  %v1202_v13 = vadd.s32 127, %v1201_v41 }
 0x11f   : > { %v8220_v7 = vadd.s32 4294967294, %v1505_v39  ;;  %v1379_v29 = vsel %vm1367_vm12, %v1361_v20, %v1378_v61  ;;  %vm1656_vm14 = vcmp.gt.s32.totalorder %v1655_v52, 0  ;;  %v10337_v50 = vadd.f32 %v656_v15, %v605_v46 }
 0x120   : > { %v1380_v44 = vsel %vm1366_vm13, %v1377_v25, %v1379_v29  ;;  %v1653_v47 = vor.u32 8388608, %v1652_v53  ;;  %v1657_v14 = vsel %vm1656_vm14, %v1655_v52, 0  ;;  %v1372_v59 = vsel %vm1366_vm13, %v1369_v49, %v1371_v56 }
 0x121   : > { %vm8221_vm15 = vcmp.lt.s32.totalorder %v8220_v7, 0  ;;  %v10341_v45 = vmul.u32.u64.low %v10298_v58, %v1380_v44  ;;  %v10342_v21 = vmul.u32.u64.high %v10298_v58, %v1380_v44, %v10341_v45  ;;  %v1391_v20 = vadd.s32 1, %v10332_v17 }
 0x122   : > { %v1659_v40 = vand.u32 31, %v1657_v14  ;;  %v1309_v39 = vand.u32 2147483647, %v10294_v34  ;;  %v1198_v46 = vshll.u32 %v10184_v35, %v10283_v51  ;;  %v1199_v52 = vshrl.u32 %v10289_v60, %v1197_v27 }
 0x123   : > { %v1203_v24 = vshll.u32 %v1202_v13, 23  ;;  %v10351_v53 = vsel %vm8221_vm15, 0, %v8220_v7  ;;  %v1388_v49 = vmul.u32 %v10298_v58, %v1372_v59  ;;  %v10354_v25 = vshll.u32 %v1653_v47, 8 }
 0x124   : > { %v1660_v1 = vsub.s32 32, %v1659_v40  ;;  %vm1390_vm0 = vc.u32 %v10342_v21, %v10331_v32  ;;  %v1658_v15 = vshrl.u32 %v1657_v14, 5  ;;  %v1662_v56 = vshll.u32 %v16366_v5, %v1659_v40 }
 0x125   : > { %v1544_v34 = vand.u32 2139095040, %v10337_v50  ;;  %v1392_v35 = vsel %vm1390_vm0, %v1391_v20, %v10332_v17  ;;  %v1665_v7 = vshll.u32 %v16376_v8, %v1659_v40  ;;  %v1513_v58 = vsub.s32 4294967266, %v10351_v53 }
 0x126   : > { %v1663_v51 = vshrl.u32 %v16376_v8, %v1660_v1  ;;  %v1666_v60 = vshrl.u32 %v16377_v16, %v1660_v1  ;;  %v1393_v27 = vadd.s32 %v1392_v35, %v1388_v49  ;;  %v1668_v61 = vshll.u32 %v16377_v16, %v1659_v40 }
 0x127   : > { %v1669_v13 = vshrl.u32 %v16378_v12, %v1660_v1  ;;  %v1671_v47 = vshll.u32 %v16378_v12, %v1659_v40  ;;  %v16380_v14 = vmov 920167782   ;;  %v1204_v17 = vor.u32 4788187, %v1203_v24 }
 0x128   : > { %v1664_v29 = vor.u32 %v1663_v51, %v1662_v56  ;;  %v1667_v44 = vor.u32 %v1666_v60, %v1665_v7  ;;  %v1672_v59 = vshrl.u32 %v16380_v14, %v1660_v1  ;;  %v1394_v45 = vadd.s32 536870912, %v1393_v27 }
 0x129   : > { %v1670_v20 = vor.u32 %v1669_v13, %v1668_v61  ;;  %v1545_v9 = vshrl.u32 %v1544_v34, 23  ;;  %vm16129_vm1 = vcmp.lt.s32.totalorder %v9880_v31, 0  ;;  %v1509_v41 = vsub.s32 32, %v10351_v53 }
 0x12a   : > { %v1673_v22 = vor.u32 %v1672_v59, %v1671_v47  ;;  %v1674_v49 = vshll.u32 %v16380_v14, %v1659_v40  ;;  %v16381_v35 = vmov 1326507024   ;;  %v1514_v33 = vadd.s32 127, %v1513_v58 }
 0x12b   : > { %v1675_v3 = vshrl.u32 %v16381_v35, %v1660_v1  ;;  %v10373_v56 = vshrl.u32 %v1394_v45, 30  ;;  %vm1677_vm2 = vcmp.lt.s32.totalorder %v1658_v15, 1  ;;  %vm1680_vm7 = vcmp.lt.s32.totalorder %v1658_v15, 4 }
 0x12c   : > { %v1661_v51 = vshrl.u32 %v16366_v5, %v1660_v1  ;;  %v1682_v7 = vsel %vm1680_vm7, %v1670_v20, 2102212464  ;;  %v1685_v60 = vsel %vm1677_vm2, %v1664_v29, %v1667_v44  ;;  %vm1678_vm8 = vcmp.lt.s32.totalorder %v1658_v15, 2 }
 0x12d   : > { %16382 = vst [vmem:[#allocation24_spill] sm:$0xff] %v10373_v56  ;;  %v1676_v24 = vor.u32 %v1675_v3, %v1674_v49  ;;  %v1396_v34 = vshll.u32 %v10373_v56, 30  ;;  %vm1679_vm9 = vcmp.lt.s32.totalorder %v1658_v15, 3  ;;  %v1686_v61 = vsel %vm1680_vm7, %v1673_v22, 920167782 }
 0x12e   : > { %v1681_v13 = vsel %vm1677_vm2, %v1661_v51, %v1664_v29  ;;  %v1687_v47 = vsel %vm1679_vm9, %v1670_v20, %v1686_v61  ;;  %v1689_v40 = vsel %vm1677_vm2, %v1667_v44, %v1670_v20  ;;  %v1683_v58 = vsel %vm1679_vm9, %v1667_v44, %v1682_v7 }
 0x12f   : > { %v1690_v59 = vsel %vm1680_vm7, %v1676_v24, 1326507024  ;;  %v10377_v57 = vsub.s32 %v1393_v27, %v1396_v34  ;;  %v1688_v45 = vsel %vm1678_vm8, %v1685_v60, %v1687_v47  ;;  %v16383_v1 = vand.u32 2147483647, %v9880_v31  ;;  %v569_v60 = vpop.permute.xlu1 %568 }
 0x130   : > { %v1691_v28 = vsel %vm1679_vm9, %v1673_v22, %v1690_v59  ;;  %v16384_v3 = vmov 0  ;;  %v1200_v49 = vor.u32 %v1199_v52, %v1198_v46  ;;  %vm16110_vm11 = vcmp.lt.s32.totalorder %v9946_v54, 0 }
 0x131   : > { %vm10382_vm10 = vcmp.le.f32.partialorder %v16383_v1, 0.7853982  ;;  %v1692_v56 = vsel %vm1678_vm8, %v1689_v40, %v1691_v28  ;;  %v10388_v29 = vmul.u32.u64.low %v10354_v25, %v1688_v45  ;;  %v10389_v51 = vmul.u32.u64.high %v10354_v25, %v1688_v45, %v10388_v29 }
 0x132   : > { %v16385_v3 = vsel %vm10382_vm10, 4294967295, %v16384_v3  ;;  %v1493_v27 = vadd.s32 %v10210_v0, %v10232_v2  ;;  %v1399_v22 = vsub.s32 0, %v10377_v57  ;;  %v16387_v46 = vcvt.s32.f32 %v10292_v43 }
 0x133   : > { %16386 = vst [vmem:[#allocation25_spill] sm:$0xff] %v16385_v3  ;;  %v10397_v44 = vmul.u32.u64.low %v10354_v25, %v1692_v56  ;;  %v10398_v20 = vmul.u32.u64.high %v10354_v25, %v1692_v56, %v10397_v44  ;;  %v1205_v28 = vand.u32 2147483647, %v1204_v17  ;;  %v1684_v24 = vsel %vm1678_vm8, %v1681_v13, %v1683_v58  ;;  %v564_v13 = vpop.permute.xlu0 %563 }
 0x134   : > { %v1312_v52 = vmul.f32 %v16387_v46, %v1309_v39  ;;  %v8222_v7 = vadd.s32 4294967169, %v1545_v9  ;;  %v16388_v34 = vxor.u32 2147483648, %v10285_v62  ;;  %v1511_v2 = vshrl.u32 %v1493_v27, %v1509_v41 }
 0x135   : > { %v1515_v61 = vshll.u32 %v1514_v33, 23  ;;  %v8215_v47 = vmin.u32 %v1399_v22, %v10377_v57  ;;  %v1207_v56 = vcvt.s32.f32 %v1200_v49  ;;  %v1703_v40 = vadd.s32 1, %v10389_v51  ;;  %v671_v49 = vpop.permute.xlu1 %670  ;;  %v10432_v22 = vld [vmem:[%s9838_s14] ss:$0 sm:$0xff]  ;;  %s8446_s14 = sshll.u32 %s9608_s10, 4  ;;  %s9523_s10 = smov [#allocation3]  }
 0x136   : > { %v1002_v0 = vsel %vm16129_vm1, %v16388_v34, %v10285_v62  ;;  %v16080_v43 = vand.u32 2147483647, %v10337_v50  ;;  %v1551_v39 = vadd.s32 1, %v8222_v7  ;;  %v1510_v9 = vshll.u32 %v10309_v48, %v10351_v53  ;;  %s15986_s17 = scalar_lea.hbm %s16039_s11, %s8446_s14  ;;  %s9453_s18 = sshll.u32 %s9523_s10, 4  ;;  %s9454_s18 = int_to_ptr.vmem [resolvable:$false] %s9453_s18 }
 0x137   : > { %v1401_v15 = vclz %v8215_v47  ;;  %v1700_v17 = vmul.u32 %v10354_v25, %v1684_v24  ;;  %vm1702_vm12 = vc.u32 %v10398_v20, %v10388_v29  ;;  %v1313_v62 = vxor.u32 2147483648, %v1312_v52  ;;  %s9455_s26 = scalar_lea.vmem %s9454_s18, 32  ;;  %p9456_p0 = scmp.lt.s32.totalorder %s15988_s13, %s9454_s18 }
 0x138   : > { %v10416_v33 = vmul.f32 %v1207_v56, %v1205_v28  ;;  %v1704_v41 = vsel %vm1702_vm12, %v1703_v40, %v10389_v51  ;;  %vm1552_vm13 = vcmp.gt.s32.totalorder %v1551_v39, 0  ;;  %v10419_v59 = vor.u32 %v1511_v2, %v1510_v9  ;;  %p9457_p1 = scmp.lt.s32.totalorder %s9455_s26, %s9449_s25 }
 0x139   : > { %v10421_v58 = vor.u32 4788187, %v1515_v61  ;;  %v1705_v45 = vadd.s32 %v1704_v41, %v1700_v17  ;;  %v1553_v48 = vsel %vm1552_vm13, %v1551_v39, 0  ;;  %9192 = vcosq.f32 %v10279_v11  ;;  %v666_v41 = vpop.permute.xlu0 %665 }
 0x13a   : > { %v8216_v53 = vadd.s32 4294967294, %v1401_v15  ;;  %v1548_v25 = vand.u32 8388607, %v16080_v43  ;;  %v1555_v1 = vand.u32 31, %v1553_v48  ;;  %v10429_v51 = vsel %vm10382_vm10, %v9880_v31, %v1002_v0  ;;  %p9458_p2 = por %p9457_p1, %p9456_p0 }
 0x13b   : > { %v1706_v27 = vadd.s32 536870912, %v1705_v45  ;;  %v608_v44 = vmul.f32 %v10432_v22, %v569_v60  ;;  %v607_v46 = vmul.f32 %v10432_v22, %v564_v13  ;;  %v10438_v28 = vsel %vm16110_vm11, %v1313_v62, %v1312_v52 }
 0x13c   : > { %v10443_v7 = vadd.s32 %v10331_v32, %v10342_v21  ;;  %v1556_v34 = vsub.s32 32, %v1555_v1  ;;  %v1517_v0 = vand.u32 2147483647, %v10421_v58  ;;  %v1519_v2 = vcvt.s32.f32 %v10419_v59  ;;  %p9459_p3 = pnand %p9458_p2, %p9452_p13 }
 0x13d   : > { %v10447_v61 = vshrl.u32 %v1706_v27, 30  ;;  %v10449_v60 = vadd.f32 %v671_v49, %v608_v44  ;;  %vm8217_vm14 = vcmp.lt.s32.totalorder %v8216_v53, 0  ;;  %v1549_v47 = vor.u32 8388608, %v1548_v25 }
 0x13e   : > { %v1559_v52 = vshrl.u32 %v16376_v8, %v1556_v34  ;;  %v1562_v56 = vshrl.u32 %v16377_v16, %v1556_v34  ;;  %v1558_v32 = vshll.u32 %v16366_v5, %v1555_v1  ;;  %v1561_v21 = vshll.u32 %v16376_v8, %v1555_v1 }
 0x13f   : > { %16389 = vst [vmem:[#allocation26_spill] sm:$0xff] %v10447_v61  ;;  %16390 = vst [vmem:[#allocation27_spill] sm:$0xff] %v10449_v60  ;;  %v1708_v40 = vshll.u32 %v10447_v61, 30  ;;  %v1565_v39 = vshrl.u32 %v16378_v12, %v1556_v34  ;;  %v1554_v9 = vshrl.u32 %v1553_v48, 5  ;;  %v1564_v15 = vshll.u32 %v16377_v16, %v1555_v1 }
 0x140   : > { %v1567_v17 = vshll.u32 %v16378_v12, %v1555_v1  ;;  %v1568_v62 = vshrl.u32 %v16380_v14, %v1556_v34  ;;  %v10460_v13 = vsel %vm8217_vm14, 0, %v8216_v53  ;;  %v1560_v58 = vor.u32 %v1559_v52, %v1558_v32 }
 0x141   : > { %v10462_v59 = vsub.s32 %v1705_v45, %v1708_v40  ;;  %v1563_v25 = vor.u32 %v1562_v56, %v1561_v21  ;;  %v1566_v49 = vor.u32 %v1565_v39, %v1564_v15  ;;  %v1570_v44 = vshll.u32 %v16380_v14, %v1555_v1 }
 0x142   : > { %v1569_v27 = vor.u32 %v1568_v62, %v1567_v17  ;;  %v1571_v43 = vshrl.u32 %v16381_v35, %v1556_v34  ;;  %v10467_v24 = vshll.u32 %v1549_v47, 8  ;;  %v1856_v61 = vand.u32 2139095040, %v10449_v60 }
 0x143   : > { %v1711_v48 = vsub.s32 0, %v10462_v59  ;;  %v10470_v3 = vadd.f32 %v666_v41, %v607_v46  ;;  %v10472_v53 = vpop.eup %9192  ;;  %v16392_v45 = vand.u32 2147483647, %v9946_v54  ;;  %v16393_v52 = vmov 0 }
 0x144   : > { %16391 = vst [vmem:[#allocation28_spill] sm:$0xff] %v10472_v53  ;;  %vm16113_vm0 = vcmp.lt.s32.totalorder %v9948_v55, 0  ;;  %v1405_v1 = vsub.s32 32, %v10460_v13  ;;  %v1409_v56 = vsub.s32 4294967266, %v10460_v13  ;;  %v1572_v47 = vor.u32 %v1571_v43, %v1570_v44 }
 0x145   : > { %vm10476_vm15 = vcmp.le.f32.partialorder %v16392_v45, 0.7853982  ;;  %vm1573_vm2 = vcmp.lt.s32.totalorder %v1554_v9, 1  ;;  %v8227_v40 = vmin.u32 %v1711_v48, %v10462_v59  ;;  %vm1575_vm7 = vcmp.lt.s32.totalorder %v1554_v9, 3 }
 0x146   : > { %v16394_v52 = vsel %vm10476_vm15, 4294967295, %v16393_v52  ;;  %vm1576_vm8 = vcmp.lt.s32.totalorder %v1554_v9, 4  ;;  %v1581_v46 = vsel %vm1573_vm2, %v1560_v58, %v1563_v25  ;;  %v1585_v39 = vsel %vm1573_vm2, %v1563_v25, %v1566_v49 }
 0x147   : > { %16395 = vst [vmem:[#allocation29_spill] sm:$0xff] %v16394_v52  ;;  %v1578_v32 = vsel %vm1576_vm8, %v1566_v49, 2102212464  ;;  %v1582_v21 = vsel %vm1576_vm8, %v1569_v27, 920167782  ;;  %v1713_v17 = vclz %v8227_v40  ;;  %v1557_v62 = vshrl.u32 %v16366_v5, %v1556_v34 }
 0x148   : > { %v1586_v15 = vsel %vm1576_vm8, %v1572_v47, 1326507024  ;;  %vm1574_vm9 = vcmp.lt.s32.totalorder %v1554_v9, 2  ;;  %v1583_v41 = vsel %vm1575_vm7, %v1566_v49, %v1582_v21  ;;  %v1410_v45 = vadd.s32 127, %v1409_v56 }
 0x149   : > { %v1584_v43 = vsel %vm1574_vm9, %v1581_v46, %v1583_v41  ;;  %v1587_v44 = vsel %vm1575_vm7, %v1569_v27, %v1586_v15  ;;  %v1857_v48 = vshrl.u32 %v1856_v61, 23  ;;  %v16396_v53 = vand.u32 2147483647, %v9948_v55 }
 0x14a   : > { %v16397_v31 = vmov 0  ;;  %v1577_v47 = vsel %vm1573_vm2, %v1557_v62, %v1560_v58  ;;  %v1579_v40 = vsel %vm1575_vm7, %v1563_v25, %v1578_v32  ;;  %v1588_v34 = vsel %vm1574_vm9, %v1585_v39, %v1587_v44 }
 0x14b   : > { %vm10492_vm12 = vcmp.le.f32.partialorder %v16396_v53, 0.7853982  ;;  %v16087_v49 = vand.u32 2147483647, %v10449_v60  ;;  %vm16100_vm13 = vcmp.lt.s32.totalorder %v10053_v63, 0  ;;  %9194 = vsinq.f32 %v10279_v11 }
 0x14c   : > { %v16398_v31 = vsel %vm10492_vm12, 4294967295, %v16397_v31  ;;  %v10502_v56 = vmul.u32.u64.low %v10467_v24, %v1588_v34  ;;  %v10503_v27 = vmul.u32.u64.high %v10467_v24, %v1588_v34, %v10502_v56  ;;  %v1520_v58 = vmul.f32 %v1519_v2, %v1517_v0 }
 0x14d   : > { %16399 = vst [vmem:[#allocation30_spill] sm:$0xff] %v16398_v31  ;;  %v10506_v61 = vmul.u32.u64.low %v10467_v24, %v1584_v43  ;;  %v10507_v53 = vmul.u32.u64.high %v10467_v24, %v1584_v43, %v10506_v61  ;;  %v8228_v46 = vadd.s32 4294967294, %v1713_v17  ;;  %v8234_v25 = vadd.s32 4294967169, %v1857_v48 }
 0x14e   : > { %9196 = vcosq.f32 %v10429_v51  ;;  %v1407_v32 = vshrl.u32 %v10443_v7, %v1405_v1  ;;  %v1411_v21 = vshll.u32 %v1410_v45, 23  ;;  %v1580_v39 = vsel %vm1574_vm9, %v1577_v47, %v1579_v40 }
 0x14f   : > { %9198 = vsinq.f32 %v10429_v51  ;;  %v1317_v15 = vsel %vm10476_vm15, %v9946_v54, %v10438_v28  ;;  %v16400_v11 = vxor.u32 2147483648, %v10416_v33  ;;  %v1860_v2 = vand.u32 8388607, %v16087_v49 }
 0x150   : > { %v1406_v7 = vshll.u32 %v10377_v57, %v10460_v13  ;;  %vm1598_vm14 = vc.u32 %v10503_v27, %v10506_v61  ;;  %v1599_v51 = vadd.s32 1, %v10507_v53  ;;  %v1752_v9 = vand.u32 2139095040, %v10470_v3  ;;  %v579_v57 = vpop.permute.xlu1 %578 }
 0x151   : > { %v1210_v0 = vsel %vm16113_vm0, %v16400_v11, %v10416_v33  ;;  %v1521_v28 = vxor.u32 2147483648, %v1520_v58  ;;  %vm8229_vm2 = vcmp.lt.s32.totalorder %v8228_v46, 0  ;;  %v1596_v1 = vmul.u32 %v10467_v24, %v1580_v39 }
 0x152   : > { %v1863_v17 = vadd.s32 1, %v8234_v25  ;;  %9200 = vcosq.f32 %v1317_v15  ;;  %v10533_v33 = vor.u32 %v1407_v32, %v1406_v7  ;;  %v10535_v62 = vor.u32 4788187, %v1411_v21 }
 0x153   : > { %v1600_v41 = vsel %vm1598_vm14, %v1599_v51, %v10507_v53  ;;  %9202 = vsinq.f32 %v1317_v15  ;;  %v1861_v45 = vor.u32 8388608, %v1860_v2  ;;  %v10541_v43 = vsel %vm10492_vm12, %v9948_v55, %v1210_v0 }
 0x154   : > { %v1601_v13 = vadd.s32 %v1600_v41, %v1596_v1  ;;  %vm1864_vm7 = vcmp.gt.s32.totalorder %v1863_v17, 0  ;;  %v10543_v44 = vsel %vm8229_vm2, 0, %v8228_v46  ;;  %v1753_v48 = vshrl.u32 %v1752_v9, 23 }
 0x155   : > { %v1865_v24 = vsel %vm1864_vm7, %v1863_v17, 0  ;;  %v10547_v47 = vsel %vm16100_vm13, %v1521_v28, %v1520_v58  ;;  %v1701_v40 = vadd.s32 %v10388_v29, %v10398_v20  ;;  %v10552_v56 = vmul.f32 %v10432_v22, %v579_v57  ;;  %v10557_v21 = vpop.eup %9194 }
 0x156   : > { %v1602_v34 = vadd.s32 536870912, %v1601_v13  ;;  %v1867_v32 = vand.u32 31, %v1865_v24  ;;  %16401 = vst [vmem:[#allocation31_spill] sm:$0xff] %v10557_v21  ;;  %v1717_v39 = vsub.s32 32, %v10543_v44  ;;  %v10564_v29 = vshll.u32 %v1861_v45, 8 }
 0x157   : > { %v1721_v11 = vsub.s32 4294967266, %v10543_v44  ;;  %v1866_v0 = vshrl.u32 %v1865_v24, 5  ;;  %v8230_v7 = vadd.s32 4294967169, %v1753_v48  ;;  %v16406_v31 = vand.u32 2147483647, %v10053_v63 }
 0x158   : > { %v10562_v15 = vshrl.u32 %v1602_v34, 30  ;;  %v10566_v20 = vpop.eup %9196  ;;  %v1868_v2 = vsub.s32 32, %v1867_v32  ;;  %v1870_v28 = vshll.u32 %v16366_v5, %v1867_v32  ;;  %v1873_v1 = vshll.u32 %v16376_v8, %v1867_v32 }
 0x159   : > { %16403 = vst [vmem:[#allocation33_spill] sm:$0xff] %v10566_v20  ;;  %v10569_v51 = vpop.eup %9198  ;;  %v1876_v17 = vshll.u32 %v16377_v16, %v1867_v32  ;;  %v1879_v24 = vshll.u32 %v16378_v12, %v1867_v32  ;;  %v1882_v49 = vshll.u32 %v16380_v14, %v1867_v32  ;;  %v1719_v53 = vshrl.u32 %v1701_v40, %v1717_v39 }
 0x15a   : > { %16402 = vst [vmem:[#allocation32_spill] sm:$0xff] %v10562_v15  ;;  %v1604_v9 = vshll.u32 %v10562_v15, 30  ;;  %v1871_v41 = vshrl.u32 %v16376_v8, %v1868_v2  ;;  %v1874_v57 = vshrl.u32 %v16377_v16, %v1868_v2  ;;  %v1877_v45 = vshrl.u32 %v16378_v12, %v1868_v2 }
 0x15b   : > { %v1880_v48 = vshrl.u32 %v16380_v14, %v1868_v2  ;;  %v1883_v58 = vshrl.u32 %v16381_v35, %v1868_v2  ;;  %vm10590_vm8 = vcmp.le.f32.partialorder %v16406_v31, 0.7853982  ;;  %v16407_v55 = vmov 0 }
 0x15c   : > { %v10579_v34 = vsub.s32 %v1601_v13, %v1604_v9  ;;  %v10584_v25 = vpop.eup %9200  ;;  %v1872_v46 = vor.u32 %v1871_v41, %v1870_v28  ;;  %v1875_v15 = vor.u32 %v1874_v57, %v1873_v1  ;;  %v1878_v52 = vor.u32 %v1877_v45, %v1876_v17 }
 0x15d   : > { %16404 = vst [vmem:[#allocation34_spill] sm:$0xff] %v10584_v25  ;;  %v10586_v54 = vpop.eup %9202  ;;  %v16408_v55 = vsel %vm10590_vm8, 4294967295, %v16407_v55  ;;  %v1881_v9 = vor.u32 %v1880_v48, %v1879_v24  ;;  %v1884_v32 = vor.u32 %v1883_v58, %v1882_v49  ;;  %vm1885_vm9 = vcmp.lt.s32.totalorder %v1866_v0, 1  ;;  %v681_v58 = vpop.permute.xlu1 %680 }
 0x15e   : > { %16405 = vst [vmem:[#allocation35_spill] sm:$0xff] %v10586_v54  ;;  %16409 = vst [vmem:[#allocation36_spill] sm:$0xff] %v16408_v55  ;;  %v1607_v13 = vsub.s32 0, %v10579_v34  ;;  %v1869_v21 = vshrl.u32 %v16366_v5, %v1868_v2  ;;  %vm1888_vm14 = vcmp.lt.s32.totalorder %v1866_v0, 4  ;;  %v1893_v40 = vsel %vm1885_vm9, %v1872_v46, %v1875_v15 }
 0x15f   : > { %v1759_v39 = vadd.s32 1, %v8230_v7  ;;  %vm1887_vm2 = vcmp.lt.s32.totalorder %v1866_v0, 3  ;;  %v1890_v1 = vsel %vm1888_vm14, %v1878_v52, 2102212464  ;;  %v1894_v17 = vsel %vm1888_vm14, %v1881_v9, 920167782 }
 0x160   : > { %v8223_v28 = vmin.u32 %v1607_v13, %v10579_v34  ;;  %v1722_v41 = vadd.s32 127, %v1721_v11  ;;  %vm1886_vm7 = vcmp.lt.s32.totalorder %v1866_v0, 2  ;;  %v1895_v31 = vsel %vm1887_vm2, %v1878_v52, %v1894_v17 }
 0x161   : > { %v1897_v57 = vsel %vm1885_vm9, %v1875_v15, %v1878_v52  ;;  %v1889_v25 = vsel %vm1885_vm9, %v1869_v21, %v1872_v46  ;;  %v1896_v24 = vsel %vm1886_vm7, %v1893_v40, %v1895_v31  ;;  %v1898_v49 = vsel %vm1888_vm14, %v1884_v32, 1326507024 }
 0x162   : > { %v1609_v45 = vclz %v8223_v28  ;;  %v1891_v48 = vsel %vm1887_vm2, %v1875_v15, %v1890_v1  ;;  %v1899_v2 = vsel %vm1887_vm2, %v1881_v9, %v1898_v49  ;;  %v16410_v11 = vand.u32 2147483647, %v10470_v3 }
 0x163   : > { %v10599_v54 = vmul.u32.u64.low %v10564_v29, %v1896_v24  ;;  %v10600_v7 = vmul.u32.u64.high %v10564_v29, %v1896_v24, %v10599_v54  ;;  %v1900_v20 = vsel %vm1886_vm7, %v1897_v57, %v1899_v2  ;;  %vm1760_vm13 = vcmp.gt.s32.totalorder %v1759_v39, 0 }
 0x164   : > { %v8224_v13 = vadd.s32 4294967294, %v1609_v45  ;;  %v1756_v17 = vand.u32 8388607, %v16410_v11  ;;  %v10607_v52 = vmul.u32.u64.low %v10564_v29, %v1900_v20  ;;  %v10608_v46 = vmul.u32.u64.high %v10564_v29, %v1900_v20, %v10607_v52 }
 0x165   : > { %v1761_v21 = vsel %vm1760_vm13, %v1759_v39, 0  ;;  %v10611_v15 = vadd.f32 %v681_v58, %v10552_v56  ;;  %v1723_v9 = vshll.u32 %v1722_v41, 23  ;;  %v1892_v32 = vsel %vm1886_vm7, %v1889_v25, %v1891_v48 }
 0x166   : > { %vm8225_vm9 = vcmp.lt.s32.totalorder %v8224_v13, 0  ;;  %v1763_v40 = vand.u32 31, %v1761_v21  ;;  %9204 = vcosq.f32 %v10541_v43  ;;  %v10619_v28 = vsel %vm10590_vm8, %v10053_v63, %v10547_v47 }
 0x167   : > { %v16411_v20 = vand.u32 2147483647, %v10535_v62  ;;  %v16412_v39 = vcvt.s32.f32 %v10533_v33  ;;  %v1911_v56 = vadd.s32 1, %v10600_v7  ;;  %v16413_v25 = vshll.u32 %v10462_v59, %v10543_v44 }
 0x168   : > { %v1597_v41 = vadd.s32 %v10506_v61, %v10503_v27  ;;  %v10635_v31 = vsel %vm8225_vm9, 0, %v8224_v13  ;;  %v1764_v47 = vsub.s32 32, %v1763_v40  ;;  %v1908_v57 = vmul.u32 %v10564_v29, %v1892_v32 }
 0x169   : > { %v10625_v1 = vmul.f32 %v16412_v39, %v16411_v20  ;;  %v10631_v0 = vor.u32 %v1719_v53, %v16413_v25  ;;  %vm1910_vm13 = vc.u32 %v10608_v46, %v10599_v54  ;;  %v1757_v33 = vor.u32 8388608, %v1756_v17 }
 0x16a   : > { %v10641_v45 = vor.u32 4788187, %v1723_v9  ;;  %v1912_v59 = vsel %vm1910_vm13, %v1911_v56, %v10600_v7  ;;  %v1762_v44 = vshrl.u32 %v1761_v21, 5  ;;  %v2064_v53 = vand.u32 2139095040, %v10611_v15 }
 0x16b   : > { %v1617_v27 = vsub.s32 4294967266, %v10635_v31  ;;  %v1913_v61 = vadd.s32 %v1912_v59, %v1908_v57  ;;  %v1767_v24 = vshrl.u32 %v16376_v8, %v1764_v47  ;;  %v1770_v29 = vshrl.u32 %v16377_v16, %v1764_v47 }
 0x16c   : > { %v1766_v49 = vshll.u32 %v16366_v5, %v1763_v40  ;;  %v1769_v58 = vshll.u32 %v16376_v8, %v1763_v40  ;;  %v1772_v48 = vshll.u32 %v16377_v16, %v1763_v40  ;;  %v1773_v2 = vshrl.u32 %v16378_v12, %v1764_v47 }
 0x16d   : > { %v1914_v13 = vadd.s32 536870912, %v1913_v61  ;;  %v1775_v7 = vshll.u32 %v16378_v12, %v1763_v40  ;;  %v1776_v11 = vshrl.u32 %v16380_v14, %v1764_v47  ;;  %v10654_v17 = vshll.u32 %v1757_v33, 8 }
 0x16e   : > { %v1725_v52 = vand.u32 2147483647, %v10641_v45  ;;  %v1768_v21 = vor.u32 %v1767_v24, %v1766_v49  ;;  %v1771_v9 = vor.u32 %v1770_v29, %v1769_v58  ;;  %v1774_v32 = vor.u32 %v1773_v2, %v1772_v48 }
 0x16f   : > { %v10657_v20 = vshrl.u32 %v1914_v13, 30  ;;  %v1777_v39 = vor.u32 %v1776_v11, %v1775_v7  ;;  %v1778_v56 = vshll.u32 %v16380_v14, %v1763_v40  ;;  %v1779_v25 = vshrl.u32 %v16381_v35, %v1764_v47 }
 0x170   : > { %v1613_v57 = vsub.s32 32, %v10635_v31  ;;  %v1618_v59 = vadd.s32 127, %v1617_v27  ;;  %vm1784_vm14 = vcmp.lt.s32.totalorder %v1762_v44, 4  ;;  %v2065_v62 = vshrl.u32 %v2064_v53, 23  ;;  %v10662_v55 = vpop.eup %9204  ;;  %v574_v53 = vpop.permute.xlu0 %573 }
 0x171   : > { %16414 = vst [vmem:[#allocation37_spill] sm:$0xff] %v10657_v20  ;;  %v1916_v33 = vshll.u32 %v10657_v20, 30  ;;  %v1780_v45 = vor.u32 %v1779_v25, %v1778_v56  ;;  %vm1781_vm2 = vcmp.lt.s32.totalorder %v1762_v44, 1  ;;  %v1786_v24 = vsel %vm1784_vm14, %v1774_v32, 2102212464 }
 0x172   : > { %v1765_v29 = vshrl.u32 %v16366_v5, %v1764_v47  ;;  %vm1783_vm7 = vcmp.lt.s32.totalorder %v1762_v44, 3  ;;  %v1789_v49 = vsel %vm1781_vm2, %v1768_v21, %v1771_v9  ;;  %v1790_v40 = vsel %vm1784_vm14, %v1777_v39, 920167782 }
 0x173   : > { %v10668_v58 = vsub.s32 %v1913_v61, %v1916_v33  ;;  %vm1782_vm9 = vcmp.lt.s32.totalorder %v1762_v44, 2  ;;  %v1791_v27 = vsel %vm1783_vm7, %v1774_v32, %v1790_v40  ;;  %v1793_v48 = vsel %vm1781_vm2, %v1771_v9, %v1774_v32 }
 0x174   : > { %vm16104_vm13 = vcmp.lt.s32.totalorder %v10177_v37, 0  ;;  %v1785_v2 = vsel %vm1781_vm2, %v1765_v29, %v1768_v21  ;;  %v1787_v13 = vsel %vm1783_vm7, %v1771_v9, %v1786_v24  ;;  %v1792_v7 = vsel %vm1782_vm9, %v1789_v49, %v1791_v27  ;;  %v676_v27 = vpop.permute.xlu0 %675 }
 0x175   : > { %v1794_v11 = vsel %vm1784_vm14, %v1780_v45, 1326507024  ;;  %v1919_v47 = vsub.s32 0, %v10668_v58  ;;  %v10675_v25 = vmul.u32.u64.low %v10654_v17, %v1792_v7  ;;  %v10676_v20 = vmul.u32.u64.high %v10654_v17, %v1792_v7, %v10675_v25 }
 0x176   : > { %v1795_v56 = vsel %vm1783_vm7, %v1777_v39, %v1794_v11  ;;  %v1615_v61 = vshrl.u32 %v1597_v41, %v1613_v57  ;;  %v1619_v33 = vshll.u32 %v1618_v59, 23  ;;  %v8242_v40 = vadd.s32 4294967169, %v2065_v62 }
 0x177   : > { %v1796_v32 = vsel %vm1782_vm9, %v1793_v48, %v1795_v56  ;;  %v1727_v21 = vcvt.s32.f32 %v10631_v0  ;;  %v8235_v9 = vmin.u32 %v1919_v47, %v10668_v58  ;;  %v1417_v39 = vxor.u32 2147483648, %v10625_v1 }
 0x178   : > { %v10683_v24 = vmul.u32.u64.low %v10654_v17, %v1796_v32  ;;  %v10684_v45 = vmul.u32.u64.high %v10654_v17, %v1796_v32, %v10683_v24  ;;  %v1614_v29 = vshll.u32 %v10579_v34, %v10635_v31  ;;  %v1788_v49 = vsel %vm1782_vm9, %v1785_v2, %v1787_v13 }
 0x179   : > { %v2071_v41 = vadd.s32 1, %v8242_v40  ;;  %v10690_v57 = vmul.f32 %v1727_v21, %v1725_v52  ;;  %v1921_v59 = vclz %v8235_v9  ;;  %v1807_v62 = vadd.s32 1, %v10676_v20 }
 0x17a   : > { %v609_v0 = vmul.f32 %v10432_v22, %v574_v53  ;;  %v10694_v48 = vor.u32 %v1615_v61, %v1614_v29  ;;  %v10696_v7 = vor.u32 4788187, %v1619_v33  ;;  %v16415_v11 = vand.u32 2147483647, %v10611_v15 }
 0x17b   : > { %vm2072_vm14 = vcmp.gt.s32.totalorder %v2071_v41, 0  ;;  %v8236_v34 = vadd.s32 4294967294, %v1921_v59  ;;  %v1804_v31 = vmul.u32 %v10654_v17, %v1788_v49  ;;  %vm1806_vm2 = vc.u32 %v10684_v45, %v10675_v25 }
 0x17c   : > { %v2068_v47 = vand.u32 8388607, %v16415_v11  ;;  %v2073_v44 = vsel %vm2072_vm14, %v2071_v41, 0  ;;  %9206 = vsinq.f32 %v10541_v43  ;;  %v1808_v52 = vsel %vm1806_vm2, %v1807_v62, %v10676_v20 }
 0x17d   : > { %v2075_v53 = vand.u32 31, %v2073_v44  ;;  %v10705_v2 = vadd.f32 %v676_v27, %v609_v0  ;;  %v16416_v13 = vor.u32 %v10238_v23, %v10135_v42  ;;  %9208 = vcosq.f32 %v10619_v28 }
 0x17e   : > { %v10718_v17 = vsel %vm16104_vm13, %v1417_v39, %v10625_v1  ;;  %v1809_v43 = vadd.s32 %v1808_v52, %v1804_v31  ;;  %v1909_v33 = vadd.s32 %v10599_v54, %v10608_v46  ;;  %vm8237_vm7 = vcmp.lt.s32.totalorder %v8236_v34, 0 }
 0x17f   : > { %v10712_v56 = vsel %vm16142_vm4, %v16416_v13, 1326507024  ;;  %v2076_v42 = vsub.s32 32, %v2075_v53  ;;  %v2069_v40 = vor.u32 8388608, %v2068_v47  ;;  %v10725_v21 = vshrl.u32 %v2073_v44, 5 }
 0x180   : > { %v1810_v32 = vadd.s32 536870912, %v1809_v43  ;;  %v1960_v24 = vand.u32 2139095040, %v10705_v2  ;;  %v2078_v29 = vshll.u32 %v16366_v5, %v2075_v53  ;;  %v2081_v54 = vshll.u32 %v16376_v8, %v2075_v53 }
 0x181   : > { %v2079_v9 = vshrl.u32 %v16376_v8, %v2076_v42  ;;  %v2082_v1 = vshrl.u32 %v16377_v16, %v2076_v42  ;;  %v2085_v46 = vshrl.u32 %v16378_v12, %v2076_v42  ;;  %v10735_v49 = vsel %vm8237_vm7, 0, %v8236_v34 }
 0x182   : > { %v10730_v39 = vshrl.u32 %v1810_v32, 30  ;;  %v2084_v41 = vshll.u32 %v16377_v16, %v2075_v53  ;;  %v2087_v59 = vshll.u32 %v16378_v12, %v2075_v53  ;;  %v2088_v62 = vshrl.u32 %v16380_v14, %v2076_v42 }
 0x183   : > { %v2080_v27 = vor.u32 %v2079_v9, %v2078_v29  ;;  %v2083_v11 = vor.u32 %v2082_v1, %v2081_v54  ;;  %v10741_v47 = vshll.u32 %v2069_v40, 8  ;;  %v2090_v52 = vshll.u32 %v16380_v14, %v2075_v53 }
 0x184   : > { %16417 = vst [vmem:[#allocation38_spill] sm:$0xff] %v10730_v39  ;;  %v1812_v0 = vshll.u32 %v10730_v39, 30  ;;  %v2086_v31 = vor.u32 %v2085_v46, %v2084_v41  ;;  %v2089_v44 = vor.u32 %v2088_v62, %v2087_v59  ;;  %v2091_v13 = vshrl.u32 %v16381_v35, %v2076_v42 }
 0x185   : > { %v16418_v34 = vand.u32 2147483647, %v10177_v37  ;;  %v16419_v32 = vmov 0  ;;  %v1929_v20 = vsub.s32 4294967266, %v10735_v49  ;;  %v1961_v40 = vshrl.u32 %v1960_v24, 23 }
 0x186   : > { %v10752_v61 = vsub.s32 %v1809_v43, %v1812_v0  ;;  %v10755_v1 = vpop.eup %9206  ;;  %v1925_v29 = vsub.s32 32, %v10735_v49  ;;  %v2077_v53 = vshrl.u32 %v16366_v5, %v2076_v42  ;;  %v2092_v54 = vor.u32 %v2091_v13, %v2090_v52 }
 0x187   : > { %vm10747_vm9 = vcmp.le.f32.partialorder %v16418_v34, 0.7853982  ;;  %vm2093_vm14 = vcmp.lt.s32.totalorder %v10725_v21, 1  ;;  %v10760_v46 = vpop.eup %9208  ;;  %vm2095_vm2 = vcmp.lt.s32.totalorder %v10725_v21, 3  ;;  %vm2096_vm7 = vcmp.lt.s32.totalorder %v10725_v21, 4  ;;  %v589_v34 = vpop.permute.xlu1 %588 }
 0x188   : > { %v16420_v32 = vsel %vm10747_vm9, 4294967295, %v16419_v32  ;;  %16422 = vst [vmem:[#allocation40_spill] sm:$0xff] %v10760_v46  ;;  %v1815_v41 = vsub.s32 0, %v10752_v61  ;;  %v2101_v43 = vsel %vm2093_vm14, %v2080_v27, %v2083_v11  ;;  %v2098_v24 = vsel %vm2096_vm7, %v2086_v31, 2102212464 }
 0x189   : > { %16421 = vst [vmem:[#allocation39_spill] sm:$0xff] %v16420_v32  ;;  %v2102_v59 = vsel %vm2096_vm7, %v2089_v44, 920167782  ;;  %v2105_v62 = vsel %vm2093_vm14, %v2083_v11, %v2086_v31  ;;  %v2106_v42 = vsel %vm2096_vm7, %v2092_v54, 1326507024  ;;  %v1930_v0 = vadd.s32 127, %v1929_v20 }
 0x18a   : > { %v8231_v52 = vmin.u32 %v1815_v41, %v10752_v61  ;;  %vm2094_vm13 = vcmp.lt.s32.totalorder %v10725_v21, 2  ;;  %v2103_v13 = vsel %vm2095_vm2, %v2086_v31, %v2102_v59  ;;  %v1927_v23 = vshrl.u32 %v1909_v33, %v1925_v29 }
 0x18b   : > { %v2104_v9 = vsel %vm2094_vm13, %v2101_v43, %v2103_v13  ;;  %v2107_v39 = vsel %vm2095_vm2, %v2089_v44, %v2106_v42  ;;  %v8238_v46 = vadd.s32 4294967169, %v1961_v40  ;;  %v2097_v20 = vsel %vm2093_vm14, %v2077_v53, %v2080_v27  ;;  %v584_v44 = vpop.permute.xlu0 %583 }
 0x18c   : > { %v1817_v63 = vclz %v8231_v52  ;;  %v2099_v54 = vsel %vm2095_vm2, %v2083_v11, %v2098_v24  ;;  %v2108_v41 = vsel %vm2094_vm13, %v2105_v62, %v2107_v39  ;;  %v1931_v40 = vshll.u32 %v1930_v0, 23 }
 0x18d   : > { %v10784_v31 = vmul.u32.u64.low %v10741_v47, %v2108_v41  ;;  %v10785_v33 = vmul.u32.u64.high %v10741_v47, %v2108_v41, %v10784_v31  ;;  %v10788_v29 = vmul.u32.u64.low %v10741_v47, %v2104_v9  ;;  %v10789_v43 = vmul.u32.u64.high %v10741_v47, %v2104_v9, %v10788_v29 }
 0x18e   : > { %v8232_v59 = vadd.s32 4294967294, %v1817_v63  ;;  %v16423_v27 = vand.u32 2147483647, %v10705_v2  ;;  %v1967_v42 = vadd.s32 1, %v8238_v46  ;;  %9210 = vsinq.f32 %v10619_v28  ;;  %v691_v46 = vpop.permute.xlu1 %690 }
 0x18f   : > { %v10799_v39 = vsel %vm10747_vm9, %v10177_v37, %v10718_v17  ;;  %vm16112_vm14 = vcmp.lt.s32.totalorder %v10234_v38, 0  ;;  %v1926_v11 = vshll.u32 %v10668_v58, %v10735_v49  ;;  %v16424_v9 = vand.u32 2147483647, %v10696_v7 }
 0x190   : > { %v1964_v53 = vand.u32 8388607, %v16423_v27  ;;  %v16425_v63 = vcvt.s32.f32 %v10694_v48  ;;  %vm8233_vm2 = vcmp.lt.s32.totalorder %v8232_v59, 0  ;;  %v2100_v28 = vsel %vm2094_vm13, %v2097_v20, %v2099_v54 }
 0x191   : > { %vm1968_vm7 = vcmp.gt.s32.totalorder %v1967_v42, 0  ;;  %v10812_v62 = vor.u32 %v1927_v23, %v1926_v11  ;;  %v10814_v17 = vsel %vm8233_vm2, 0, %v8232_v59  ;;  %vm2118_vm11 = vc.u32 %v10785_v33, %v10788_v29 }
 0x192   : > { %v10808_v24 = vmul.f32 %v16425_v63, %v16424_v9  ;;  %v612_v58 = vmul.f32 %v10432_v22, %v589_v34  ;;  %v16426_v48 = vxor.u32 2147483648, %v10690_v57  ;;  %v10826_v21 = vor.u32 4788187, %v1931_v40  ;;  %v686_v34 = vpop.permute.xlu0 %685 }
 0x193   : > { %v2119_v49 = vadd.s32 1, %v10789_v43  ;;  %v1965_v23 = vor.u32 8388608, %v1964_v53  ;;  %v1821_v0 = vsub.s32 32, %v10814_v17  ;;  %v2116_v52 = vmul.u32 %v10741_v47, %v2100_v28 }
 0x194   : > { %v10824_v7 = vsel %vm16112_vm14, %v16426_v48, %v10690_v57  ;;  %v1969_v13 = vsel %vm1968_vm7, %v1967_v42, 0  ;;  %v10831_v20 = vadd.f32 %v691_v46, %v612_v58  ;;  %v1825_v41 = vsub.s32 4294967266, %v10814_v17 }
 0x195   : > { %v2120_v57 = vsel %vm2118_vm11, %v2119_v49, %v10789_v43  ;;  %v611_v31 = vmul.f32 %v10432_v22, %v584_v44  ;;  %v1935_v40 = vcvt.s32.f32 %v10812_v62  ;;  %v1805_v59 = vadd.s32 %v10675_v25, %v10684_v45 }
 0x196   : > { %v2121_v27 = vadd.s32 %v2120_v57, %v2116_v52  ;;  %v1971_v53 = vand.u32 31, %v1969_v13  ;;  %v1933_v47 = vand.u32 2147483647, %v10826_v21  ;;  %v1822_v42 = vshll.u32 %v10752_v61, %v10814_v17 }
 0x197   : > { %v10843_v11 = vshll.u32 %v1965_v23, 8  ;;  %v10845_v9 = vadd.f32 %v686_v34, %v611_v31  ;;  %v1823_v63 = vshrl.u32 %v1805_v59, %v1821_v0  ;;  %v2272_v22 = vand.u32 2139095040, %v10831_v20 }
 0x198   : > { %v2122_v43 = vadd.s32 536870912, %v2121_v27  ;;  %v1972_v28 = vsub.s32 32, %v1971_v53  ;;  %v1826_v44 = vadd.s32 127, %v1825_v41  ;;  %v1970_v46 = vshrl.u32 %v1969_v13, 5  ;;  %v10850_v62 = vpop.eup %9210 }
 0x199   : > { %v1974_v25 = vshll.u32 %v16366_v5, %v1971_v53  ;;  %v1977_v45 = vshll.u32 %v16376_v8, %v1971_v53  ;;  %16427 = vst [vmem:[#allocation41_spill] sm:$0xff] %v10850_v62  ;;  %v1980_v48 = vshll.u32 %v16377_v16, %v1971_v53  ;;  %v1983_v49 = vshll.u32 %v16378_v12, %v1971_v53 }
 0x19a   : > { %v10852_v58 = vshrl.u32 %v2122_v43, 30  ;;  %v1975_v61 = vshrl.u32 %v16376_v8, %v1972_v28  ;;  %v1978_v17 = vshrl.u32 %v16377_v16, %v1972_v28  ;;  %v1981_v21 = vshrl.u32 %v16378_v12, %v1972_v28 }
 0x19b   : > { %v1984_v23 = vshrl.u32 %v16380_v14, %v1972_v28  ;;  %v1986_v0 = vshll.u32 %v16380_v14, %v1971_v53  ;;  %v1987_v41 = vshrl.u32 %v16381_v35, %v1972_v28  ;;  %v16429_v57 = vand.u32 2147483647, %v10234_v38 }
 0x19c   : > { %16428 = vst [vmem:[#allocation42_spill] sm:$0xff] %v10852_v58  ;;  %v2124_v52 = vshll.u32 %v10852_v58, 30  ;;  %v1976_v13 = vor.u32 %v1975_v61, %v1974_v25  ;;  %v1979_v34 = vor.u32 %v1978_v17, %v1977_v45  ;;  %v16430_v31 = vmov 0 }
 0x19d   : > { %vm10865_vm11 = vcmp.le.f32.partialorder %v16429_v57, 0.7853982  ;;  %vm16128_vm13 = vcmp.lt.s32.totalorder %v10337_v50, 0  ;;  %v1827_v59 = vshll.u32 %v1826_v44, 23  ;;  %v1982_v43 = vor.u32 %v1981_v21, %v1980_v48 }
 0x19e   : > { %v16431_v31 = vsel %vm10865_vm11, 4294967295, %v16430_v31  ;;  %v1985_v54 = vor.u32 %v1984_v23, %v1983_v49  ;;  %vm1989_vm2 = vcmp.lt.s32.totalorder %v1970_v46, 1  ;;  %v10870_v62 = vsub.s32 %v2121_v27, %v2124_v52 }
 0x19f   : > { %16432 = vst [vmem:[#allocation43_spill] sm:$0xff] %v16431_v31  ;;  %v1988_v53 = vor.u32 %v1987_v41, %v1986_v0  ;;  %vm1990_vm7 = vcmp.lt.s32.totalorder %v1970_v46, 2  ;;  %vm1992_vm14 = vcmp.lt.s32.totalorder %v1970_v46, 4  ;;  %vm1991_vm0 = vcmp.lt.s32.totalorder %v1970_v46, 3 }
 0x1a0   : > { %v1994_v25 = vsel %vm1992_vm14, %v1982_v43, 2102212464  ;;  %v1997_v45 = vsel %vm1989_vm2, %v1976_v13, %v1979_v34  ;;  %v1998_v61 = vsel %vm1992_vm14, %v1985_v54, 920167782  ;;  %v2127_v17 = vsub.s32 0, %v10870_v62 }
 0x1a1   : > { %v1973_v57 = vshrl.u32 %v16366_v5, %v1972_v28  ;;  %v1999_v58 = vsel %vm1991_vm0, %v1982_v43, %v1998_v61  ;;  %v2001_v44 = vsel %vm1989_vm2, %v1979_v34, %v1982_v43  ;;  %v1828_v48 = vor.u32 4788187, %v1827_v59 }
 0x1a2   : > { %v2000_v21 = vsel %vm1990_vm7, %v1997_v45, %v1999_v58  ;;  %v2002_v27 = vsel %vm1992_vm14, %v1988_v53, 1326507024  ;;  %v2273_v49 = vshrl.u32 %v2272_v22, 23  ;;  %v8243_v23 = vmin.u32 %v2127_v17, %v10870_v62 }
 0x1a3   : > { %v1993_v0 = vsel %vm1989_vm2, %v1973_v57, %v1976_v13  ;;  %v1995_v52 = vsel %vm1991_vm0, %v1979_v34, %v1994_v25  ;;  %v2003_v41 = vsel %vm1991_vm0, %v1985_v54, %v2002_v27  ;;  %v16433_v32 = vand.u32 2147483647, %v10337_v50 }
 0x1a4   : > { %v1824_v28 = vor.u32 %v1823_v63, %v1822_v42  ;;  %v2004_v43 = vsel %vm1990_vm7, %v2001_v44, %v2003_v41  ;;  %v10887_v59 = vmul.u32.u64.low %v10843_v11, %v2000_v21  ;;  %v10888_v58 = vmul.u32.u64.high %v10843_v11, %v2000_v21, %v10887_v59 }
 0x1a5   : > { %vm10881_vm3 = vcmp.le.f32.partialorder %v16433_v32, 0.7853982  ;;  %v1936_v22 = vmul.f32 %v1935_v40, %v1933_v47  ;;  %v2129_v53 = vclz %v8243_v23  ;;  %9212 = vcosq.f32 %v10799_v39 }
 0x1a6   : > { %v10892_v13 = vmul.u32.u64.low %v10843_v11, %v2004_v43  ;;  %v10893_v34 = vmul.u32.u64.high %v10843_v11, %v2004_v43, %v10892_v13  ;;  %v1829_v32 = vand.u32 2147483647, %v1828_v48  ;;  %v1996_v54 = vsel %vm1990_vm7, %v1993_v0, %v1995_v52 }
 0x1a7   : > { %v8250_v25 = vadd.s32 4294967169, %v2273_v49  ;;  %v1733_v42 = vsel %vm10865_vm11, %v10234_v38, %v10824_v7  ;;  %v16436_v63 = vxor.u32 2147483648, %v10808_v24  ;;  %v8244_v47 = vadd.s32 4294967294, %v2129_v53 }
 0x1a8   : > { %v16121_v45 = vand.u32 2147483647, %v10831_v20  ;;  %v1831_v61 = vcvt.s32.f32 %v1824_v28  ;;  %v2015_v17 = vadd.s32 1, %v10888_v58  ;;  %v2168_v57 = vand.u32 2139095040, %v10845_v9 }
 0x1a9   : > { %v1626_v40 = vsel %vm16128_vm13, %v16436_v63, %v10808_v24  ;;  %v2279_v46 = vadd.s32 1, %v8250_v25  ;;  %v1937_v44 = vxor.u32 2147483648, %v1936_v22  ;;  %vm8245_vm0 = vcmp.lt.s32.totalorder %v8244_v47, 0 }
 0x1aa   : > { %v2012_v48 = vmul.u32 %v10843_v11, %v1996_v54  ;;  %vm2014_vm14 = vc.u32 %v10893_v34, %v10887_v59  ;;  %v10912_v7 = vmul.f32 %v1831_v61, %v1829_v32  ;;  %v10914_v21 = vsel %vm8245_vm0, 0, %v8244_v47 }
 0x1ab   : > { %v2016_v24 = vsel %vm2014_vm14, %v2015_v17, %v10888_v58  ;;  %vm2280_vm2 = vcmp.gt.s32.totalorder %v2279_v46, 0  ;;  %9214 = vsinq.f32 %v10799_v39  ;;  %v2276_v49 = vand.u32 8388607, %v16121_v45 }
 0x1ac   : > { %v2017_v27 = vadd.s32 %v2016_v24, %v2012_v48  ;;  %v16120_v23 = vand.u32 2147483647, %v9862_v18  ;;  %9216 = vcosq.f32 %v1733_v42  ;;  %v2137_v11 = vsub.s32 4294967266, %v10914_v21 }
 0x1ad   : > { %v2281_v0 = vsel %vm2280_vm2, %v2279_v46, 0  ;;  %v2169_v52 = vshrl.u32 %v2168_v57, 23  ;;  %9218 = vsinq.f32 %v1733_v42  ;;  %v10925_v41 = vsel %vm10881_vm3, %v10337_v50, %v1626_v40 }
 0x1ae   : > { %vm16127_vm7 = vcmp.lt.s32.totalorder %v10449_v60, 0  ;;  %v2018_v39 = vadd.s32 536870912, %v2017_v27  ;;  %v2117_v58 = vadd.s32 %v10788_v29, %v10785_v33  ;;  %v2283_v53 = vand.u32 31, %v2281_v0 }
 0x1af   : > { %v10930_v28 = vsel %vm16127_vm7, %v1937_v44, %v1936_v22  ;;  %v2277_v32 = vor.u32 8388608, %v2276_v49  ;;  %v10940_v25 = vand.u32 8388607, %v16120_v23  ;;  %v10942_v42 = vpop.eup %9212  ;;  %v2133_v22 = vsub.s32 32, %v10914_v21 }
 0x1b0   : > { %v10935_v13 = vshrl.u32 %v2018_v39, 30  ;;  %v2138_v63 = vadd.s32 127, %v2137_v11  ;;  %v2284_v40 = vsub.s32 32, %v2283_v53  ;;  %v8246_v47 = vadd.s32 4294967169, %v2169_v52 }
 0x1b1   : > { %v2282_v33 = vshrl.u32 %v2281_v0, 5  ;;  %v2286_v29 = vshll.u32 %v16366_v5, %v2283_v53  ;;  %v2289_v17 = vshll.u32 %v16376_v8, %v2283_v53  ;;  %v2292_v44 = vshll.u32 %v16377_v16, %v2283_v53 }
 0x1b2   : > { %16437 = vst [vmem:[#allocation44_spill] sm:$0xff] %v10935_v13  ;;  %v2020_v61 = vshll.u32 %v10935_v13, 30  ;;  %v2287_v46 = vshrl.u32 %v16376_v8, %v2284_v40  ;;  %v2290_v57 = vshrl.u32 %v16377_v16, %v2284_v40  ;;  %v2293_v48 = vshrl.u32 %v16378_v12, %v2284_v40 }
 0x1b3   : > { %v2295_v49 = vshll.u32 %v16378_v12, %v2283_v53  ;;  %v2296_v11 = vshrl.u32 %v16380_v14, %v2284_v40  ;;  %v2298_v0 = vshll.u32 %v16380_v14, %v2283_v53  ;;  %v2299_v45 = vshrl.u32 %v16381_v35, %v2284_v40 }
 0x1b4   : > { %v10952_v24 = vsub.s32 %v2017_v27, %v2020_v61  ;;  %v2288_v52 = vor.u32 %v2287_v46, %v2286_v29  ;;  %v2291_v39 = vor.u32 %v2290_v57, %v2289_v17  ;;  %v2294_v23 = vor.u32 %v2293_v48, %v2292_v44 }
 0x1b5   : > { %v10958_v43 = vpop.eup %9214  ;;  %v16438_v54 = vand.u32 2147483647, %v10449_v60  ;;  %v16439_v13 = vmov 0  ;;  %v2135_v27 = vshrl.u32 %v2117_v58, %v2133_v22  ;;  %v2297_v31 = vor.u32 %v2296_v11, %v2295_v49 }
 0x1b6   : > { %v2023_v61 = vsub.s32 0, %v10952_v24  ;;  %v10967_v38 = vshll.u32 %v2277_v32, 8  ;;  %v10969_v53 = vpop.eup %9216  ;;  %vm16141_vm14 = vcmp.lt.s32.totalorder %v10470_v3, 0  ;;  %v2139_v29 = vshll.u32 %v2138_v63, 23 }
 0x1b7   : > { %vm10962_vm0 = vcmp.le.f32.partialorder %v16438_v54, 0.7853982  ;;  %16442 = vst [vmem:[#allocation46_spill] sm:$0xff] %v10969_v53  ;;  %v2300_v17 = vor.u32 %v2299_v45, %v2298_v0  ;;  %vm2301_vm2 = vcmp.lt.s32.totalorder %v2282_v33, 1  ;;  %v2175_v46 = vadd.s32 1, %v8246_v47  ;;  %v10972_v57 = vpop.eup %9218 }
 0x1b8   : > { %v16440_v13 = vsel %vm10962_vm0, 4294967295, %v16439_v13  ;;  %16443 = vst [vmem:[#allocation47_spill] sm:$0xff] %v10972_v57  ;;  %v8239_v54 = vmin.u32 %v2023_v61, %v10952_v24  ;;  %vm2303_vm7 = vcmp.lt.s32.totalorder %v2282_v33, 3  ;;  %vm2304_vm13 = vcmp.lt.s32.totalorder %v2282_v33, 4 }
 0x1b9   : > { %16441 = vst [vmem:[#allocation45_spill] sm:$0xff] %v16440_v13  ;;  %v2309_v58 = vsel %vm2301_vm2, %v2288_v52, %v2291_v39  ;;  %v2306_v22 = vsel %vm2304_vm13, %v2294_v23, 2102212464  ;;  %v2310_v44 = vsel %vm2304_vm13, %v2297_v31, 920167782  ;;  %v2313_v32 = vsel %vm2301_vm2, %v2291_v39, %v2294_v23 }
 0x1ba   : > { %v2314_v48 = vsel %vm2304_vm13, %v2300_v17, 1326507024  ;;  %v2025_v49 = vclz %v8239_v54  ;;  %v2285_v11 = vshrl.u32 %v16366_v5, %v2284_v40  ;;  %vm2302_vm1 = vcmp.lt.s32.totalorder %v2282_v33, 2 }
 0x1bb   : > { %v2311_v45 = vsel %vm2303_vm7, %v2294_v23, %v2310_v44  ;;  %v2134_v63 = vshll.u32 %v10870_v62, %v10914_v21  ;;  %v2315_v0 = vsel %vm2303_vm7, %v2297_v31, %v2314_v48  ;;  %v16444_v61 = vand.u32 2147483647, %v10845_v9 }
 0x1bc   : > { %v2312_v47 = vsel %vm2302_vm1, %v2309_v58, %v2311_v45  ;;  %v2305_v57 = vsel %vm2301_vm2, %v2285_v11, %v2288_v52  ;;  %v2307_v17 = vsel %vm2303_vm7, %v2291_v39, %v2306_v22  ;;  %v2316_v54 = vsel %vm2302_vm1, %v2313_v32, %v2315_v0 }
 0x1bd   : > { %v2172_v53 = vand.u32 8388607, %v16444_v61  ;;  %vm2176_vm13 = vcmp.gt.s32.totalorder %v2175_v46, 0  ;;  %v2140_v40 = vor.u32 4788187, %v2139_v29  ;;  %v2136_v21 = vor.u32 %v2135_v27, %v2134_v63 }
 0x1be   : > { %v10989_v23 = vmul.u32.u64.low %v10967_v38, %v2316_v54  ;;  %v10990_v44 = vmul.u32.u64.high %v10967_v38, %v2316_v54, %v10989_v23  ;;  %v2177_v62 = vsel %vm2176_vm13, %v2175_v46, 0  ;;  %v8240_v58 = vadd.s32 4294967294, %v2025_v49 }
 0x1bf   : > { %v10993_v31 = vmul.u32.u64.low %v10967_v38, %v2312_v47  ;;  %v10994_v48 = vmul.u32.u64.high %v10967_v38, %v2312_v47, %v10993_v31  ;;  %9220 = vcosq.f32 %v10925_v41  ;;  %v11002_v52 = vsel %vm10962_vm0, %v10449_v60, %v10930_v28 }
 0x1c0   : > { %v2308_v39 = vsel %vm2302_vm1, %v2305_v57, %v2307_v17  ;;  %v2179_v29 = vand.u32 31, %v2177_v62  ;;  %v16445_v27 = vxor.u32 2147483648, %v10912_v7  ;;  %v2013_v22 = vadd.s32 %v10887_v59, %v10893_v34 }
 0x1c1   : > { %v2173_v32 = vor.u32 8388608, %v2172_v53  ;;  %v2141_v11 = vand.u32 2147483647, %v2140_v40  ;;  %vm2326_vm7 = vc.u32 %v10990_v44, %v10993_v31  ;;  %v11019_v33 = vshrl.u32 %v16366_v5, %v9996_v10 }
 0x1c2   : > { %v11010_v46 = vsel %vm16141_vm14, %v16445_v27, %v10912_v7  ;;  %v2180_v28 = vsub.s32 32, %v2179_v29  ;;  %v2143_v57 = vcvt.s32.f32 %v2136_v21  ;;  %vm8241_vm1 = vcmp.lt.s32.totalorder %v8240_v58, 0 }
 0x1c3   : > { %v2324_v7 = vmul.u32 %v10967_v38, %v2308_v39  ;;  %v2327_v45 = vadd.s32 1, %v10994_v48  ;;  %v2178_v63 = vshrl.u32 %v2177_v62, 5  ;;  %v2182_v59 = vshll.u32 %v16366_v5, %v2179_v29 }
 0x1c4   : > { %v2183_v34 = vshrl.u32 %v16376_v8, %v2180_v28  ;;  %v2186_v53 = vshrl.u32 %v16377_v16, %v2180_v28  ;;  %v2185_v0 = vshll.u32 %v16376_v8, %v2179_v29  ;;  %v2188_v61 = vshll.u32 %v16377_v16, %v2179_v29 }
 0x1c5   : > { %v2328_v47 = vsel %vm2326_vm7, %v2327_v45, %v10994_v48  ;;  %v2189_v17 = vshrl.u32 %v16378_v12, %v2180_v28  ;;  %v11030_v54 = vmul.f32 %v2143_v57, %v2141_v11  ;;  %v11032_v38 = vsel %vm8241_vm1, 0, %v8240_v58  ;;  %v412_v57 = vld [vmem:[%s16031_s3] sm:$0xff] }
 0x1c6   : > { %v2329_v40 = vadd.s32 %v2328_v47, %v2324_v7  ;;  %v2184_v23 = vor.u32 %v2183_v34, %v2182_v59  ;;  %v2187_v62 = vor.u32 %v2186_v53, %v2185_v0  ;;  %v2191_v39 = vshll.u32 %v16378_v12, %v2179_v29  ;;  %8594 = vmatprep.mubr.f32.mxu0 %v412_v57 }
 0x1c7   : > { %v2190_v21 = vor.u32 %v2189_v17, %v2188_v61  ;;  %v2192_v27 = vshrl.u32 %v16380_v14, %v2180_v28  ;;  %v2194_v48 = vshll.u32 %v16380_v14, %v2179_v29  ;;  %v2195_v45 = vshrl.u32 %v16381_v35, %v2180_v28 }
 0x1c8   : > { %v2330_v49 = vadd.s32 536870912, %v2329_v40  ;;  %v2213_v13 = vshll.u32 %v2173_v32, 8  ;;  %v2029_v60 = vsub.s32 32, %v11032_v38  ;;  %v2033_v11 = vsub.s32 4294967266, %v11032_v38 }
 0x1c9   : > { %v2193_v58 = vor.u32 %v2192_v27, %v2191_v39  ;;  %vm2200_vm2 = vcmp.lt.s32.totalorder %v2178_v63, 4  ;;  %v11043_v7 = vpop.eup %9220  ;;  %v2196_v34 = vor.u32 %v2195_v45, %v2194_v48  ;;  %vm2197_vm13 = vcmp.lt.s32.totalorder %v2178_v63, 1 }
 0x1ca   : > { %16446 = vst [vmem:[#allocation48_spill] sm:$0xff] %v11043_v7  ;;  %v11045_v59 = vshrl.u32 %v2330_v49, 30  ;;  %v2202_v29 = vsel %vm2200_vm2, %v2190_v21, 2102212464  ;;  %v2181_v32 = vshrl.u32 %v16366_v5, %v2180_v28  ;;  %vm2199_vm7 = vcmp.lt.s32.totalorder %v2178_v63, 3 }
 0x1cb   : > { %v2205_v53 = vsel %vm2197_vm13, %v2184_v23, %v2187_v62  ;;  %v2206_v47 = vsel %vm2200_vm2, %v2193_v58, 920167782  ;;  %vm2198_vm1 = vcmp.lt.s32.totalorder %v2178_v63, 2  ;;  %v2209_v17 = vsel %vm2197_vm13, %v2187_v62, %v2190_v21 }
 0x1cc   : > { %16447 = vst [vmem:[#allocation49_spill] sm:$0xff] %v11045_v59  ;;  %v2332_v0 = vshll.u32 %v11045_v59, 30  ;;  %v2207_v61 = vsel %vm2199_vm7, %v2190_v21, %v2206_v47  ;;  %v2201_v39 = vsel %vm2197_vm13, %v2181_v32, %v2184_v23  ;;  %v2203_v27 = vsel %vm2199_vm7, %v2187_v62, %v2202_v29 }
 0x1cd   : > { %v2208_v49 = vsel %vm2198_vm1, %v2205_v53, %v2207_v61  ;;  %v2210_v48 = vsel %vm2200_vm2, %v2196_v34, 1326507024  ;;  %v2031_v28 = vshrl.u32 %v2013_v22, %v2029_v60  ;;  %v726_v59 = vshll.u32 %v16366_v5, %v9991_v4 }
 0x1ce   : > { %v11052_v45 = vsub.s32 %v2329_v40, %v2332_v0  ;;  %v2211_v35 = vsel %vm2199_vm7, %v2193_v58, %v2210_v48  ;;  %v11054_v57 = vmul.u32.u64.low %v2213_v13, %v2208_v49  ;;  %v11055_v14 = vmul.u32.u64.high %v2213_v13, %v2208_v49, %v11054_v57 }
 0x1cf   : > { %v2212_v7 = vsel %vm2198_vm1, %v2209_v17, %v2211_v35  ;;  %v727_v21 = vshrl.u32 %v16376_v8, %v9996_v10  ;;  %v2204_v62 = vsel %vm2198_vm1, %v2201_v39, %v2203_v27  ;;  %v2034_v40 = vadd.s32 127, %v2033_v11 }
 0x1d0   : > { %v2335_v23 = vsub.s32 0, %v11052_v45  ;;  %v11063_v63 = vmul.u32.u64.low %v2213_v13, %v2212_v7  ;;  %v11064_v34 = vmul.u32.u64.high %v2213_v13, %v2212_v7, %v11063_v63  ;;  %v729_v29 = vshll.u32 %v16376_v8, %v9991_v4 }
 0x1d1   : > { %v728_v58 = vor.u32 %v727_v21, %v726_v59  ;;  %v730_v35 = vshrl.u32 %v16377_v16, %v9996_v10  ;;  %v2223_v22 = vadd.s32 1, %v11055_v14  ;;  %v732_v32 = vshll.u32 %v16377_v16, %v9991_v4 }
 0x1d2   : > { %v8251_v60 = vmin.u32 %v2335_v23, %v11052_v45  ;;  %v733_v53 = vshrl.u32 %v16378_v12, %v9996_v10  ;;  %v2030_v11 = vshll.u32 %v10952_v24, %v11032_v38  ;;  %v2220_v7 = vmul.u32 %v2213_v13, %v2204_v62 }
 0x1d3   : > { %v731_v59 = vor.u32 %v730_v35, %v729_v29  ;;  %vm741_vm2 = vcmp.lt.s32.totalorder %v10002_v19, 1  ;;  %vm2222_vm13 = vc.u32 %v11064_v34, %v11054_v57  ;;  %vm743_vm7 = vcmp.lt.s32.totalorder %v10002_v19, 3 }
 0x1d4   : > { %v2337_v47 = vclz %v8251_v60  ;;  %v734_v0 = vor.u32 %v733_v53, %v732_v32  ;;  %v2035_v61 = vshll.u32 %v2034_v40, 23  ;;  %v2224_v4 = vsel %vm2222_vm13, %v2223_v22, %v11055_v14 }
 0x1d5   : > { %v749_v10 = vsel %vm741_vm2, %v728_v58, %v731_v59  ;;  %v755_v13 = vsel %vm743_vm7, %v10032_v6, %v10251_v36  ;;  %v11089_v24 = vor.u32 %v2031_v28, %v2030_v11  ;;  %v2225_v17 = vadd.s32 %v2224_v4, %v2220_v7 }
 0x1d6   : > { %v8252_v38 = vadd.s32 4294967294, %v2337_v47  ;;  %v751_v39 = vsel %vm743_vm7, %v734_v0, %v10131_v30  ;;  %vm742_vm1 = vcmp.lt.s32.totalorder %v10002_v19, 2  ;;  %v746_v14 = vsel %vm744_vm6, %v734_v0, 2102212464 }
 0x1d7   : > { %v753_v27 = vsel %vm741_vm2, %v731_v59, %v734_v0  ;;  %v16448_v49 = vor.u32 8388608, %v10940_v25  ;;  %v2226_v6 = vadd.s32 536870912, %v2225_v17  ;;  %v752_v36 = vsel %vm742_vm1, %v749_v10, %v751_v39  ;;  %v16452_v10 = vld [vmem:[#allocation7_spill] sm:$0xff] }
 0x1d8   : > { %vm8253_vm13 = vcmp.lt.s32.totalorder %v8252_v38, 0  ;;  %v756_v28 = vsel %vm742_vm1, %v753_v27, %v755_v13  ;;  %v2036_v30 = vor.u32 4788187, %v2035_v61  ;;  %v745_v25 = vsel %vm741_vm2, %v11019_v33, %v728_v58 }
 0x1d9   : > { %v757_v48 = vshll.u32 %v16448_v49, 8  ;;  %v2340_v21 = vsel %vm8253_vm13, 0, %v8252_v38  ;;  %v11108_v40 = vshrl.u32 %v2226_v6, 30  ;;  %v747_v29 = vsel %vm743_vm7, %v731_v59, %v746_v14  ;;  %v16453_v38 = vld [vmem:[#allocation15_spill] sm:$0xff]  ;;  %v16457_v49 = vld [vmem:[#allocation13_spill] sm:$0xff] }
 0x1da   : > { %v2345_v63 = vsub.s32 4294967266, %v2340_v21  ;;  %9222 = vsinq.f32 %v10925_v41  ;;  %v16449_v35 = vand.u32 2147483647, %v10470_v3  ;;  %v16450_v60 = vmov 0 }
 0x1db   : > { %v11105_v23 = vmul.u32.u64.low %v757_v48, %v756_v28  ;;  %v11106_v62 = vmul.u32.u64.high %v757_v48, %v756_v28, %v11105_v23  ;;  %v11122_v22 = vmul.u32.u64.low %v757_v48, %v752_v36  ;;  %v11123_v32 = vmul.u32.u64.high %v757_v48, %v752_v36, %v11122_v22 }
 0x1dc   : > { %vm11118_vm6 = vcmp.le.f32.partialorder %v16449_v35, 0.7853982  ;;  %9224 = vcosq.f32 %v11002_v52  ;;  %vm16140_vm13 = vcmp.lt.s32.totalorder %v10611_v15, 0  ;;  %v2341_v33 = vsub.s32 32, %v2340_v21 }
 0x1dd   : > { %v16451_v60 = vsel %vm11118_vm6, 4294967295, %v16450_v60  ;;  %v2346_v58 = vadd.s32 127, %v2345_v63  ;;  %v2228_v53 = vshll.u32 %v11108_v40, 30  ;;  %v11133_v41 = vsel %vm11118_vm6, %v10470_v3, %v11010_v46 }
 0x1de   : > { %v2145_v11 = vxor.u32 2147483648, %v11030_v54  ;;  %v2325_v7 = vadd.s32 %v10993_v31, %v10990_v44  ;;  %v748_v59 = vsel %vm742_vm1, %v745_v25, %v747_v29  ;;  %v2037_v47 = vand.u32 2147483647, %v2036_v30 }
 0x1df   : > { %v2039_v0 = vcvt.s32.f32 %v11089_v24  ;;  %v11141_v61 = vsub.s32 %v2225_v17, %v2228_v53  ;;  %vm766_vm2 = vc.u32 %v11106_v62, %v11122_v22  ;;  %v2347_v4 = vshll.u32 %v2346_v58, 23 }
 0x1e0   : > { %v767_v46 = vadd.s32 1, %v11123_v32  ;;  %v813_v13 = vand.u32 2147483647, %v16452_v10  ;;  %v831_v39 = vshrl.u32 %v16376_v8, %v16453_v38  ;;  %v16454_v44 = vand.u32 2147483647, %v10611_v15 }
 0x1e1   : > { %v16455_v19 = vmov 0  ;;  %v2342_v31 = vshll.u32 %v11052_v45, %v2340_v21  ;;  %v2343_v24 = vshrl.u32 %v2325_v7, %v2341_v33  ;;  %v2231_v17 = vsub.s32 0, %v11141_v61 }
 0x1e2   : > { %vm11151_vm7 = vcmp.le.f32.partialorder %v16454_v44, 0.7853982  ;;  %v764_v14 = vmul.u32 %v757_v48, %v748_v59  ;;  %v768_v27 = vsel %vm766_vm2, %v767_v46, %v11123_v32  ;;  %v830_v6 = vshll.u32 %v16366_v5, %v16457_v49 }
 0x1e3   : > { %v16456_v19 = vsel %vm11151_vm7, 4294967295, %v16455_v19  ;;  %v833_v36 = vshll.u32 %v16376_v8, %v16457_v49  ;;  %v834_v28 = vshrl.u32 %v16377_v16, %v16453_v38  ;;  %v8247_v30 = vmin.u32 %v2231_v17, %v11141_v61 }
 0x1e4   : > { %v769_v23 = vadd.s32 %v768_v27, %v764_v14  ;;  %v836_v45 = vshll.u32 %v16377_v16, %v16457_v49  ;;  %v837_v48 = vshrl.u32 %v16378_v12, %v16453_v38  ;;  %v2348_v21 = vor.u32 4788187, %v2347_v4  ;;  %v11172_v58 = vpop.eup %9222  ;;  %v16458_v14 = vld [vmem:[#allocation21_spill] sm:$0xff] }
 0x1e5   : > { %v820_v63 = vand.u32 8388607, %v813_v13  ;;  %v832_v25 = vor.u32 %v831_v39, %v830_v6  ;;  %v835_v29 = vor.u32 %v834_v28, %v833_v36  ;;  %9226 = vsinq.f32 %v11002_v52 }
 0x1e6   : > { %v2233_v35 = vclz %v8247_v30  ;;  %v770_v32 = vadd.s32 536870912, %v769_v23  ;;  %v838_v33 = vor.u32 %v837_v48, %v836_v45  ;;  %9228 = vcosq.f32 %v11133_v41  ;;  %v11178_v4 = vpop.eup %9224 }
 0x1e7   : > { %v2146_v53 = vsel %vm16140_vm13, %v2145_v11, %v11030_v54  ;;  %v2040_v7 = vmul.f32 %v2039_v0, %v2037_v47  ;;  %v2344_v59 = vor.u32 %v2343_v24, %v2342_v31  ;;  %vm16144_vm1 = vcmp.lt.s32.totalorder %v10016_v26, 1  ;;  %v16459_v47 = vld [vmem:[#allocation22_spill] sm:$0xff] }
 0x1e8   : > { %v8248_v46 = vadd.s32 4294967294, %v2233_v35  ;;  %v771_v39 = vshrl.u32 %v770_v32, 30  ;;  %vm16143_vm2 = vcmp.lt.s32.totalorder %v10016_v26, 3  ;;  %v2349_v52 = vand.u32 2147483647, %v2348_v21 }
 0x1e9   : > { %v821_v44 = vor.u32 8388608, %v820_v63  ;;  %v853_v17 = vsel %vm16144_vm1, %v832_v25, %v835_v29  ;;  %v859_v54 = vsel %vm16143_vm2, %v16458_v14, %v10712_v56  ;;  %v855_v0 = vsel %vm16143_vm2, %v838_v33, %v16459_v47 }
 0x1ea   : > { %vm8249_vm14 = vcmp.lt.s32.totalorder %v8248_v46, 0  ;;  %v772_v11 = vshll.u32 %v771_v39, 30  ;;  %v857_v31 = vsel %vm16144_vm1, %v835_v29, %v838_v33  ;;  %v11197_v24 = vsel %vm11151_vm7, %v10611_v15, %v2146_v53 }
 0x1eb   : > { %v2041_v27 = vxor.u32 2147483648, %v2040_v7  ;;  %v2236_v49 = vsel %vm8249_vm14, 0, %v8248_v46  ;;  %v829_v56 = vshrl.u32 %v16366_v5, %v16453_v38  ;;  %v2351_v6 = vcvt.s32.f32 %v2344_v59 }
 0x1ec   : > { %v2241_v36 = vsub.s32 4294967266, %v2236_v49  ;;  %vm846_vm4 = vcmp.lt.s32.totalorder %v10016_v26, 2  ;;  %vm16460_vm2 = vcmp.lt.s32.totalorder %v10016_v26, 4  ;;  %v16461_v30 = vand.u32 2147483647, %v10705_v2 }
 0x1ed   : > { %v850_v28 = vsel %vm16460_vm2, %v838_v33, 2102212464  ;;  %v11211_v48 = vsub.s32 %v769_v23, %v772_v11  ;;  %v856_v38 = vsel %vm846_vm4, %v853_v17, %v855_v0  ;;  %v860_v21 = vsel %vm846_vm4, %v857_v31, %v859_v54 }
 0x1ee   : > { %vm11207_vm1 = vcmp.le.f32.partialorder %v16461_v30, 0.7853982  ;;  %v861_v63 = vshll.u32 %v821_v44, 8  ;;  %v2352_v35 = vmul.f32 %v2351_v6, %v2349_v52  ;;  %v2237_v32 = vsub.s32 32, %v2236_v49 }
 0x1ef   : > { %v2242_v33 = vadd.s32 127, %v2241_v36  ;;  %vm16464_vm2 = vcmp.lt.s32.totalorder %v10016_v26, 1  ;;  %v775_v59 = vsub.s32 0, %v11211_v48  ;;  %vm16465_vm13 = vcmp.lt.s32.totalorder %v10016_v26, 3  ;;  %v11226_v17 = vpop.eup %9226 }
 0x1f0   : > { %v849_v53 = vsel %vm16464_vm2, %v829_v56, %v832_v25  ;;  %v851_v23 = vsel %vm16465_vm13, %v835_v29, %v850_v28  ;;  %v11223_v46 = vmul.u32.u64.low %v861_v63, %v860_v21  ;;  %v11224_v14 = vmul.u32.u64.high %v861_v63, %v860_v21, %v11223_v46  ;;  %v11234_v47 = vpop.eup %9228 }
 0x1f1   : > { %v2221_v44 = vadd.s32 %v11054_v57, %v11064_v34  ;;  %v2243_v54 = vshll.u32 %v2242_v33, 23  ;;  %v11230_v52 = vmul.u32.u64.low %v861_v63, %v856_v38  ;;  %v11231_v11 = vmul.u32.u64.high %v861_v63, %v856_v38, %v11230_v52 }
 0x1f2   : > { %9230 = vsinq.f32 %v11133_v41  ;;  %v16466_v25 = vand.u32 2147483647, %v10831_v20  ;;  %v8191_v0 = vmin.u32 %v775_v59, %v11211_v48  ;;  %v795_v31 = vsub.s32 4, %v771_v39  ;;  %v16472_v41 = vld [vmem:[#allocation12_spill] sm:$0xff] }
 0x1f3   : > { %v2239_v56 = vshrl.u32 %v2221_v44, %v2237_v32  ;;  %v16469_v57 = vand.u32 2147483647, %v9862_v18  ;;  %v852_v6 = vsel %vm846_vm4, %v849_v53, %v851_v23  ;;  %v1003_v36 = vsub.s32 4, %v16472_v41  ;;  %v16475_v23 = vld [vmem:[#allocation11_spill] sm:$0xff] }
 0x1f4   : > { %vm11239_vm13 = vcmp.le.f32.partialorder %v16466_v25, 0.7853982  ;;  %9232 = vcosq.f32 %v11197_v24  ;;  %vm16473_vm14 = vcmp.lt.s32.totalorder %v10705_v2, 0  ;;  %v2353_v30 = vxor.u32 2147483648, %v2352_v35 }
 0x1f5   : > { %vm11246_vm2 = vcmp.le.f32.partialorder %v16469_v57, 0.7853982  ;;  %v2042_v28 = vsel %vm16473_vm14, %v2041_v27, %v2040_v7  ;;  %v777_v38 = vclz %v8191_v0  ;;  %v2238_v21 = vshll.u32 %v11141_v61, %v2236_v49  ;;  %v16476_v49 = vld [vmem:[#allocation8_spill] sm:$0xff] }
 0x1f6   : > { %v2244_v32 = vor.u32 4788187, %v2243_v54  ;;  %vm870_vm7 = vc.u32 %v11224_v14, %v11230_v52  ;;  %v871_v33 = vadd.s32 1, %v11231_v11  ;;  %vm16474_vm4 = vcmp.lt.s32.totalorder %v9862_v18, 0 }
 0x1f7   : > { %v8192_v59 = vadd.s32 4294967294, %v777_v38  ;;  %v796_v26 = vsel %vm16474_vm4, %v795_v31, %v771_v39  ;;  %v868_v53 = vmul.u32 %v861_v63, %v852_v6  ;;  %v1107_v46 = vsub.s32 4, %v16475_v23  ;;  %v16479_v39 = vld [vmem:[#allocation6_spill] sm:$0xff] }
 0x1f8   : > { %v2045_v7 = vsel %vm11207_vm1, %v10705_v2, %v2042_v28  ;;  %v2240_v27 = vor.u32 %v2239_v56, %v2238_v21  ;;  %v872_v61 = vsel %vm870_vm7, %v871_v33, %v11231_v11  ;;  %vm16477_vm14 = vcmp.lt.s32.totalorder %v16476_v49, 0 }
 0x1f9   : > { %v1004_v44 = vsel %vm16477_vm14, %v1003_v36, %v16472_v41  ;;  %vm16478_vm0 = vcmp.lt.s32.totalorder %v10831_v20, 0  ;;  %vm8193_vm6 = vcmp.lt.s32.totalorder %v8192_v59, 0  ;;  %v873_v25 = vadd.s32 %v872_v61, %v868_v53 }
 0x1fa   : > { %v2354_v54 = vsel %vm16478_vm0, %v2353_v30, %v2352_v35  ;;  %vm16480_vm4 = vcmp.lt.s32.totalorder %v16479_v39, 0  ;;  %v2245_v0 = vand.u32 2147483647, %v2244_v32  ;;  %v765_v31 = vadd.s32 %v11122_v22, %v11106_v62 }
 0x1fb   : > { %v1108_v63 = vsel %vm16480_vm4, %v1107_v46, %v16475_v23  ;;  %v780_v56 = vsel %vm8193_vm6, 0, %v8192_v59  ;;  %v798_v11 = vsel %vm11246_vm2, 0, %v796_v26  ;;  %v874_v41 = vadd.s32 536870912, %v873_v25 }
 0x1fc   : > { %v781_v57 = vsub.s32 32, %v780_v56  ;;  %v785_v6 = vsub.s32 4294967266, %v780_v56  ;;  %v1006_v35 = vsel %vm10382_vm10, 0, %v1004_v44  ;;  %9234 = vsinq.f32 %v11197_v24  ;;  %v11287_v22 = vpop.eup %9230 }
 0x1fd   : > { %v2357_v28 = vsel %vm11239_vm13, %v10831_v20, %v2354_v54  ;;  %v2247_v30 = vcvt.s32.f32 %v2240_v27  ;;  %v1110_v62 = vsel %vm10227_vm5, 0, %v1108_v63  ;;  %v782_v21 = vshll.u32 %v11211_v48, %v780_v56  ;;  %v16483_v54 = vld [vmem:[#allocation17_spill] sm:$0xff] }
 0x1fe   : > { %v783_v32 = vshrl.u32 %v765_v31, %v781_v57  ;;  %v786_v33 = vadd.s32 127, %v785_v6  ;;  %v875_v59 = vshrl.u32 %v874_v41, 30  ;;  %9236 = vcosq.f32 %v2045_v7  ;;  %v11290_v24 = vpop.eup %9232 }
 0x1ff   : > { %v2248_v26 = vmul.f32 %v2247_v30, %v2245_v0  ;;  %v802_v53 = vadd.s32 3, %v798_v11  ;;  %v1010_v23 = vadd.s32 3, %v1006_v35  ;;  %9238 = vsinq.f32 %v2045_v7 }
 0x200   : > { %v784_v46 = vor.u32 %v783_v32, %v782_v21  ;;  %v787_v61 = vshll.u32 %v786_v33, 23  ;;  %v876_v27 = vshll.u32 %v875_v59, 30  ;;  %9240 = vcosq.f32 %v2357_v28  ;;  %v16490_v21 = vld [vmem:[#allocation31_spill] sm:$0xff]  ;;  %v16491_v33 = vld [vmem:[#allocation10_spill] sm:$0xff] }
 0x201   : > { %vm16151_vm5 = vcmp.lt.s32.totalorder %v10845_v9, 0  ;;  %v1114_v44 = vadd.s32 3, %v1110_v62  ;;  %v1211_v63 = vsub.s32 4, %v16483_v54  ;;  %9242 = vsinq.f32 %v2357_v28  ;;  %v16489_v28 = vld [vmem:[#allocation33_spill] sm:$0xff] }
 0x202   : > { %v788_v48 = vor.u32 4788187, %v787_v61  ;;  %vm815_vm10 = vcmp.lt.s32.totalorder %v16452_v10, 0  ;;  %v11295_v31 = vsub.s32 %v873_v25, %v876_v27  ;;  %v16484_v0 = vand.u32 2147483647, %v10845_v9  ;;  %v16493_v61 = vld [vmem:[#allocation28_spill] sm:$0xff] }
 0x203   : > { %v2249_v7 = vxor.u32 2147483648, %v2248_v26  ;;  %v11303_v11 = vand.u32 3, %v802_v53  ;;  %v1011_v57 = vand.u32 3, %v1010_v23  ;;  %v1014_v6 = vxor.u32 2147483648, %v10569_v51  ;;  %v16500_v27 = vld [vmem:[#allocation24_spill] sm:$0xff] }
 0x204   : > { %vm11299_vm0 = vcmp.le.f32.partialorder %v16484_v0, 0.7853982  ;;  %v789_v41 = vand.u32 2147483647, %v788_v48  ;;  %v791_v36 = vcvt.s32.f32 %v784_v46  ;;  %vm11308_vm6 = vcmp.le.f32.partialorder %v813_v13, 0.7853982 }
 0x205   : > { %v879_v25 = vsub.s32 0, %v11295_v31  ;;  %v1017_v30 = vxor.u32 2147483648, %v16489_v28  ;;  %v899_v38 = vsub.s32 4, %v875_v59  ;;  %v1115_v62 = vand.u32 3, %v1114_v44 }
 0x206   : > { %v1118_v32 = vxor.u32 2147483648, %v16490_v21  ;;  %vm16492_vm7 = vcmp.lt.s32.totalorder %v16491_v33, 0  ;;  %v792_v23 = vmul.f32 %v791_v36, %v789_v41  ;;  %v1121_v13 = vxor.u32 2147483648, %v16493_v61  ;;  %v11322_v0 = vpop.eup %9234 }
 0x207   : > { %v1212_v53 = vsel %vm16492_vm7, %v1211_v63, %v16483_v54  ;;  %v8195_v46 = vmin.u32 %v879_v25, %v11295_v31  ;;  %v2250_v12 = vsel %vm16151_vm5, %v2249_v7, %v2248_v26  ;;  %v869_v44 = vadd.s32 %v11230_v52, %v11224_v14 }
 0x208   : > { %v1214_v48 = vsel %vm10492_vm12, 0, %v1212_v53  ;;  %vm1013_vm14 = vcmp.eq.s32.totalorder %v1011_v57, 0  ;;  %v793_v8 = vxor.u32 2147483648, %v792_v23  ;;  %vm1016_vm4 = vcmp.eq.s32.totalorder %v1011_v57, 2  ;;  %v11329_v41 = vpop.eup %9236 }
 0x209   : > { %v1218_v16 = vadd.s32 3, %v1214_v48  ;;  %v881_v54 = vclz %v8195_v46  ;;  %v1015_v63 = vsel %vm1013_vm14, %v16489_v28, %v1014_v6  ;;  %v900_v36 = vsel %vm815_vm10, %v899_v38, %v875_v59  ;;  %v11334_v26 = vpop.eup %9238 }
 0x20a   : > { %v1018_v25 = vsel %vm1016_vm4, %v1017_v30, %v10569_v51  ;;  %vm1117_vm12 = vcmp.eq.s32.totalorder %v1115_v62, 0  ;;  %vm1120_vm7 = vcmp.eq.s32.totalorder %v1115_v62, 2  ;;  %vm16495_vm5 = vcmp.lt.s32.totalorder %v9862_v18, 0  ;;  %v11340_v28 = vpop.eup %9240  ;;  %v16497_v30 = vld [vmem:[#allocation16_spill] sm:$0xff] }
 0x20b   : > { %v794_v14 = vsel %vm16495_vm5, %v793_v8, %v792_v23  ;;  %v8196_v52 = vadd.s32 4294967294, %v881_v54  ;;  %v1119_v7 = vsel %vm1117_vm12, %v16493_v61, %v1118_v32  ;;  %v1122_v6 = vsel %vm1120_vm7, %v1121_v13, %v16490_v21  ;;  %16496 = vst [vmem:[#allocation7_spill] sm:$0xff] %v11340_v28  ;;  %v11346_v53 = vpop.eup %9242  ;;  %v16498_v13 = vld [vmem:[#allocation9_spill] sm:$0xff] }
 0x20c   : > { %v797_v59 = vsel %vm11246_vm2, %v9862_v18, %v794_v14  ;;  %vm1012_vm14 = vcmp.lt.s32.totalorder %v1011_v57, 2  ;;  %v1219_v51 = vand.u32 3, %v1218_v16  ;;  %v1315_v38 = vsub.s32 4, %v16497_v30 }
 0x20d   : > { %v2253_v8 = vsel %vm11299_vm0, %v10845_v9, %v2250_v12  ;;  %vm8197_vm5 = vcmp.lt.s32.totalorder %v8196_v52, 0  ;;  %v1019_v32 = vsel %vm1012_vm14, %v1015_v63, %v1018_v25  ;;  %vm1116_vm4 = vcmp.lt.s32.totalorder %v1115_v62, 2 }
 0x20e   : > { %v884_v21 = vsel %vm8197_vm5, 0, %v8196_v52  ;;  %v902_v23 = vsel %vm11308_vm6, 0, %v900_v36  ;;  %v1123_v46 = vsel %vm1116_vm4, %v1119_v7, %v1122_v6  ;;  %v1222_v34 = vxor.u32 2147483648, %v10755_v1  ;;  %v16502_v7 = vld [vmem:[#allocation18_spill] sm:$0xff] }
 0x20f   : > { %9244 = vcosq.f32 %v797_v59  ;;  %v885_v16 = vsub.s32 32, %v884_v21  ;;  %v889_v57 = vsub.s32 4294967266, %v884_v21  ;;  %v1225_v61 = vxor.u32 2147483648, %v10662_v55 }
 0x210   : > { %9246 = vsinq.f32 %v797_v59  ;;  %vm1221_vm2 = vcmp.eq.s32.totalorder %v1219_v51, 0  ;;  %vm16499_vm12 = vcmp.lt.s32.totalorder %v16498_v13, 0  ;;  %v1419_v62 = vsub.s32 4, %v16500_v27 }
 0x211   : > { %v1316_v12 = vsel %vm16499_vm12, %v1315_v38, %v16497_v30  ;;  %v886_v48 = vshll.u32 %v11295_v31, %v884_v21  ;;  %v887_v54 = vshrl.u32 %v869_v44, %v885_v16  ;;  %v890_v63 = vadd.s32 127, %v889_v57  ;;  %v16504_v38 = vld [vmem:[#allocation23_spill] sm:$0xff] }
 0x212   : > { %v1318_v25 = vsel %vm10476_vm15, 0, %v1316_v12  ;;  %v1223_v14 = vsel %vm1221_vm2, %v10662_v55, %v1222_v34  ;;  %vm1224_vm7 = vcmp.eq.s32.totalorder %v1219_v51, 2  ;;  %vm16503_vm14 = vcmp.lt.s32.totalorder %v16502_v7, 0  ;;  %v16506_v34 = vld [vmem:[#allocation14_spill] sm:$0xff]  ;;  %v16538_v29 = vld [vmem:[#allocation7_spill] sm:$0xff] }
 0x213   : > { %v1322_v52 = vadd.s32 3, %v1318_v25  ;;  %v1420_v6 = vsel %vm16503_vm14, %v1419_v62, %v16500_v27  ;;  %v888_v59 = vor.u32 %v887_v54, %v886_v48  ;;  %v891_v5 = vshll.u32 %v890_v63, 23 }
 0x214   : > { %v1226_v30 = vsel %vm1224_vm7, %v1225_v61, %v10755_v1  ;;  %v1523_v28 = vsub.s32 4, %v16504_v38  ;;  %9248 = vcosq.f32 %v2253_v8  ;;  %vm1009_vm5 = vweird.f32 %v16476_v49 }
 0x215   : > { %vm1113_vm4 = vweird.f32 %v16479_v39  ;;  %v1422_v55 = vsel %vm10747_vm9, 0, %v1420_v6  ;;  %v892_v44 = vor.u32 4788187, %v891_v5  ;;  %v906_v21 = vadd.s32 3, %v902_v23  ;;  %v16509_v5 = vld [vmem:[#allocation35_spill] sm:$0xff]  ;;  %v16511_v6 = vld [vmem:[#allocation32_spill] sm:$0xff] }
 0x216   : > { %vm1220_vm15 = vcmp.lt.s32.totalorder %v1219_v51, 2  ;;  %vm16507_vm2 = vcmp.lt.s32.totalorder %v16506_v34, 0  ;;  %v1020_v57 = vsel %vm1009_vm5, nan, %v1019_v32  ;;  %v1124_v12 = vsel %vm1113_vm4, nan, %v1123_v46 }
 0x217   : > { %v1524_v16 = vsel %vm16507_vm2, %v1523_v28, %v16504_v38  ;;  %v1227_v1 = vsel %vm1220_vm15, %v1223_v14, %v1226_v30  ;;  %v1323_v61 = vand.u32 3, %v1322_v52  ;;  %v893_v27 = vand.u32 2147483647, %v892_v44  ;;  %v16510_v28 = vld [vmem:[#allocation34_spill] sm:$0xff] }
 0x218   : > { %v895_v62 = vcvt.s32.f32 %v888_v59  ;;  %v1426_v48 = vadd.s32 3, %v1422_v55  ;;  %v1526_v39 = vsel %vm10590_vm8, 0, %v1524_v16  ;;  %9250 = vsinq.f32 %v2253_v8  ;;  %v16512_v55 = vld [vmem:[#allocation41_spill] sm:$0xff] }
 0x219   : > { %vm805_vm9 = vcmp.eq.s32.totalorder %v11303_v11, 0  ;;  %vm808_vm12 = vcmp.eq.s32.totalorder %v11303_v11, 2  ;;  %vm1217_vm7 = vweird.f32 %v16491_v33  ;;  %v1326_v51 = vxor.u32 2147483648, %v16509_v5  ;;  %v9245_v23 = vpop.eup %9244 }
 0x21a   : > { %v1329_v32 = vxor.u32 2147483648, %v16510_v28  ;;  %v896_v46 = vmul.f32 %v895_v62, %v893_v27  ;;  %v11382_v54 = vand.u32 3, %v906_v21  ;;  %v11384_v63 = vpack.c.bf16 %v1124_v12, %v1020_v57  ;;  %v9247_v36 = vpop.eup %9246 }
 0x21b   : > { %vm1321_vm14 = vweird.f32 %v16498_v13  ;;  %v11387_v8 = vsel %vm1217_vm7, nan, %v1227_v1  ;;  %vm1325_vm8 = vcmp.eq.s32.totalorder %v1323_v61, 0  ;;  %v1430_v25 = vxor.u32 2147483648, %v10958_v43 }
 0x21c   : > { %v1530_v14 = vadd.s32 3, %v1526_v39  ;;  %vm804_vm5 = vcmp.lt.s32.totalorder %v11303_v11, 2  ;;  %v897_v33 = vxor.u32 2147483648, %v896_v46  ;;  %vm1328_vm4 = vcmp.eq.s32.totalorder %v1323_v61, 2 }
 0x21d   : > { %v1427_v52 = vand.u32 3, %v1426_v48  ;;  %v1627_v59 = vsub.s32 4, %v16511_v6  ;;  %v1327_v30 = vsel %vm1325_vm8, %v16510_v28, %v1326_v51  ;;  %v1330_v38 = vsel %vm1328_vm4, %v1329_v32, %v16509_v5  ;;  %v16514_v48 = vld [vmem:[#allocation40_spill] sm:$0xff] }
 0x21e   : > { %v1433_v31 = vxor.u32 2147483648, %v10942_v42  ;;  %v1534_v44 = vxor.u32 2147483648, %v16512_v55  ;;  %v806_v21 = vxor.u32 2147483648, %v9247_v36  ;;  %v809_v16 = vxor.u32 2147483648, %v9245_v23  ;;  %v11401_v1 = vpop.eup %9248 }
 0x21f   : > { %v898_v57 = vsel %vm815_vm10, %v897_v33, %v896_v46  ;;  %vm16513_vm15 = vcmp.lt.s32.totalorder %v10337_v50, 0  ;;  %vm801_vm2 = vweird.f32 %v9862_v18  ;;  %vm1324_vm7 = vcmp.lt.s32.totalorder %v1323_v61, 2  ;;  %v16515_v46 = vld [vmem:[#allocation26_spill] sm:$0xff] }
 0x220   : > { %v1628_v12 = vsel %vm16513_vm15, %v1627_v59, %v16511_v6  ;;  %v901_v27 = vsel %vm11308_vm6, %v16452_v10, %v898_v57  ;;  %vm1425_vm8 = vweird.f32 %v16502_v7  ;;  %v1531_v62 = vand.u32 3, %v1530_v14 }
 0x221   : > { %v1537_v49 = vxor.u32 2147483648, %v16514_v48  ;;  %9252 = vcosq.f32 %v901_v27  ;;  %v1331_v39 = vsel %vm1324_vm7, %v1327_v30, %v1330_v38  ;;  %vm1429_vm10 = vcmp.eq.s32.totalorder %v1427_v52, 0 }
 0x222   : > { %v1630_v5 = vsel %vm10881_vm3, 0, %v1628_v12  ;;  %9254 = vsinq.f32 %v901_v27  ;;  %v1431_v51 = vsel %vm1429_vm10, %v10942_v42, %v1430_v25  ;;  %vm1432_vm4 = vcmp.eq.s32.totalorder %v1427_v52, 2  ;;  %v11419_v33 = vpop.eup %9250  ;;  %v16518_v25 = vld [vmem:[#allocation38_spill] sm:$0xff]  ;;  %v16523_v12 = vld [vmem:[#allocation37_spill] sm:$0xff] }
 0x223   : > { %vm1529_vm15 = vweird.f32 %v16506_v34  ;;  %v1634_v35 = vadd.s32 3, %v1630_v5  ;;  %v807_v61 = vsel %vm805_vm9, %v9245_v23, %v806_v21  ;;  %v810_v28 = vsel %vm808_vm12, %v809_v16, %v9247_v36  ;;  %v16516_v36 = vld [vmem:[#allocation20_spill] sm:$0xff]  ;;  %v16524_v5 = vld [vmem:[#allocation47_spill] sm:$0xff] }
 0x224   : > { %v1434_v32 = vsel %vm1432_vm4, %v1433_v31, %v10958_v43  ;;  %v1731_v14 = vsub.s32 4, %v16515_v46  ;;  %v1332_v37 = vsel %vm1321_vm14, nan, %v1331_v39  ;;  %vm1428_vm3 = vcmp.lt.s32.totalorder %v1427_v52, 2  ;;  %v16521_v21 = vld [vmem:[#allocation48_spill] sm:$0xff] }
 0x225   : > { %vm1533_vm6 = vcmp.eq.s32.totalorder %v1531_v62, 0  ;;  %vm1536_vm7 = vcmp.eq.s32.totalorder %v1531_v62, 2  ;;  %vm912_vm10 = vcmp.eq.s32.totalorder %v11382_v54, 2  ;;  %vm16517_vm9 = vcmp.lt.s32.totalorder %v16516_v36, 0 }
 0x226   : > { %v1535_v42 = vsel %vm1533_vm6, %v16514_v48, %v1534_v44  ;;  %v1538_v23 = vsel %vm1536_vm7, %v1537_v49, %v16512_v55  ;;  %v1732_v43 = vsel %vm16517_vm9, %v1731_v14, %v16515_v46  ;;  %v1835_v6 = vsub.s32 4, %v16518_v25 }
 0x227   : > { %v811_v59 = vsel %vm804_vm5, %v807_v61, %v810_v28  ;;  %vm909_vm12 = vcmp.eq.s32.totalorder %v11382_v54, 0  ;;  %v1435_v13 = vsel %vm1428_vm3, %v1431_v51, %v1434_v32  ;;  %v1635_v52 = vand.u32 3, %v1634_v35  ;;  %v16525_v35 = vld [vmem:[#allocation46_spill] sm:$0xff] }
 0x228   : > { %v1734_v38 = vsel %vm10865_vm11, 0, %v1732_v43  ;;  %vm908_vm14 = vcmp.lt.s32.totalorder %v11382_v54, 2  ;;  %vm1532_vm4 = vcmp.lt.s32.totalorder %v1531_v62, 2  ;;  %v1638_v31 = vxor.u32 2147483648, %v11172_v58  ;;  %v16530_v43 = vld [vmem:[#allocation44_spill] sm:$0xff] }
 0x229   : > { %v1738_v55 = vadd.s32 3, %v1734_v38  ;;  %vm16520_vm6 = vcmp.lt.s32.totalorder %v10470_v3, 0  ;;  %vm905_vm7 = vweird.f32 %v16452_v10  ;;  %v1539_v11 = vsel %vm1532_vm4, %v1535_v42, %v1538_v23  ;;  %v16528_v42 = vld [vmem:[#allocation45_spill] sm:$0xff] }
 0x22a   : > { %v1836_v44 = vsel %vm16520_vm6, %v1835_v6, %v16518_v25  ;;  %v1641_v16 = vxor.u32 2147483648, %v16521_v21  ;;  %vm16522_vm5 = vnez %v16451_v60  ;;  %v1939_v27 = vsub.s32 4, %v16523_v12  ;;  %v16526_v60 = vld [vmem:[#allocation27_spill] sm:$0xff] }
 0x22b   : > { %v1838_v57 = vsel %vm16522_vm5, 0, %v1836_v44  ;;  %v812_v62 = vsel %vm801_vm2, nan, %v811_v59  ;;  %v11448_v48 = vpack.c.bf16 %v1332_v37, %v11387_v8  ;;  %v1436_v49 = vsel %vm1425_vm8, nan, %v1435_v13  ;;  %v9253_v32 = vpop.eup %9252 }
 0x22c   : > { %v1739_v39 = vand.u32 3, %v1738_v55  ;;  %vm1637_vm11 = vcmp.eq.s32.totalorder %v1635_v52, 0  ;;  %v1742_v51 = vxor.u32 2147483648, %v16524_v5  ;;  %v1745_v61 = vxor.u32 2147483648, %v16525_v35  ;;  %v9255_v46 = vpop.eup %9254 }
 0x22d   : > { %vm16527_vm3 = vcmp.lt.s32.totalorder %v16526_v60, 0  ;;  %v1540_v18 = vsel %vm1529_vm15, nan, %v1539_v11  ;;  %vm1633_vm2 = vweird.f32 %v10337_v50  ;;  %v1639_v8 = vsel %vm1637_vm11, %v16521_v21, %v1638_v31 }
 0x22e   : > { %v1940_v28 = vsel %vm16527_vm3, %v1939_v27, %v16523_v12  ;;  %vm1640_vm9 = vcmp.eq.s32.totalorder %v1635_v52, 2  ;;  %v1842_v7 = vadd.s32 3, %v1838_v57  ;;  %v913_v14 = vxor.u32 2147483648, %v9253_v32 }
 0x22f   : > { %v1642_v37 = vsel %vm1640_vm9, %v1641_v16, %v11172_v58  ;;  %vm16529_vm8 = vnez %v16528_v42  ;;  %v2043_v25 = vsub.s32 4, %v16530_v43  ;;  %v910_v6 = vxor.u32 2147483648, %v9255_v46  ;;  %v16535_v42 = vld [vmem:[#allocation49_spill] sm:$0xff] }
 0x230   : > { %v1942_v23 = vsel %vm16529_vm8, 0, %v1940_v28  ;;  %vm1741_vm4 = vcmp.eq.s32.totalorder %v1739_v39, 0  ;;  %vm1744_vm6 = vcmp.eq.s32.totalorder %v1739_v39, 2  ;;  %v1846_v34 = vxor.u32 2147483648, %v11287_v22 }
 0x231   : > { %v914_v59 = vsel %vm912_vm10, %v913_v14, %v9255_v46  ;;  %vm1636_vm15 = vcmp.lt.s32.totalorder %v1635_v52, 2  ;;  %v1743_v13 = vsel %vm1741_vm4, %v16525_v35, %v1742_v51  ;;  %v1746_v30 = vsel %vm1744_vm6, %v1745_v61, %v16524_v5  ;;  %v16532_v35 = vld [vmem:[#allocation42_spill] sm:$0xff] }
 0x232   : > { %v911_v58 = vsel %vm909_vm12, %v9253_v32, %v910_v6  ;;  %v1643_v38 = vsel %vm1636_vm15, %v1639_v8, %v1642_v37  ;;  %v1843_v31 = vand.u32 3, %v1842_v7  ;;  %v1946_v55 = vadd.s32 3, %v1942_v23 }
 0x233   : > { %v915_v44 = vsel %vm908_vm14, %v911_v58, %v914_v59  ;;  %vm1740_vm5 = vcmp.lt.s32.totalorder %v1739_v39, 2  ;;  %v1849_v11 = vxor.u32 2147483648, %v11234_v47  ;;  %vm16531_vm10 = vcmp.lt.s32.totalorder %v10705_v2, 0 }
 0x234   : > { %v2044_v52 = vsel %vm16531_vm10, %v2043_v25, %v16530_v43  ;;  %v916_v21 = vsel %vm905_vm7, nan, %v915_v44  ;;  %v1747_v16 = vsel %vm1740_vm5, %v1743_v13, %v1746_v30  ;;  %v1947_v57 = vand.u32 3, %v1946_v55 }
 0x235   : > { %v2046_v12 = vsel %vm11207_vm1, 0, %v2044_v52  ;;  %v8765_v27 = vpack.c.bf16 %v916_v21, %v812_v62  ;;  %v1950_v5 = vxor.u32 2147483648, %v11226_v17  ;;  %v1953_v54 = vxor.u32 2147483648, %v11178_v4 }
 0x236   : > { %v2050_v39 = vadd.s32 3, %v2046_v12  ;;  %v11484_v51 = vpack.c.bf16 %v1540_v18, %v1436_v49  ;;  %vm1737_vm12 = vweird.f32 %v16516_v36  ;;  %vm1845_vm14 = vcmp.eq.s32.totalorder %v1843_v31, 0 }
 0x237   : > { %v2147_v61 = vsub.s32 4, %v16532_v35  ;;  %8766 = vmatprep.subr.bf16.mxu0 %v8765_v27  ;;  %v1644_v10 = vsel %vm1633_vm2, nan, %v1643_v38  ;;  %v1748_v28 = vsel %vm1737_vm12, nan, %v1747_v16  ;;  %v1847_v45 = vsel %vm1845_vm14, %v11234_v47, %v1846_v34 }
 0x238   : > { %vm1848_vm1 = vcmp.eq.s32.totalorder %v1843_v31, 2  ;;  %8768 = vmatpush3.bf16.msra.mxu0 %v8765_v27  ;;  %vm1841_vm7 = vweird.f32 %v10470_v3  ;;  %vm1949_vm11 = vcmp.eq.s32.totalorder %v1947_v57, 0  ;;  %vm1952_vm3 = vcmp.eq.s32.totalorder %v1947_v57, 2 }
 0x239   : > { %v1850_v62 = vsel %vm1848_vm1, %v1849_v11, %v11287_v22  ;;  %vm16533_vm9 = vcmp.lt.s32.totalorder %v10611_v15, 0  ;;  %8770 = vmatprep.subr.bf16.mxu0 %v11384_v63  ;;  %vm1844_vm8 = vcmp.lt.s32.totalorder %v1843_v31, 2  ;;  %vm1945_vm2 = vweird.f32 %v16526_v60 }
 0x23a   : > { %v2148_v36 = vsel %vm16533_vm9, %v2147_v61, %v16532_v35  ;;  %v1951_v50 = vsel %vm1949_vm11, %v11178_v4, %v1950_v5  ;;  %v1954_v47 = vsel %vm1952_vm3, %v1953_v54, %v11226_v17  ;;  %v2051_v49 = vand.u32 3, %v2050_v39  ;;  %v414_v5 = vld [vmem:[%s16031_s3 + $0x10] sm:$0xff]  ;;  %v417_v54 = vld [vmem:[%s16031_s3 + $0x28] sm:$0xff]  ;;  %v420_v35 = vld [vmem:[%s16031_s3 + $0x40] sm:$0xff] }
 0x23b   : > { %v8781_v32 = vpack.c.bf16 %v1748_v28, %v1644_v10  ;;  %v2054_v18 = vxor.u32 2147483648, %v11334_v26  ;;  %v2057_v22 = vxor.u32 2147483648, %v11329_v41  ;;  %vm16534_vm4 = vnez %v16456_v19  ;;  %v418_v39 = vld [vmem:[%s16031_s3 + $0x30] sm:$0xff]  ;;  %v421_v61 = vld [vmem:[%s16031_s3 + $0x48] sm:$0xff]  ;;  %v423_v28 = vld [vmem:[%s16031_s3 + $0x58] sm:$0xff] }
 0x23c   : > { %v2150_v8 = vsel %vm16534_vm4, 0, %v2148_v36  ;;  %v1851_v7 = vsel %vm1844_vm8, %v1847_v45, %v1850_v62  ;;  %vm1948_vm6 = vcmp.lt.s32.totalorder %v1947_v57, 2  ;;  %v2251_v14 = vsub.s32 4, %v11108_v40  ;;  %8772 = vmatpush3.bf16.msra.mxu0 %v11384_v63  ;;  %v422_v10 = vld [vmem:[%s16031_s3 + $0x50] sm:$0xff]  ;;  %v424_v45 = vld [vmem:[%s16031_s3 + $0x60] sm:$0xff]  ;;  %v425_v62 = vld [vmem:[%s16031_s3 + $0x68] sm:$0xff] }
 0x23d   : > { %v2154_v46 = vadd.s32 3, %v2150_v8  ;;  %v1955_v37 = vsel %vm1948_vm6, %v1951_v50, %v1954_v47  ;;  %v2158_v4 = vxor.u32 2147483648, %v11322_v0  ;;  %v2161_v17 = vxor.u32 2147483648, %v11290_v24  ;;  %8774 = vmatprep.subr.bf16.mxu0 %v11448_v48  ;;  %v426_v36 = vld [vmem:[%s16031_s3 + $0x70] sm:$0xff]  ;;  %v427_v50 = vld [vmem:[%s16031_s3 + $0x78] sm:$0xff]  ;;  %v2381_v47 = vpop.permute.xlu1 %2380 }
 0x23e   : > { %v2355_v23 = vsub.s32 4, %v16535_v42  ;;  %vm2053_vm15 = vcmp.eq.s32.totalorder %v2051_v49, 0  ;;  %vm2056_vm5 = vcmp.eq.s32.totalorder %v2051_v49, 2  ;;  %vm16536_vm10 = vcmp.lt.s32.totalorder %v10845_v9, 0 }
 0x23f   : > { %v2155_v19 = vand.u32 3, %v2154_v46  ;;  %v2252_v43 = vsel %vm16536_vm10, %v2251_v14, %v11108_v40  ;;  %v2055_v25 = vsel %vm2053_vm15, %v11329_v41, %v2054_v18  ;;  %v2058_v63 = vsel %vm2056_vm5, %v2057_v22, %v11334_v26 }
 0x240   : > { %v2254_v6 = vsel %vm11299_vm0, 0, %v2252_v43  ;;  %vm16537_vm12 = vcmp.lt.s32.totalorder %v10831_v20, 0  ;;  %v2262_v13 = vxor.u32 2147483648, %v11419_v33  ;;  %8776 = vmatpush3.bf16.msra.mxu0 %v11448_v48  ;;  %v2265_v26 = vxor.u32 2147483648, %v11401_v1 }
 0x241   : > { %v2356_v34 = vsel %vm16537_vm12, %v2355_v23, %v16535_v42  ;;  %vm2157_vm14 = vcmp.eq.s32.totalorder %v2155_v19, 0  ;;  %vm2160_vm1 = vcmp.eq.s32.totalorder %v2155_v19, 2  ;;  %v2258_v59 = vadd.s32 3, %v2254_v6  ;;  %8778 = vmatprep.subr.bf16.mxu0 %v11484_v51  ;;  %v2391_v14 = vpop.permute.xlu1 %2390 }
 0x242   : > { %v2159_v40 = vsel %vm2157_vm14, %v11290_v24, %v2158_v4  ;;  %v2162_v41 = vsel %vm2160_vm1, %v2161_v17, %v11322_v0  ;;  %v2358_v56 = vsel %vm11239_vm13, 0, %v2356_v34  ;;  %v1852_v30 = vsel %vm1841_vm7, nan, %v1851_v7 }
 0x243   : > { %vm2052_vm0 = vcmp.lt.s32.totalorder %v2051_v49, 2  ;;  %v2259_v58 = vand.u32 3, %v2258_v59  ;;  %v2362_v38 = vadd.s32 3, %v2358_v56  ;;  %v1956_v48 = vsel %vm1945_vm2, nan, %v1955_v37 }
 0x244   : > { %v2059_v31 = vsel %vm2052_vm0, %v2055_v25, %v2058_v63  ;;  %vm2156_vm11 = vcmp.lt.s32.totalorder %v2155_v19, 2  ;;  %v2366_v24 = vxor.u32 2147483648, %v11346_v53  ;;  %v2369_v55 = vxor.u32 2147483648, %v16538_v29  ;;  %8780 = vmatpush3.bf16.msra.mxu0 %v11484_v51  ;;  %v419_v51 = vld [vmem:[%s16031_s3 + $0x38] sm:$0xff] }
 0x245   : > { %v2163_v0 = vsel %vm2156_vm11, %v2159_v40, %v2162_v41  ;;  %vm2261_vm3 = vcmp.eq.s32.totalorder %v2259_v58, 0  ;;  %vm2264_vm9 = vcmp.eq.s32.totalorder %v2259_v58, 2  ;;  %vm2049_vm13 = vweird.f32 %v10705_v2  ;;  %8782 = vmatprep.subr.bf16.mxu0 %v8781_v32 }
 0x246   : > { %v2263_v3 = vsel %vm2261_vm3, %v11401_v1, %v2262_v13  ;;  %v2266_v44 = vsel %vm2264_vm9, %v2265_v26, %v11419_v33  ;;  %v2363_v11 = vand.u32 3, %v2362_v38  ;;  %v8785_v60 = vpack.c.bf16 %v1956_v48, %v1852_v30 }
 0x247   : > { %v2060_v52 = vsel %vm2049_vm13, nan, %v2059_v31  ;;  %vm2153_vm7 = vweird.f32 %v10611_v15  ;;  %vm2260_vm8 = vcmp.lt.s32.totalorder %v2259_v58, 2  ;;  %vm2257_vm15 = vweird.f32 %v10845_v9  ;;  %v416_v9 = vld [vmem:[%s16031_s3 + $0x20] sm:$0xff] }
 0x248   : > { %v2164_v21 = vsel %vm2153_vm7, nan, %v2163_v0  ;;  %vm2365_vm2 = vcmp.eq.s32.totalorder %v2363_v11, 0  ;;  %vm2368_vm4 = vcmp.eq.s32.totalorder %v2363_v11, 2  ;;  %v2267_v16 = vsel %vm2260_vm8, %v2263_v3, %v2266_v44  ;;  %8784 = vmatpush3.bf16.msra.mxu0 %v8781_v32  ;;  %v2376_v32 = vpop.permute.xlu0 %2375 }
 0x249   : > { %vm2364_vm6 = vcmp.lt.s32.totalorder %v2363_v11, 2  ;;  %v2367_v57 = vsel %vm2365_vm2, %v16538_v29, %v2366_v24  ;;  %v2370_v2 = vsel %vm2368_vm4, %v2369_v55, %v11346_v53  ;;  %8786 = vmatprep.subr.bf16.mxu0 %v8785_v60  ;;  %v8789_v33 = vpack.c.bf16 %v2164_v21, %v2060_v52  ;;  %v413_v53 = vld [vmem:[%s16031_s3 + $0x8] sm:$0xff] }
 0x24a   : > { %v2371_v1 = vsel %vm2364_vm6, %v2367_v57, %v2370_v2  ;;  %vm2361_vm5 = vweird.f32 %v10831_v20  ;;  %v2268_v12 = vsel %vm2257_vm15, nan, %v2267_v16  ;;  %v415_v20 = vld [vmem:[%s16031_s3 + $0x18] sm:$0xff] }
 0x24b   : > { %v2372_v15 = vsel %vm2361_vm5, nan, %v2371_v1 }
 0x24c   : > { %8788 = vmatpush3.bf16.msra.mxu0 %v8785_v60  ;;  %v8793_v27 = vpack.c.bf16 %v2372_v15, %v2268_v12  ;;  %v2386_v31 = vpop.permute.xlu0 %2385  ;;  %v16541_v15 = vmov 2475754826  }
 0x24d   : > { %8790 = vmatprep.subr.bf16.mxu0 %v8789_v33 }
 0x250   : > { %8792 = vmatpush3.bf16.msra.mxu0 %v8789_v33  ;;  %v16540_v33 = vmov 683565275  }
 0x251   : > { %8794 = vmatprep.subr.bf16.mxu0 %v8793_v27 }
 0x254   : > { %8796 = vmatpush3.bf16.msra.mxu0 %v8793_v27 }
 0x257   : > { %8595 = vmatmul.mubr.f32.vlgmr.msra.gmra.mrb[0].mxu0 %v413_v53 }
 0x258   : > { %8597 = vmatprep.mubr.f32.mxu0 %v414_v5  ;;  %v16542_v5 = vmov 2131351028  }
 0x25b   : > { %8598 = vmatmul.mubr.f32.gmra.mrb[2].mxu0 %v415_v20 }
 0x25c   : > { %8600 = vmatprep.mubr.f32.mxu0 %v416_v9  ;;  %v16543_v9 = vmov 2102212464  }
 0x25f   : > { %8601 = vmatmul.mubr.f32.gmra.mrb[4].mxu0 %v417_v54 }
 0x260   : > { %8603 = vmatprep.mubr.f32.mxu0 %v418_v39  ;;  %v16544_v39 = vmov 920167782  }
 0x263   : > { %8604 = vmatmul.mubr.f32.gmra.mrb[6].mxu0 %v419_v51 }
 0x264   : > { %8606 = vmatprep.mubr.f32.mxu0 %v420_v35 }
 0x267   : > { %8607 = vmatmul.mubr.f32.gmra.mrb[8].mxu0 %v421_v61 }
 0x268   : > { %8609 = vmatprep.mubr.f32.mxu0 %v422_v10 }
 0x26b   : > { %8610 = vmatmul.mubr.f32.gmra.mrb[10].mxu0 %v423_v28 }
 0x26c   : > { %8612 = vmatprep.mubr.f32.mxu0 %v424_v45 }
 0x26f   : > { %8613 = vmatmul.mubr.f32.gmra.mrb[12].mxu0 %v425_v62 }
 0x270   : > { %8615 = vmatprep.mubr.f32.mxu0 %v426_v36  ;;  %v16545_v36 = vmov 1326507024  }
 0x273   : > { %8616 = vmatmul.mubr.f32.gmra.mrb[14].mxu0 %v427_v50 }
 0x32a   : > { %v8596_v49 = vpop.f32.mrb[0].mxu0 }
 0x32b   : > { %v11588_v18 = vadd.f32 %v8596_v49, %v2381_v47  ;;  %v2519_v22 = vpop.f32.mrb[1].mxu0 }
 0x32c   : > { %v11590_v8 = vadd.f32 %v2519_v22, %v2376_v32 }
 0x32d   : > { %v16154_v7 = vand.u32 2147483647, %v11588_v18  ;;  %v2705_v46 = vand.u32 2139095040, %v11588_v18 }
 0x32e   : > { %v16155_v37 = vand.u32 2147483647, %v11590_v8  ;;  %v2601_v4 = vand.u32 2139095040, %v11590_v8  ;;  %v8599_v17 = vpop.f32.mrb[2].mxu0 }
 0x32f   : > { %v2706_v42 = vshrl.u32 %v2705_v46, 23  ;;  %v2709_v23 = vand.u32 8388607, %v16154_v7  ;;  %v11598_v19 = vadd.f32 %v8599_v17, %v2391_v14  ;;  %v2529_v43 = vpop.f32.mrb[3].mxu0 }
 0x330   : > { %v2602_v25 = vshrl.u32 %v2601_v4, 23  ;;  %v2605_v63 = vand.u32 8388607, %v16155_v37  ;;  %v11612_v29 = vadd.f32 %v2529_v43, %v2386_v31 }
 0x331   : > { %16539 = vst [vmem:[#allocation15_spill] sm:$0xff] %v11598_v19  ;;  %v8258_v6 = vadd.s32 4294967169, %v2706_v42  ;;  %v2910_v34 = vand.u32 2147483647, %v11598_v19  ;;  %v2913_v13 = vand.u32 2139095040, %v11598_v19  ;;  %v2710_v41 = vor.u32 8388608, %v2709_v23 }
 0x332   : > { %v8254_v59 = vadd.s32 4294967169, %v2602_v25  ;;  %v11604_v40 = vpop.f32.mrb[4].mxu0  ;;  %v2606_v56 = vor.u32 8388608, %v2605_v63 }
 0x333   : > { %v2712_v26 = vadd.s32 1, %v8258_v6  ;;  %v2914_v58 = vshrl.u32 %v2913_v13, 23  ;;  %v11608_v38 = vand.u32 8388607, %v2910_v34  ;;  %v11610_v48 = vpop.f32.mrb[5].mxu0  ;;  %v11616_v11 = vshll.u32 %v2710_v41, 8 }
 0x334   : > { %v2608_v30 = vadd.s32 1, %v8254_v59  ;;  %v11622_v57 = vshll.u32 %v2606_v56, 8 }
 0x335   : > { %vm2713_vm10 = vcmp.gt.s32.totalorder %v2712_v26, 0  ;;  %v8266_v0 = vadd.s32 4294967169, %v2914_v58  ;;  %v2918_v2 = vor.u32 8388608, %v11608_v38 }
 0x336   : > { %v2714_v24 = vsel %vm2713_vm10, %v2712_v26, 0  ;;  %vm2609_vm12 = vcmp.gt.s32.totalorder %v2608_v30, 0  ;;  %v11614_v55 = vpop.f32.mrb[6].mxu0 }
 0x337   : > { %v2715_v3 = vshrl.u32 %v2714_v24, 5  ;;  %v2716_v44 = vand.u32 31, %v2714_v24  ;;  %v2610_v60 = vsel %vm2609_vm12, %v2608_v30, 0  ;;  %v11618_v52 = vpop.f32.mrb[7].mxu0  ;;  %v11627_v53 = vadd.s32 1, %v8266_v0 }
 0x338   : > { %v11620_v21 = vshrl.u32 %v2610_v60, 5  ;;  %v2612_v16 = vand.u32 31, %v2610_v60 }
 0x339   : > { %v2717_v1 = vsub.s32 32, %v2716_v44  ;;  %v2719_v12 = vshll.u32 %v16540_v33, %v2716_v44  ;;  %v2722_v27 = vshll.u32 %v16541_v15, %v2716_v44  ;;  %v2725_v20 = vshll.u32 %v16542_v5, %v2716_v44 }
 0x33a   : > { %v2728_v54 = vshll.u32 %v16543_v9, %v2716_v44  ;;  %v2731_v51 = vshll.u32 %v16544_v39, %v2716_v44  ;;  %vm2734_vm14 = vcmp.lt.s32.totalorder %v2715_v3, 1  ;;  %v11632_v35 = vpop.f32.mrb[8].mxu0  ;;  %vm2735_vm1 = vcmp.lt.s32.totalorder %v2715_v3, 2 }
 0x33b   : > { %v2720_v61 = vshrl.u32 %v16541_v15, %v2717_v1  ;;  %v2723_v10 = vshrl.u32 %v16542_v5, %v2717_v1  ;;  %v2726_v28 = vshrl.u32 %v16543_v9, %v2717_v1  ;;  %v2718_v45 = vshrl.u32 %v16540_v33, %v2717_v1 }
 0x33c   : > { %v2729_v62 = vshrl.u32 %v16544_v39, %v2717_v1  ;;  %v2732_v50 = vshrl.u32 %v16545_v36, %v2717_v1  ;;  %vm2736_vm0 = vcmp.lt.s32.totalorder %v2715_v3, 3  ;;  %v2613_v22 = vsub.s32 32, %v2612_v16 }
 0x33d   : > { %v2721_v47 = vor.u32 %v2720_v61, %v2719_v12  ;;  %v2724_v49 = vor.u32 %v2723_v10, %v2722_v27  ;;  %v2727_v32 = vor.u32 %v2726_v28, %v2725_v20  ;;  %vm2737_vm11 = vcmp.lt.s32.totalorder %v2715_v3, 4 }
 0x33e   : > { %v2730_v46 = vor.u32 %v2729_v62, %v2728_v54  ;;  %v2733_v14 = vor.u32 %v2732_v50, %v2731_v51  ;;  %v2615_v4 = vshll.u32 %v16540_v33, %v2612_v16  ;;  %v2618_v59 = vshll.u32 %v16541_v15, %v2612_v16 }
 0x33f   : > { %v2738_v17 = vsel %vm2734_vm14, %v2718_v45, %v2721_v47  ;;  %v2739_v42 = vsel %vm2737_vm11, %v2727_v32, 2102212464  ;;  %v2742_v23 = vsel %vm2734_vm14, %v2721_v47, %v2724_v49  ;;  %v2746_v43 = vsel %vm2734_vm14, %v2724_v49, %v2727_v32 }
 0x340   : > { %v2740_v25 = vsel %vm2736_vm0, %v2724_v49, %v2739_v42  ;;  %v2743_v63 = vsel %vm2737_vm11, %v2730_v46, 920167782  ;;  %v2747_v6 = vsel %vm2737_vm11, %v2733_v14, 1326507024  ;;  %v2614_v26 = vshrl.u32 %v16540_v33, %v2613_v22  ;;  %v11678_v14 = vpop.f32.mrb[9].mxu0 }
 0x341   : > { %v2744_v13 = vsel %vm2736_vm0, %v2727_v32, %v2743_v63  ;;  %v2748_v41 = vsel %vm2736_vm0, %v2730_v46, %v2747_v6  ;;  %v2616_v56 = vshrl.u32 %v16541_v15, %v2613_v22  ;;  %v2741_v30 = vsel %vm2735_vm1, %v2738_v17, %v2740_v25 }
 0x342   : > { %v2745_v58 = vsel %vm2735_vm1, %v2742_v23, %v2744_v13  ;;  %v2749_v31 = vsel %vm2735_vm1, %v2746_v43, %v2748_v41  ;;  %v2619_v24 = vshrl.u32 %v16542_v5, %v2613_v22  ;;  %v2621_v20 = vshll.u32 %v16542_v5, %v2612_v16 }
 0x343   : > { %v11655_v0 = vmul.u32.u64.low %v11616_v11, %v2749_v31  ;;  %v11656_v44 = vmul.u32.u64.high %v11616_v11, %v2749_v31, %v11655_v0  ;;  %v11659_v60 = vmul.u32.u64.low %v11616_v11, %v2745_v58  ;;  %v11660_v1 = vmul.u32.u64.high %v11616_v11, %v2745_v58, %v11659_v60 }
 0x344   : > { %v2617_v12 = vor.u32 %v2616_v56, %v2615_v4  ;;  %v2620_v27 = vor.u32 %v2619_v24, %v2618_v59  ;;  %v2622_v54 = vshrl.u32 %v16543_v9, %v2613_v22  ;;  %v2757_v3 = vmul.u32 %v11616_v11, %v2741_v30 }
 0x345   : > { %v2624_v51 = vshll.u32 %v16543_v9, %v2612_v16  ;;  %v2625_v61 = vshrl.u32 %v16544_v39, %v2613_v22  ;;  %v2628_v10 = vshrl.u32 %v16545_v36, %v2613_v22  ;;  %v2627_v45 = vshll.u32 %v16544_v39, %v2612_v16 }
 0x346   : > { %v2623_v28 = vor.u32 %v2622_v54, %v2621_v20  ;;  %vm2630_vm3 = vcmp.lt.s32.totalorder %v11620_v21, 1  ;;  %vm2631_vm9 = vcmp.lt.s32.totalorder %v11620_v21, 2  ;;  %vm2759_vm13 = vc.u32 %v11656_v44, %v11659_v60 }
 0x347   : > { %v2760_v62 = vadd.s32 1, %v11660_v1  ;;  %v2626_v50 = vor.u32 %v2625_v61, %v2624_v51  ;;  %vm2632_vm7 = vcmp.lt.s32.totalorder %v11620_v21, 3  ;;  %v2629_v11 = vor.u32 %v2628_v10, %v2627_v45 }
 0x348   : > { %vm2633_vm8 = vcmp.lt.s32.totalorder %v11620_v21, 4  ;;  %v2634_v47 = vsel %vm2630_vm3, %v2614_v26, %v2617_v12  ;;  %v2638_v49 = vsel %vm2630_vm3, %v2617_v12, %v2620_v27  ;;  %v2642_v46 = vsel %vm2630_vm3, %v2620_v27, %v2623_v28 }
 0x349   : > { %v2761_v32 = vsel %vm2759_vm13, %v2760_v62, %v11660_v1  ;;  %v2635_v16 = vsel %vm2633_vm8, %v2623_v28, 2102212464  ;;  %v2639_v22 = vsel %vm2633_vm8, %v2626_v50, 920167782  ;;  %v2643_v23 = vsel %vm2633_vm8, %v2629_v11, 1326507024 }
 0x34a   : > { %v2762_v4 = vadd.s32 %v2761_v32, %v2757_v3  ;;  %v2636_v17 = vsel %vm2632_vm7, %v2620_v27, %v2635_v16  ;;  %v2640_v42 = vsel %vm2632_vm7, %v2623_v28, %v2639_v22  ;;  %v2644_v25 = vsel %vm2632_vm7, %v2626_v50, %v2643_v23 }
 0x34b   : > { %v2641_v43 = vsel %vm2631_vm9, %v2638_v49, %v2640_v42  ;;  %vm2921_vm2 = vcmp.gt.s32.totalorder %v11627_v53, 0  ;;  %v2809_v63 = vand.u32 2139095040, %v11612_v29  ;;  %v2645_v59 = vsel %vm2631_vm9, %v2642_v46, %v2644_v25 }
 0x34c   : > { %v2763_v6 = vadd.s32 536870912, %v2762_v4  ;;  %v11687_v13 = vmul.u32.u64.low %v11622_v57, %v2641_v43  ;;  %v11688_v41 = vmul.u32.u64.high %v11622_v57, %v2641_v43, %v11687_v13  ;;  %v2637_v26 = vsel %vm2631_vm9, %v2634_v47, %v2636_v17 }
 0x34d   : > { %v11694_v56 = vmul.u32.u64.low %v11622_v57, %v2645_v59  ;;  %v11695_v30 = vmul.u32.u64.high %v11622_v57, %v2645_v59, %v11694_v56  ;;  %v2922_v58 = vsel %vm2921_vm2, %v11627_v53, 0  ;;  %v11702_v0 = vshll.u32 %v2918_v2, 8 }
 0x34e   : > { %v11698_v31 = vshrl.u32 %v2763_v6, 30  ;;  %v2924_v24 = vand.u32 31, %v2922_v58  ;;  %v16159_v1 = vand.u32 2147483647, %v11612_v29  ;;  %v2810_v12 = vshrl.u32 %v2809_v63, 23 }
 0x34f   : > { %v2653_v21 = vmul.u32 %v11622_v57, %v2637_v26  ;;  %v2656_v20 = vadd.s32 1, %v11688_v41  ;;  %vm2655_vm4 = vc.u32 %v11695_v30, %v11687_v13  ;;  %v2923_v53 = vshrl.u32 %v2922_v58, 5 }
 0x350   : > { %v2765_v27 = vshll.u32 %v11698_v31, 30  ;;  %v2925_v54 = vsub.s32 32, %v2924_v24  ;;  %v2927_v3 = vshll.u32 %v16540_v33, %v2924_v24  ;;  %v2930_v38 = vshll.u32 %v16541_v15, %v2924_v24 }
 0x351   : > { %v2657_v51 = vsel %vm2655_vm4, %v2656_v20, %v11688_v41  ;;  %v2933_v10 = vshll.u32 %v16542_v5, %v2924_v24  ;;  %v2936_v62 = vshll.u32 %v16543_v9, %v2924_v24  ;;  %v2939_v49 = vshll.u32 %v16544_v39, %v2924_v24 }
 0x352   : > { %v11712_v2 = vsub.s32 %v2762_v4, %v2765_v27  ;;  %v2928_v61 = vshrl.u32 %v16541_v15, %v2925_v54  ;;  %v2658_v57 = vadd.s32 %v2657_v51, %v2653_v21  ;;  %v2931_v28 = vshrl.u32 %v16542_v5, %v2925_v54 }
 0x353   : > { %v2934_v45 = vshrl.u32 %v16543_v9, %v2925_v54  ;;  %v2937_v47 = vshrl.u32 %v16544_v39, %v2925_v54  ;;  %v2940_v46 = vshrl.u32 %v16545_v36, %v2925_v54  ;;  %v2926_v17 = vshrl.u32 %v16540_v33, %v2925_v54 }
 0x354   : > { %v2768_v50 = vsub.s32 0, %v11712_v2  ;;  %v2929_v11 = vor.u32 %v2928_v61, %v2927_v3  ;;  %v2659_v32 = vadd.s32 536870912, %v2658_v57  ;;  %v2932_v16 = vor.u32 %v2931_v28, %v2930_v38 }
 0x355   : > { %v2935_v22 = vor.u32 %v2934_v45, %v2933_v10  ;;  %v2938_v42 = vor.u32 %v2937_v47, %v2936_v62  ;;  %v8262_v23 = vadd.s32 4294967169, %v2810_v12  ;;  %v2941_v25 = vor.u32 %v2940_v46, %v2939_v49  ;;  %v11746_v47 = vpop.f32.mrb[10].mxu0 }
 0x356   : > { %v8259_v4 = vmin.u32 %v2768_v50, %v11712_v2  ;;  %v11726_v43 = vshrl.u32 %v2659_v32, 30  ;;  %vm2942_vm6 = vcmp.lt.s32.totalorder %v2923_v53, 1  ;;  %vm2945_vm15 = vcmp.lt.s32.totalorder %v2923_v53, 4 }
 0x357   : > { %vm2943_vm5 = vcmp.lt.s32.totalorder %v2923_v53, 2  ;;  %v2947_v6 = vsel %vm2945_vm15, %v2935_v22, 2102212464  ;;  %v2950_v59 = vsel %vm2942_vm6, %v2929_v11, %v2932_v16  ;;  %vm2944_vm10 = vcmp.lt.s32.totalorder %v2923_v53, 3 }
 0x358   : > { %v2770_v63 = vclz %v8259_v4  ;;  %v2661_v41 = vshll.u32 %v11726_v43, 30  ;;  %v2951_v26 = vsel %vm2945_vm15, %v2938_v42, 920167782  ;;  %v2954_v56 = vsel %vm2942_vm6, %v2932_v16, %v2935_v22 }
 0x359   : > { %v2946_v24 = vsel %vm2942_vm6, %v2926_v17, %v2929_v11  ;;  %v2952_v27 = vsel %vm2944_vm10, %v2935_v22, %v2951_v26  ;;  %v2955_v21 = vsel %vm2945_vm15, %v2941_v25, 1326507024  ;;  %v2948_v12 = vsel %vm2944_vm10, %v2932_v16, %v2947_v6  ;;  %v2401_v25 = vpop.permute.xlu1 %2400 }
 0x35a   : > { %v8260_v58 = vadd.s32 4294967294, %v2770_v63  ;;  %v11729_v20 = vsub.s32 %v2658_v57, %v2661_v41  ;;  %v2953_v54 = vsel %vm2943_vm5, %v2950_v59, %v2952_v27  ;;  %v2956_v3 = vsel %vm2944_vm10, %v2938_v42, %v2955_v21  ;;  %v2396_v63 = vpop.permute.xlu0 %2395 }
 0x35b   : > { %v2957_v38 = vsel %vm2943_vm5, %v2954_v56, %v2956_v3  ;;  %v11734_v51 = vmul.u32.u64.low %v11702_v0, %v2953_v54  ;;  %v11735_v61 = vmul.u32.u64.high %v11702_v0, %v2953_v54, %v11734_v51  ;;  %v2949_v57 = vsel %vm2943_vm5, %v2946_v24, %v2948_v12 }
 0x35c   : > { %v2664_v10 = vsub.s32 0, %v11729_v20  ;;  %v11739_v28 = vmul.u32.u64.low %v11702_v0, %v2957_v38  ;;  %v11740_v45 = vmul.u32.u64.high %v11702_v0, %v2957_v38, %v11739_v28  ;;  %vm8261_vm12 = vcmp.lt.s32.totalorder %v8260_v58, 0 }
 0x35d   : > { %v2816_v62 = vadd.s32 1, %v8262_v23  ;;  %v2813_v11 = vand.u32 8388607, %v16159_v1  ;;  %v2968_v49 = vadd.s32 1, %v11735_v61  ;;  %v11749_v32 = vsel %vm8261_vm12, 0, %v8260_v58 }
 0x35e   : > { %v8255_v50 = vmin.u32 %v2664_v10, %v11729_v20  ;;  %v2965_v16 = vmul.u32 %v11702_v0, %v2949_v57  ;;  %vm2967_vm1 = vc.u32 %v11740_v45, %v11734_v51  ;;  %v2778_v23 = vsub.s32 4294967266, %v11749_v32 }
 0x35f   : > { %vm2817_vm14 = vcmp.gt.s32.totalorder %v2816_v62, 0  ;;  %v2969_v46 = vsel %vm2967_vm1, %v2968_v49, %v11735_v61  ;;  %v2814_v17 = vor.u32 8388608, %v2813_v11  ;;  %v2758_v6 = vadd.s32 %v11659_v60, %v11656_v44 }
 0x360   : > { %v2818_v22 = vsel %vm2817_vm14, %v2816_v62, 0  ;;  %v2666_v53 = vclz %v8255_v50  ;;  %v2970_v4 = vadd.s32 %v2969_v46, %v2965_v16  ;;  %v2774_v0 = vsub.s32 32, %v11749_v32 }
 0x361   : > { %v2820_v42 = vand.u32 31, %v2818_v22  ;;  %v11759_v56 = vadd.f32 %v11604_v40, %v2401_v25  ;;  %v11762_v58 = vadd.f32 %v11610_v48, %v2396_v63  ;;  %v2775_v24 = vshll.u32 %v11712_v2, %v11749_v32 }
 0x362   : > { %v2971_v59 = vadd.s32 536870912, %v2970_v4  ;;  %v8256_v26 = vadd.s32 4294967294, %v2666_v53  ;;  %v2654_v27 = vadd.s32 %v11687_v13, %v11695_v30  ;;  %v11770_v44 = vshll.u32 %v2814_v17, 8 }
 0x363   : > { %v2821_v41 = vsub.s32 32, %v2820_v42  ;;  %16546 = vst [vmem:[#allocation13_spill] sm:$0xff] %v11759_v56  ;;  %v2779_v60 = vadd.s32 127, %v2778_v23  ;;  %v2819_v12 = vshrl.u32 %v2818_v22, 5  ;;  %v2823_v48 = vshll.u32 %v16540_v33, %v2820_v42 }
 0x364   : > { %v11768_v21 = vshrl.u32 %v2971_v59, 30  ;;  %v2826_v38 = vshll.u32 %v16541_v15, %v2820_v42  ;;  %v2776_v10 = vshrl.u32 %v2758_v6, %v2774_v0  ;;  %vm8257_vm0 = vcmp.lt.s32.totalorder %v8256_v26, 0 }
 0x365   : > { %v2824_v54 = vshrl.u32 %v16541_v15, %v2821_v41  ;;  %v2827_v40 = vshrl.u32 %v16542_v5, %v2821_v41  ;;  %v2830_v61 = vshrl.u32 %v16543_v9, %v2821_v41  ;;  %v2829_v13 = vshll.u32 %v16542_v5, %v2820_v42 }
 0x366   : > { %v2973_v3 = vshll.u32 %v11768_v21, 30  ;;  %v16158_v30 = vand.u32 2147483647, %v11759_v56  ;;  %v2832_v50 = vshll.u32 %v16543_v9, %v2820_v42  ;;  %v2833_v49 = vshrl.u32 %v16544_v39, %v2821_v41 }
 0x367   : > { %v2825_v57 = vor.u32 %v2824_v54, %v2823_v48  ;;  %v2828_v62 = vor.u32 %v2827_v40, %v2826_v38  ;;  %v2831_v11 = vor.u32 %v2830_v61, %v2829_v13  ;;  %v2835_v16 = vshll.u32 %v16544_v39, %v2820_v42 }
 0x368   : > { %v11780_v28 = vsub.s32 %v2970_v4, %v2973_v3  ;;  %v2836_v22 = vshrl.u32 %v16545_v36, %v2821_v41  ;;  %v2780_v53 = vshll.u32 %v2779_v60, 23  ;;  %v2966_v46 = vadd.s32 %v11734_v51, %v11740_v45 }
 0x369   : > { %vm2838_vm11 = vcmp.lt.s32.totalorder %v2819_v12, 1  ;;  %v2669_v23 = vsel %vm8257_vm0, 0, %v8256_v26  ;;  %v2834_v4 = vor.u32 %v2833_v49, %v2832_v50  ;;  %vm2839_vm3 = vcmp.lt.s32.totalorder %v2819_v12, 2 }
 0x36a   : > { %v2976_v17 = vsub.s32 0, %v11780_v28  ;;  %v2837_v25 = vor.u32 %v2836_v22, %v2835_v16  ;;  %vm2840_vm9 = vcmp.lt.s32.totalorder %v2819_v12, 3  ;;  %vm2841_vm13 = vcmp.lt.s32.totalorder %v2819_v12, 4 }
 0x36b   : > { %v2846_v6 = vsel %vm2838_vm11, %v2825_v57, %v2828_v62  ;;  %v2843_v59 = vsel %vm2841_vm13, %v2831_v11, 2102212464  ;;  %v2847_v42 = vsel %vm2841_vm13, %v2834_v4, 920167782  ;;  %v2850_v0 = vsel %vm2838_vm11, %v2828_v62, %v2831_v11 }
 0x36c   : > { %v8267_v63 = vmin.u32 %v2976_v17, %v11780_v28  ;;  %v2851_v60 = vsel %vm2841_vm13, %v2837_v25, 1326507024  ;;  %v2670_v54 = vsub.s32 32, %v2669_v23  ;;  %v2822_v45 = vshrl.u32 %v16540_v33, %v2821_v41  ;;  %v11808_v17 = vpop.f32.mrb[11].mxu0 }
 0x36d   : > { %v2848_v26 = vsel %vm2840_vm9, %v2831_v11, %v2847_v42  ;;  %v2674_v40 = vsub.s32 4294967266, %v2669_v23  ;;  %v2852_v48 = vsel %vm2840_vm9, %v2834_v4, %v2851_v60  ;;  %v3121_v38 = vand.u32 2139095040, %v11759_v56 }
 0x36e   : > { %v2978_v51 = vclz %v8267_v63  ;;  %v2849_v3 = vsel %vm2839_vm3, %v2846_v6, %v2848_v26  ;;  %v2842_v13 = vsel %vm2838_vm11, %v2822_v45, %v2825_v57  ;;  %v2844_v50 = vsel %vm2840_vm9, %v2828_v62, %v2843_v59 }
 0x36f   : > { %v2853_v49 = vsel %vm2839_vm3, %v2850_v0, %v2852_v48  ;;  %v11804_v41 = vmul.u32.u64.low %v11770_v44, %v2849_v3  ;;  %v11805_v11 = vmul.u32.u64.high %v11770_v44, %v2849_v3, %v11804_v41  ;;  %v2781_v4 = vor.u32 4788187, %v2780_v53  ;;  %v2411_v48 = vpop.permute.xlu1 %2410 }
 0x370   : > { %v8268_v61 = vadd.s32 4294967294, %v2978_v51  ;;  %v11800_v16 = vmul.u32.u64.low %v11770_v44, %v2853_v49  ;;  %v11801_v22 = vmul.u32.u64.high %v11770_v44, %v2853_v49, %v11800_v16  ;;  %v2672_v25 = vshrl.u32 %v2654_v27, %v2670_v54 }
 0x371   : > { %v3122_v63 = vshrl.u32 %v3121_v38, 23  ;;  %v2675_v57 = vadd.s32 127, %v2674_v40  ;;  %v2845_v62 = vsel %vm2839_vm3, %v2842_v13, %v2844_v50  ;;  %v3125_v59 = vand.u32 8388607, %v16158_v30 }
 0x372   : > { %vm8269_vm7 = vcmp.lt.s32.totalorder %v8268_v61, 0  ;;  %v2777_v42 = vor.u32 %v2776_v10, %v2775_v24  ;;  %v2671_v45 = vshll.u32 %v11729_v20, %v2669_v23  ;;  %vm2863_vm8 = vc.u32 %v11801_v22, %v11804_v41 }
 0x373   : > { %v2981_v6 = vsel %vm8269_vm7, 0, %v8268_v61  ;;  %v8274_v51 = vadd.s32 4294967169, %v3122_v63  ;;  %v2864_v27 = vadd.s32 1, %v11805_v11  ;;  %v3017_v12 = vand.u32 2139095040, %v11762_v58 }
 0x374   : > { %v2982_v0 = vsub.s32 32, %v2981_v6  ;;  %v2986_v60 = vsub.s32 4294967266, %v2981_v6  ;;  %v2782_v53 = vand.u32 2147483647, %v2781_v4  ;;  %v2861_v26 = vmul.u32 %v11770_v44, %v2845_v62 }
 0x375   : > { %v3128_v40 = vadd.s32 1, %v8274_v51  ;;  %v11822_v3 = vor.u32 %v2672_v25, %v2671_v45  ;;  %v2676_v2 = vshll.u32 %v2675_v57, 23  ;;  %v2865_v32 = vsel %vm2863_vm8, %v2864_v27, %v11805_v11 }
 0x376   : > { %v2987_v54 = vadd.s32 127, %v2986_v60  ;;  %v3126_v24 = vor.u32 8388608, %v3125_v59  ;;  %v2984_v10 = vshrl.u32 %v2966_v46, %v2982_v0  ;;  %v2866_v20 = vadd.s32 %v2865_v32, %v2861_v26 }
 0x377   : > { %vm3129_vm2 = vcmp.gt.s32.totalorder %v3128_v40, 0  ;;  %v16157_v23 = vand.u32 2147483647, %v11762_v58  ;;  %v2784_v38 = vcvt.s32.f32 %v2777_v42  ;;  %v3018_v50 = vshrl.u32 %v3017_v12, 23 }
 0x378   : > { %v2988_v61 = vshll.u32 %v2987_v54, 23  ;;  %v3130_v13 = vsel %vm3129_vm2, %v3128_v40, 0  ;;  %v2983_v49 = vshll.u32 %v11780_v28, %v2981_v6  ;;  %v2867_v44 = vadd.s32 536870912, %v2866_v20 }
 0x379   : > { %v11828_v16 = vadd.f32 %v11614_v55, %v2411_v48  ;;  %v11830_v4 = vmul.f32 %v2784_v38, %v2782_v53  ;;  %v11832_v11 = vor.u32 4788187, %v2676_v2  ;;  %v2680_v46 = vcvt.s32.f32 %v11822_v3 }
 0x37a   : > { %v3132_v25 = vand.u32 31, %v3130_v13  ;;  %v2985_v63 = vor.u32 %v2984_v10, %v2983_v49  ;;  %v11835_v57 = vshrl.u32 %v2867_v44, 30  ;;  %v11837_v62 = vshll.u32 %v3126_v24, 8 }
 0x37b   : > { %16547 = vst [vmem:[#allocation21_spill] sm:$0xff] %v11828_v16  ;;  %v11841_v59 = vand.u32 8388607, %v16157_v23  ;;  %v2989_v28 = vor.u32 4788187, %v2988_v61  ;;  %v3131_v6 = vshrl.u32 %v3130_v13, 5 }
 0x37c   : > { %v3133_v55 = vsub.s32 32, %v3132_v25  ;;  %v8270_v42 = vadd.s32 4294967169, %v3018_v50  ;;  %v2869_v0 = vshll.u32 %v11835_v57, 30  ;;  %v3135_v60 = vshll.u32 %v16540_v33, %v3132_v25 }
 0x37d   : > { %v3138_v51 = vshll.u32 %v16541_v15, %v3132_v25  ;;  %v3141_v45 = vshll.u32 %v16542_v5, %v3132_v25  ;;  %v3144_v54 = vshll.u32 %v16543_v9, %v3132_v25  ;;  %v3147_v2 = vshll.u32 %v16544_v39, %v3132_v25 }
 0x37e   : > { %v3136_v27 = vshrl.u32 %v16541_v15, %v3133_v55  ;;  %v3139_v12 = vshrl.u32 %v16542_v5, %v3133_v55  ;;  %v3142_v53 = vshrl.u32 %v16543_v9, %v3133_v55  ;;  %v11851_v26 = vsub.s32 %v2866_v20, %v2869_v0 }
 0x37f   : > { %v3145_v40 = vshrl.u32 %v16544_v39, %v3133_v55  ;;  %v3148_v32 = vshrl.u32 %v16545_v36, %v3133_v55  ;;  %v2992_v24 = vcvt.s32.f32 %v2985_v63  ;;  %vm3150_vm4 = vcmp.lt.s32.totalorder %v3131_v6, 1 }
 0x380   : > { %v3137_v10 = vor.u32 %v3136_v27, %v3135_v60  ;;  %v3140_v48 = vor.u32 %v3139_v12, %v3138_v51  ;;  %v3143_v38 = vor.u32 %v3142_v53, %v3141_v45  ;;  %v2872_v61 = vsub.s32 0, %v11851_v26  ;;  %v11860_v53 = vpop.f32.mrb[12].mxu0 }
 0x381   : > { %v3146_v13 = vor.u32 %v3145_v40, %v3144_v54  ;;  %v3149_v50 = vor.u32 %v3148_v32, %v3147_v2  ;;  %v3134_v49 = vshrl.u32 %v16540_v33, %v3133_v55  ;;  %vm3153_vm6 = vcmp.lt.s32.totalorder %v3131_v6, 4  ;;  %v11951_v3 = vpop.f32.mrb[13].mxu0 }
 0x382   : > { %v3158_v20 = vsel %vm3150_vm4, %v3137_v10, %v3140_v48  ;;  %v3024_v44 = vadd.s32 1, %v8270_v42  ;;  %v8263_v0 = vmin.u32 %v2872_v61, %v11851_v26  ;;  %vm3152_vm15 = vcmp.lt.s32.totalorder %v3131_v6, 3 }
 0x383   : > { %v3155_v25 = vsel %vm3153_vm6, %v3143_v38, 2102212464  ;;  %v3159_v7 = vsel %vm3153_vm6, %v3146_v13, 920167782  ;;  %v2990_v37 = vand.u32 2147483647, %v2989_v28  ;;  %v3162_v60 = vsel %vm3150_vm4, %v3140_v48, %v3143_v38 }
 0x384   : > { %vm3151_vm5 = vcmp.lt.s32.totalorder %v3131_v6, 2  ;;  %v3160_v63 = vsel %vm3152_vm15, %v3143_v38, %v3159_v7  ;;  %v2874_v51 = vclz %v8263_v0  ;;  %v3154_v45 = vsel %vm3150_vm4, %v3134_v49, %v3137_v10 }
 0x385   : > { %v3161_v27 = vsel %vm3151_vm5, %v3158_v20, %v3160_v63  ;;  %v3163_v12 = vsel %vm3153_vm6, %v3149_v50, 1326507024  ;;  %v3156_v55 = vsel %vm3152_vm15, %v3140_v48, %v3155_v25  ;;  %v3022_v7 = vor.u32 8388608, %v11841_v59 }
 0x386   : > { %v3164_v54 = vsel %vm3152_vm15, %v3146_v13, %v3163_v12  ;;  %v11863_v42 = vmul.u32.u64.low %v11837_v62, %v3161_v27  ;;  %v11864_v40 = vmul.u32.u64.high %v11837_v62, %v3161_v27, %v11863_v42  ;;  %v8264_v2 = vadd.s32 4294967294, %v2874_v51 }
 0x387   : > { %v3165_v28 = vsel %vm3151_vm5, %v3162_v60, %v3164_v54  ;;  %vm3025_vm10 = vcmp.gt.s32.totalorder %v3024_v44, 0  ;;  %v11869_v32 = vmul.f32 %v2992_v24, %v2990_v37  ;;  %v3157_v48 = vsel %vm3151_vm5, %v3154_v45, %v3156_v55 }
 0x388   : > { %v11872_v10 = vmul.u32.u64.low %v11837_v62, %v3165_v28  ;;  %v11873_v38 = vmul.u32.u64.high %v11837_v62, %v3165_v28, %v11872_v10  ;;  %v3026_v61 = vsel %vm3025_vm10, %v3024_v44, 0  ;;  %vm8265_vm12 = vcmp.lt.s32.totalorder %v8264_v2, 0 }
 0x389   : > { %v3028_v13 = vand.u32 31, %v3026_v61  ;;  %v16156_v50 = vand.u32 2147483647, %v11828_v16  ;;  %v2678_v49 = vand.u32 2147483647, %v11832_v11  ;;  %v2862_v20 = vadd.s32 %v11804_v41, %v11801_v22 }
 0x38a   : > { %v2877_v59 = vsel %vm8265_vm12, 0, %v8264_v2  ;;  %v3176_v37 = vadd.s32 1, %v11864_v40  ;;  %v11881_v63 = vshll.u32 %v3022_v7, 8  ;;  %v2994_v44 = vxor.u32 2147483648, %v11869_v32 }
 0x38b   : > { %v2878_v24 = vsub.s32 32, %v2877_v59  ;;  %v2882_v0 = vsub.s32 4294967266, %v2877_v59  ;;  %v3029_v25 = vsub.s32 32, %v3028_v13  ;;  %v3173_v6 = vmul.u32 %v11837_v62, %v3157_v48 }
 0x38c   : > { %vm3175_vm14 = vc.u32 %v11873_v38, %v11863_v42  ;;  %v3329_v60 = vand.u32 2139095040, %v11828_v16  ;;  %v3027_v41 = vshrl.u32 %v3026_v61, 5  ;;  %v11891_v45 = vand.u32 8388607, %v16156_v50 }
 0x38d   : > { %v2883_v51 = vadd.s32 127, %v2882_v0  ;;  %v3177_v22 = vsel %vm3175_vm14, %v3176_v37, %v11864_v40  ;;  %v3031_v12 = vshll.u32 %v16540_v33, %v3028_v13  ;;  %v3032_v55 = vshrl.u32 %v16541_v15, %v3029_v25 }
 0x38e   : > { %v3178_v27 = vadd.s32 %v3177_v22, %v3173_v6  ;;  %v3035_v62 = vshrl.u32 %v16542_v5, %v3029_v25  ;;  %v2880_v54 = vshrl.u32 %v2862_v20, %v2878_v24  ;;  %v3034_v2 = vshll.u32 %v16541_v15, %v3028_v13 }
 0x38f   : > { %v3037_v28 = vshll.u32 %v16542_v5, %v3028_v13  ;;  %v3038_v7 = vshrl.u32 %v16543_v9, %v3029_v25  ;;  %v2879_v40 = vshll.u32 %v11851_v26, %v2877_v59  ;;  %v3040_v61 = vshll.u32 %v16543_v9, %v3028_v13 }
 0x390   : > { %v3179_v10 = vadd.s32 536870912, %v3178_v27  ;;  %v3041_v48 = vshrl.u32 %v16544_v39, %v3029_v25  ;;  %v2884_v37 = vshll.u32 %v2883_v51, 23  ;;  %v3033_v0 = vor.u32 %v3032_v55, %v3031_v12 }
 0x391   : > { %v3036_v6 = vor.u32 %v3035_v62, %v3034_v2  ;;  %v3039_v22 = vor.u32 %v3038_v7, %v3037_v28  ;;  %v3043_v24 = vshll.u32 %v16544_v39, %v3028_v13  ;;  %v3044_v23 = vshrl.u32 %v16545_v36, %v3029_v25 }
 0x392   : > { %v11902_v50 = vshrl.u32 %v3179_v10, 30  ;;  %v3042_v20 = vor.u32 %v3041_v48, %v3040_v61  ;;  %vm16208_vm1 = vcmp.lt.s32.totalorder %v11598_v19, 0  ;;  %v2881_v30 = vor.u32 %v2880_v54, %v2879_v40  ;;  %v2406_v40 = vpop.permute.xlu0 %2405 }
 0x393   : > { %v3030_v26 = vshrl.u32 %v16540_v33, %v3029_v25  ;;  %vm3049_vm0 = vcmp.lt.s32.totalorder %v3027_v41, 4  ;;  %v3330_v59 = vshrl.u32 %v3329_v60, 23  ;;  %v3045_v51 = vor.u32 %v3044_v23, %v3043_v24 }
 0x394   : > { %16548 = vst [vmem:[#allocation22_spill] sm:$0xff] %v11902_v50  ;;  %v3181_v1 = vshll.u32 %v11902_v50, 30  ;;  %vm3046_vm11 = vcmp.lt.s32.totalorder %v3027_v41, 1  ;;  %v3051_v12 = vsel %vm3049_vm0, %v3039_v22, 2102212464  ;;  %vm3048_vm3 = vcmp.lt.s32.totalorder %v3027_v41, 3 }
 0x395   : > { %v2885_v55 = vor.u32 4788187, %v2884_v37  ;;  %v3054_v62 = vsel %vm3046_vm11, %v3033_v0, %v3036_v6  ;;  %v3055_v13 = vsel %vm3049_vm0, %v3042_v20, 920167782  ;;  %vm16212_vm9 = vcmp.lt.s32.totalorder %v11588_v18, 0 }
 0x396   : > { %v11912_v2 = vsub.s32 %v3178_v27, %v3181_v1  ;;  %vm3047_vm13 = vcmp.lt.s32.totalorder %v3027_v41, 2  ;;  %v3056_v54 = vsel %vm3048_vm3, %v3039_v22, %v3055_v13  ;;  %v3058_v25 = vsel %vm3046_vm11, %v3036_v6, %v3039_v22 }
 0x397   : > { %v3050_v28 = vsel %vm3046_vm11, %v3030_v26, %v3033_v0  ;;  %v3052_v60 = vsel %vm3048_vm3, %v3036_v6, %v3051_v12  ;;  %v3057_v7 = vsel %vm3047_vm13, %v3054_v62, %v3056_v54  ;;  %v3059_v23 = vsel %vm3049_vm0, %v3045_v51, 1326507024 }
 0x398   : > { %v3184_v10 = vsub.s32 0, %v11912_v2  ;;  %v3060_v61 = vsel %vm3048_vm3, %v3042_v20, %v3059_v23  ;;  %v11918_v48 = vmul.u32.u64.low %v11881_v63, %v3057_v7  ;;  %v11919_v37 = vmul.u32.u64.high %v11881_v63, %v3057_v7, %v11918_v48 }
 0x399   : > { %v2886_v1 = vand.u32 2147483647, %v2885_v55  ;;  %v3061_v27 = vsel %vm3047_vm13, %v3058_v25, %v3060_v61  ;;  %v8282_v24 = vadd.s32 4294967169, %v3330_v59  ;;  %v11924_v0 = vadd.f32 %v11618_v52, %v2406_v40 }
 0x39a   : > { %v8275_v6 = vmin.u32 %v3184_v10, %v11912_v2  ;;  %v3053_v22 = vsel %vm3047_vm13, %v3050_v28, %v3052_v60  ;;  %v11929_v26 = vmul.u32.u64.low %v11881_v63, %v3061_v27  ;;  %v11930_v51 = vmul.u32.u64.high %v11881_v63, %v3061_v27, %v11929_v26 }
 0x39b   : > { %16549 = vst [vmem:[#allocation12_spill] sm:$0xff] %v11924_v0  ;;  %v2786_v20 = vxor.u32 2147483648, %v11830_v4  ;;  %v11937_v12 = vmul.f32 %v2680_v46, %v2678_v49  ;;  %v2888_v59 = vcvt.s32.f32 %v2881_v30  ;;  %v3336_v55 = vadd.s32 1, %v8282_v24 }
 0x39c   : > { %vm11941_vm7 = vcmp.le.f32.partialorder %v2910_v34, 0.7853982  ;;  %v16550_v52 = vmov 0  ;;  %v2995_v41 = vsel %vm16208_vm1, %v2994_v44, %v11869_v32  ;;  %v3186_v62 = vclz %v8275_v6 }
 0x39d   : > { %v16551_v52 = vsel %vm11941_vm7, 4294967295, %v16550_v52  ;;  %v3072_v11 = vadd.s32 1, %v11919_v37  ;;  %v11953_v46 = vmul.f32 %v2888_v59, %v2886_v1  ;;  %v3069_v30 = vmul.u32 %v11881_v63, %v3053_v22  ;;  %v2421_v59 = vpop.permute.xlu1 %2420 }
 0x39e   : > { %16552 = vst [vmem:[#allocation11_spill] sm:$0xff] %v16551_v52  ;;  %v3334_v34 = vor.u32 8388608, %v11891_v45  ;;  %vm3337_vm8 = vcmp.gt.s32.totalorder %v3336_v55, 0  ;;  %v8276_v49 = vadd.s32 4294967294, %v3186_v62  ;;  %vm3071_vm2 = vc.u32 %v11930_v51, %v11918_v48 }
 0x39f   : > { %v3338_v13 = vsel %vm3337_vm8, %v3336_v55, 0  ;;  %v16160_v54 = vand.u32 2147483647, %v11924_v0  ;;  %v11963_v32 = vsel %vm16212_vm9, %v2786_v20, %v11830_v4  ;;  %v3073_v25 = vsel %vm3071_vm2, %v3072_v11, %v11919_v37 }
 0x3a0   : > { %v3340_v63 = vand.u32 31, %v3338_v13  ;;  %v11970_v45 = vsel %vm11941_vm7, %v11598_v19, %v2995_v41  ;;  %v3174_v28 = vadd.s32 %v11863_v42, %v11873_v38  ;;  %vm8277_vm4 = vcmp.lt.s32.totalorder %v8276_v49, 0 }
 0x3a1   : > { %v3074_v60 = vadd.s32 %v3073_v25, %v3069_v30  ;;  %v3189_v23 = vsel %vm8277_vm4, 0, %v8276_v49  ;;  %v11975_v40 = vshll.u32 %v3334_v34, 8  ;;  %v3225_v37 = vand.u32 2139095040, %v11924_v0 }
 0x3a2   : > { %v3341_v4 = vsub.s32 32, %v3340_v63  ;;  %v3194_v10 = vsub.s32 4294967266, %v3189_v23  ;;  %v11980_v1 = vand.u32 8388607, %v16160_v54  ;;  %v11982_v27 = vshrl.u32 %v3338_v13, 5 }
 0x3a3   : > { %v3075_v61 = vadd.s32 536870912, %v3074_v60  ;;  %v3343_v42 = vshll.u32 %v16540_v33, %v3340_v63  ;;  %v3346_v26 = vshll.u32 %v16541_v15, %v3340_v63  ;;  %v3190_v55 = vsub.s32 32, %v3189_v23 }
 0x3a4   : > { %v3344_v38 = vshrl.u32 %v16541_v15, %v3341_v4  ;;  %v3347_v24 = vshrl.u32 %v16542_v5, %v3341_v4  ;;  %v3195_v6 = vadd.s32 127, %v3194_v10  ;;  %v3350_v20 = vshrl.u32 %v16543_v9, %v3341_v4 }
 0x3a5   : > { %v11987_v22 = vshrl.u32 %v3075_v61, 30  ;;  %v3349_v41 = vshll.u32 %v16542_v5, %v3340_v63  ;;  %v3352_v62 = vshll.u32 %v16543_v9, %v3340_v63  ;;  %v3353_v11 = vshrl.u32 %v16544_v39, %v3341_v4 }
 0x3a6   : > { %v3345_v34 = vor.u32 %v3344_v38, %v3343_v42  ;;  %v3348_v49 = vor.u32 %v3347_v24, %v3346_v26  ;;  %v11996_v13 = vadd.f32 %v11632_v35, %v2421_v59  ;;  %v3355_v61 = vshll.u32 %v16544_v39, %v3340_v63 }
 0x3a7   : > { %16553 = vst [vmem:[#allocation8_spill] sm:$0xff] %v11987_v22  ;;  %v3077_v30 = vshll.u32 %v11987_v22, 30  ;;  %v3351_v25 = vor.u32 %v3350_v20, %v3349_v41  ;;  %v3354_v10 = vor.u32 %v3353_v11, %v3352_v62  ;;  %v3356_v54 = vshrl.u32 %v16545_v36, %v3341_v4 }
 0x3a8   : > { %16554 = vst [vmem:[#allocation6_spill] sm:$0xff] %v11996_v13  ;;  %vm16213_vm6 = vcmp.lt.s32.totalorder %v11590_v8, 0  ;;  %vm16211_vm15 = vcmp.lt.s32.totalorder %v11612_v29, 0  ;;  %v3191_v7 = vshll.u32 %v11912_v2, %v3189_v23  ;;  %v3196_v44 = vshll.u32 %v3195_v6, 23 }
 0x3a9   : > { %v12003_v50 = vsub.s32 %v3074_v60, %v3077_v30  ;;  %v3226_v42 = vshrl.u32 %v3225_v37, 23  ;;  %v3192_v38 = vshrl.u32 %v3174_v28, %v3190_v55  ;;  %v3342_v35 = vshrl.u32 %v16540_v33, %v3341_v4 }
 0x3aa   : > { %v3357_v24 = vor.u32 %v3356_v54, %v3355_v61  ;;  %vm3358_vm5 = vcmp.lt.s32.totalorder %v11982_v27, 1  ;;  %vm3360_vm10 = vcmp.lt.s32.totalorder %v11982_v27, 3  ;;  %vm3361_vm12 = vcmp.lt.s32.totalorder %v11982_v27, 4 }
 0x3ab   : > { %v3080_v63 = vsub.s32 0, %v12003_v50  ;;  %v3366_v26 = vsel %vm3358_vm5, %v3345_v34, %v3348_v49  ;;  %v3363_v2 = vsel %vm3361_vm12, %v3351_v25, 2102212464  ;;  %v3367_v23 = vsel %vm3361_vm12, %v3354_v10, 920167782 }
 0x3ac   : > { %v3370_v60 = vsel %vm3358_vm5, %v3348_v49, %v3351_v25  ;;  %v3371_v28 = vsel %vm3361_vm12, %v3357_v24, 1326507024  ;;  %v16555_v4 = vand.u32 2147483647, %v11612_v29  ;;  %v3197_v37 = vor.u32 4788187, %v3196_v44 }
 0x3ad   : > { %v8271_v6 = vmin.u32 %v3080_v63, %v12003_v50  ;;  %vm3359_vm0 = vcmp.lt.s32.totalorder %v11982_v27, 2  ;;  %v3368_v20 = vsel %vm3360_vm10, %v3351_v25, %v3367_v23  ;;  %v3193_v59 = vor.u32 %v3192_v38, %v3191_v7 }
 0x3ae   : > { %vm12016_vm14 = vcmp.le.f32.partialorder %v16555_v4, 0.7853982  ;;  %v3369_v55 = vsel %vm3359_vm0, %v3366_v26, %v3368_v20  ;;  %v3372_v41 = vsel %vm3360_vm10, %v3354_v10, %v3371_v28  ;;  %v8278_v62 = vadd.s32 4294967169, %v3226_v42  ;;  %v12043_v10 = vpop.f32.mrb[14].mxu0 }
 0x3af   : > { %v3082_v11 = vclz %v8271_v6  ;;  %v3362_v30 = vsel %vm3358_vm5, %v3342_v35, %v3345_v34  ;;  %v3364_v44 = vsel %vm3360_vm10, %v3348_v49, %v3363_v2  ;;  %v3373_v61 = vsel %vm3359_vm0, %v3370_v60, %v3372_v41 }
 0x3b0   : > { %v12035_v25 = vmul.u32.u64.low %v11975_v40, %v3373_v61  ;;  %v12036_v7 = vmul.u32.u64.high %v11975_v40, %v3373_v61, %v12035_v25  ;;  %v12039_v38 = vmul.u32.u64.low %v11975_v40, %v3369_v55  ;;  %v12040_v24 = vmul.u32.u64.high %v11975_v40, %v3369_v55, %v12039_v38 }
 0x3b1   : > { %9256 = vcosq.f32 %v11970_v45  ;;  %v3198_v34 = vand.u32 2147483647, %v3197_v37  ;;  %v8272_v42 = vadd.s32 4294967294, %v3082_v11  ;;  %v3232_v35 = vadd.s32 1, %v8278_v62  ;;  %v2416_v11 = vpop.permute.xlu0 %2415 }
 0x3b2   : > { %v16558_v49 = vxor.u32 2147483648, %v11937_v12  ;;  %9258 = vsinq.f32 %v11970_v45  ;;  %v16559_v26 = vxor.u32 2147483648, %v11953_v46  ;;  %v3537_v23 = vand.u32 2139095040, %v11996_v13 }
 0x3b3   : > { %v3200_v60 = vcvt.s32.f32 %v3193_v59  ;;  %vm8273_vm11 = vcmp.lt.s32.totalorder %v8272_v42, 0  ;;  %v3365_v28 = vsel %vm3359_vm0, %v3362_v30, %v3364_v44  ;;  %vm3233_vm3 = vcmp.gt.s32.totalorder %v3232_v35, 0 }
 0x3b4   : > { %v12051_v63 = vsel %vm16213_vm6, %v16558_v49, %v11937_v12  ;;  %v2891_v2 = vsel %vm16211_vm15, %v16559_v26, %v11953_v46  ;;  %v3070_v12 = vadd.s32 %v11918_v48, %v11930_v51  ;;  %v3085_v4 = vsel %vm8273_vm11, 0, %v8272_v42 }
 0x3b5   : > { %vm3383_vm13 = vc.u32 %v12036_v7, %v12039_v38  ;;  %v3230_v45 = vor.u32 8388608, %v11980_v1  ;;  %v12067_v37 = vmul.f32 %v3200_v60, %v3198_v34  ;;  %v3086_v46 = vsub.s32 32, %v3085_v4 }
 0x3b6   : > { %v3090_v6 = vsub.s32 4294967266, %v3085_v4  ;;  %v3384_v20 = vadd.s32 1, %v12040_v24  ;;  %v12073_v27 = vsel %vm12016_vm14, %v11612_v29, %v2891_v2  ;;  %v3381_v59 = vmul.u32 %v11975_v40, %v3365_v28 }
 0x3b7   : > { %v3234_v48 = vsel %vm3233_vm3, %v3232_v35, 0  ;;  %v3538_v51 = vshrl.u32 %v3537_v23, 23  ;;  %v3088_v55 = vshrl.u32 %v3070_v12, %v3086_v46  ;;  %v3087_v30 = vshll.u32 %v12003_v50, %v3085_v4 }
 0x3b8   : > { %v3091_v41 = vadd.s32 127, %v3090_v6  ;;  %v3385_v62 = vsel %vm3383_vm13, %v3384_v20, %v12040_v24  ;;  %v12077_v1 = vshrl.u32 %v3234_v48, 5  ;;  %v3236_v61 = vand.u32 31, %v3234_v48 }
 0x3b9   : > { %v3386_v44 = vadd.s32 %v3385_v62, %v3381_v59  ;;  %v3202_v34 = vxor.u32 2147483648, %v12067_v37  ;;  %v12082_v49 = vshll.u32 %v3230_v45, 8  ;;  %v12085_v40 = vadd.f32 %v11678_v14, %v2416_v11 }
 0x3ba   : > { %v3092_v42 = vshll.u32 %v3091_v41, 23  ;;  %v3089_v35 = vor.u32 %v3088_v55, %v3087_v30  ;;  %v3237_v24 = vsub.s32 32, %v3236_v61  ;;  %v8290_v2 = vadd.s32 4294967169, %v3538_v51 }
 0x3bb   : > { %16560 = vst [vmem:[#allocation25_spill] sm:$0xff] %v12085_v40  ;;  %v3387_v26 = vadd.s32 536870912, %v3386_v44  ;;  %v12087_v23 = vpop.eup %9256  ;;  %vm16192_vm8 = vcmp.lt.s32.totalorder %v11759_v56, 0  ;;  %v3239_v60 = vshll.u32 %v16540_v33, %v3236_v61  ;;  %v3242_v28 = vshll.u32 %v16541_v15, %v3236_v61 }
 0x3bc   : > { %16561 = vst [vmem:[#allocation19_spill] sm:$0xff] %v12087_v23  ;;  %v3093_v50 = vor.u32 4788187, %v3092_v42  ;;  %vm3254_vm2 = vcmp.lt.s32.totalorder %v12077_v1, 1  ;;  %v12093_v12 = vpop.eup %9258  ;;  %v3240_v14 = vshrl.u32 %v16541_v15, %v3237_v24  ;;  %v3243_v45 = vshrl.u32 %v16542_v5, %v3237_v24 }
 0x3bd   : > { %16562 = vst [vmem:[#allocation17_spill] sm:$0xff] %v12093_v12  ;;  %v12095_v4 = vshrl.u32 %v3387_v26, 30  ;;  %v3245_v46 = vshll.u32 %v16542_v5, %v3236_v61  ;;  %v3246_v6 = vshrl.u32 %v16543_v9, %v3237_v24  ;;  %v3248_v20 = vshll.u32 %v16543_v9, %v3236_v61 }
 0x3be   : > { %v3249_v59 = vshrl.u32 %v16544_v39, %v3237_v24  ;;  %v3251_v48 = vshll.u32 %v16544_v39, %v3236_v61  ;;  %v16564_v51 = vand.u32 2147483647, %v11759_v56  ;;  %v16565_v55 = vmov 0 }
 0x3bf   : > { %16563 = vst [vmem:[#allocation33_spill] sm:$0xff] %v12095_v4  ;;  %v3389_v41 = vshll.u32 %v12095_v4, 30  ;;  %v3241_v62 = vor.u32 %v3240_v14, %v3239_v60  ;;  %v3244_v11 = vor.u32 %v3243_v45, %v3242_v28  ;;  %v3252_v30 = vshrl.u32 %v16545_v36, %v3237_v24 }
 0x3c0   : > { %vm12106_vm4 = vcmp.le.f32.partialorder %v16564_v51, 0.7853982  ;;  %v3238_v42 = vshrl.u32 %v16540_v33, %v3237_v24  ;;  %v3247_v26 = vor.u32 %v3246_v6, %v3245_v46  ;;  %v3250_v25 = vor.u32 %v3249_v59, %v3248_v20 }
 0x3c1   : > { %v16566_v55 = vsel %vm12106_vm4, 4294967295, %v16565_v55  ;;  %vm3255_vm5 = vcmp.lt.s32.totalorder %v12077_v1, 2  ;;  %v3094_v23 = vand.u32 2147483647, %v3093_v50  ;;  %v12114_v61 = vsub.s32 %v3386_v44, %v3389_v41 }
 0x3c2   : > { %16567 = vst [vmem:[#allocation31_spill] sm:$0xff] %v16566_v55  ;;  %v3253_v22 = vor.u32 %v3252_v30, %v3251_v48  ;;  %vm3257_vm10 = vcmp.lt.s32.totalorder %v12077_v1, 4  ;;  %vm3256_vm12 = vcmp.lt.s32.totalorder %v12077_v1, 3  ;;  %v3262_v60 = vsel %vm3254_vm2, %v3241_v62, %v3244_v11 }
 0x3c3   : > { %v3259_v51 = vsel %vm3257_vm10, %v3247_v26, 2102212464  ;;  %v3263_v28 = vsel %vm3257_vm10, %v3250_v25, 920167782  ;;  %v3096_v14 = vcvt.s32.f32 %v3089_v35  ;;  %v3392_v24 = vsub.s32 0, %v12114_v61 }
 0x3c4   : > { %v3264_v45 = vsel %vm3256_vm12, %v3247_v26, %v3263_v28  ;;  %v3266_v46 = vsel %vm3254_vm2, %v3244_v11, %v3247_v26  ;;  %v3258_v44 = vsel %vm3254_vm2, %v3238_v42, %v3241_v62  ;;  %v3260_v50 = vsel %vm3256_vm12, %v3244_v11, %v3259_v51 }
 0x3c5   : > { %v3265_v6 = vsel %vm3255_vm5, %v3262_v60, %v3264_v45  ;;  %v3267_v20 = vsel %vm3257_vm10, %v3253_v22, 1326507024  ;;  %v3203_v59 = vsel %vm16192_vm8, %v3202_v34, %v12067_v37  ;;  %v8283_v35 = vmin.u32 %v3392_v24, %v12114_v61  ;;  %v12144_v22 = vpop.f32.mrb[15].mxu0 }
 0x3c6   : > { %v3268_v48 = vsel %vm3256_vm12, %v3250_v25, %v3267_v20  ;;  %v16568_v41 = vand.u32 2147483647, %v11996_v13  ;;  %v12135_v26 = vmul.f32 %v3096_v14, %v3094_v23  ;;  %v3261_v25 = vsel %vm3255_vm5, %v3258_v44, %v3260_v50 }
 0x3c7   : > { %v3269_v62 = vsel %vm3255_vm5, %v3266_v46, %v3268_v48  ;;  %v12140_v11 = vmul.u32.u64.low %v12082_v49, %v3265_v6  ;;  %v12141_v42 = vmul.u32.u64.high %v12082_v49, %v3265_v6, %v12140_v11  ;;  %v3394_v37 = vclz %v8283_v35 }
 0x3c8   : > { %v12133_v30 = vand.u32 8388607, %v16568_v41  ;;  %v12149_v34 = vmul.u32.u64.low %v12082_v49, %v3269_v62  ;;  %v12150_v51 = vmul.u32.u64.high %v12082_v49, %v3269_v62, %v12149_v34  ;;  %9260 = vcosq.f32 %v12073_v27 }
 0x3c9   : > { %v12156_v23 = vsel %vm12106_vm4, %v11759_v56, %v3203_v59  ;;  %v3544_v60 = vadd.s32 1, %v8290_v2  ;;  %v3433_v28 = vand.u32 2139095040, %v12085_v40  ;;  %v3382_v14 = vadd.s32 %v12039_v38, %v12036_v7 }
 0x3ca   : > { %v8284_v24 = vadd.s32 4294967294, %v3394_v37  ;;  %v3277_v44 = vmul.u32 %v12082_v49, %v3261_v25  ;;  %v3280_v50 = vadd.s32 1, %v12141_v42  ;;  %vm3279_vm3 = vc.u32 %v12150_v51, %v12140_v11 }
 0x3cb   : > { %vm3545_vm0 = vcmp.gt.s32.totalorder %v3544_v60, 0  ;;  %v3434_v6 = vshrl.u32 %v3433_v28, 23  ;;  %vm16194_vm13 = vcmp.lt.s32.totalorder %v11762_v58, 0  ;;  %v16570_v19 = vand.u32 2147483647, %v11762_v58 }
 0x3cc   : > { %vm8285_vm11 = vcmp.lt.s32.totalorder %v8284_v24, 0  ;;  %v3546_v2 = vsel %vm3545_vm0, %v3544_v60, 0  ;;  %v3281_v7 = vsel %vm3279_vm3, %v3280_v50, %v12141_v42  ;;  %9262 = vsinq.f32 %v12073_v27 }
 0x3cd   : > { %v3397_v20 = vsel %vm8285_vm11, 0, %v8284_v24  ;;  %v3547_v38 = vshrl.u32 %v3546_v2, 5  ;;  %v3548_v59 = vand.u32 31, %v3546_v2  ;;  %v3282_v62 = vadd.s32 %v3281_v7, %v3277_v44 }
 0x3ce   : > { %v3398_v35 = vsub.s32 32, %v3397_v20  ;;  %v3399_v48 = vshll.u32 %v12114_v61, %v3397_v20  ;;  %v3402_v41 = vsub.s32 4294967266, %v3397_v20  ;;  %vm12188_vm2 = vcmp.le.f32.partialorder %v16570_v19, 0.7853982 }
 0x3cf   : > { %v3549_v49 = vsub.s32 32, %v3548_v59  ;;  %v3551_v37 = vshll.u32 %v16540_v33, %v3548_v59  ;;  %v3554_v25 = vshll.u32 %v16541_v15, %v3548_v59  ;;  %v3557_v34 = vshll.u32 %v16542_v5, %v3548_v59 }
 0x3d0   : > { %v3400_v45 = vshrl.u32 %v3382_v14, %v3398_v35  ;;  %v3403_v60 = vadd.s32 127, %v3402_v41  ;;  %v3283_v28 = vadd.s32 536870912, %v3282_v62  ;;  %v3560_v24 = vshll.u32 %v16543_v9, %v3548_v59 }
 0x3d1   : > { %v3550_v42 = vshrl.u32 %v16540_v33, %v3549_v49  ;;  %v3552_v61 = vshrl.u32 %v16541_v15, %v3549_v49  ;;  %v3555_v44 = vshrl.u32 %v16542_v5, %v3549_v49  ;;  %v3558_v50 = vshrl.u32 %v16543_v9, %v3549_v49 }
 0x3d2   : > { %v3401_v2 = vor.u32 %v3400_v45, %v3399_v48  ;;  %v3404_v20 = vshll.u32 %v3403_v60, 23  ;;  %v12179_v7 = vshrl.u32 %v3283_v28, 30  ;;  %v3561_v14 = vshrl.u32 %v16544_v39, %v3549_v49  ;;  %v12182_v35 = vpop.eup %9260 }
 0x3d3   : > { %v3553_v41 = vor.u32 %v3552_v61, %v3551_v37  ;;  %v3556_v46 = vor.u32 %v3555_v44, %v3554_v25  ;;  %v3559_v1 = vor.u32 %v3558_v50, %v3557_v34  ;;  %v3563_v4 = vshll.u32 %v16544_v39, %v3548_v59 }
 0x3d4   : > { %16569 = vst [vmem:[#allocation10_spill] sm:$0xff] %v12179_v7  ;;  %v3405_v55 = vor.u32 4788187, %v3404_v20  ;;  %v3408_v56 = vcvt.s32.f32 %v3401_v2  ;;  %v3285_v12 = vshll.u32 %v12179_v7, 30  ;;  %v3562_v52 = vor.u32 %v3561_v14, %v3560_v24 }
 0x3d5   : > { %v16571_v45 = vmov 0  ;;  %v3564_v48 = vshrl.u32 %v16545_v36, %v3549_v49  ;;  %vm3566_vm5 = vcmp.lt.s32.totalorder %v3547_v38, 1  ;;  %vm3567_vm10 = vcmp.lt.s32.totalorder %v3547_v38, 2 }
 0x3d6   : > { %v16572_v45 = vsel %vm12188_vm2, 4294967295, %v16571_v45  ;;  %vm3568_vm12 = vcmp.lt.s32.totalorder %v3547_v38, 3  ;;  %v3406_v37 = vand.u32 2147483647, %v3405_v55  ;;  %v12193_v25 = vsub.s32 %v3282_v62, %v3285_v12 }
 0x3d7   : > { %16573 = vst [vmem:[#allocation28_spill] sm:$0xff] %v16572_v45  ;;  %vm3569_vm0 = vcmp.lt.s32.totalorder %v3547_v38, 4  ;;  %v3570_v59 = vsel %vm3566_vm5, %v3550_v42, %v3553_v41  ;;  %v3565_v34 = vor.u32 %v3564_v48, %v3563_v4  ;;  %v3574_v28 = vsel %vm3566_vm5, %v3553_v41, %v3556_v46 }
 0x3d8   : > { %v3571_v60 = vsel %vm3569_vm0, %v3559_v1, 2102212464  ;;  %v3575_v24 = vsel %vm3569_vm0, %v3562_v52, 920167782  ;;  %v3409_v19 = vmul.f32 %v3408_v56, %v3406_v37  ;;  %v3288_v61 = vsub.s32 0, %v12193_v25 }
 0x3d9   : > { %v3572_v44 = vsel %vm3568_vm12, %v3556_v46, %v3571_v60  ;;  %v3576_v49 = vsel %vm3568_vm12, %v3559_v1, %v3575_v24  ;;  %v3578_v12 = vsel %vm3566_vm5, %v3556_v46, %v3559_v1  ;;  %v3579_v55 = vsel %vm3569_vm0, %v3565_v34, 1326507024 }
 0x3da   : > { %v3577_v50 = vsel %vm3567_vm10, %v3574_v28, %v3576_v49  ;;  %v16574_v62 = vor.u32 8388608, %v12133_v30  ;;  %v16575_v4 = vxor.u32 2147483648, %v12135_v26  ;;  %v8279_v2 = vmin.u32 %v3288_v61, %v12193_v25  ;;  %v2431_v28 = vpop.permute.xlu1 %2430 }
 0x3db   : > { %v3573_v20 = vsel %vm3567_vm10, %v3570_v59, %v3572_v44  ;;  %v3580_v14 = vsel %vm3568_vm12, %v3562_v52, %v3579_v55  ;;  %v8286_v30 = vadd.s32 4294967169, %v3434_v6  ;;  %v3410_v46 = vxor.u32 2147483648, %v3409_v19 }
 0x3dc   : > { %v3582_v42 = vshll.u32 %v16574_v62, 8  ;;  %v3099_v56 = vsel %vm16194_vm13, %v16575_v4, %v12135_v26  ;;  %v3581_v41 = vsel %vm3567_vm10, %v3578_v12, %v3580_v14  ;;  %v3290_v37 = vclz %v8279_v2 }
 0x3dd   : > { %vm16178_vm11 = vcmp.lt.s32.totalorder %v11828_v16, 0  ;;  %v16576_v26 = vand.u32 2147483647, %v12085_v40  ;;  %v3440_v38 = vadd.s32 1, %v8286_v30  ;;  %9264 = vcosq.f32 %v12156_v23 }
 0x3de   : > { %v12213_v48 = vmul.u32.u64.low %v3582_v42, %v3577_v50  ;;  %v12214_v1 = vmul.u32.u64.high %v3582_v42, %v3577_v50, %v12213_v48  ;;  %v12217_v34 = vmul.u32.u64.low %v3582_v42, %v3581_v41  ;;  %v12218_v60 = vmul.u32.u64.high %v3582_v42, %v3581_v41, %v12217_v34 }
 0x3df   : > { %v3437_v52 = vand.u32 8388607, %v16576_v26  ;;  %v12228_v6 = vsel %vm12188_vm2, %v11762_v58, %v3099_v56  ;;  %v8280_v59 = vadd.s32 4294967294, %v3290_v37  ;;  %v12231_v24 = vadd.f32 %v11746_v47, %v2431_v28 }
 0x3e0   : > { %v3278_v27 = vadd.s32 %v12140_v11, %v12150_v51  ;;  %v3589_v61 = vmul.u32 %v3582_v42, %v3573_v20  ;;  %v3592_v44 = vadd.s32 1, %v12214_v1  ;;  %vm3441_vm3 = vcmp.gt.s32.totalorder %v3440_v38, 0 }
 0x3e1   : > { %16577 = vst [vmem:[#allocation30_spill] sm:$0xff] %v12231_v24  ;;  %v12238_v49 = vsel %vm16178_vm11, %v3410_v46, %v3409_v19  ;;  %vm8281_vm5 = vcmp.lt.s32.totalorder %v8280_v59, 0  ;;  %vm3591_vm10 = vc.u32 %v12218_v60, %v12213_v48  ;;  %v3442_v50 = vsel %vm3441_vm3, %v3440_v38, 0 }
 0x3e2   : > { %v3293_v12 = vsel %vm8281_vm5, 0, %v8280_v59  ;;  %v3593_v47 = vsel %vm3591_vm10, %v3592_v44, %v12214_v1  ;;  %v3438_v55 = vor.u32 8388608, %v3437_v52  ;;  %v3444_v62 = vand.u32 31, %v3442_v50  ;;  %v12256_v59 = vpop.eup %9262 }
 0x3e3   : > { %v3294_v4 = vsub.s32 32, %v3293_v12  ;;  %v3298_v11 = vsub.s32 4294967266, %v3293_v12  ;;  %v3594_v51 = vadd.s32 %v3593_v47, %v3589_v61  ;;  %v12243_v42 = vshrl.u32 %v3442_v50, 5 }
 0x3e4   : > { %v3295_v56 = vshll.u32 %v12193_v25, %v3293_v12  ;;  %v3445_v2 = vsub.s32 32, %v3444_v62  ;;  %v3447_v19 = vshll.u32 %v16540_v33, %v3444_v62  ;;  %v3450_v20 = vshll.u32 %v16541_v15, %v3444_v62 }
 0x3e5   : > { %v3296_v14 = vshrl.u32 %v3278_v27, %v3294_v4  ;;  %v3299_v41 = vadd.s32 127, %v3298_v11  ;;  %v3595_v30 = vadd.s32 536870912, %v3594_v51  ;;  %v3453_v46 = vshll.u32 %v16542_v5, %v3444_v62 }
 0x3e6   : > { %v3448_v1 = vshrl.u32 %v16541_v15, %v3445_v2  ;;  %v3451_v37 = vshrl.u32 %v16542_v5, %v3445_v2  ;;  %v3454_v34 = vshrl.u32 %v16543_v9, %v3445_v2  ;;  %v3456_v28 = vshll.u32 %v16543_v9, %v3444_v62 }
 0x3e7   : > { %v3297_v26 = vor.u32 %v3296_v14, %v3295_v56  ;;  %v3300_v25 = vshll.u32 %v3299_v41, 23  ;;  %v12253_v52 = vshrl.u32 %v3595_v30, 30  ;;  %v3457_v38 = vshrl.u32 %v16544_v39, %v3445_v2  ;;  %v12265_v4 = vpop.eup %9264 }
 0x3e8   : > { %v16579_v27 = vand.u32 2147483647, %v11828_v16  ;;  %v16580_v61 = vmov 0  ;;  %v3449_v44 = vor.u32 %v3448_v1, %v3447_v19  ;;  %v3452_v50 = vor.u32 %v3451_v37, %v3450_v20 }
 0x3e9   : > { %16578 = vst [vmem:[#allocation16_spill] sm:$0xff] %v12253_v52  ;;  %v3455_v12 = vor.u32 %v3454_v34, %v3453_v46  ;;  %v3745_v47 = vand.u32 2139095040, %v12231_v24  ;;  %v3301_v11 = vor.u32 4788187, %v3300_v25  ;;  %v3597_v56 = vshll.u32 %v12253_v52, 30 }
 0x3ea   : > { %vm12260_vm12 = vcmp.le.f32.partialorder %v16579_v27, 0.7853982  ;;  %v3458_v14 = vor.u32 %v3457_v38, %v3456_v28  ;;  %v3478_v41 = vshll.u32 %v3438_v55, 8  ;;  %v3304_v30 = vcvt.s32.f32 %v3297_v26 }
 0x3eb   : > { %v16581_v61 = vsel %vm12260_vm12, 4294967295, %v16580_v61  ;;  %v3459_v7 = vshll.u32 %v16544_v39, %v3444_v62  ;;  %v3460_v27 = vshrl.u32 %v16545_v36, %v3445_v2  ;;  %vm3462_vm0 = vcmp.lt.s32.totalorder %v12243_v42, 1 }
 0x3ec   : > { %16582 = vst [vmem:[#allocation9_spill] sm:$0xff] %v16581_v61  ;;  %v3302_v45 = vand.u32 2147483647, %v3301_v11  ;;  %v12271_v19 = vsub.s32 %v3594_v51, %v3597_v56  ;;  %vm3464_vm3 = vcmp.lt.s32.totalorder %v12243_v42, 3  ;;  %vm3465_vm5 = vcmp.lt.s32.totalorder %v12243_v42, 4 }
 0x3ed   : > { %v3461_v20 = vor.u32 %v3460_v27, %v3459_v7  ;;  %v3467_v46 = vsel %vm3465_vm5, %v3455_v12, 2102212464  ;;  %v3470_v1 = vsel %vm3462_vm0, %v3449_v44, %v3452_v50  ;;  %v3471_v55 = vsel %vm3465_vm5, %v3458_v14, 920167782 }
 0x3ee   : > { %vm16191_vm10 = vcmp.lt.s32.totalorder %v11924_v0, 0  ;;  %v3600_v62 = vsub.s32 0, %v12271_v19  ;;  %v3446_v37 = vshrl.u32 %v16540_v33, %v3445_v2  ;;  %vm3463_vm11 = vcmp.lt.s32.totalorder %v12243_v42, 2 }
 0x3ef   : > { %v3472_v51 = vsel %vm3464_vm3, %v3455_v12, %v3471_v55  ;;  %v3305_v34 = vmul.f32 %v3304_v30, %v3302_v45  ;;  %v3474_v28 = vsel %vm3462_vm0, %v3452_v50, %v3455_v12  ;;  %v3475_v26 = vsel %vm3465_vm5, %v3461_v20, 1326507024  ;;  %v2426_v20 = vpop.permute.xlu0 %2425 }
 0x3f0   : > { %v3473_v7 = vsel %vm3463_vm11, %v3470_v1, %v3472_v51  ;;  %v8291_v25 = vmin.u32 %v3600_v62, %v12271_v19  ;;  %v3466_v38 = vsel %vm3462_vm0, %v3446_v37, %v3449_v44  ;;  %v3468_v2 = vsel %vm3464_vm3, %v3452_v50, %v3467_v46 }
 0x3f1   : > { %v3476_v11 = vsel %vm3464_vm3, %v3458_v14, %v3475_v26  ;;  %9266 = vsinq.f32 %v12156_v23  ;;  %v12297_v56 = vmul.u32.u64.low %v3478_v41, %v3473_v7  ;;  %v12298_v30 = vmul.u32.u64.high %v3478_v41, %v3473_v7, %v12297_v56 }
 0x3f2   : > { %v3477_v45 = vsel %vm3463_vm11, %v3474_v28, %v3476_v11  ;;  %v3414_v44 = vsel %vm12260_vm12, %v11828_v16, %v12238_v49  ;;  %v3602_v12 = vclz %v8291_v25  ;;  %9268 = vcosq.f32 %v12228_v6  ;;  %v2441_v25 = vpop.permute.xlu1 %2440 }
 0x3f3   : > { %v12305_v27 = vmul.u32.u64.low %v3478_v41, %v3477_v45  ;;  %v12306_v50 = vmul.u32.u64.high %v3478_v41, %v3477_v45, %v12305_v27  ;;  %v3306_v23 = vxor.u32 2147483648, %v3305_v34  ;;  %v3469_v14 = vsel %vm3463_vm11, %v3466_v38, %v3468_v2 }
 0x3f4   : > { %v3746_v46 = vshrl.u32 %v3745_v47, 23  ;;  %9270 = vsinq.f32 %v12228_v6  ;;  %v16583_v1 = vand.u32 2147483647, %v11924_v0  ;;  %v16584_v55 = vmov 0 }
 0x3f5   : > { %v8292_v49 = vadd.s32 4294967294, %v3602_v12  ;;  %v12319_v62 = vadd.f32 %v11808_v17, %v2426_v20  ;;  %9272 = vcosq.f32 %v3414_v44  ;;  %v3488_v37 = vadd.s32 1, %v12298_v30 }
 0x3f6   : > { %vm12314_vm0 = vcmp.le.f32.partialorder %v16583_v1, 0.7853982  ;;  %v16179_v51 = vand.u32 2147483647, %v12231_v24  ;;  %v8298_v42 = vadd.s32 4294967169, %v3746_v46  ;;  %v3590_v47 = vadd.s32 %v12213_v48, %v12218_v60 }
 0x3f7   : > { %v16585_v55 = vsel %vm12314_vm0, 4294967295, %v16584_v55  ;;  %vm8293_vm11 = vcmp.lt.s32.totalorder %v8292_v49, 0  ;;  %v3485_v6 = vmul.u32 %v3478_v41, %v3469_v14  ;;  %vm3487_vm3 = vc.u32 %v12306_v50, %v12297_v56 }
 0x3f8   : > { %16586 = vst [vmem:[#allocation24_spill] sm:$0xff] %v16585_v55  ;;  %v3307_v7 = vsel %vm16191_vm10, %v3306_v23, %v3305_v34  ;;  %v3605_v28 = vsel %vm8293_vm11, 0, %v8292_v49  ;;  %v3489_v17 = vsel %vm3487_vm3, %v3488_v37, %v12298_v30  ;;  %v3752_v26 = vadd.s32 1, %v8298_v42 }
 0x3f9   : > { %v3606_v38 = vsub.s32 32, %v3605_v28  ;;  %v3610_v2 = vsub.s32 4294967266, %v3605_v28  ;;  %v3490_v11 = vadd.s32 %v3489_v17, %v3485_v6  ;;  %v3641_v45 = vand.u32 2139095040, %v12319_v62 }
 0x3fa   : > { %9274 = vsinq.f32 %v3414_v44  ;;  %v3607_v48 = vshll.u32 %v12271_v19, %v3605_v28  ;;  %vm3753_vm5 = vcmp.gt.s32.totalorder %v3752_v26, 0  ;;  %v12333_v60 = vadd.f32 %v11860_v53, %v2441_v25 }
 0x3fb   : > { %v3608_v41 = vshrl.u32 %v3590_v47, %v3606_v38  ;;  %v3611_v12 = vadd.s32 127, %v3610_v2  ;;  %v3491_v34 = vadd.s32 536870912, %v3490_v11  ;;  %v3754_v27 = vsel %vm3753_vm5, %v3752_v26, 0  ;;  %v12335_v20 = vpop.eup %9266 }
 0x3fc   : > { %v12340_v30 = vsel %vm12314_vm0, %v11924_v0, %v3307_v7  ;;  %v3749_v44 = vand.u32 8388607, %v16179_v51  ;;  %v3756_v23 = vand.u32 31, %v3754_v27  ;;  %v3642_v1 = vshrl.u32 %v3641_v45, 23  ;;  %v12347_v49 = vpop.eup %9268 }
 0x3fd   : > { %v3609_v14 = vor.u32 %v3608_v41, %v3607_v48  ;;  %v3612_v53 = vshll.u32 %v3611_v12, 23  ;;  %v12345_v46 = vshrl.u32 %v3491_v34, 30  ;;  %v3755_v37 = vshrl.u32 %v3754_v27, 5 }
 0x3fe   : > { %v3757_v42 = vsub.s32 32, %v3756_v23  ;;  %v3759_v47 = vshll.u32 %v16540_v33, %v3756_v23  ;;  %v3762_v6 = vshll.u32 %v16541_v15, %v3756_v23  ;;  %v12351_v7 = vpop.eup %9270  ;;  %v3765_v25 = vshll.u32 %v16542_v5, %v3756_v23 }
 0x3ff   : > { %16587 = vst [vmem:[#allocation29_spill] sm:$0xff] %v12345_v46  ;;  %v3613_v28 = vor.u32 4788187, %v3612_v53  ;;  %v3616_v17 = vcvt.s32.f32 %v3609_v14  ;;  %v3493_v26 = vshll.u32 %v12345_v46, 30  ;;  %v12355_v38 = vpop.eup %9272  ;;  %v3768_v41 = vshll.u32 %v16543_v9, %v3756_v23 }
 0x400   : > { %16588 = vst [vmem:[#allocation18_spill] sm:$0xff] %v12355_v38  ;;  %v3760_v2 = vshrl.u32 %v16541_v15, %v3757_v42  ;;  %v3763_v45 = vshrl.u32 %v16542_v5, %v3757_v42  ;;  %v3766_v48 = vshrl.u32 %v16543_v9, %v3757_v42  ;;  %v3769_v27 = vshrl.u32 %v16544_v39, %v3757_v42 }
 0x401   : > { %v3614_v12 = vand.u32 2147483647, %v3613_v28  ;;  %v12361_v34 = vsub.s32 %v3490_v11, %v3493_v26  ;;  %v3771_v14 = vshll.u32 %v16544_v39, %v3756_v23  ;;  %v3772_v52 = vshrl.u32 %v16545_v36, %v3757_v42 }
 0x402   : > { %v3761_v53 = vor.u32 %v3760_v2, %v3759_v47  ;;  %v3764_v51 = vor.u32 %v3763_v45, %v3762_v6  ;;  %v3767_v19 = vor.u32 %v3766_v48, %v3765_v25  ;;  %v3750_v61 = vor.u32 8388608, %v3749_v44 }
 0x403   : > { %v3496_v38 = vsub.s32 0, %v12361_v34  ;;  %v3770_v46 = vor.u32 %v3769_v27, %v3768_v41  ;;  %v8294_v16 = vadd.s32 4294967169, %v3642_v1  ;;  %v3617_v0 = vmul.f32 %v3616_v17, %v3614_v12 }
 0x404   : > { %v12367_v55 = vpop.eup %9274  ;;  %v3758_v11 = vshrl.u32 %v16540_v33, %v3757_v42  ;;  %v3773_v28 = vor.u32 %v3772_v52, %v3771_v14  ;;  %vm3777_vm11 = vcmp.lt.s32.totalorder %v3755_v37, 4  ;;  %vm16195_vm3 = vcmp.lt.s32.totalorder %v11996_v13, 0 }
 0x405   : > { %16589 = vst [vmem:[#allocation23_spill] sm:$0xff] %v12367_v55  ;;  %v8287_v23 = vmin.u32 %v3496_v38, %v12361_v34  ;;  %vm3774_vm5 = vcmp.lt.s32.totalorder %v3755_v37, 1  ;;  %vm3775_vm10 = vcmp.lt.s32.totalorder %v3755_v37, 2  ;;  %v3779_v47 = vsel %vm3777_vm11, %v3767_v19, 2102212464 }
 0x406   : > { %vm3776_vm8 = vcmp.lt.s32.totalorder %v3755_v37, 3  ;;  %v3778_v6 = vsel %vm3774_vm5, %v3758_v11, %v3761_v53  ;;  %v3782_v26 = vsel %vm3774_vm5, %v3761_v53, %v3764_v51  ;;  %v3783_v44 = vsel %vm3777_vm11, %v3770_v46, 920167782 }
 0x407   : > { %v3498_v25 = vclz %v8287_v23  ;;  %v3780_v1 = vsel %vm3776_vm8, %v3764_v51, %v3779_v47  ;;  %v3784_v2 = vsel %vm3776_vm8, %v3767_v19, %v3783_v44  ;;  %v3786_v45 = vsel %vm3774_vm5, %v3764_v51, %v3767_v19 }
 0x408   : > { %v3785_v17 = vsel %vm3775_vm10, %v3782_v26, %v3784_v2  ;;  %v3787_v42 = vsel %vm3777_vm11, %v3773_v28, 1326507024  ;;  %v3790_v52 = vshll.u32 %v3750_v61, 8  ;;  %v16590_v48 = vand.u32 2147483647, %v12319_v62 }
 0x409   : > { %v3618_v12 = vxor.u32 2147483648, %v3617_v0  ;;  %v8288_v38 = vadd.s32 4294967294, %v3498_v25  ;;  %v3788_v27 = vsel %vm3776_vm8, %v3770_v46, %v3787_v42  ;;  %v3648_v14 = vadd.s32 1, %v8294_v16 }
 0x40a   : > { %v3645_v41 = vand.u32 8388607, %v16590_v48  ;;  %v16591_v55 = vand.u32 2147483647, %v11996_v13  ;;  %v16592_v53 = vmov 0  ;;  %v3781_v11 = vsel %vm3775_vm10, %v3778_v6, %v3780_v1 }
 0x40b   : > { %v3789_v51 = vsel %vm3775_vm10, %v3786_v45, %v3788_v27  ;;  %v12383_v19 = vmul.u32.u64.low %v3790_v52, %v3785_v17  ;;  %v12384_v28 = vmul.u32.u64.high %v3790_v52, %v3785_v17, %v12383_v19  ;;  %vm8289_vm11 = vcmp.lt.s32.totalorder %v8288_v38, 0 }
 0x40c   : > { %vm12377_vm13 = vcmp.le.f32.partialorder %v16591_v55, 0.7853982  ;;  %v12387_v61 = vmul.u32.u64.low %v3790_v52, %v3789_v51  ;;  %v12388_v23 = vmul.u32.u64.high %v3790_v52, %v3789_v51, %v12387_v61  ;;  %vm3649_vm8 = vcmp.gt.s32.totalorder %v3648_v14, 0 }
 0x40d   : > { %v16593_v53 = vsel %vm12377_vm13, 4294967295, %v16592_v53  ;;  %9276 = vcosq.f32 %v12340_v30  ;;  %v3486_v16 = vadd.s32 %v12297_v56, %v12306_v50  ;;  %v3501_v55 = vsel %vm8289_vm11, 0, %v8288_v38 }
 0x40e   : > { %16594 = vst [vmem:[#allocation39_spill] sm:$0xff] %v16593_v53  ;;  %v3650_v46 = vsel %vm3649_vm8, %v3648_v14, 0  ;;  %v3502_v47 = vsub.s32 32, %v3501_v55  ;;  %v3506_v6 = vsub.s32 4294967266, %v3501_v55  ;;  %v3646_v37 = vor.u32 8388608, %v3645_v41 }
 0x40f   : > { %v3619_v44 = vsel %vm16195_vm3, %v3618_v12, %v3617_v0  ;;  %v3797_v25 = vmul.u32 %v3790_v52, %v3781_v11  ;;  %v3800_v1 = vadd.s32 1, %v12384_v28  ;;  %v3652_v2 = vand.u32 31, %v3650_v46 }
 0x410   : > { %v3503_v45 = vshll.u32 %v12361_v34, %v3501_v55  ;;  %v3504_v17 = vshrl.u32 %v3486_v16, %v3502_v47  ;;  %v3507_v42 = vadd.s32 127, %v3506_v6  ;;  %vm3799_vm10 = vc.u32 %v12388_v23, %v12383_v19 }
 0x411   : > { %v3801_v56 = vsel %vm3799_vm10, %v3800_v1, %v12384_v28  ;;  %v3651_v50 = vshrl.u32 %v3650_v46, 5  ;;  %v3653_v48 = vsub.s32 32, %v3652_v2  ;;  %v3655_v41 = vshll.u32 %v16540_v33, %v3652_v2 }
 0x412   : > { %v3505_v38 = vor.u32 %v3504_v17, %v3503_v45  ;;  %v3508_v27 = vshll.u32 %v3507_v42, 23  ;;  %v3802_v0 = vadd.s32 %v3801_v56, %v3797_v25  ;;  %v3658_v52 = vshll.u32 %v16541_v15, %v3652_v2 }
 0x413   : > { %v3656_v12 = vshrl.u32 %v16541_v15, %v3653_v48  ;;  %v3659_v34 = vshrl.u32 %v16542_v5, %v3653_v48  ;;  %v3661_v14 = vshll.u32 %v16542_v5, %v3652_v2  ;;  %v3662_v11 = vshrl.u32 %v16543_v9, %v3653_v48 }
 0x414   : > { %v3622_v51 = vsel %vm12377_vm13, %v11996_v13, %v3619_v44  ;;  %v3509_v28 = vor.u32 4788187, %v3508_v27  ;;  %v3803_v61 = vadd.s32 536870912, %v3802_v0  ;;  %v3664_v16 = vshll.u32 %v16543_v9, %v3652_v2 }
 0x415   : > { %v3657_v55 = vor.u32 %v3656_v12, %v3655_v41  ;;  %v3660_v46 = vor.u32 %v3659_v34, %v3658_v52  ;;  %v3663_v47 = vor.u32 %v3662_v11, %v3661_v14  ;;  %v3665_v6 = vshrl.u32 %v16544_v39, %v3653_v48 }
 0x416   : > { %v3510_v25 = vand.u32 2147483647, %v3509_v28  ;;  %v12412_v1 = vshrl.u32 %v3803_v61, 30  ;;  %v3667_v45 = vshll.u32 %v16544_v39, %v3652_v2  ;;  %v3668_v17 = vshrl.u32 %v16545_v36, %v3653_v48 }
 0x417   : > { %v12416_v42 = vpop.eup %9276  ;;  %v3512_v56 = vcvt.s32.f32 %v3505_v38  ;;  %v3666_v44 = vor.u32 %v3665_v6, %v3664_v16  ;;  %vm3670_vm5 = vcmp.lt.s32.totalorder %v3651_v50, 1  ;;  %v3686_v27 = vshll.u32 %v3646_v37, 8 }
 0x418   : > { %16595 = vst [vmem:[#allocation14_spill] sm:$0xff] %v12412_v1  ;;  %16596 = vst [vmem:[#allocation36_spill] sm:$0xff] %v12416_v42  ;;  %v3805_v26 = vshll.u32 %v12412_v1, 30  ;;  %v3669_v41 = vor.u32 %v3668_v17, %v3667_v45  ;;  %vm3672_vm11 = vcmp.lt.s32.totalorder %v3651_v50, 3  ;;  %vm3673_vm8 = vcmp.lt.s32.totalorder %v3651_v50, 4 }
 0x419   : > { %v3513_v52 = vmul.f32 %v3512_v56, %v3510_v25  ;;  %v3675_v12 = vsel %vm3673_vm8, %v3663_v47, 2102212464  ;;  %v3678_v34 = vsel %vm3670_vm5, %v3657_v55, %v3660_v46  ;;  %v3679_v14 = vsel %vm3673_vm8, %v3666_v44, 920167782 }
 0x41a   : > { %v12420_v11 = vsub.s32 %v3802_v0, %v3805_v26  ;;  %v3654_v2 = vshrl.u32 %v16540_v33, %v3653_v48  ;;  %vm3671_vm10 = vcmp.lt.s32.totalorder %v3651_v50, 2  ;;  %v3680_v38 = vsel %vm3672_vm11, %v3663_v47, %v3679_v14 }
 0x41b   : > { %v3681_v28 = vsel %vm3671_vm10, %v3678_v34, %v3680_v38  ;;  %v3682_v37 = vsel %vm3670_vm5, %v3660_v46, %v3663_v47  ;;  %v3683_v61 = vsel %vm3673_vm8, %v3669_v41, 1326507024  ;;  %v3953_v16 = vand.u32 2139095040, %v12333_v60  ;;  %v2436_v34 = vpop.permute.xlu0 %2435 }
 0x41c   : > { %v3808_v6 = vsub.s32 0, %v12420_v11  ;;  %v3674_v25 = vsel %vm3670_vm5, %v3654_v2, %v3657_v55  ;;  %v3676_v45 = vsel %vm3672_vm11, %v3660_v46, %v3675_v12  ;;  %v3684_v26 = vsel %vm3672_vm11, %v3666_v44, %v3683_v61 }
 0x41d   : > { %v3514_v0 = vxor.u32 2147483648, %v3513_v52  ;;  %v3685_v48 = vsel %vm3671_vm10, %v3682_v37, %v3684_v26  ;;  %v12432_v17 = vmul.u32.u64.low %v3686_v27, %v3681_v28  ;;  %v12433_v56 = vmul.u32.u64.high %v3686_v27, %v3681_v28, %v12432_v17 }
 0x41e   : > { %9278 = vsinq.f32 %v12340_v30  ;;  %v8299_v47 = vmin.u32 %v3808_v6, %v12420_v11  ;;  %v12437_v41 = vmul.u32.u64.low %v3686_v27, %v3685_v48  ;;  %v12438_v14 = vmul.u32.u64.high %v3686_v27, %v3685_v48, %v12437_v41 }
 0x41f   : > { %v3677_v55 = vsel %vm3671_vm10, %v3674_v25, %v3676_v45  ;;  %v3954_v2 = vshrl.u32 %v3953_v16, 23  ;;  %v16597_v46 = vand.u32 2147483647, %v12333_v60  ;;  %v12444_v12 = vadd.f32 %v11951_v3, %v2436_v34  ;;  %v2451_v34 = vpop.permute.xlu1 %2450  ;;  %v2446_v41 = vpop.permute.xlu0 %2445 }
 0x420   : > { %9280 = vcosq.f32 %v3622_v51  ;;  %v16598_v38 = vand.u32 2147483647, %v12085_v40  ;;  %v16599_v28 = vmov 0  ;;  %vm16207_vm11 = vcmp.lt.s32.totalorder %v12085_v40, 0 }
 0x421   : > { %v3957_v44 = vand.u32 8388607, %v16597_v46  ;;  %v3810_v30 = vclz %v8299_v47  ;;  %9282 = vsinq.f32 %v3622_v51  ;;  %v3515_v50 = vsel %vm16207_vm11, %v3514_v0, %v3513_v52 }
 0x422   : > { %vm12448_vm5 = vcmp.le.f32.partialorder %v16598_v38, 0.7853982  ;;  %v3696_v37 = vadd.s32 1, %v12433_v56  ;;  %v8306_v61 = vadd.s32 4294967169, %v3954_v2  ;;  %v3693_v3 = vmul.u32 %v3686_v27, %v3677_v55 }
 0x423   : > { %v16600_v28 = vsel %vm12448_vm5, 4294967295, %v16599_v28  ;;  %v8300_v16 = vadd.s32 4294967294, %v3810_v30  ;;  %vm3695_vm8 = vc.u32 %v12438_v14, %v12432_v17  ;;  %v16196_v6 = vand.u32 2147483647, %v12444_v12 }
 0x424   : > { %16601 = vst [vmem:[#allocation35_spill] sm:$0xff] %v16600_v28  ;;  %v3697_v25 = vsel %vm3695_vm8, %v3696_v37, %v12433_v56  ;;  %v3958_v45 = vor.u32 8388608, %v3957_v44  ;;  %v3960_v26 = vadd.s32 1, %v8306_v61  ;;  %v3849_v48 = vand.u32 2139095040, %v12444_v12 }
 0x425   : > { %v12463_v51 = vsel %vm12448_vm5, %v12085_v40, %v3515_v50  ;;  %v3798_v52 = vadd.s32 %v12383_v19, %v12388_v23  ;;  %vm8301_vm10 = vcmp.lt.s32.totalorder %v8300_v16, 0  ;;  %v3698_v27 = vadd.s32 %v3697_v25, %v3693_v3 }
 0x426   : > { %v3813_v0 = vsel %vm8301_vm10, 0, %v8300_v16  ;;  %vm3961_vm3 = vcmp.gt.s32.totalorder %v3960_v26, 0  ;;  %v3850_v47 = vshrl.u32 %v3849_v48, 23  ;;  %v12468_v56 = vadd.f32 %v12043_v10, %v2451_v34 }
 0x427   : > { %v3814_v55 = vsub.s32 32, %v3813_v0  ;;  %v3818_v2 = vsub.s32 4294967266, %v3813_v0  ;;  %v3699_v46 = vadd.s32 536870912, %v3698_v27  ;;  %v12472_v44 = vand.u32 8388607, %v16196_v6 }
 0x428   : > { %9284 = vcosq.f32 %v12463_v51  ;;  %v3962_v38 = vsel %vm3961_vm3, %v3960_v26, 0  ;;  %v12475_v19 = vshll.u32 %v3958_v45, 8  ;;  %v12478_v23 = vadd.f32 %v12144_v22, %v2446_v41  ;;  %v12480_v30 = vpop.eup %9278 }
 0x429   : > { %16602 = vst [vmem:[#allocation34_spill] sm:$0xff] %v12480_v30  ;;  %v3815_v10 = vshll.u32 %v12420_v11, %v3813_v0  ;;  %v3816_v50 = vshrl.u32 %v3798_v52, %v3814_v55  ;;  %v3819_v37 = vadd.s32 127, %v3818_v2  ;;  %v12483_v61 = vshrl.u32 %v3699_v46, 30 }
 0x42a   : > { %v12486_v16 = vadd.s32 %v12432_v17, %v12438_v14  ;;  %v3964_v3 = vand.u32 31, %v3962_v38  ;;  %v8302_v25 = vadd.s32 4294967169, %v3850_v47  ;;  %v12489_v45 = vpop.eup %9280  ;;  %v3854_v41 = vor.u32 8388608, %v12472_v44 }
 0x42b   : > { %16603 = vst [vmem:[#allocation32_spill] sm:$0xff] %v12483_v61  ;;  %16604 = vst [vmem:[#allocation41_spill] sm:$0xff] %v12489_v45  ;;  %v3817_v48 = vor.u32 %v3816_v50, %v3815_v10  ;;  %v3820_v22 = vshll.u32 %v3819_v37, 23  ;;  %v3701_v34 = vshll.u32 %v12483_v61, 30  ;;  %v12493_v11 = vpop.eup %9282  ;;  %v3963_v52 = vshrl.u32 %v3962_v38, 5 }
 0x42c   : > { %16605 = vst [vmem:[#allocation40_spill] sm:$0xff] %v12493_v11  ;;  %v3965_v0 = vsub.s32 32, %v3964_v3  ;;  %v3967_v55 = vshll.u32 %v16540_v33, %v3964_v3  ;;  %v3970_v17 = vshll.u32 %v16541_v15, %v3964_v3  ;;  %vm16225_vm3 = vcmp.lt.s32.totalorder %v12231_v24, 0 }
 0x42d   : > { %v3821_v14 = vor.u32 4788187, %v3820_v22  ;;  %v3824_v47 = vcvt.s32.f32 %v3817_v48  ;;  %v12498_v2 = vsub.s32 %v3698_v27, %v3701_v34  ;;  %v3973_v46 = vshll.u32 %v16542_v5, %v3964_v3 }
 0x42e   : > { %v3968_v10 = vshrl.u32 %v16541_v15, %v3965_v0  ;;  %v3971_v44 = vshrl.u32 %v16542_v5, %v3965_v0  ;;  %v3974_v50 = vshrl.u32 %v16543_v9, %v3965_v0  ;;  %v3976_v38 = vshll.u32 %v16543_v9, %v3964_v3 }
 0x42f   : > { %v3822_v37 = vand.u32 2147483647, %v3821_v14  ;;  %v3704_v6 = vsub.s32 0, %v12498_v2  ;;  %v3977_v26 = vshrl.u32 %v16544_v39, %v3965_v0  ;;  %v3979_v22 = vshll.u32 %v16544_v39, %v3964_v3 }
 0x430   : > { %v3969_v48 = vor.u32 %v3968_v10, %v3967_v55  ;;  %v3972_v27 = vor.u32 %v3971_v44, %v3970_v17  ;;  %v3975_v34 = vor.u32 %v3974_v50, %v3973_v46  ;;  %v3980_v1 = vshrl.u32 %v16545_v36, %v3965_v0 }
 0x431   : > { %v16606_v61 = vand.u32 2147483647, %v12231_v24  ;;  %v16607_v45 = vmov 0  ;;  %v3825_v53 = vmul.f32 %v3824_v47, %v3822_v37  ;;  %v8295_v14 = vmin.u32 %v3704_v6, %v12498_v2 }
 0x432   : > { %v3978_v11 = vor.u32 %v3977_v26, %v3976_v38  ;;  %v3856_v13 = vadd.s32 1, %v8302_v25  ;;  %v12516_v28 = vpop.eup %9284  ;;  %v3966_v3 = vshrl.u32 %v16540_v33, %v3965_v0  ;;  %v3981_v55 = vor.u32 %v3980_v1, %v3979_v22 }
 0x433   : > { %vm12511_vm8 = vcmp.le.f32.partialorder %v16606_v61, 0.7853982  ;;  %16610 = vst [vmem:[#allocation20_spill] sm:$0xff] %v12516_v28  ;;  %vm3982_vm10 = vcmp.lt.s32.totalorder %v3963_v52, 1  ;;  %vm3985_vm11 = vcmp.lt.s32.totalorder %v3963_v52, 4  ;;  %v3826_v17 = vxor.u32 2147483648, %v3825_v53 }
 0x434   : > { %v16608_v45 = vsel %vm12511_vm8, 4294967295, %v16607_v45  ;;  %v3706_v46 = vclz %v8295_v14  ;;  %vm3984_vm1 = vcmp.lt.s32.totalorder %v3963_v52, 3  ;;  %v3987_v10 = vsel %vm3985_vm11, %v3975_v34, 2102212464 }
 0x435   : > { %16609 = vst [vmem:[#allocation26_spill] sm:$0xff] %v16608_v45  ;;  %v3990_v61 = vsel %vm3982_vm10, %v3969_v48, %v3972_v27  ;;  %v3991_v44 = vsel %vm3985_vm11, %v3978_v11, 920167782  ;;  %v3994_v50 = vsel %vm3982_vm10, %v3972_v27, %v3975_v34  ;;  %v3995_v40 = vsel %vm3985_vm11, %v3981_v55, 1326507024 }
 0x436   : > { %v8296_v47 = vadd.s32 4294967294, %v3706_v46  ;;  %v3986_v37 = vsel %vm3982_vm10, %v3966_v3, %v3969_v48  ;;  %v3988_v6 = vsel %vm3984_vm1, %v3972_v27, %v3987_v10  ;;  %v3992_v26 = vsel %vm3984_vm1, %v3975_v34, %v3991_v44 }
 0x437   : > { %v3827_v25 = vsel %vm16225_vm3, %v3826_v17, %v3825_v53  ;;  %vm3983_vm15 = vcmp.lt.s32.totalorder %v3963_v52, 2  ;;  %v3996_v0 = vsel %vm3984_vm1, %v3978_v11, %v3995_v40  ;;  %v4161_v1 = vand.u32 2139095040, %v12468_v56 }
 0x438   : > { %vm8297_vm9 = vcmp.lt.s32.totalorder %v8296_v47, 0  ;;  %v3993_v38 = vsel %vm3983_vm15, %v3990_v61, %v3992_v26  ;;  %v3997_v22 = vsel %vm3983_vm15, %v3994_v50, %v3996_v0  ;;  %vm3857_vm6 = vcmp.gt.s32.totalorder %v3856_v13, 0 }
 0x439   : > { %v3709_v14 = vsel %vm8297_vm9, 0, %v8296_v47  ;;  %v3989_v28 = vsel %vm3983_vm15, %v3986_v37, %v3988_v6  ;;  %v12523_v42 = vmul.u32.u64.low %v12475_v19, %v3997_v22  ;;  %v12524_v55 = vmul.u32.u64.high %v12475_v19, %v3997_v22, %v12523_v42 }
 0x43a   : > { %v3710_v48 = vsub.s32 32, %v3709_v14  ;;  %v3714_v27 = vsub.s32 4294967266, %v3709_v14  ;;  %v3858_v34 = vsel %vm3857_vm6, %v3856_v13, 0  ;;  %v12526_v3 = vshll.u32 %v3854_v41, 8 }
 0x43b   : > { %v12531_v40 = vsel %vm12511_vm8, %v12231_v24, %v3827_v25  ;;  %v12534_v53 = vmul.u32.u64.low %v12475_v19, %v3993_v38  ;;  %v12535_v11 = vmul.u32.u64.high %v12475_v19, %v3993_v38, %v12534_v53  ;;  %v3860_v52 = vand.u32 31, %v3858_v34 }
 0x43c   : > { %v3711_v17 = vshll.u32 %v12498_v2, %v3709_v14  ;;  %v3712_v42 = vshrl.u32 %v12486_v16, %v3710_v48  ;;  %v3715_v46 = vadd.s32 127, %v3714_v27  ;;  %v4005_v13 = vmul.u32 %v12475_v19, %v3989_v28 }
 0x43d   : > { %v3859_v41 = vshrl.u32 %v3858_v34, 5  ;;  %v3861_v10 = vsub.s32 32, %v3860_v52  ;;  %v4162_v61 = vshrl.u32 %v4161_v1, 23  ;;  %v16611_v44 = vand.u32 2147483647, %v12468_v56 }
 0x43e   : > { %v3713_v47 = vor.u32 %v3712_v42, %v3711_v17  ;;  %v3716_v37 = vshll.u32 %v3715_v46, 23  ;;  %vm4007_vm1 = vc.u32 %v12524_v55, %v12534_v53  ;;  %v3863_v6 = vshll.u32 %v16540_v33, %v3860_v52 }
 0x43f   : > { %v12543_v50 = vand.u32 8388607, %v16611_v44  ;;  %v4008_v2 = vadd.s32 1, %v12535_v11  ;;  %v3864_v16 = vshrl.u32 %v16541_v15, %v3861_v10  ;;  %v3866_v28 = vshll.u32 %v16541_v15, %v3860_v52 }
 0x440   : > { %v3867_v19 = vshrl.u32 %v16542_v5, %v3861_v10  ;;  %vm16226_vm9 = vcmp.lt.s32.totalorder %v12319_v62, 0  ;;  %v3717_v26 = vor.u32 4788187, %v3716_v37  ;;  %v3869_v25 = vshll.u32 %v16542_v5, %v3860_v52 }
 0x441   : > { %v3870_v0 = vshrl.u32 %v16543_v9, %v3861_v10  ;;  %v3872_v1 = vshll.u32 %v16543_v9, %v3860_v52  ;;  %v4009_v38 = vsel %vm4007_vm1, %v4008_v2, %v12535_v11  ;;  %v3865_v22 = vor.u32 %v3864_v16, %v3863_v6 }
 0x442   : > { %v3868_v14 = vor.u32 %v3867_v19, %v3866_v28  ;;  %v3873_v48 = vshrl.u32 %v16544_v39, %v3861_v10  ;;  %v3718_v27 = vand.u32 2147483647, %v3717_v26  ;;  %v3720_v34 = vcvt.s32.f32 %v3713_v47 }
 0x443   : > { %v4010_v17 = vadd.s32 %v4009_v38, %v4005_v13  ;;  %v3871_v42 = vor.u32 %v3870_v0, %v3869_v25  ;;  %v3862_v46 = vshrl.u32 %v16540_v33, %v3861_v10  ;;  %v3875_v37 = vshll.u32 %v16544_v39, %v3860_v52 }
 0x444   : > { %v3874_v44 = vor.u32 %v3873_v48, %v3872_v1  ;;  %v3876_v45 = vshrl.u32 %v16545_v36, %v3861_v10  ;;  %v3721_v24 = vmul.f32 %v3720_v34, %v3718_v27  ;;  %vm3878_vm6 = vcmp.lt.s32.totalorder %v3859_v41, 1 }
 0x445   : > { %v4011_v30 = vadd.s32 536870912, %v4010_v17  ;;  %vm3881_vm15 = vcmp.lt.s32.totalorder %v3859_v41, 4  ;;  %vm3879_vm11 = vcmp.lt.s32.totalorder %v3859_v41, 2  ;;  %v3886_v2 = vsel %vm3878_vm6, %v3865_v22, %v3868_v14 }
 0x446   : > { %v3877_v11 = vor.u32 %v3876_v45, %v3875_v37  ;;  %v3883_v6 = vsel %vm3881_vm15, %v3871_v42, 2102212464  ;;  %v3722_v16 = vxor.u32 2147483648, %v3721_v24  ;;  %vm3880_vm10 = vcmp.lt.s32.totalorder %v3859_v41, 3  ;;  %v444_v45 = vld [vmem:[%s16033_s5] sm:$0xff] }
 0x447   : > { %v12561_v28 = vshrl.u32 %v4011_v30, 30  ;;  %v3887_v13 = vsel %vm3881_vm15, %v3874_v44, 920167782  ;;  %v3882_v47 = vsel %vm3878_vm6, %v3862_v46, %v3865_v22  ;;  %v3890_v26 = vsel %vm3878_vm6, %v3868_v14, %v3871_v42  ;;  %8650 = vmatprep.mubr.f32.mxu1 %v444_v45 }
 0x448   : > { %v3888_v19 = vsel %vm3880_vm10, %v3871_v42, %v3887_v13  ;;  %v3891_v25 = vsel %vm3881_vm15, %v3877_v11, 1326507024  ;;  %v3884_v10 = vsel %vm3880_vm10, %v3868_v14, %v3883_v6  ;;  %v3723_v30 = vsel %vm16226_vm9, %v3722_v16, %v3721_v24  ;;  %v16681_v42 = vld [vmem:[#allocation30_spill] sm:$0xff] }
 0x449   : > { %16612 = vst [vmem:[#allocation38_spill] sm:$0xff] %v12561_v28  ;;  %v4013_v52 = vshll.u32 %v12561_v28, 30  ;;  %v3889_v0 = vsel %vm3879_vm11, %v3886_v2, %v3888_v19  ;;  %v3892_v1 = vsel %vm3880_vm10, %v3874_v44, %v3891_v25  ;;  %9286 = vsinq.f32 %v12463_v51 }
 0x44a   : > { %v3893_v38 = vsel %vm3879_vm11, %v3890_v26, %v3892_v1  ;;  %v12572_v22 = vmul.u32.u64.low %v12526_v3, %v3889_v0  ;;  %v12573_v48 = vmul.u32.u64.high %v12526_v3, %v3889_v0, %v12572_v22  ;;  %9288 = vcosq.f32 %v12531_v40 }
 0x44b   : > { %v12577_v14 = vsub.s32 %v4010_v17, %v4013_v52  ;;  %v12580_v27 = vmul.u32.u64.low %v12526_v3, %v3893_v38  ;;  %v12581_v34 = vmul.u32.u64.high %v12526_v3, %v3893_v38, %v12580_v27  ;;  %v16613_v24 = vand.u32 2147483647, %v12319_v62 }
 0x44c   : > { %v3885_v46 = vsel %vm3879_vm11, %v3882_v47, %v3884_v10  ;;  %v8314_v44 = vadd.s32 4294967169, %v4162_v61  ;;  %9290 = vsinq.f32 %v12531_v40  ;;  %v4057_v37 = vand.u32 2139095040, %v12478_v23 }
 0x44d   : > { %vm12586_vm1 = vcmp.le.f32.partialorder %v16613_v24, 0.7853982  ;;  %v4016_v17 = vsub.s32 0, %v12577_v14  ;;  %v3904_v11 = vadd.s32 1, %v12573_v48  ;;  %v4166_v6 = vor.u32 8388608, %v12543_v50 }
 0x44e   : > { %v3726_v51 = vsel %vm12586_vm1, %v12319_v62, %v3723_v30  ;;  %v4168_v2 = vadd.s32 1, %v8314_v44  ;;  %v16220_v16 = vand.u32 2147483647, %v12478_v23  ;;  %v3901_v61 = vmul.u32 %v12526_v3, %v3885_v46 }
 0x44f   : > { %v8307_v41 = vmin.u32 %v4016_v17, %v12577_v14  ;;  %vm3903_vm6 = vc.u32 %v12581_v34, %v12572_v22  ;;  %v2684_v40 = vsub.s32 4, %v11726_v43  ;;  %v4006_v13 = vadd.s32 %v12534_v53, %v12524_v55 }
 0x450   : > { %v3905_v47 = vsel %vm3903_vm6, %v3904_v11, %v12573_v48  ;;  %vm4169_vm15 = vcmp.gt.s32.totalorder %v4168_v2, 0  ;;  %v4058_v19 = vshrl.u32 %v4057_v37, 23  ;;  %9292 = vcosq.f32 %v3726_v51 }
 0x451   : > { %v4018_v50 = vclz %v8307_v41  ;;  %v3906_v26 = vadd.s32 %v3905_v47, %v3901_v61  ;;  %v4170_v25 = vsel %vm4169_vm15, %v4168_v2, 0  ;;  %9294 = vsinq.f32 %v3726_v51 }
 0x452   : > { %v4172_v52 = vand.u32 31, %v4170_v25  ;;  %v12608_v10 = vshll.u32 %v4166_v6, 8  ;;  %v12612_v3 = vand.u32 8388607, %v16220_v16  ;;  %v12614_v45 = vshrl.u32 %v4170_v25, 5 }
 0x453   : > { %v8308_v0 = vadd.s32 4294967294, %v4018_v50  ;;  %v3907_v1 = vadd.s32 536870912, %v3906_v26  ;;  %vm16616_vm11 = vcmp.lt.s32.totalorder %v11590_v8, 0  ;;  %v8310_v48 = vadd.s32 4294967169, %v4058_v19  ;;  %v12623_v27 = vpop.eup %9286 }
 0x454   : > { %v12619_v55 = vsel %vm16616_vm11, %v2684_v40, %v11726_v43  ;;  %v4173_v53 = vsub.s32 32, %v4172_v52  ;;  %v4175_v30 = vshll.u32 %v16540_v33, %v4172_v52  ;;  %v4178_v38 = vshll.u32 %v16541_v15, %v4172_v52  ;;  %v12629_v51 = vpop.eup %9288 }
 0x455   : > { %vm8309_vm10 = vcmp.lt.s32.totalorder %v8308_v0, 0  ;;  %v12625_v24 = vshrl.u32 %v3907_v1, 30  ;;  %v4181_v46 = vshll.u32 %v16542_v5, %v4172_v52  ;;  %v4184_v44 = vshll.u32 %v16543_v9, %v4172_v52  ;;  %16617 = vst [vmem:[#allocation43_spill] sm:$0xff] %v12629_v51 }
 0x456   : > { %v4021_v17 = vsel %vm8309_vm10, 0, %v8308_v0  ;;  %v4176_v43 = vshrl.u32 %v16541_v15, %v4173_v53  ;;  %v4179_v37 = vshrl.u32 %v16542_v5, %v4173_v53  ;;  %v4187_v11 = vshll.u32 %v16544_v39, %v4172_v52  ;;  %v12634_v6 = vpop.eup %9290 }
 0x457   : > { %16618 = vst [vmem:[#allocation48_spill] sm:$0xff] %v12634_v6  ;;  %v4022_v2 = vsub.s32 32, %v4021_v17  ;;  %v4023_v41 = vshll.u32 %v12577_v14, %v4021_v17  ;;  %v4026_v61 = vsub.s32 4294967266, %v4021_v17  ;;  %v3909_v40 = vshll.u32 %v12625_v24, 30 }
 0x458   : > { %v4177_v47 = vor.u32 %v4176_v43, %v4175_v30  ;;  %v4180_v19 = vor.u32 %v4179_v37, %v4178_v38  ;;  %v4182_v50 = vshrl.u32 %v16543_v9, %v4173_v53  ;;  %v4185_v25 = vshrl.u32 %v16544_v39, %v4173_v53 }
 0x459   : > { %v4024_v0 = vshrl.u32 %v4006_v13, %v4022_v2  ;;  %v4027_v1 = vadd.s32 127, %v4026_v61  ;;  %v12640_v16 = vsub.s32 %v3906_v26, %v3909_v40  ;;  %v4188_v52 = vshrl.u32 %v16545_v36, %v4173_v53 }
 0x45a   : > { %v4174_v28 = vshrl.u32 %v16540_v33, %v4173_v53  ;;  %v4183_v51 = vor.u32 %v4182_v50, %v4181_v46  ;;  %v4186_v6 = vor.u32 %v4185_v25, %v4184_v44  ;;  %vm4190_vm6 = vcmp.lt.s32.totalorder %v12614_v45, 1  ;;  %v12651_v38 = vpop.eup %9292 }
 0x45b   : > { %v16619_v14 = vand.u32 2147483647, %v11590_v8  ;;  %v4025_v13 = vor.u32 %v4024_v0, %v4023_v41  ;;  %v4028_v17 = vshll.u32 %v4027_v1, 23  ;;  %v3912_v26 = vsub.s32 0, %v12640_v16  ;;  %v12654_v37 = vpop.eup %9294 }
 0x45c   : > { %v4189_v43 = vor.u32 %v4188_v52, %v4187_v11  ;;  %vm4191_vm10 = vcmp.lt.s32.totalorder %v12614_v45, 2  ;;  %vm4192_vm3 = vcmp.lt.s32.totalorder %v12614_v45, 3  ;;  %vm4193_vm9 = vcmp.lt.s32.totalorder %v12614_v45, 4 }
 0x45d   : > { %vm12647_vm15 = vcmp.le.f32.partialorder %v16619_v14, 0.7853982  ;;  %v4194_v53 = vsel %vm4190_vm6, %v4174_v28, %v4177_v47  ;;  %v4029_v46 = vor.u32 4788187, %v4028_v17  ;;  %v8303_v44 = vmin.u32 %v3912_v26, %v12640_v16 }
 0x45e   : > { %v4195_v2 = vsel %vm4193_vm9, %v4183_v51, 2102212464  ;;  %v4198_v11 = vsel %vm4190_vm6, %v4177_v47, %v4180_v19  ;;  %v4199_v61 = vsel %vm4193_vm9, %v4186_v6, 920167782  ;;  %v4202_v40 = vsel %vm4190_vm6, %v4180_v19, %v4183_v51 }
 0x45f   : > { %v4196_v41 = vsel %vm4192_vm3, %v4180_v19, %v4195_v2  ;;  %v4203_v50 = vsel %vm4193_vm9, %v4189_v43, 1326507024  ;;  %v16622_v25 = vand.u32 2147483647, %v12333_v60  ;;  %v16623_v0 = vmov 0 }
 0x460   : > { %v4030_v28 = vand.u32 2147483647, %v4029_v46  ;;  %v4032_v1 = vcvt.s32.f32 %v4025_v13  ;;  %v3914_v52 = vclz %v8303_v44  ;;  %v4200_v47 = vsel %vm4192_vm3, %v4183_v51, %v4199_v61 }
 0x461   : > { %vm12671_vm11 = vcmp.le.f32.partialorder %v16622_v25, 0.7853982  ;;  %v4201_v14 = vsel %vm4191_vm10, %v4198_v11, %v4200_v47  ;;  %v4204_v17 = vsel %vm4192_vm3, %v4186_v6, %v4203_v50  ;;  %v4062_v19 = vor.u32 8388608, %v12612_v3 }
 0x462   : > { %v16624_v0 = vsel %vm12671_vm11, 4294967295, %v16623_v0  ;;  %v4064_v26 = vadd.s32 1, %v8310_v48  ;;  %v4033_v43 = vmul.f32 %v4032_v1, %v4030_v28  ;;  %v8304_v2 = vadd.s32 4294967294, %v3914_v52 }
 0x463   : > { %v4197_v25 = vsel %vm4191_vm10, %v4194_v53, %v4196_v41  ;;  %v4205_v13 = vsel %vm4191_vm10, %v4202_v40, %v4204_v17  ;;  %v12691_v44 = vmul.u32.u64.low %v12608_v10, %v4201_v14  ;;  %v12692_v11 = vmul.u32.u64.high %v12608_v10, %v4201_v14, %v12691_v44 }
 0x464   : > { %v12687_v46 = vmul.u32.u64.low %v12608_v10, %v4205_v13  ;;  %v12688_v51 = vmul.u32.u64.high %v12608_v10, %v4205_v13, %v12687_v46  ;;  %v4034_v6 = vxor.u32 2147483648, %v4033_v43  ;;  %vm8305_vm3 = vcmp.lt.s32.totalorder %v8304_v2, 0 }
 0x465   : > { %vm4065_vm9 = vcmp.gt.s32.totalorder %v4064_v26, 0  ;;  %v2686_v3 = vsel %vm12647_vm15, %v11590_v8, %v12051_v63  ;;  %v3902_v45 = vadd.s32 %v12572_v22, %v12581_v34  ;;  %v3917_v48 = vsel %vm8305_vm3, 0, %v8304_v2 }
 0x466   : > { %v4213_v53 = vmul.u32 %v12608_v10, %v4197_v25  ;;  %v2687_v41 = vsel %vm12647_vm15, 0, %v12619_v55  ;;  %vm16625_vm6 = vcmp.lt.s32.totalorder %v12333_v60, 0  ;;  %v3918_v40 = vsub.s32 32, %v3917_v48 }
 0x467   : > { %v4035_v61 = vsel %vm16625_vm6, %v4034_v6, %v4033_v43  ;;  %v3922_v50 = vsub.s32 4294967266, %v3917_v48  ;;  %v4066_v28 = vsel %vm4065_vm9, %v4064_v26, 0  ;;  %vm4215_vm10 = vc.u32 %v12688_v51, %v12691_v44 }
 0x468   : > { %v4216_v63 = vadd.s32 1, %v12692_v11  ;;  %v12710_v1 = vshll.u32 %v4062_v19, 8  ;;  %9296 = vcosq.f32 %v2686_v3  ;;  %v3919_v22 = vshll.u32 %v12640_v16, %v3917_v48 }
 0x469   : > { %v3920_v34 = vshrl.u32 %v3902_v45, %v3918_v40  ;;  %v3923_v10 = vadd.s32 127, %v3922_v50  ;;  %9298 = vsinq.f32 %v2686_v3  ;;  %v4038_v55 = vsel %vm12671_vm11, %v12333_v60, %v4035_v61 }
 0x46a   : > { %v4217_v30 = vsel %vm4215_vm10, %v4216_v63, %v12692_v11  ;;  %v4067_v52 = vshrl.u32 %v4066_v28, 5  ;;  %v4068_v47 = vand.u32 31, %v4066_v28  ;;  %v2691_v43 = vadd.s32 3, %v2687_v41 }
 0x46b   : > { %v3921_v14 = vor.u32 %v3920_v34, %v3919_v22  ;;  %v3924_v17 = vshll.u32 %v3923_v10, 23  ;;  %v4218_v26 = vadd.s32 %v4217_v30, %v4213_v53  ;;  %v16626_v28 = vand.u32 2147483647, %v12444_v12 }
 0x46c   : > { %v4069_v19 = vsub.s32 32, %v4068_v47  ;;  %v4071_v2 = vshll.u32 %v16540_v33, %v4068_v47  ;;  %v4074_v16 = vshll.u32 %v16541_v15, %v4068_v47  ;;  %v4077_v25 = vshll.u32 %v16542_v5, %v4068_v47 }
 0x46d   : > { %v3925_v13 = vor.u32 4788187, %v3924_v17  ;;  %v3928_v46 = vcvt.s32.f32 %v3921_v14  ;;  %v4219_v6 = vadd.s32 536870912, %v4218_v26  ;;  %v4080_v11 = vshll.u32 %v16543_v9, %v4068_v47 }
 0x46e   : > { %v4070_v3 = vshrl.u32 %v16540_v33, %v4069_v19  ;;  %v4072_v45 = vshrl.u32 %v16541_v15, %v4069_v19  ;;  %v4075_v48 = vshrl.u32 %v16542_v5, %v4069_v19  ;;  %v4078_v53 = vshrl.u32 %v16543_v9, %v4069_v19 }
 0x46f   : > { %v3926_v41 = vand.u32 2147483647, %v3925_v13  ;;  %v12726_v61 = vshrl.u32 %v4219_v6, 30  ;;  %v4081_v40 = vshrl.u32 %v16544_v39, %v4069_v19  ;;  %v4083_v50 = vshll.u32 %v16544_v39, %v4068_v47 }
 0x470   : > { %vm12732_vm3 = vcmp.le.f32.partialorder %v16626_v28, 0.7853982  ;;  %v16627_v63 = vmov 0  ;;  %v4073_v22 = vor.u32 %v4072_v45, %v4071_v2  ;;  %v4076_v34 = vor.u32 %v4075_v48, %v4074_v16 }
 0x471   : > { %v16628_v63 = vsel %vm12732_vm3, 4294967295, %v16627_v63  ;;  %v4079_v10 = vor.u32 %v4078_v53, %v4077_v25  ;;  %v4084_v30 = vshrl.u32 %v16545_v36, %v4069_v19  ;;  %v3929_v14 = vmul.f32 %v3928_v46, %v3926_v41 }
 0x472   : > { %v4221_v17 = vshll.u32 %v12726_v61, 30  ;;  %v4082_v13 = vor.u32 %v4081_v40, %v4080_v11  ;;  %vm4086_vm9 = vcmp.lt.s32.totalorder %v4067_v52, 1  ;;  %v9297_v6 = vpop.eup %9296  ;;  %vm4088_vm6 = vcmp.lt.s32.totalorder %v4067_v52, 3 }
 0x473   : > { %v4085_v9 = vor.u32 %v4084_v30, %v4083_v50  ;;  %vm4089_vm10 = vcmp.lt.s32.totalorder %v4067_v52, 4  ;;  %v4090_v47 = vsel %vm4086_vm9, %v4070_v3, %v4073_v22  ;;  %v9299_v39 = vpop.eup %9298  ;;  %v3930_v28 = vxor.u32 2147483648, %v3929_v14 }
 0x474   : > { %v12738_v5 = vsub.s32 %v4218_v26, %v4221_v17  ;;  %v4091_v15 = vsel %vm4089_vm10, %v4079_v10, 2102212464  ;;  %v4094_v2 = vsel %vm4086_vm9, %v4073_v22, %v4076_v34  ;;  %v4095_v25 = vsel %vm4089_vm10, %v4082_v13, 920167782 }
 0x475   : > { %v4092_v16 = vsel %vm4088_vm6, %v4076_v34, %v4091_v15  ;;  %v4098_v19 = vsel %vm4086_vm9, %v4076_v34, %v4079_v10  ;;  %v4099_v46 = vsel %vm4089_vm10, %v4085_v9, 1326507024  ;;  %v4214_v11 = vadd.s32 %v12691_v44, %v12688_v51 }
 0x476   : > { %v4224_v45 = vsub.s32 0, %v12738_v5  ;;  %vm4087_vm15 = vcmp.lt.s32.totalorder %v4067_v52, 2  ;;  %v4096_v48 = vsel %vm4088_vm6, %v4079_v10, %v4095_v25  ;;  %9300 = vcosq.f32 %v4038_v55 }
 0x477   : > { %vm16629_vm11 = vcmp.lt.s32.totalorder %v12444_v12, 0  ;;  %v4097_v3 = vsel %vm4087_vm15, %v4094_v2, %v4096_v48  ;;  %v4100_v53 = vsel %vm4088_vm6, %v4082_v13, %v4099_v46  ;;  %v4093_v41 = vsel %vm4087_vm15, %v4090_v47, %v4092_v16 }
 0x478   : > { %v3931_v26 = vsel %vm16629_vm11, %v3930_v28, %v3929_v14  ;;  %v8315_v15 = vmin.u32 %v4224_v45, %v12738_v5  ;;  %v4101_v40 = vsel %vm4087_vm15, %v4098_v19, %v4100_v53  ;;  %v2692_v9 = vand.u32 3, %v2691_v43 }
 0x479   : > { %9302 = vsinq.f32 %v4038_v55  ;;  %v12750_v51 = vmul.u32.u64.low %v12710_v1, %v4101_v40  ;;  %v12751_v44 = vmul.u32.u64.high %v12710_v1, %v4101_v40, %v12750_v51  ;;  %v2695_v50 = vxor.u32 2147483648, %v9299_v39 }
 0x47a   : > { %v3934_v22 = vsel %vm12732_vm3, %v12444_v12, %v3931_v26  ;;  %v4226_v34 = vclz %v8315_v15  ;;  %v12757_v10 = vmul.u32.u64.low %v12710_v1, %v4097_v3  ;;  %v12758_v52 = vmul.u32.u64.high %v12710_v1, %v4097_v3, %v12757_v10 }
 0x47b   : > { %v4109_v30 = vmul.u32 %v12710_v1, %v4093_v41  ;;  %vm2694_vm15 = vcmp.eq.s32.totalorder %v2692_v9, 0  ;;  %v2698_v55 = vxor.u32 2147483648, %v9297_v6  ;;  %v16630_v43 = vand.u32 2147483647, %v11588_v18 }
 0x47c   : > { %v8316_v17 = vadd.s32 4294967294, %v4226_v34  ;;  %vm2697_vm6 = vcmp.eq.s32.totalorder %v2692_v9, 2  ;;  %v2788_v13 = vsub.s32 4, %v11698_v31  ;;  %vm4111_vm10 = vc.u32 %v12751_v44, %v12757_v10 }
 0x47d   : > { %vm12764_vm9 = vcmp.le.f32.partialorder %v16630_v43, 0.7853982  ;;  %v2696_v1 = vsel %vm2694_vm15, %v9297_v6, %v2695_v50  ;;  %v2699_v28 = vsel %vm2697_vm6, %v2698_v55, %v9299_v39  ;;  %v4112_v2 = vadd.s32 1, %v12758_v52  ;;  %v16639_v43 = vld [vmem:[#allocation15_spill] sm:$0xff] }
 0x47e   : > { %v2790_v47 = vsel %vm12764_vm9, %v11588_v18, %v11963_v32  ;;  %vm8317_vm11 = vcmp.lt.s32.totalorder %v8316_v17, 0  ;;  %vm16633_vm3 = vcmp.lt.s32.totalorder %v11588_v18, 0  ;;  %vm2693_vm8 = vcmp.lt.s32.totalorder %v2692_v9, 2 }
 0x47f   : > { %9304 = vcosq.f32 %v2790_v47  ;;  %v2789_v16 = vsel %vm16633_vm3, %v2788_v13, %v11698_v31  ;;  %v4229_v25 = vsel %vm8317_vm11, 0, %v8316_v17  ;;  %v4113_v6 = vsel %vm4111_vm10, %v4112_v2, %v12758_v52 }
 0x480   : > { %9306 = vcosq.f32 %v3934_v22  ;;  %v2791_v19 = vsel %vm12764_vm9, 0, %v2789_v16  ;;  %v4230_v32 = vsub.s32 32, %v4229_v25  ;;  %v4234_v46 = vsub.s32 4294967266, %v4229_v25  ;;  %v12781_v45 = vpop.eup %9300 }
 0x481   : > { %9308 = vsinq.f32 %v2790_v47  ;;  %v2700_v39 = vsel %vm2693_vm8, %v2696_v1, %v2699_v28  ;;  %v4114_v48 = vadd.s32 %v4113_v6, %v4109_v30  ;;  %v2795_v26 = vadd.s32 3, %v2791_v19 }
 0x482   : > { %9310 = vsinq.f32 %v3934_v22  ;;  %v2892_v3 = vsub.s32 4, %v11835_v57  ;;  %v4231_v31 = vshll.u32 %v12738_v5, %v4229_v25  ;;  %v4232_v53 = vshrl.u32 %v4214_v11, %v4230_v32 }
 0x483   : > { %v4235_v15 = vadd.s32 127, %v4234_v46  ;;  %v12786_v41 = vadd.s32 %v12757_v10, %v12751_v44  ;;  %v12788_v40 = vpop.eup %9302  ;;  %v4115_v9 = vadd.s32 536870912, %v4114_v48  ;;  %vm16634_vm3 = vweird.f32 %v11590_v8 }
 0x484   : > { %v2701_v51 = vsel %vm16634_vm3, nan, %v2700_v39  ;;  %v2796_v50 = vand.u32 3, %v2795_v26  ;;  %vm16635_vm8 = vcmp.lt.s32.totalorder %v11612_v29, 0  ;;  %v4233_v34 = vor.u32 %v4232_v53, %v4231_v31  ;;  %v16643_v26 = vld [vmem:[#allocation8_spill] sm:$0xff] }
 0x485   : > { %v2893_v22 = vsel %vm16635_vm8, %v2892_v3, %v11835_v57  ;;  %v4236_v52 = vshll.u32 %v4235_v15, 23  ;;  %v2996_v11 = vsub.s32 4, %v11768_v21  ;;  %vm4160_vm11 = vcmp.lt.s32.totalorder %v12468_v56, 0 }
 0x486   : > { %v2895_v5 = vsel %vm12016_vm14, 0, %v2893_v22  ;;  %v12799_v44 = vshrl.u32 %v4115_v9, 30  ;;  %vm2794_vm15 = vweird.f32 %v11588_v18  ;;  %v2903_v8 = vxor.u32 2147483648, %v12256_v59 }
 0x487   : > { %v2906_v10 = vxor.u32 2147483648, %v12182_v35  ;;  %v16636_v30 = vand.u32 2147483647, %v12468_v56  ;;  %v4237_v54 = vor.u32 4788187, %v4236_v52  ;;  %vm2797_vm14 = vcmp.lt.s32.totalorder %v2796_v50, 2 }
 0x488   : > { %v2899_v55 = vadd.s32 3, %v2895_v5  ;;  %vm16640_vm6 = vcmp.lt.s32.totalorder %v16639_v43, 0  ;;  %v4240_v13 = vcvt.s32.f32 %v4233_v34  ;;  %v4117_v47 = vshll.u32 %v12799_v44, 30 }
 0x489   : > { %vm12806_vm9 = vcmp.le.f32.partialorder %v16636_v30, 0.7853982  ;;  %v2997_v14 = vsel %vm16640_vm6, %v2996_v11, %v11768_v21  ;;  %v9305_v17 = vpop.eup %9304  ;;  %vm2798_vm10 = vcmp.eq.s32.totalorder %v2796_v50, 0  ;;  %v4238_v16 = vand.u32 2147483647, %v4237_v54  ;;  %v16642_v21 = vld [vmem:[#allocation17_spill] sm:$0xff] }
 0x48a   : > { %v2999_v28 = vsel %vm11941_vm7, 0, %v2997_v14  ;;  %v12817_v2 = vpop.eup %9306  ;;  %v2802_v25 = vxor.u32 2147483648, %v9305_v17  ;;  %v2900_v19 = vand.u32 3, %v2899_v55  ;;  %v12819_v6 = vsub.s32 %v4114_v48, %v4117_v47  ;;  %v16644_v14 = vld [vmem:[#allocation19_spill] sm:$0xff] }
 0x48b   : > { %v3003_v32 = vadd.s32 3, %v2999_v28  ;;  %v9309_v46 = vpop.eup %9308  ;;  %vm2801_vm8 = vcmp.eq.s32.totalorder %v2796_v50, 2  ;;  %v3007_v39 = vxor.u32 2147483648, %v16642_v21  ;;  %v3100_v3 = vsub.s32 4, %v16643_v26 }
 0x48c   : > { %v4241_v31 = vmul.f32 %v4240_v13, %v4238_v16  ;;  %v2799_v53 = vxor.u32 2147483648, %v9309_v46  ;;  %v2803_v15 = vsel %vm2801_vm8, %v2802_v25, %v9309_v46  ;;  %vm2901_vm6 = vcmp.lt.s32.totalorder %v2900_v19, 2  ;;  %v12823_v9 = vpop.eup %9310 }
 0x48d   : > { %v4120_v22 = vsub.s32 0, %v12819_v6  ;;  %vm2902_vm7 = vcmp.eq.s32.totalorder %v2900_v19, 0  ;;  %vm2905_vm3 = vcmp.eq.s32.totalorder %v2900_v19, 2  ;;  %v3004_v34 = vand.u32 3, %v3003_v32  ;;  %v16648_v32 = vld [vmem:[#allocation22_spill] sm:$0xff] }
 0x48e   : > { %v4242_v52 = vxor.u32 2147483648, %v4241_v31  ;;  %v2800_v48 = vsel %vm2798_vm10, %v9305_v17, %v2799_v53  ;;  %v2904_v5 = vsel %vm2902_vm7, %v12182_v35, %v2903_v8  ;;  %v2907_v11 = vsel %vm2905_vm3, %v2906_v10, %v12256_v59 }
 0x48f   : > { %v8311_v30 = vmin.u32 %v4120_v22, %v12819_v6  ;;  %v2804_v54 = vsel %vm2797_vm14, %v2800_v48, %v2803_v15  ;;  %v2908_v55 = vsel %vm2901_vm6, %v2904_v5, %v2907_v11  ;;  %v3010_v13 = vxor.u32 2147483648, %v16644_v14  ;;  %v16649_v15 = vld [vmem:[#allocation13_spill] sm:$0xff] }
 0x490   : > { %v4243_v47 = vsel %vm4160_vm11, %v4242_v52, %v4241_v31  ;;  %v2805_v1 = vsel %vm2794_vm15, nan, %v2804_v54  ;;  %vm3002_vm8 = vweird.f32 %v16639_v43  ;;  %vm3006_vm10 = vcmp.eq.s32.totalorder %v3004_v34, 0 }
 0x491   : > { %v4246_v35 = vsel %vm12806_vm9, %v12468_v56, %v4243_v47  ;;  %v4122_v59 = vclz %v8311_v30  ;;  %v8797_v8 = vpack.c.bf16 %v2805_v1, %v2701_v51  ;;  %v3008_v50 = vsel %vm3006_vm10, %v16644_v14, %v3007_v39  ;;  %v16652_v1 = vld [vmem:[#allocation10_spill] sm:$0xff] }
 0x492   : > { %vm16645_vm14 = vweird.f32 %v11612_v29  ;;  %vm3005_vm3 = vcmp.lt.s32.totalorder %v3004_v34, 2  ;;  %vm3009_vm6 = vcmp.eq.s32.totalorder %v3004_v34, 2  ;;  %vm16646_vm7 = vcmp.lt.s32.totalorder %v11762_v58, 0 }
 0x493   : > { %v2909_v10 = vsel %vm16645_vm14, nan, %v2908_v55  ;;  %v3101_v18 = vsel %vm16646_vm7, %v3100_v3, %v16643_v26  ;;  %9312 = vcosq.f32 %v4246_v35  ;;  %v8312_v17 = vadd.s32 4294967294, %v4122_v59  ;;  %8798 = vmatprep.subr.bf16.mxu1 %v8797_v8 }
 0x494   : > { %v3011_v28 = vsel %vm3009_vm6, %v3010_v13, %v16642_v21  ;;  %v3103_v25 = vsel %vm12188_vm2, 0, %v3101_v18  ;;  %8800 = vmatpush3.bf16.msra.mxu1 %v8797_v8  ;;  %v3111_v29 = vxor.u32 2147483648, %v12351_v7  ;;  %v3204_v46 = vsub.s32 4, %v16648_v32 }
 0x495   : > { %v3012_v51 = vsel %vm3005_vm3, %v3008_v50, %v3011_v28  ;;  %v3107_v19 = vadd.s32 3, %v3103_v25  ;;  %vm8313_vm15 = vcmp.lt.s32.totalorder %v8312_v17, 0  ;;  %v3114_v26 = vxor.u32 2147483648, %v12347_v49 }
 0x496   : > { %v3013_v39 = vsel %vm3002_vm8, nan, %v3012_v51  ;;  %v3215_v3 = vxor.u32 2147483648, %v12335_v20  ;;  %v4125_v31 = vsel %vm8313_vm15, 0, %v8312_v17  ;;  %vm16650_vm2 = vcmp.lt.s32.totalorder %v16649_v15, 0 }
 0x497   : > { %v8801_v21 = vpack.c.bf16 %v3013_v39, %v2909_v10  ;;  %v3108_v53 = vand.u32 3, %v3107_v19  ;;  %v3205_v22 = vsel %vm16650_vm2, %v3204_v46, %v16648_v32  ;;  %v4126_v34 = vsub.s32 32, %v4125_v31  ;;  %v16659_v39 = vld [vmem:[#allocation33_spill] sm:$0xff] }
 0x498   : > { %v4127_v52 = vshll.u32 %v12819_v6, %v4125_v31  ;;  %v4130_v48 = vsub.s32 4294967266, %v4125_v31  ;;  %v3207_v11 = vsel %vm12106_vm4, 0, %v3205_v22  ;;  %v3218_v6 = vxor.u32 2147483648, %v12265_v4  ;;  %v16661_v31 = vld [vmem:[#allocation36_spill] sm:$0xff] }
 0x499   : > { %8802 = vmatprep.subr.bf16.mxu1 %v8801_v21  ;;  %vm3109_vm8 = vcmp.lt.s32.totalorder %v3108_v53, 2  ;;  %vm3110_vm10 = vcmp.eq.s32.totalorder %v3108_v53, 0  ;;  %vm3113_vm14 = vcmp.eq.s32.totalorder %v3108_v53, 2  ;;  %v3211_v43 = vadd.s32 3, %v3207_v11 }
 0x49a   : > { %v4128_v30 = vshrl.u32 %v12786_v41, %v4126_v34  ;;  %v4131_v54 = vadd.s32 127, %v4130_v48  ;;  %8804 = vmatpush3.bf16.msra.mxu1 %v8801_v21  ;;  %v3112_v55 = vsel %vm3110_vm10, %v12347_v49, %v3111_v29  ;;  %v3115_v14 = vsel %vm3113_vm14, %v3114_v26, %v12351_v7  ;;  %v16653_v49 = vld [vmem:[#allocation12_spill] sm:$0xff] }
 0x49b   : > { %v3116_v13 = vsel %vm3109_vm8, %v3112_v55, %v3115_v14  ;;  %v3212_v47 = vand.u32 3, %v3211_v43  ;;  %v3308_v59 = vsub.s32 4, %v16652_v1  ;;  %9314 = vsinq.f32 %v4246_v35  ;;  %v16666_v43 = vld [vmem:[#allocation23_spill] sm:$0xff] }
 0x49c   : > { %v4129_v8 = vor.u32 %v4128_v30, %v4127_v52  ;;  %v4132_v50 = vshll.u32 %v4131_v54, 23  ;;  %vm3106_vm4 = vweird.f32 %v11762_v58  ;;  %vm4056_vm3 = vcmp.lt.s32.totalorder %v12478_v23, 0  ;;  %v16664_v52 = vld [vmem:[#allocation29_spill] sm:$0xff]  ;;  %v16667_v54 = vld [vmem:[#allocation18_spill] sm:$0xff] }
 0x49d   : > { %v3117_v41 = vsel %vm3106_vm4, nan, %v3116_v13  ;;  %vm3214_vm6 = vcmp.eq.s32.totalorder %v3212_v47, 0  ;;  %vm3217_vm7 = vcmp.eq.s32.totalorder %v3212_v47, 2  ;;  %vm16654_vm15 = vcmp.lt.s32.totalorder %v16653_v49, 0  ;;  %v12871_v10 = vpop.eup %9312 }
 0x49e   : > { %v3309_v7 = vsel %vm16654_vm15, %v3308_v59, %v16652_v1  ;;  %v4133_v18 = vor.u32 4788187, %v4132_v50  ;;  %vm3213_vm2 = vcmp.lt.s32.totalorder %v3212_v47, 2  ;;  %v3216_v17 = vsel %vm3214_vm6, %v12265_v4, %v3215_v3  ;;  %v16668_v1 = vld [vmem:[#allocation25_spill] sm:$0xff] }
 0x49f   : > { %v3219_v35 = vsel %vm3217_vm7, %v3218_v6, %v12335_v20  ;;  %v16655_v28 = vand.u32 2147483647, %v12478_v23  ;;  %v4136_v16 = vcvt.s32.f32 %v4129_v8  ;;  %vm3210_vm10 = vweird.f32 %v16649_v15  ;;  %v16660_v20 = vld [vmem:[#allocation34_spill] sm:$0xff]  ;;  %v16662_v15 = vld [vmem:[#allocation21_spill] sm:$0xff] }
 0x4a0   : > { %v3220_v25 = vsel %vm3213_vm2, %v3216_v17, %v3219_v35  ;;  %v3311_v19 = vsel %vm12314_vm0, 0, %v3309_v7  ;;  %v4134_v29 = vand.u32 2147483647, %v4133_v18  ;;  %v3412_v4 = vsub.s32 4, %v16659_v39  ;;  %v16671_v17 = vld [vmem:[#allocation16_spill] sm:$0xff] }
 0x4a1   : > { %vm12877_vm8 = vcmp.le.f32.partialorder %v16655_v28, 0.7853982  ;;  %v3221_v32 = vsel %vm3210_vm10, nan, %v3220_v25  ;;  %v3315_v46 = vadd.s32 3, %v3311_v19  ;;  %vm3314_vm14 = vweird.f32 %v16653_v49 }
 0x4a2   : > { %v8805_v26 = vpack.c.bf16 %v3221_v32, %v3117_v41  ;;  %v3319_v3 = vxor.u32 2147483648, %v16660_v20  ;;  %v3322_v21 = vxor.u32 2147483648, %v16661_v31  ;;  %v4137_v53 = vmul.f32 %v4136_v16, %v4134_v29  ;;  %v16672_v29 = vld [vmem:[#allocation20_spill] sm:$0xff] }
 0x4a3   : > { %v3316_v22 = vand.u32 3, %v3315_v46  ;;  %vm16663_vm4 = vcmp.lt.s32.totalorder %v16662_v15, 0  ;;  %v3516_v48 = vsub.s32 4, %v16664_v52  ;;  %vm3418_vm0 = vweird.f32 %v16662_v15  ;;  %v16673_v46 = vld [vmem:[#allocation6_spill] sm:$0xff] }
 0x4a4   : > { %v3413_v34 = vsel %vm16663_vm4, %v3412_v4, %v16659_v39  ;;  %8806 = vmatprep.subr.bf16.mxu1 %v8805_v26  ;;  %v3423_v30 = vxor.u32 2147483648, %v16666_v43  ;;  %v3426_v55 = vxor.u32 2147483648, %v16667_v54  ;;  %v4138_v14 = vxor.u32 2147483648, %v4137_v53  ;;  %v16675_v4 = vld [vmem:[#allocation40_spill] sm:$0xff] }
 0x4a5   : > { %v3415_v11 = vsel %vm12260_vm12, 0, %v3413_v34  ;;  %8808 = vmatpush3.bf16.msra.mxu1 %v8805_v26  ;;  %vm3317_vm6 = vcmp.lt.s32.totalorder %v3316_v22, 2  ;;  %vm3318_vm7 = vcmp.eq.s32.totalorder %v3316_v22, 0  ;;  %vm3321_vm15 = vcmp.eq.s32.totalorder %v3316_v22, 2  ;;  %v12902_v8 = vpop.eup %9314  ;;  %v16677_v34 = vld [vmem:[#allocation41_spill] sm:$0xff] }
 0x4a6   : > { %v3320_v13 = vsel %vm3318_vm7, %v16661_v31, %v3319_v3  ;;  %v3323_v47 = vsel %vm3321_vm15, %v3322_v21, %v16660_v20  ;;  %v3419_v6 = vadd.s32 3, %v3415_v11  ;;  %vm16669_vm2 = vcmp.lt.s32.totalorder %v16668_v1, 0  ;;  %v16689_v21 = vld [vmem:[#allocation38_spill] sm:$0xff] }
 0x4a7   : > { %v3517_v59 = vsel %vm16669_vm2, %v3516_v48, %v16664_v52  ;;  %v4139_v50 = vsel %vm4056_vm3, %v4138_v14, %v4137_v53  ;;  %v3324_v41 = vsel %vm3317_vm6, %v3320_v13, %v3323_v47  ;;  %v3620_v35 = vsub.s32 4, %v16671_v17  ;;  %v16678_v48 = vld [vmem:[#allocation32_spill] sm:$0xff] }
 0x4a8   : > { %v3519_v18 = vsel %vm12448_vm5, 0, %v3517_v59  ;;  %v3420_v28 = vand.u32 3, %v3419_v6  ;;  %vm3522_vm12 = vweird.f32 %v16668_v1  ;;  %v3527_v25 = vxor.u32 2147483648, %v12623_v27 }
 0x4a9   : > { %v3523_v16 = vadd.s32 3, %v3519_v18  ;;  %v4142_v51 = vsel %vm12877_vm8, %v12478_v23, %v4139_v50  ;;  %v3325_v19 = vsel %vm3314_vm14, nan, %v3324_v41  ;;  %v3530_v32 = vxor.u32 2147483648, %v16672_v29  ;;  %v16680_v41 = vld [vmem:[#allocation14_spill] sm:$0xff] }
 0x4aa   : > { %vm16674_vm5 = vcmp.lt.s32.totalorder %v16673_v46, 0  ;;  %vm3421_vm10 = vcmp.lt.s32.totalorder %v3420_v28, 2  ;;  %vm3422_vm4 = vcmp.eq.s32.totalorder %v3420_v28, 0  ;;  %vm3425_vm6 = vcmp.eq.s32.totalorder %v3420_v28, 2 }
 0x4ab   : > { %v3621_v39 = vsel %vm16674_vm5, %v3620_v35, %v16671_v17  ;;  %v3631_v26 = vxor.u32 2147483648, %v16675_v4  ;;  %v3424_v20 = vsel %vm3422_vm4, %v16667_v54, %v3423_v30  ;;  %v3427_v3 = vsel %vm3425_vm6, %v3426_v55, %v16666_v43 }
 0x4ac   : > { %v3524_v31 = vand.u32 3, %v3523_v16  ;;  %v3623_v49 = vsel %vm12377_vm13, 0, %v3621_v39  ;;  %v3428_v53 = vsel %vm3421_vm10, %v3424_v20, %v3427_v3  ;;  %v3634_v52 = vxor.u32 2147483648, %v16677_v34 }
 0x4ad   : > { %v3627_v22 = vadd.s32 3, %v3623_v49  ;;  %v3724_v5 = vsub.s32 4, %v16678_v48  ;;  %v3429_v11 = vsel %vm3418_vm0, nan, %v3428_v53  ;;  %9316 = vcosq.f32 %v4142_v51 }
 0x4ae   : > { %vm3525_vm14 = vcmp.lt.s32.totalorder %v3524_v31, 2  ;;  %vm3526_vm7 = vcmp.eq.s32.totalorder %v3524_v31, 0  ;;  %vm3529_vm15 = vcmp.eq.s32.totalorder %v3524_v31, 2  ;;  %v8809_v14 = vpack.c.bf16 %v3429_v11, %v3325_v19 }
 0x4af   : > { %v3528_v30 = vsel %vm3526_vm7, %v16672_v29, %v3527_v25  ;;  %v3531_v43 = vsel %vm3529_vm15, %v3530_v32, %v12623_v27  ;;  %v3628_v54 = vand.u32 3, %v3627_v22  ;;  %vm3626_vm13 = vweird.f32 %v16673_v46  ;;  %v16685_v29 = vld [vmem:[#allocation48_spill] sm:$0xff]  ;;  %v16686_v46 = vld [vmem:[#allocation43_spill] sm:$0xff] }
 0x4b0   : > { %v3532_v55 = vsel %vm3525_vm14, %v3528_v30, %v3531_v43  ;;  %vm16679_vm2 = vcmp.lt.s32.totalorder %v12319_v62, 0  ;;  %9318 = vsinq.f32 %v4142_v51  ;;  %8810 = vmatprep.subr.bf16.mxu1 %v8809_v14  ;;  %vm3730_vm4 = vweird.f32 %v12319_v62  ;;  %v16683_v51 = vld [vmem:[#allocation26_spill] sm:$0xff] }
 0x4b1   : > { %v3725_v13 = vsel %vm16679_vm2, %v3724_v5, %v16678_v48  ;;  %v3533_v15 = vsel %vm3522_vm12, nan, %v3532_v55  ;;  %vm3630_vm0 = vcmp.eq.s32.totalorder %v3628_v54, 0  ;;  %vm3633_vm5 = vcmp.eq.s32.totalorder %v3628_v54, 2  ;;  %8812 = vmatpush3.bf16.msra.mxu1 %v8809_v14 }
 0x4b2   : > { %vm3629_vm10 = vcmp.lt.s32.totalorder %v3628_v54, 2  ;;  %v3632_v27 = vsel %vm3630_vm0, %v16677_v34, %v3631_v26  ;;  %v3635_v47 = vsel %vm3633_vm5, %v3634_v52, %v16675_v4  ;;  %v3727_v6 = vsel %vm12586_vm1, 0, %v3725_v13 }
 0x4b3   : > { %v3636_v59 = vsel %vm3629_vm10, %v3632_v27, %v3635_v47  ;;  %v3731_v50 = vadd.s32 3, %v3727_v6  ;;  %v3828_v7 = vsub.s32 4, %v16680_v41  ;;  %v3735_v18 = vxor.u32 2147483648, %v12654_v37 }
 0x4b4   : > { %v3637_v1 = vsel %vm3626_vm13, nan, %v3636_v59  ;;  %v3738_v17 = vxor.u32 2147483648, %v12651_v38  ;;  %v3932_v35 = vsub.s32 4, %v12625_v24  ;;  %vm16682_vm1 = vcmp.lt.s32.totalorder %v16681_v42, 0 }
 0x4b5   : > { %v8813_v28 = vpack.c.bf16 %v3637_v1, %v3533_v15  ;;  %v3732_v16 = vand.u32 3, %v3731_v50  ;;  %v3829_v25 = vsel %vm16682_vm1, %v3828_v7, %v16680_v41  ;;  %vm3834_vm12 = vweird.f32 %v16681_v42 }
 0x4b6   : > { %vm16684_vm6 = vnez %v16683_v51  ;;  %v3839_v32 = vxor.u32 2147483648, %v16685_v29  ;;  %v3842_v39 = vxor.u32 2147483648, %v16686_v46  ;;  %vm16687_vm14 = vcmp.lt.s32.totalorder %v12444_v12, 0 }
 0x4b7   : > { %v3831_v19 = vsel %vm16684_vm6, 0, %v3829_v25  ;;  %v3933_v4 = vsel %vm16687_vm14, %v3932_v35, %v12625_v24  ;;  %8814 = vmatprep.subr.bf16.mxu1 %v8813_v28  ;;  %vm3733_vm7 = vcmp.lt.s32.totalorder %v3732_v16, 2  ;;  %vm3734_vm15 = vcmp.eq.s32.totalorder %v3732_v16, 0  ;;  %v9317_v52 = vpop.eup %9316 }
 0x4b8   : > { %vm3737_vm13 = vcmp.eq.s32.totalorder %v3732_v16, 2  ;;  %v3835_v26 = vadd.s32 3, %v3831_v19  ;;  %8816 = vmatpush3.bf16.msra.mxu1 %v8813_v28  ;;  %v3736_v20 = vsel %vm3734_vm15, %v12651_v38, %v3735_v18  ;;  %vm16688_vm2 = vnez %v16628_v63 }
 0x4b9   : > { %v3739_v3 = vsel %vm3737_vm13, %v3738_v17, %v12654_v37  ;;  %v3935_v31 = vsel %vm16688_vm2, 0, %v3933_v4  ;;  %v4036_v49 = vsub.s32 4, %v16689_v21  ;;  %v3943_v24 = vxor.u32 2147483648, %v12823_v9 }
 0x4ba   : > { %v3740_v53 = vsel %vm3733_vm7, %v3736_v20, %v3739_v3  ;;  %v3836_v22 = vand.u32 3, %v3835_v26  ;;  %v3939_v34 = vadd.s32 3, %v3935_v31  ;;  %v3946_v5 = vxor.u32 2147483648, %v12817_v2  ;;  %v9319_v63 = vpop.eup %9318  ;;  %v445_v26 = vld [vmem:[%s16033_s5 + $0x8] sm:$0xff]  ;;  %v450_v20 = vld [vmem:[%s16033_s5 + $0x30] sm:$0xff]  ;;  %v451_v3 = vld [vmem:[%s16033_s5 + $0x38] sm:$0xff] }
 0x4bb   : > { %v3741_v48 = vsel %vm3730_vm4, nan, %v3740_v53  ;;  %vm16690_vm0 = vcmp.lt.s32.totalorder %v12333_v60, 0  ;;  %v4047_v37 = vxor.u32 2147483648, %v12788_v40  ;;  %vm16691_vm6 = vnez %v16624_v0  ;;  %v452_v31 = vld [vmem:[%s16033_s5 + $0x40] sm:$0xff]  ;;  %v455_v53 = vld [vmem:[%s16033_s5 + $0x58] sm:$0xff] }
 0x4bc   : > { %v4037_v38 = vsel %vm16690_vm0, %v4036_v49, %v16689_v21  ;;  %vm3837_vm5 = vcmp.lt.s32.totalorder %v3836_v22, 2  ;;  %vm3838_vm10 = vcmp.eq.s32.totalorder %v3836_v22, 0  ;;  %vm3841_vm1 = vcmp.eq.s32.totalorder %v3836_v22, 2  ;;  %v453_v21 = vld [vmem:[%s16033_s5 + $0x48] sm:$0xff]  ;;  %v454_v49 = vld [vmem:[%s16033_s5 + $0x50] sm:$0xff]  ;;  %v456_v22 = vld [vmem:[%s16033_s5 + $0x60] sm:$0xff] }
 0x4bd   : > { %v3940_v11 = vand.u32 3, %v3939_v34  ;;  %v3840_v14 = vsel %vm3838_vm10, %v16686_v46, %v3839_v32  ;;  %v3843_v30 = vsel %vm3841_vm1, %v3842_v39, %v16685_v29  ;;  %v4039_v62 = vsel %vm16691_vm6, 0, %v4037_v38  ;;  %v457_v34 = vld [vmem:[%s16033_s5 + $0x68] sm:$0xff]  ;;  %v4265_v38 = vpop.permute.xlu0 %4264 }
 0x4be   : > { %v4140_v43 = vsub.s32 4, %v12799_v44  ;;  %v3844_v54 = vsel %vm3837_vm5, %v3840_v14, %v3843_v30  ;;  %v4043_v27 = vadd.s32 3, %v4039_v62  ;;  %v4050_v59 = vxor.u32 2147483648, %v12781_v45 }
 0x4bf   : > { %vm3941_vm4 = vcmp.lt.s32.totalorder %v3940_v11, 2  ;;  %vm3942_vm14 = vcmp.eq.s32.totalorder %v3940_v11, 0  ;;  %vm3945_vm7 = vcmp.eq.s32.totalorder %v3940_v11, 2  ;;  %v3845_v55 = vsel %vm3834_vm12, nan, %v3844_v54 }
 0x4c0   : > { %v3944_v13 = vsel %vm3942_vm14, %v12817_v2, %v3943_v24  ;;  %v3947_v15 = vsel %vm3945_vm7, %v3946_v5, %v12823_v9  ;;  %v8817_v47 = vpack.c.bf16 %v3845_v55, %v3741_v48  ;;  %v4141_v0 = vsel %vm4056_vm3, %v4140_v43, %v12799_v44  ;;  %v458_v24 = vld [vmem:[%s16033_s5 + $0x70] sm:$0xff]  ;;  %v4270_v48 = vpop.permute.xlu1 %4269 }
 0x4c1   : > { %v3948_v6 = vsel %vm3941_vm4, %v3944_v13, %v3947_v15  ;;  %vm3938_vm15 = vweird.f32 %v12444_v12  ;;  %v4044_v50 = vand.u32 3, %v4043_v27  ;;  %v4143_v41 = vsel %vm12877_vm8, 0, %v4141_v0 }
 0x4c2   : > { %8818 = vmatprep.subr.bf16.mxu1 %v8817_v47  ;;  %v3949_v7 = vsel %vm3938_vm15, nan, %v3948_v6  ;;  %v4147_v2 = vadd.s32 3, %v4143_v41  ;;  %v4151_v1 = vxor.u32 2147483648, %v9319_v63  ;;  %v4244_v9 = vsub.s32 4, %v12726_v61 }
 0x4c3   : > { %8820 = vmatpush3.bf16.msra.mxu1 %v8817_v47  ;;  %vm4045_vm12 = vcmp.lt.s32.totalorder %v4044_v50, 2  ;;  %vm4046_vm13 = vcmp.eq.s32.totalorder %v4044_v50, 0  ;;  %vm4049_vm2 = vcmp.eq.s32.totalorder %v4044_v50, 2  ;;  %v4154_v18 = vxor.u32 2147483648, %v9317_v52 }
 0x4c4   : > { %v4048_v17 = vsel %vm4046_vm13, %v12781_v45, %v4047_v37  ;;  %v4051_v44 = vsel %vm4049_vm2, %v4050_v59, %v12788_v40  ;;  %v4148_v12 = vand.u32 3, %v4147_v2  ;;  %v4245_v58 = vsel %vm4160_vm11, %v4244_v9, %v12726_v61  ;;  %v4280_v62 = vpop.permute.xlu1 %4279 }
 0x4c5   : > { %vm4042_vm3 = vweird.f32 %v12333_v60  ;;  %v4052_v35 = vsel %vm4045_vm12, %v4048_v17, %v4051_v44  ;;  %v4247_v28 = vsel %vm12806_vm9, 0, %v4245_v58  ;;  %v4255_v40 = vxor.u32 2147483648, %v12902_v8 }
 0x4c6   : > { %v4053_v16 = vsel %vm4042_vm3, nan, %v4052_v35  ;;  %vm4150_vm8 = vcmp.eq.s32.totalorder %v4148_v12, 0  ;;  %vm4153_vm0 = vcmp.eq.s32.totalorder %v4148_v12, 2  ;;  %v4251_v45 = vadd.s32 3, %v4247_v28  ;;  %v4275_v35 = vpop.permute.xlu0 %4274 }
 0x4c7   : > { %v8821_v42 = vpack.c.bf16 %v4053_v16, %v3949_v7  ;;  %v4152_v25 = vsel %vm4150_vm8, %v9317_v52, %v4151_v1  ;;  %v4155_v51 = vsel %vm4153_vm0, %v4154_v18, %v9319_v63  ;;  %vm4149_vm5 = vcmp.lt.s32.totalorder %v4148_v12, 2  ;;  %v459_v52 = vld [vmem:[%s16033_s5 + $0x78] sm:$0xff] }
 0x4c8   : > { %v4258_v19 = vxor.u32 2147483648, %v12871_v10  ;;  %v4156_v61 = vsel %vm4149_vm5, %v4152_v25, %v4155_v51  ;;  %v4252_v29 = vand.u32 3, %v4251_v45  ;;  %vm4146_vm11 = vweird.f32 %v12478_v23  ;;  %v446_v23 = vld [vmem:[%s16033_s5 + $0x10] sm:$0xff] }
 0x4c9   : > { %8822 = vmatprep.subr.bf16.mxu1 %v8821_v42  ;;  %v4157_v60 = vsel %vm4146_vm11, nan, %v4156_v61  ;;  %vm4250_vm6 = vweird.f32 %v12468_v56  ;;  %v448_v56 = vld [vmem:[%s16033_s5 + $0x20] sm:$0xff] }
 0x4ca   : > { %8824 = vmatpush3.bf16.msra.mxu1 %v8821_v42  ;;  %vm4254_vm10 = vcmp.eq.s32.totalorder %v4252_v29, 0  ;;  %vm4257_vm9 = vcmp.eq.s32.totalorder %v4252_v29, 2  ;;  %vm4253_vm1 = vcmp.lt.s32.totalorder %v4252_v29, 2 }
 0x4cb   : > { %v4256_v57 = vsel %vm4254_vm10, %v12871_v10, %v4255_v40  ;;  %v4259_v32 = vsel %vm4257_vm9, %v4258_v19, %v12902_v8  ;;  %v447_v10 = vld [vmem:[%s16033_s5 + $0x18] sm:$0xff]  ;;  %v449_v8 = vld [vmem:[%s16033_s5 + $0x28] sm:$0xff] }
 0x4cc   : > { %v4260_v46 = vsel %vm4253_vm1, %v4256_v57, %v4259_v32 }
 0x4cd   : > { %v4261_v39 = vsel %vm4250_vm6, nan, %v4260_v46 }
 0x4ce   : > { %v8825_v4 = vpack.c.bf16 %v4261_v39, %v4157_v60 }
 0x4d0   : > { %8826 = vmatprep.subr.bf16.mxu1 %v8825_v4 }
 0x4d1   : > { %8828 = vmatpush3.bf16.msra.mxu1 %v8825_v4  ;;  %v16694_v4 = vmov 2475754826  }
 0x4d4   : > { %8651 = vmatmul.mubr.f32.vlgmr.msra.gmra.mrb[0].mxu1 %v445_v26 }
 0x4d5   : > { %8653 = vmatprep.mubr.f32.mxu1 %v446_v23 }
 0x4d8   : > { %8654 = vmatmul.mubr.f32.gmra.mrb[2].mxu1 %v447_v10  ;;  %v16695_v10 = vmov 2131351028  }
 0x4d9   : > { %8656 = vmatprep.mubr.f32.mxu1 %v448_v56 }
 0x4dc   : > { %8657 = vmatmul.mubr.f32.gmra.mrb[4].mxu1 %v449_v8  ;;  %v16696_v8 = vmov 2102212464  }
 0x4dd   : > { %8659 = vmatprep.mubr.f32.mxu1 %v450_v20 }
 0x4e0   : > { %8660 = vmatmul.mubr.f32.gmra.mrb[6].mxu1 %v451_v3  ;;  %v16697_v3 = vmov 920167782  }
 0x4e1   : > { %8662 = vmatprep.mubr.f32.mxu1 %v452_v31 }
 0x4e4   : > { %8663 = vmatmul.mubr.f32.gmra.mrb[8].mxu1 %v453_v21 }
 0x4e5   : > { %8665 = vmatprep.mubr.f32.mxu1 %v454_v49 }
 0x4e8   : > { %8666 = vmatmul.mubr.f32.gmra.mrb[10].mxu1 %v455_v53 }
 0x4e9   : > { %8668 = vmatprep.mubr.f32.mxu1 %v456_v22 }
 0x4ec   : > { %8669 = vmatmul.mubr.f32.gmra.mrb[12].mxu1 %v457_v34 }
 0x4ed   : > { %8671 = vmatprep.mubr.f32.mxu1 %v458_v24 }
 0x4f0   : > { %8672 = vmatmul.mubr.f32.gmra.mrb[14].mxu1 %v459_v52 }
 0x5a7   : > { %v8652_v5 = vpop.f32.mrb[0].mxu1 }
 0x5a8   : > { %v13048_v37 = vadd.f32 %v8652_v5, %v4270_v48  ;;  %v4408_v63 = vpop.f32.mrb[1].mxu1 }
 0x5a9   : > { %v13050_v11 = vadd.f32 %v4408_v63, %v4265_v38 }
 0x5aa   : > { %v4591_v14 = vand.u32 2147483647, %v13048_v37  ;;  %v4594_v30 = vand.u32 2139095040, %v13048_v37 }
 0x5ab   : > { %v4487_v43 = vand.u32 2147483647, %v13050_v11  ;;  %v4490_v54 = vand.u32 2139095040, %v13050_v11  ;;  %v8655_v55 = vpop.f32.mrb[2].mxu1 }
 0x5ac   : > { %v4595_v13 = vshrl.u32 %v4594_v30, 23  ;;  %v4598_v15 = vand.u32 8388607, %v4591_v14  ;;  %v13058_v27 = vadd.f32 %v8655_v55, %v4280_v62  ;;  %v4418_v47 = vpop.f32.mrb[3].mxu1 }
 0x5ad   : > { %v4491_v6 = vshrl.u32 %v4490_v54, 23  ;;  %v4494_v59 = vand.u32 8388607, %v4487_v43  ;;  %v13072_v42 = vadd.f32 %v4418_v47, %v4275_v35 }
 0x5ae   : > { %16692 = vst [vmem:[#allocation37_spill] sm:$0xff] %v13058_v27  ;;  %v8322_v0 = vadd.s32 4294967169, %v4595_v13  ;;  %v16238_v50 = vand.u32 2147483647, %v13058_v27  ;;  %v4802_v7 = vand.u32 2139095040, %v13058_v27  ;;  %v4599_v1 = vor.u32 8388608, %v4598_v15 }
 0x5af   : > { %v8318_v41 = vadd.s32 4294967169, %v4491_v6  ;;  %v13064_v2 = vpop.f32.mrb[4].mxu1  ;;  %v4495_v18 = vor.u32 8388608, %v4494_v59  ;;  %16693 = vst [vmem:[#allocation47_spill] sm:$0xff] %v13072_v42 }
 0x5b0   : > { %v4601_v9 = vadd.s32 1, %v8322_v0  ;;  %v4803_v44 = vshrl.u32 %v4802_v7, 23  ;;  %v13068_v12 = vand.u32 8388607, %v16238_v50  ;;  %v13070_v58 = vpop.f32.mrb[5].mxu1  ;;  %v13076_v40 = vshll.u32 %v4599_v1, 8 }
 0x5b1   : > { %v4497_v17 = vadd.s32 1, %v8318_v41  ;;  %v13082_v57 = vshll.u32 %v4495_v18, 8 }
 0x5b2   : > { %vm4602_vm4 = vcmp.gt.s32.totalorder %v4601_v9, 0  ;;  %v8330_v16 = vadd.s32 4294967169, %v4803_v44  ;;  %v4807_v32 = vor.u32 8388608, %v13068_v12 }
 0x5b3   : > { %v4603_v28 = vsel %vm4602_vm4, %v4601_v9, 0  ;;  %vm4498_vm14 = vcmp.gt.s32.totalorder %v4497_v17, 0  ;;  %v13074_v25 = vpop.f32.mrb[6].mxu1 }
 0x5b4   : > { %v4604_v51 = vshrl.u32 %v4603_v28, 5  ;;  %v4605_v45 = vand.u32 31, %v4603_v28  ;;  %v4499_v19 = vsel %vm4498_vm14, %v4497_v17, 0  ;;  %v13078_v61 = vpop.f32.mrb[7].mxu1  ;;  %v13087_v23 = vadd.s32 1, %v8330_v16 }
 0x5b5   : > { %v13080_v29 = vshrl.u32 %v4499_v19, 5  ;;  %v4501_v60 = vand.u32 31, %v4499_v19 }
 0x5b6   : > { %v4606_v46 = vsub.s32 32, %v4605_v45  ;;  %v4608_v39 = vshll.u32 %v16540_v33, %v4605_v45  ;;  %v4611_v26 = vshll.u32 %v16694_v4, %v4605_v45  ;;  %v4614_v56 = vshll.u32 %v16695_v10, %v4605_v45 }
 0x5b7   : > { %v4617_v20 = vshll.u32 %v16696_v8, %v4605_v45  ;;  %v4620_v31 = vshll.u32 %v16697_v3, %v4605_v45  ;;  %vm4623_vm7 = vcmp.lt.s32.totalorder %v4604_v51, 1  ;;  %v13092_v21 = vpop.f32.mrb[8].mxu1  ;;  %vm4624_vm15 = vcmp.lt.s32.totalorder %v4604_v51, 2 }
 0x5b8   : > { %v4609_v49 = vshrl.u32 %v16694_v4, %v4606_v46  ;;  %v4612_v53 = vshrl.u32 %v16695_v10, %v4606_v46  ;;  %v4615_v22 = vshrl.u32 %v16696_v8, %v4606_v46  ;;  %v4607_v34 = vshrl.u32 %v16540_v33, %v4606_v46 }
 0x5b9   : > { %v4618_v24 = vshrl.u32 %v16697_v3, %v4606_v46  ;;  %v4621_v52 = vshrl.u32 %v16545_v36, %v4606_v46  ;;  %vm4625_vm12 = vcmp.lt.s32.totalorder %v4604_v51, 3  ;;  %v4502_v63 = vsub.s32 32, %v4501_v60 }
 0x5ba   : > { %v4610_v48 = vor.u32 %v4609_v49, %v4608_v39  ;;  %v4613_v5 = vor.u32 %v4612_v53, %v4611_v26  ;;  %v4616_v38 = vor.u32 %v4615_v22, %v4614_v56  ;;  %vm4626_vm13 = vcmp.lt.s32.totalorder %v4604_v51, 4 }
 0x5bb   : > { %v4619_v30 = vor.u32 %v4618_v24, %v4617_v20  ;;  %v4622_v62 = vor.u32 %v4621_v52, %v4620_v31  ;;  %v4504_v54 = vshll.u32 %v16540_v33, %v4501_v60  ;;  %v4507_v41 = vshll.u32 %v16694_v4, %v4501_v60 }
 0x5bc   : > { %v4627_v55 = vsel %vm4623_vm7, %v4607_v34, %v4610_v48  ;;  %v4628_v13 = vsel %vm4626_vm13, %v4616_v38, 2102212464  ;;  %v4631_v15 = vsel %vm4623_vm7, %v4610_v48, %v4613_v5  ;;  %v4635_v47 = vsel %vm4623_vm7, %v4613_v5, %v4616_v38 }
 0x5bd   : > { %v4629_v6 = vsel %vm4625_vm12, %v4613_v5, %v4628_v13  ;;  %v4632_v59 = vsel %vm4626_vm13, %v4619_v30, 920167782  ;;  %v4636_v0 = vsel %vm4626_vm13, %v4622_v62, 1326507024  ;;  %v4503_v9 = vshrl.u32 %v16540_v33, %v4502_v63 }
 0x5be   : > { %v4633_v7 = vsel %vm4625_vm12, %v4616_v38, %v4632_v59  ;;  %v4637_v1 = vsel %vm4625_vm12, %v4619_v30, %v4636_v0  ;;  %v4505_v18 = vshrl.u32 %v16694_v4, %v4502_v63  ;;  %v4630_v17 = vsel %vm4624_vm15, %v4627_v55, %v4629_v6 }
 0x5bf   : > { %v4634_v44 = vsel %vm4624_vm15, %v4631_v15, %v4633_v7  ;;  %v4638_v35 = vsel %vm4624_vm15, %v4635_v47, %v4637_v1  ;;  %v4508_v28 = vshrl.u32 %v16695_v10, %v4502_v63  ;;  %v4510_v56 = vshll.u32 %v16695_v10, %v4501_v60 }
 0x5c0   : > { %v13115_v16 = vmul.u32.u64.low %v13076_v40, %v4638_v35  ;;  %v13116_v45 = vmul.u32.u64.high %v13076_v40, %v4638_v35, %v13115_v16  ;;  %v13119_v19 = vmul.u32.u64.low %v13076_v40, %v4634_v44  ;;  %v13120_v46 = vmul.u32.u64.high %v13076_v40, %v4634_v44, %v13119_v19 }
 0x5c1   : > { %v4506_v39 = vor.u32 %v4505_v18, %v4504_v54  ;;  %v4509_v26 = vor.u32 %v4508_v28, %v4507_v41  ;;  %v4511_v20 = vshrl.u32 %v16696_v8, %v4502_v63  ;;  %v4646_v51 = vmul.u32 %v13076_v40, %v4630_v17 }
 0x5c2   : > { %v4513_v31 = vshll.u32 %v16696_v8, %v4501_v60  ;;  %v4514_v49 = vshrl.u32 %v16697_v3, %v4502_v63  ;;  %v4517_v53 = vshrl.u32 %v16545_v36, %v4502_v63  ;;  %v4516_v34 = vshll.u32 %v16697_v3, %v4501_v60 }
 0x5c3   : > { %v4512_v22 = vor.u32 %v4511_v20, %v4510_v56  ;;  %vm4519_vm2 = vcmp.lt.s32.totalorder %v13080_v29, 1  ;;  %vm4520_vm3 = vcmp.lt.s32.totalorder %v13080_v29, 2  ;;  %vm4648_vm8 = vc.u32 %v13116_v45, %v13119_v19 }
 0x5c4   : > { %v4649_v24 = vadd.s32 1, %v13120_v46  ;;  %v4515_v52 = vor.u32 %v4514_v49, %v4513_v31  ;;  %vm4521_vm0 = vcmp.lt.s32.totalorder %v13080_v29, 3  ;;  %v4518_v40 = vor.u32 %v4517_v53, %v4516_v34 }
 0x5c5   : > { %vm4522_vm5 = vcmp.lt.s32.totalorder %v13080_v29, 4  ;;  %v4523_v48 = vsel %vm4519_vm2, %v4503_v9, %v4506_v39  ;;  %v4527_v5 = vsel %vm4519_vm2, %v4506_v39, %v4509_v26  ;;  %v4531_v30 = vsel %vm4519_vm2, %v4509_v26, %v4512_v22 }
 0x5c6   : > { %v4650_v38 = vsel %vm4648_vm8, %v4649_v24, %v13120_v46  ;;  %v4524_v60 = vsel %vm4522_vm5, %v4512_v22, 2102212464  ;;  %v4528_v63 = vsel %vm4522_vm5, %v4515_v52, 920167782  ;;  %v4532_v13 = vsel %vm4522_vm5, %v4518_v40, 1326507024 }
 0x5c7   : > { %v4651_v62 = vadd.s32 %v4650_v38, %v4646_v51  ;;  %v4525_v54 = vsel %vm4521_vm0, %v4509_v26, %v4524_v60  ;;  %v4529_v55 = vsel %vm4521_vm0, %v4512_v22, %v4528_v63  ;;  %v4533_v47 = vsel %vm4521_vm0, %v4515_v52, %v4532_v13  ;;  %v13178_v24 = vpop.f32.mrb[9].mxu1 }
 0x5c8   : > { %v4530_v15 = vsel %vm4520_vm3, %v4527_v5, %v4529_v55  ;;  %vm4810_vm11 = vcmp.gt.s32.totalorder %v13087_v23, 0  ;;  %v4698_v6 = vand.u32 2139095040, %v13072_v42  ;;  %v4534_v0 = vsel %vm4520_vm3, %v4531_v30, %v4533_v47 }
 0x5c9   : > { %v4652_v59 = vadd.s32 536870912, %v4651_v62  ;;  %v13145_v41 = vmul.u32.u64.low %v13082_v57, %v4530_v15  ;;  %v13146_v7 = vmul.u32.u64.high %v13082_v57, %v4530_v15, %v13145_v41  ;;  %v4526_v1 = vsel %vm4520_vm3, %v4523_v48, %v4525_v54 }
 0x5ca   : > { %v13152_v9 = vmul.u32.u64.low %v13082_v57, %v4534_v0  ;;  %v13153_v18 = vmul.u32.u64.high %v13082_v57, %v4534_v0, %v13152_v9  ;;  %v4811_v17 = vsel %vm4810_vm11, %v13087_v23, 0  ;;  %v13160_v28 = vshll.u32 %v4807_v32, 8 }
 0x5cb   : > { %v13156_v44 = vshrl.u32 %v4652_v59, 30  ;;  %v4813_v35 = vand.u32 31, %v4811_v17  ;;  %v16237_v16 = vand.u32 2147483647, %v13072_v42  ;;  %v4699_v46 = vshrl.u32 %v4698_v6, 23 }
 0x5cc   : > { %v4542_v29 = vmul.u32 %v13082_v57, %v4526_v1  ;;  %v4545_v26 = vadd.s32 1, %v13146_v7  ;;  %vm4544_vm10 = vc.u32 %v13153_v18, %v13145_v41  ;;  %v4812_v23 = vshrl.u32 %v4811_v17, 5 }
 0x5cd   : > { %v4654_v39 = vshll.u32 %v13156_v44, 30  ;;  %v4814_v56 = vsub.s32 32, %v4813_v35  ;;  %v4816_v20 = vshll.u32 %v16540_v33, %v4813_v35  ;;  %v4819_v12 = vshll.u32 %v16694_v4, %v4813_v35 }
 0x5ce   : > { %v4546_v51 = vsel %vm4544_vm10, %v4545_v26, %v13146_v7  ;;  %v4822_v49 = vshll.u32 %v16695_v10, %v4813_v35  ;;  %v4825_v34 = vshll.u32 %v16696_v8, %v4813_v35  ;;  %v4828_v5 = vshll.u32 %v16697_v3, %v4813_v35 }
 0x5cf   : > { %v13170_v32 = vsub.s32 %v4651_v62, %v4654_v39  ;;  %v4817_v31 = vshrl.u32 %v16694_v4, %v4814_v56  ;;  %v4547_v57 = vadd.s32 %v4546_v51, %v4542_v29  ;;  %v4820_v53 = vshrl.u32 %v16695_v10, %v4814_v56 }
 0x5d0   : > { %v4823_v22 = vshrl.u32 %v16696_v8, %v4814_v56  ;;  %v4826_v48 = vshrl.u32 %v16697_v3, %v4814_v56  ;;  %v4829_v30 = vshrl.u32 %v16545_v36, %v4814_v56  ;;  %v4815_v54 = vshrl.u32 %v16540_v33, %v4814_v56 }
 0x5d1   : > { %v4657_v52 = vsub.s32 0, %v13170_v32  ;;  %v4818_v40 = vor.u32 %v4817_v31, %v4816_v20  ;;  %v4548_v38 = vadd.s32 536870912, %v4547_v57  ;;  %v4821_v60 = vor.u32 %v4820_v53, %v4819_v12 }
 0x5d2   : > { %v4824_v63 = vor.u32 %v4823_v22, %v4822_v49  ;;  %v4827_v55 = vor.u32 %v4826_v48, %v4825_v34  ;;  %v8326_v13 = vadd.s32 4294967169, %v4699_v46  ;;  %v4830_v47 = vor.u32 %v4829_v30, %v4828_v5 }
 0x5d3   : > { %v8323_v62 = vmin.u32 %v4657_v52, %v13170_v32  ;;  %v13186_v15 = vshrl.u32 %v4548_v38, 30  ;;  %vm4831_vm9 = vcmp.lt.s32.totalorder %v4812_v23, 1  ;;  %vm4834_vm1 = vcmp.lt.s32.totalorder %v4812_v23, 4 }
 0x5d4   : > { %vm4832_vm6 = vcmp.lt.s32.totalorder %v4812_v23, 2  ;;  %v4836_v59 = vsel %vm4834_vm1, %v4824_v63, 2102212464  ;;  %v4839_v0 = vsel %vm4831_vm9, %v4818_v40, %v4821_v60  ;;  %vm4833_vm4 = vcmp.lt.s32.totalorder %v4812_v23, 3 }
 0x5d5   : > { %v4659_v6 = vclz %v8323_v62  ;;  %v4550_v7 = vshll.u32 %v13186_v15, 30  ;;  %v4840_v1 = vsel %vm4834_vm1, %v4827_v55, 920167782  ;;  %v4843_v9 = vsel %vm4831_vm9, %v4821_v60, %v4824_v63 }
 0x5d6   : > { %v4835_v35 = vsel %vm4831_vm9, %v4815_v54, %v4818_v40  ;;  %v4841_v39 = vsel %vm4833_vm4, %v4824_v63, %v4840_v1  ;;  %v4844_v29 = vsel %vm4834_vm1, %v4830_v47, 1326507024  ;;  %v4837_v46 = vsel %vm4833_vm4, %v4821_v60, %v4836_v59  ;;  %v4290_v1 = vpop.permute.xlu1 %4289 }
 0x5d7   : > { %v8324_v17 = vadd.s32 4294967294, %v4659_v6  ;;  %v13189_v26 = vsub.s32 %v4547_v57, %v4550_v7  ;;  %v4842_v56 = vsel %vm4832_vm6, %v4839_v0, %v4841_v39  ;;  %v4845_v20 = vsel %vm4833_vm4, %v4827_v55, %v4844_v29 }
 0x5d8   : > { %v4846_v12 = vsel %vm4832_vm6, %v4843_v9, %v4845_v20  ;;  %v13194_v51 = vmul.u32.u64.low %v13160_v28, %v4842_v56  ;;  %v13195_v31 = vmul.u32.u64.high %v13160_v28, %v4842_v56, %v13194_v51  ;;  %v4838_v52 = vsel %vm4832_vm6, %v4835_v35, %v4837_v46 }
 0x5d9   : > { %vm8325_vm14 = vcmp.lt.s32.totalorder %v8324_v17, 0  ;;  %v4553_v53 = vsub.s32 0, %v13189_v26  ;;  %v13200_v22 = vmul.u32.u64.low %v13160_v28, %v4846_v12  ;;  %v13201_v34 = vmul.u32.u64.high %v13160_v28, %v4846_v12, %v13200_v22 }
 0x5da   : > { %v4662_v49 = vsel %vm8325_vm14, 0, %v8324_v17  ;;  %v4705_v40 = vadd.s32 1, %v8326_v13  ;;  %v4702_v5 = vand.u32 8388607, %v16237_v16  ;;  %v4857_v60 = vadd.s32 1, %v13195_v31  ;;  %v13214_v13 = vpop.f32.mrb[10].mxu1 }
 0x5db   : > { %v4667_v57 = vsub.s32 4294967266, %v4662_v49  ;;  %v8319_v48 = vmin.u32 %v4553_v53, %v13189_v26  ;;  %v4663_v38 = vsub.s32 32, %v4662_v49  ;;  %v4854_v30 = vmul.u32 %v13160_v28, %v4838_v52 }
 0x5dc   : > { %vm4706_vm7 = vcmp.gt.s32.totalorder %v4705_v40, 0  ;;  %vm4856_vm15 = vc.u32 %v13201_v34, %v13194_v51  ;;  %v4647_v23 = vadd.s32 %v13119_v19, %v13116_v45  ;;  %v4703_v59 = vor.u32 8388608, %v4702_v5 }
 0x5dd   : > { %v4555_v63 = vclz %v8319_v48  ;;  %v4707_v62 = vsel %vm4706_vm7, %v4705_v40, 0  ;;  %v4668_v54 = vadd.s32 127, %v4667_v57  ;;  %v4858_v55 = vsel %vm4856_vm15, %v4857_v60, %v13195_v31 }
 0x5de   : > { %v4859_v6 = vadd.s32 %v4858_v55, %v4854_v30  ;;  %v4709_v0 = vand.u32 31, %v4707_v62  ;;  %v4665_v7 = vshrl.u32 %v4647_v23, %v4663_v38  ;;  %v4664_v17 = vshll.u32 %v13170_v32, %v4662_v49 }
 0x5df   : > { %v8320_v47 = vadd.s32 4294967294, %v4555_v63  ;;  %v4669_v35 = vshll.u32 %v4668_v54, 23  ;;  %v13218_v39 = vadd.f32 %v13064_v2, %v4290_v1  ;;  %v4543_v45 = vadd.s32 %v13145_v41, %v13153_v18 }
 0x5e0   : > { %v4860_v28 = vadd.s32 536870912, %v4859_v6  ;;  %v4710_v9 = vsub.s32 32, %v4709_v0  ;;  %v13226_v46 = vshll.u32 %v4703_v59, 8  ;;  %v4666_v56 = vor.u32 %v4665_v7, %v4664_v17 }
 0x5e1   : > { %vm8321_vm12 = vcmp.lt.s32.totalorder %v8320_v47, 0  ;;  %16698 = vst [vmem:[#allocation46_spill] sm:$0xff] %v13218_v39  ;;  %v4708_v20 = vshrl.u32 %v4707_v62, 5  ;;  %v4712_v2 = vshll.u32 %v16540_v33, %v4709_v0  ;;  %v4715_v49 = vshll.u32 %v16694_v4, %v4709_v0 }
 0x5e2   : > { %v13222_v19 = vsel %vm8321_vm12, 0, %v8320_v47  ;;  %v13224_v29 = vshrl.u32 %v4860_v28, 30  ;;  %v4713_v12 = vshrl.u32 %v16694_v4, %v4710_v9  ;;  %v4716_v31 = vshrl.u32 %v16695_v10, %v4710_v9 }
 0x5e3   : > { %v4719_v41 = vshrl.u32 %v16696_v8, %v4710_v9  ;;  %v4670_v18 = vor.u32 4788187, %v4669_v35  ;;  %v4563_v53 = vsub.s32 4294967266, %v13222_v19  ;;  %v4718_v22 = vshll.u32 %v16695_v10, %v4709_v0 }
 0x5e4   : > { %16699 = vst [vmem:[#allocation27_spill] sm:$0xff] %v13224_v29  ;;  %v4862_v32 = vshll.u32 %v13224_v29, 30  ;;  %v16236_v57 = vand.u32 2147483647, %v13218_v39  ;;  %v4714_v40 = vor.u32 %v4713_v12, %v4712_v2  ;;  %v4717_v48 = vor.u32 %v4716_v31, %v4715_v49 }
 0x5e5   : > { %v4721_v5 = vshll.u32 %v16696_v8, %v4709_v0  ;;  %v4720_v38 = vor.u32 %v4719_v41, %v4718_v22  ;;  %v4722_v60 = vshrl.u32 %v16697_v3, %v4710_v9  ;;  %v4724_v63 = vshll.u32 %v16697_v3, %v4709_v0  ;;  %v13253_v22 = vpop.f32.mrb[11].mxu1 }
 0x5e6   : > { %v13237_v52 = vsub.s32 %v4859_v6, %v4862_v32  ;;  %v4725_v30 = vshrl.u32 %v16545_v36, %v4710_v9  ;;  %v4673_v62 = vcvt.s32.f32 %v4666_v56  ;;  %v4559_v23 = vsub.s32 32, %v13222_v19 }
 0x5e7   : > { %vm4727_vm13 = vcmp.lt.s32.totalorder %v4708_v20, 1  ;;  %v4564_v55 = vadd.s32 127, %v4563_v53  ;;  %v4723_v47 = vor.u32 %v4722_v60, %v4721_v5  ;;  %vm4728_vm2 = vcmp.lt.s32.totalorder %v4708_v20, 2 }
 0x5e8   : > { %v4865_v54 = vsub.s32 0, %v13237_v52  ;;  %v4726_v6 = vor.u32 %v4725_v30, %v4724_v63  ;;  %v4671_v59 = vand.u32 2147483647, %v4670_v18  ;;  %v4560_v7 = vshll.u32 %v13189_v26, %v13222_v19 }
 0x5e9   : > { %vm4730_vm3 = vcmp.lt.s32.totalorder %v4708_v20, 4  ;;  %vm4729_vm8 = vcmp.lt.s32.totalorder %v4708_v20, 3  ;;  %v4735_v28 = vsel %vm4727_vm13, %v4714_v40, %v4717_v48  ;;  %v4561_v35 = vshrl.u32 %v4543_v45, %v4559_v23 }
 0x5ea   : > { %v8331_v1 = vmin.u32 %v4865_v54, %v13237_v52  ;;  %v4732_v0 = vsel %vm4730_vm3, %v4720_v38, 2102212464  ;;  %v4736_v17 = vsel %vm4730_vm3, %v4723_v47, 920167782  ;;  %v4711_v12 = vshrl.u32 %v16540_v33, %v4710_v9 }
 0x5eb   : > { %v4737_v31 = vsel %vm4729_vm8, %v4720_v38, %v4736_v17  ;;  %v4565_v32 = vshll.u32 %v4564_v55, 23  ;;  %v4739_v49 = vsel %vm4727_vm13, %v4717_v48, %v4720_v38  ;;  %v4740_v41 = vsel %vm4730_vm3, %v4726_v6, 1326507024 }
 0x5ec   : > { %v4867_v56 = vclz %v8331_v1  ;;  %v4738_v2 = vsel %vm4728_vm2, %v4735_v28, %v4737_v31  ;;  %v4731_v19 = vsel %vm4727_vm13, %v4711_v12, %v4714_v40  ;;  %v4733_v18 = vsel %vm4729_vm8, %v4717_v48, %v4732_v0  ;;  %v4285_v12 = vpop.permute.xlu0 %4284 }
 0x5ed   : > { %v4741_v53 = vsel %vm4729_vm8, %v4723_v47, %v4740_v41  ;;  %v13257_v45 = vmul.u32.u64.low %v13226_v46, %v4738_v2  ;;  %v13258_v60 = vmul.u32.u64.high %v13226_v46, %v4738_v2, %v13257_v45  ;;  %v5010_v9 = vand.u32 2139095040, %v13218_v39  ;;  %v4300_v41 = vpop.permute.xlu1 %4299 }
 0x5ee   : > { %v8332_v26 = vadd.s32 4294967294, %v4867_v56  ;;  %v4742_v5 = vsel %vm4728_vm2, %v4739_v49, %v4741_v53  ;;  %v4674_v63 = vmul.f32 %v4673_v62, %v4671_v59  ;;  %v4566_v40 = vor.u32 4788187, %v4565_v32 }
 0x5ef   : > { %v13263_v38 = vmul.u32.u64.low %v13226_v46, %v4742_v5  ;;  %v13264_v30 = vmul.u32.u64.high %v13226_v46, %v4742_v5, %v13263_v38  ;;  %v4734_v23 = vsel %vm4728_vm2, %v4731_v19, %v4733_v18  ;;  %v5011_v54 = vshrl.u32 %v5010_v9, 23 }
 0x5f0   : > { %vm8333_vm0 = vcmp.lt.s32.totalorder %v8332_v26, 0  ;;  %v5014_v47 = vand.u32 8388607, %v16236_v57  ;;  %v4562_v6 = vor.u32 %v4561_v35, %v4560_v7  ;;  %v4753_v1 = vadd.s32 1, %v13258_v60 }
 0x5f1   : > { %v4870_v48 = vsel %vm8333_vm0, 0, %v8332_v26  ;;  %v8338_v0 = vadd.s32 4294967169, %v5011_v54  ;;  %v4750_v62 = vmul.u32 %v13226_v46, %v4734_v23  ;;  %vm4752_vm5 = vc.u32 %v13264_v30, %v13257_v45 }
 0x5f2   : > { %v4875_v55 = vsub.s32 4294967266, %v4870_v48  ;;  %v4675_v59 = vxor.u32 2147483648, %v4674_v63  ;;  %v4567_v17 = vand.u32 2147483647, %v4566_v40  ;;  %v4754_v20 = vsel %vm4752_vm5, %v4753_v1, %v13258_v60 }
 0x5f3   : > { %v5017_v56 = vadd.s32 1, %v8338_v0  ;;  %v4871_v31 = vsub.s32 32, %v4870_v48  ;;  %v4755_v32 = vadd.s32 %v4754_v20, %v4750_v62  ;;  %v5015_v2 = vor.u32 8388608, %v5014_v47 }
 0x5f4   : > { %v4876_v28 = vadd.s32 127, %v4875_v55  ;;  %v4569_v49 = vcvt.s32.f32 %v4562_v6  ;;  %v13275_v35 = vadd.f32 %v13070_v58, %v4285_v12  ;;  %vm16289_vm10 = vcmp.lt.s32.totalorder %v13048_v37, 0 }
 0x5f5   : > { %vm5018_vm11 = vcmp.gt.s32.totalorder %v5017_v56, 0  ;;  %v4855_v46 = vadd.s32 %v13194_v51, %v13201_v34  ;;  %v4756_v26 = vadd.s32 536870912, %v4755_v32  ;;  %v4676_v18 = vsel %vm16289_vm10, %v4675_v59, %v4674_v63 }
 0x5f6   : > { %v4877_v7 = vshll.u32 %v4876_v28, 23  ;;  %16700 = vst [vmem:[#allocation45_spill] sm:$0xff] %v13275_v35  ;;  %v5019_v19 = vsel %vm5018_vm11, %v5017_v56, 0  ;;  %v13282_v53 = vmul.f32 %v4569_v49, %v4567_v17  ;;  %v13285_v60 = vadd.f32 %v13074_v25, %v4300_v41 }
 0x5f7   : > { %v5021_v5 = vand.u32 31, %v5019_v19  ;;  %v4872_v58 = vshll.u32 %v13237_v52, %v4870_v48  ;;  %v4873_v9 = vshrl.u32 %v4855_v46, %v4871_v31  ;;  %v13288_v38 = vshrl.u32 %v4756_v26, 30 }
 0x5f8   : > { %v13290_v40 = vshll.u32 %v5015_v2, 8  ;;  %v4878_v23 = vor.u32 4788187, %v4877_v7  ;;  %v16235_v34 = vand.u32 2147483647, %v13275_v35  ;;  %v4906_v54 = vand.u32 2139095040, %v13275_v35 }
 0x5f9   : > { %16701 = vst [vmem:[#allocation44_spill] sm:$0xff] %v13288_v38  ;;  %v5022_v51 = vsub.s32 32, %v5021_v5  ;;  %v4758_v63 = vshll.u32 %v13288_v38, 30  ;;  %v5020_v55 = vshrl.u32 %v5019_v19, 5  ;;  %v5024_v47 = vshll.u32 %v16540_v33, %v5021_v5 }
 0x5fa   : > { %v5027_v25 = vshll.u32 %v16694_v4, %v5021_v5  ;;  %v5030_v6 = vshll.u32 %v16695_v10, %v5021_v5  ;;  %vm13303_vm9 = vcmp.le.f32.partialorder %v4591_v14, 0.7853982  ;;  %v5033_v62 = vshll.u32 %v16696_v8, %v5021_v5 }
 0x5fb   : > { %v5025_v52 = vshrl.u32 %v16694_v4, %v5022_v51  ;;  %v5028_v48 = vshrl.u32 %v16695_v10, %v5022_v51  ;;  %v5031_v1 = vshrl.u32 %v16696_v8, %v5022_v51  ;;  %v13307_v28 = vsub.s32 %v4755_v32, %v4758_v63 }
 0x5fc   : > { %v5034_v59 = vshrl.u32 %v16697_v3, %v5022_v51  ;;  %v5037_v17 = vshrl.u32 %v16545_v36, %v5022_v51  ;;  %v5036_v31 = vshll.u32 %v16697_v3, %v5021_v5  ;;  %v4874_v2 = vor.u32 %v4873_v9, %v4872_v58 }
 0x5fd   : > { %v5026_v20 = vor.u32 %v5025_v52, %v5024_v47  ;;  %v5029_v56 = vor.u32 %v5028_v48, %v5027_v25  ;;  %v5032_v12 = vor.u32 %v5031_v1, %v5030_v6  ;;  %v4761_v49 = vsub.s32 0, %v13307_v28 }
 0x5fe   : > { %v5035_v14 = vor.u32 %v5034_v59, %v5033_v62  ;;  %v4910_v7 = vand.u32 8388607, %v16235_v34  ;;  %v4879_v32 = vand.u32 2147483647, %v4878_v23  ;;  %v5038_v41 = vor.u32 %v5037_v17, %v5036_v31  ;;  %v13334_v31 = vpop.f32.mrb[12].mxu1 }
 0x5ff   : > { %vm5042_vm1 = vcmp.lt.s32.totalorder %v5020_v55, 4  ;;  %v4907_v46 = vshrl.u32 %v4906_v54, 23  ;;  %v8327_v26 = vmin.u32 %v4761_v49, %v13307_v28  ;;  %v5023_v19 = vshrl.u32 %v16540_v33, %v5022_v51 }
 0x600   : > { %vm5039_vm6 = vcmp.lt.s32.totalorder %v5020_v55, 1  ;;  %v5044_v63 = vsel %vm5042_vm1, %v5032_v12, 2102212464  ;;  %vm16295_vm4 = vcmp.lt.s32.totalorder %v13050_v11, 0  ;;  %vm5040_vm14 = vcmp.lt.s32.totalorder %v5020_v55, 2 }
 0x601   : > { %vm5041_vm7 = vcmp.lt.s32.totalorder %v5020_v55, 3  ;;  %v5047_v5 = vsel %vm5039_vm6, %v5026_v20, %v5029_v56  ;;  %v5048_v58 = vsel %vm5042_vm1, %v5035_v14, 920167782  ;;  %v4763_v9 = vclz %v8327_v26 }
 0x602   : > { %v5043_v47 = vsel %vm5039_vm6, %v5023_v19, %v5026_v20  ;;  %v5049_v23 = vsel %vm5041_vm7, %v5032_v12, %v5048_v58  ;;  %v5051_v25 = vsel %vm5039_vm6, %v5029_v56, %v5032_v12  ;;  %v5045_v52 = vsel %vm5041_vm7, %v5029_v56, %v5044_v63 }
 0x603   : > { %v5050_v54 = vsel %vm5040_vm14, %v5047_v5, %v5049_v23  ;;  %v5052_v48 = vsel %vm5042_vm1, %v5038_v41, 1326507024  ;;  %v8334_v51 = vadd.s32 4294967169, %v4907_v46  ;;  %v8328_v6 = vadd.s32 4294967294, %v4763_v9 }
 0x604   : > { %v5053_v1 = vsel %vm5041_vm7, %v5035_v14, %v5052_v48  ;;  %v13324_v62 = vmul.u32.u64.low %v13290_v40, %v5050_v54  ;;  %v13325_v59 = vmul.u32.u64.high %v13290_v40, %v5050_v54, %v13324_v62  ;;  %v13331_v17 = vsel %vm13303_vm9, %v13048_v37, %v4676_v18 }
 0x605   : > { %v4881_v20 = vcvt.s32.f32 %v4874_v2  ;;  %v5054_v56 = vsel %vm5040_vm14, %v5051_v25, %v5053_v1  ;;  %v4913_v12 = vadd.s32 1, %v8334_v51  ;;  %v4571_v49 = vxor.u32 2147483648, %v13282_v53 }
 0x606   : > { %vm8329_vm15 = vcmp.lt.s32.totalorder %v8328_v6, 0  ;;  %v13338_v14 = vmul.u32.u64.low %v13290_v40, %v5054_v56  ;;  %v13339_v41 = vmul.u32.u64.high %v13290_v40, %v5054_v56, %v13338_v14  ;;  %v5046_v19 = vsel %vm5040_vm14, %v5043_v47, %v5045_v52 }
 0x607   : > { %v13341_v46 = vmul.f32 %v4881_v20, %v4879_v32  ;;  %v4766_v26 = vsel %vm8329_vm15, 0, %v8328_v6  ;;  %vm4914_vm12 = vcmp.gt.s32.totalorder %v4913_v12, 0  ;;  %v5065_v2 = vadd.s32 1, %v13325_v59 }
 0x608   : > { %v4771_v18 = vsub.s32 4294967266, %v4766_v26  ;;  %v4911_v63 = vor.u32 8388608, %v4910_v7  ;;  %v16234_v5 = vand.u32 2147483647, %v13285_v60  ;;  %9320 = vcosq.f32 %v13331_v17 }
 0x609   : > { %v4767_v58 = vsub.s32 32, %v4766_v26  ;;  %v4915_v9 = vsel %vm4914_vm12, %v4913_v12, 0  ;;  %v5218_v23 = vand.u32 2139095040, %v13285_v60  ;;  %v13351_v32 = vsel %vm16295_vm4, %v4571_v49, %v13282_v53 }
 0x60a   : > { %v4772_v55 = vadd.s32 127, %v4771_v18  ;;  %v5062_v47 = vmul.u32 %v13290_v40, %v5046_v19  ;;  %vm5064_vm13 = vc.u32 %v13339_v41, %v13324_v62  ;;  %v4751_v25 = vadd.s32 %v13257_v45, %v13264_v30 }
 0x60b   : > { %v5066_v52 = vsel %vm5064_vm13, %v5065_v2, %v13325_v59  ;;  %v4917_v54 = vand.u32 31, %v4915_v9  ;;  %v4768_v48 = vshll.u32 %v13307_v28, %v4766_v26  ;;  %v13361_v6 = vshll.u32 %v4911_v63, 8 }
 0x60c   : > { %v5067_v51 = vadd.s32 %v5066_v52, %v5062_v47  ;;  %v13365_v53 = vand.u32 8388607, %v16234_v5  ;;  %v4769_v40 = vshrl.u32 %v4751_v25, %v4767_v58  ;;  %v4916_v1 = vshrl.u32 %v4915_v9, 5  ;;  %v4295_v58 = vpop.permute.xlu0 %4294 }
 0x60d   : > { %v4918_v20 = vsub.s32 32, %v4917_v54  ;;  %v5219_v56 = vshrl.u32 %v5218_v23, 23  ;;  %v4773_v12 = vshll.u32 %v4772_v55, 23  ;;  %v4920_v45 = vshll.u32 %v16540_v33, %v4917_v54 }
 0x60e   : > { %v5068_v49 = vadd.s32 536870912, %v5067_v51  ;;  %v4923_v30 = vshll.u32 %v16694_v4, %v4917_v54  ;;  %v4926_v14 = vshll.u32 %v16695_v10, %v4917_v54  ;;  %v4929_v18 = vshll.u32 %v16696_v8, %v4917_v54 }
 0x60f   : > { %v4921_v59 = vshrl.u32 %v16694_v4, %v4918_v20  ;;  %v4924_v28 = vshrl.u32 %v16695_v10, %v4918_v20  ;;  %v4927_v26 = vshrl.u32 %v16696_v8, %v4918_v20  ;;  %v4930_v2 = vshrl.u32 %v16697_v3, %v4918_v20 }
 0x610   : > { %v13373_v19 = vshrl.u32 %v5068_v49, 30  ;;  %v4932_v63 = vshll.u32 %v16697_v3, %v4917_v54  ;;  %v4933_v47 = vshrl.u32 %v16545_v36, %v4918_v20  ;;  %v5223_v5 = vor.u32 8388608, %v13365_v53 }
 0x611   : > { %v4922_v9 = vor.u32 %v4921_v59, %v4920_v45  ;;  %v4925_v23 = vor.u32 %v4924_v28, %v4923_v30  ;;  %v4928_v55 = vor.u32 %v4927_v26, %v4926_v14  ;;  %v4931_v52 = vor.u32 %v4930_v2, %v4929_v18 }
 0x612   : > { %16704 = vst [vmem:[#allocation42_spill] sm:$0xff] %v13373_v19  ;;  %v5070_v25 = vshll.u32 %v13373_v19, 30  ;;  %v13382_v49 = vadd.f32 %v13078_v61, %v4295_v58  ;;  %v13384_v34 = vpop.eup %9320  ;;  %vm13388_vm2 = vcmp.le.f32.partialorder %v4487_v43, 0.7853982  ;;  %vm16279_vm3 = vcmp.lt.s32.totalorder %v13058_v27, 0 }
 0x613   : > { %v4770_v45 = vor.u32 %v4769_v40, %v4768_v48  ;;  %v4774_v30 = vor.u32 4788187, %v4773_v12  ;;  %v4934_v59 = vor.u32 %v4933_v47, %v4932_v63  ;;  %v8346_v28 = vadd.s32 4294967169, %v5219_v56 }
 0x614   : > { %v13393_v14 = vsub.s32 %v5067_v51, %v5070_v25  ;;  %v4919_v53 = vshrl.u32 %v16540_v33, %v4918_v20  ;;  %vm4935_vm8 = vcmp.lt.s32.totalorder %v4916_v1, 1  ;;  %vm4938_vm0 = vcmp.lt.s32.totalorder %v4916_v1, 4  ;;  %v13398_v51 = vpop.f32.mrb[13].mxu1 }
 0x615   : > { %vm4937_vm5 = vcmp.lt.s32.totalorder %v4916_v1, 3  ;;  %v4940_v61 = vsel %vm4938_vm0, %v4928_v55, 2102212464  ;;  %v4943_v26 = vsel %vm4935_vm8, %v4922_v9, %v4925_v23  ;;  %v4944_v18 = vsel %vm4938_vm0, %v4931_v52, 920167782 }
 0x616   : > { %v5073_v43 = vsub.s32 0, %v13393_v14  ;;  %vm4936_vm11 = vcmp.lt.s32.totalorder %v4916_v1, 2  ;;  %v4945_v2 = vsel %vm4937_vm5, %v4928_v55, %v4944_v18  ;;  %v4947_v58 = vsel %vm4935_vm8, %v4925_v23, %v4928_v55 }
 0x617   : > { %v4775_v57 = vand.u32 2147483647, %v4774_v30  ;;  %v4939_v48 = vsel %vm4935_vm8, %v4919_v53, %v4922_v9  ;;  %v4946_v40 = vsel %vm4936_vm11, %v4943_v26, %v4945_v2  ;;  %v4948_v56 = vsel %vm4938_vm0, %v4934_v59, 1326507024 }
 0x618   : > { %v8339_v20 = vmin.u32 %v5073_v43, %v13393_v14  ;;  %v4941_v12 = vsel %vm4937_vm5, %v4925_v23, %v4940_v61  ;;  %v4949_v63 = vsel %vm4937_vm5, %v4931_v52, %v4948_v56  ;;  %v5225_v47 = vadd.s32 1, %v8346_v28 }
 0x619   : > { %v4777_v25 = vcvt.s32.f32 %v4770_v45  ;;  %v4950_v16 = vsel %vm4936_vm11, %v4947_v58, %v4949_v63  ;;  %v13403_v50 = vmul.u32.u64.low %v13361_v6, %v4946_v40  ;;  %v13404_v7 = vmul.u32.u64.high %v13361_v6, %v4946_v40, %v13403_v50 }
 0x61a   : > { %v5075_v55 = vclz %v8339_v20  ;;  %v13408_v9 = vmul.u32.u64.low %v13361_v6, %v4950_v16  ;;  %v13409_v30 = vmul.u32.u64.high %v13361_v6, %v4950_v16, %v13408_v9  ;;  %vm5226_vm1 = vcmp.gt.s32.totalorder %v5225_v47, 0 }
 0x61b   : > { %9322 = vsinq.f32 %v13331_v17  ;;  %v13412_v59 = vmul.f32 %v4777_v25, %v4775_v57  ;;  %v4942_v23 = vsel %vm4936_vm11, %v4939_v48, %v4941_v12  ;;  %v5227_v52 = vsel %vm5226_vm1, %v5225_v47, 0 }
 0x61c   : > { %v13419_v45 = vsel %vm13388_vm2, %v13050_v11, %v13351_v32  ;;  %v16707_v28 = vxor.u32 2147483648, %v13341_v46  ;;  %v8340_v53 = vadd.s32 4294967294, %v5075_v55  ;;  %v5229_v17 = vand.u32 31, %v5227_v52 }
 0x61d   : > { %v5063_v57 = vadd.s32 %v13324_v62, %v13339_v41  ;;  %v4961_v1 = vadd.s32 1, %v13404_v7  ;;  %v13431_v61 = vshll.u32 %v5223_v5, 8  ;;  %v16241_v26 = vand.u32 2147483647, %v13382_v49 }
 0x61e   : > { %v13426_v16 = vsel %vm16279_vm3, %v16707_v28, %v13341_v46  ;;  %vm8341_vm6 = vcmp.lt.s32.totalorder %v8340_v53, 0  ;;  %v4958_v32 = vmul.u32 %v13361_v6, %v4942_v23  ;;  %vm4960_vm14 = vc.u32 %v13409_v30, %v13403_v50 }
 0x61f   : > { %v5230_v18 = vsub.s32 32, %v5229_v17  ;;  %v5078_v43 = vsel %vm8341_vm6, 0, %v8340_v53  ;;  %v4962_v2 = vsel %vm4960_vm14, %v4961_v1, %v13404_v7  ;;  %v5114_v62 = vand.u32 2139095040, %v13382_v49 }
 0x620   : > { %v5079_v41 = vsub.s32 32, %v5078_v43  ;;  %v5083_v58 = vsub.s32 4294967266, %v5078_v43  ;;  %v4963_v5 = vadd.s32 %v4962_v2, %v4958_v32  ;;  %v5228_v48 = vshrl.u32 %v5227_v52, 5 }
 0x621   : > { %v5232_v40 = vshll.u32 %v16540_v33, %v5229_v17  ;;  %v5233_v56 = vshrl.u32 %v16694_v4, %v5230_v18  ;;  %v5235_v6 = vshll.u32 %v16694_v4, %v5229_v17  ;;  %v5236_v20 = vshrl.u32 %v16695_v10, %v5230_v18 }
 0x622   : > { %v5080_v12 = vshll.u32 %v13393_v14, %v5078_v43  ;;  %v5084_v63 = vadd.s32 127, %v5083_v58  ;;  %v4964_v47 = vadd.s32 536870912, %v4963_v5  ;;  %v5239_v7 = vshrl.u32 %v16696_v8, %v5230_v18 }
 0x623   : > { %v5081_v25 = vshrl.u32 %v5063_v57, %v5079_v41  ;;  %v5238_v55 = vshll.u32 %v16695_v10, %v5229_v17  ;;  %v5241_v9 = vshll.u32 %v16696_v8, %v5229_v17  ;;  %v5242_v23 = vshrl.u32 %v16697_v3, %v5230_v18 }
 0x624   : > { %v5085_v52 = vshll.u32 %v5084_v63, 23  ;;  %v13449_v28 = vshrl.u32 %v4964_v47, 30  ;;  %v5234_v53 = vor.u32 %v5233_v56, %v5232_v40  ;;  %v5237_v1 = vor.u32 %v5236_v20, %v5235_v6 }
 0x625   : > { %v13451_v32 = vpop.eup %9322  ;;  %v5240_v2 = vor.u32 %v5239_v7, %v5238_v55  ;;  %v5243_v14 = vor.u32 %v5242_v23, %v5241_v9  ;;  %v5244_v43 = vshll.u32 %v16697_v3, %v5229_v17  ;;  %v5245_v58 = vshrl.u32 %v16545_v36, %v5230_v18 }
 0x626   : > { %16708 = vst [vmem:[#allocation49_spill] sm:$0xff] %v13449_v28  ;;  %v5086_v57 = vor.u32 4788187, %v5085_v52  ;;  %v4966_v41 = vshll.u32 %v13449_v28, 30  ;;  %v5115_v46 = vshrl.u32 %v5114_v62, 23  ;;  %v16710_v40 = vmov 0 }
 0x627   : > { %v5118_v19 = vand.u32 8388607, %v16241_v26  ;;  %v16709_v63 = vand.u32 2147483647, %v13058_v27  ;;  %v5082_v56 = vor.u32 %v5081_v25, %v5080_v12  ;;  %v5231_v6 = vshrl.u32 %v16540_v33, %v5230_v18 }
 0x628   : > { %v5246_v20 = vor.u32 %v5245_v58, %v5244_v43  ;;  %vm5247_vm15 = vcmp.lt.s32.totalorder %v5228_v48, 1  ;;  %v13465_v17 = vsub.s32 %v4963_v5, %v4966_v41  ;;  %vm5249_vm12 = vcmp.lt.s32.totalorder %v5228_v48, 3 }
 0x629   : > { %vm13460_vm7 = vcmp.le.f32.partialorder %v16709_v63, 0.7853982  ;;  %vm5250_vm13 = vcmp.lt.s32.totalorder %v5228_v48, 4  ;;  %v5255_v62 = vsel %vm5247_vm15, %v5234_v53, %v5237_v1  ;;  %v5259_v55 = vsel %vm5247_vm15, %v5237_v1, %v5240_v2 }
 0x62a   : > { %v16711_v40 = vsel %vm13460_vm7, 4294967295, %v16710_v40  ;;  %v5252_v47 = vsel %vm5250_vm13, %v5240_v2, 2102212464  ;;  %v5256_v7 = vsel %vm5250_vm13, %v5243_v14, 920167782  ;;  %v4969_v52 = vsub.s32 0, %v13465_v17 }
 0x62b   : > { %16712 = vst [vmem:[#allocation7_spill] sm:$0xff] %v16711_v40  ;;  %v5260_v9 = vsel %vm5250_vm13, %v5246_v20, 1326507024  ;;  %v5087_v23 = vand.u32 2147483647, %v5086_v57  ;;  %vm5248_vm8 = vcmp.lt.s32.totalorder %v5228_v48, 2  ;;  %v5257_v12 = vsel %vm5249_vm12, %v5240_v2, %v5256_v7 }
 0x62c   : > { %v5089_v18 = vcvt.s32.f32 %v5082_v56  ;;  %v5258_v25 = vsel %vm5248_vm8, %v5255_v62, %v5257_v12  ;;  %v5261_v5 = vsel %vm5249_vm12, %v5243_v14, %v5260_v9  ;;  %v8342_v43 = vadd.s32 4294967169, %v5115_v46  ;;  %v13501_v9 = vpop.f32.mrb[14].mxu1 }
 0x62d   : > { %v8335_v58 = vmin.u32 %v4969_v52, %v13465_v17  ;;  %v5251_v41 = vsel %vm5247_vm15, %v5231_v6, %v5234_v53  ;;  %v5253_v63 = vsel %vm5249_vm12, %v5237_v1, %v5252_v47  ;;  %v5262_v20 = vsel %vm5248_vm8, %v5259_v55, %v5261_v5  ;;  %v4310_v53 = vpop.permute.xlu1 %4309 }
 0x62e   : > { %v13478_v57 = vmul.u32.u64.low %v13431_v61, %v5262_v20  ;;  %v13479_v26 = vmul.u32.u64.high %v13431_v61, %v5262_v20, %v13478_v57  ;;  %v13482_v2 = vmul.u32.u64.low %v13431_v61, %v5258_v25  ;;  %v13483_v56 = vmul.u32.u64.high %v13431_v61, %v5258_v25, %v13482_v2 }
 0x62f   : > { %9324 = vcosq.f32 %v13419_v45  ;;  %v13487_v46 = vmul.f32 %v5089_v18, %v5087_v23  ;;  %v4971_v14 = vclz %v8335_v58  ;;  %v5121_v62 = vadd.s32 1, %v8342_v43 }
 0x630   : > { %9326 = vsinq.f32 %v13419_v45  ;;  %vm16288_vm0 = vcmp.lt.s32.totalorder %v13072_v42, 0  ;;  %v5254_v1 = vsel %vm5248_vm8, %v5251_v41, %v5253_v63  ;;  %v5119_v6 = vor.u32 8388608, %v5118_v19 }
 0x631   : > { %v13496_v47 = vsel %vm13460_vm7, %v13058_v27, %v13426_v16  ;;  %v8336_v7 = vadd.s32 4294967294, %v4971_v14  ;;  %vm5122_vm5 = vcmp.gt.s32.totalorder %v5121_v62, 0  ;;  %v13499_v55 = vadd.f32 %v13092_v21, %v4310_v53 }
 0x632   : > { %v16714_v45 = vxor.u32 2147483648, %v13412_v59  ;;  %v4959_v19 = vadd.s32 %v13403_v50, %v13409_v30  ;;  %vm5272_vm11 = vc.u32 %v13479_v26, %v13482_v2  ;;  %v5273_v16 = vadd.s32 1, %v13483_v56 }
 0x633   : > { %16713 = vst [vmem:[#allocation15_spill] sm:$0xff] %v13499_v55  ;;  %vm8337_vm1 = vcmp.lt.s32.totalorder %v8336_v7, 0  ;;  %v5270_v23 = vmul.u32 %v13431_v61, %v5254_v1  ;;  %v5123_v52 = vsel %vm5122_vm5, %v5121_v62, 0  ;;  %v5426_v30 = vand.u32 2139095040, %v13499_v55 }
 0x634   : > { %v13508_v48 = vsel %vm16288_vm0, %v16714_v45, %v13412_v59  ;;  %v4974_v12 = vsel %vm8337_vm1, 0, %v8336_v7  ;;  %v5274_v18 = vsel %vm5272_vm11, %v5273_v16, %v13483_v56  ;;  %v5125_v25 = vand.u32 31, %v5123_v52 }
 0x635   : > { %v13518_v59 = vshll.u32 %v5119_v6, 8  ;;  %v4975_v5 = vsub.s32 32, %v4974_v12  ;;  %v4979_v43 = vsub.s32 4294967266, %v4974_v12  ;;  %v5275_v50 = vadd.s32 %v5274_v18, %v5270_v23 }
 0x636   : > { %v4976_v58 = vshll.u32 %v13465_v17, %v4974_v12  ;;  %v5124_v41 = vshrl.u32 %v5123_v52, 5  ;;  %v5126_v63 = vsub.s32 32, %v5125_v25  ;;  %v5128_v20 = vshll.u32 %v16540_v33, %v5125_v25 }
 0x637   : > { %v4977_v57 = vshrl.u32 %v4959_v19, %v4975_v5  ;;  %v4980_v61 = vadd.s32 127, %v4979_v43  ;;  %v5276_v14 = vadd.s32 536870912, %v5275_v50  ;;  %v5131_v62 = vshll.u32 %v16694_v4, %v5125_v25 }
 0x638   : > { %v5129_v56 = vshrl.u32 %v16694_v4, %v5126_v63  ;;  %v5132_v53 = vshrl.u32 %v16695_v10, %v5126_v63  ;;  %v5134_v1 = vshll.u32 %v16695_v10, %v5125_v25  ;;  %v5135_v6 = vshrl.u32 %v16696_v8, %v5126_v63 }
 0x639   : > { %v13528_v7 = vpop.eup %9324  ;;  %v4981_v17 = vshll.u32 %v4980_v61, 23  ;;  %v13530_v45 = vshrl.u32 %v5276_v14, 30  ;;  %v5137_v16 = vshll.u32 %v16696_v8, %v5125_v25  ;;  %v5138_v19 = vshrl.u32 %v16697_v3, %v5126_v63 }
 0x63a   : > { %v13534_v23 = vpop.eup %9326  ;;  %v5130_v52 = vor.u32 %v5129_v56, %v5128_v20  ;;  %v5133_v12 = vor.u32 %v5132_v53, %v5131_v62  ;;  %v5136_v18 = vor.u32 %v5135_v6, %v5134_v1  ;;  %v5427_v5 = vshrl.u32 %v5426_v30, 23 }
 0x63b   : > { %16715 = vst [vmem:[#allocation11_spill] sm:$0xff] %v13530_v45  ;;  %v4978_v43 = vor.u32 %v4977_v57, %v4976_v58  ;;  %v4982_v21 = vor.u32 4788187, %v4981_v17  ;;  %v5278_v28 = vshll.u32 %v13530_v45, 30  ;;  %v5139_v40 = vor.u32 %v5138_v19, %v5137_v16 }
 0x63c   : > { %v16716_v27 = vand.u32 2147483647, %v13072_v42  ;;  %v16717_v61 = vmov 0  ;;  %vm16268_vm14 = vcmp.lt.s32.totalorder %v13218_v39, 0  ;;  %v5127_v14 = vshrl.u32 %v16540_v33, %v5126_v63 }
 0x63d   : > { %v5140_v20 = vshll.u32 %v16697_v3, %v5125_v25  ;;  %v5141_v62 = vshrl.u32 %v16545_v36, %v5126_v63  ;;  %vm5143_vm15 = vcmp.lt.s32.totalorder %v5124_v41, 1  ;;  %v4983_v30 = vand.u32 2147483647, %v4982_v21 }
 0x63e   : > { %vm13539_vm6 = vcmp.le.f32.partialorder %v16716_v27, 0.7853982  ;;  %v13547_v58 = vsub.s32 %v5275_v50, %v5278_v28  ;;  %vm5145_vm12 = vcmp.lt.s32.totalorder %v5124_v41, 3  ;;  %vm5146_vm13 = vcmp.lt.s32.totalorder %v5124_v41, 4 }
 0x63f   : > { %v16718_v61 = vsel %vm13539_vm6, 4294967295, %v16717_v61  ;;  %v5142_v57 = vor.u32 %v5141_v62, %v5140_v20  ;;  %v5148_v56 = vsel %vm5146_vm13, %v5136_v18, 2102212464  ;;  %v5151_v27 = vsel %vm5143_vm15, %v5130_v52, %v5133_v12 }
 0x640   : > { %16719 = vst [vmem:[#allocation17_spill] sm:$0xff] %v16718_v61  ;;  %v5152_v53 = vsel %vm5146_vm13, %v5139_v40, 920167782  ;;  %v4985_v1 = vcvt.s32.f32 %v4978_v43  ;;  %v5281_v6 = vsub.s32 0, %v13547_v58  ;;  %vm5144_vm8 = vcmp.lt.s32.totalorder %v5124_v41, 2 }
 0x641   : > { %v5153_v17 = vsel %vm5145_vm12, %v5136_v18, %v5152_v53  ;;  %v5147_v16 = vsel %vm5143_vm15, %v5127_v14, %v5130_v52  ;;  %v5155_v63 = vsel %vm5143_vm15, %v5133_v12, %v5136_v18  ;;  %v5156_v19 = vsel %vm5146_vm13, %v5142_v57, 1326507024  ;;  %v13561_v52 = vpop.f32.mrb[15].mxu1 }
 0x642   : > { %v5154_v25 = vsel %vm5144_vm8, %v5151_v27, %v5153_v17  ;;  %v4986_v21 = vmul.f32 %v4985_v1, %v4983_v30  ;;  %v8347_v28 = vmin.u32 %v5281_v6, %v13547_v58  ;;  %v5149_v50 = vsel %vm5145_vm12, %v5133_v12, %v5148_v56  ;;  %v4305_v12 = vpop.permute.xlu0 %4304 }
 0x643   : > { %v5157_v20 = vsel %vm5145_vm12, %v5139_v40, %v5156_v19  ;;  %v13557_v43 = vmul.u32.u64.low %v13518_v59, %v5154_v25  ;;  %v13558_v45 = vmul.u32.u64.high %v13518_v59, %v5154_v25, %v13557_v43  ;;  %v8354_v53 = vadd.s32 4294967169, %v5427_v5 }
 0x644   : > { %v5158_v62 = vsel %vm5144_vm8, %v5155_v63, %v5157_v20  ;;  %9328 = vcosq.f32 %v13496_v47  ;;  %v5283_v18 = vclz %v8347_v28  ;;  %v5150_v40 = vsel %vm5144_vm8, %v5147_v16, %v5149_v50 }
 0x645   : > { %v13565_v14 = vmul.u32.u64.low %v13518_v59, %v5158_v62  ;;  %v13566_v30 = vmul.u32.u64.high %v13518_v59, %v5158_v62, %v13565_v14  ;;  %9330 = vsinq.f32 %v13496_v47  ;;  %v16249_v57 = vand.u32 2147483647, %v13499_v55 }
 0x646   : > { %v5433_v56 = vadd.s32 1, %v8354_v53  ;;  %v13575_v5 = vsel %vm13539_vm6, %v13072_v42, %v13508_v48  ;;  %v16720_v27 = vxor.u32 2147483648, %v13487_v46  ;;  %vm16278_vm5 = vcmp.lt.s32.totalorder %v13275_v35, 0 }
 0x647   : > { %v8348_v47 = vadd.s32 4294967294, %v5283_v18  ;;  %v13586_v41 = vadd.f32 %v13178_v24, %v4305_v12  ;;  %v4987_v6 = vxor.u32 2147483648, %v4986_v21  ;;  %v5271_v17 = vadd.s32 %v13482_v2, %v13479_v26 }
 0x648   : > { %v13582_v1 = vsel %vm16268_vm14, %v16720_v27, %v13487_v46  ;;  %v5169_v48 = vadd.s32 1, %v13558_v45  ;;  %vm5434_vm11 = vcmp.gt.s32.totalorder %v5433_v56, 0  ;;  %v5166_v16 = vmul.u32 %v13518_v59, %v5150_v40 }
 0x649   : > { %16721 = vst [vmem:[#allocation8_spill] sm:$0xff] %v13586_v41  ;;  %vm8349_vm1 = vcmp.lt.s32.totalorder %v8348_v47, 0  ;;  %vm5168_vm15 = vc.u32 %v13566_v30, %v13557_v43  ;;  %v5435_v46 = vsel %vm5434_vm11, %v5433_v56, 0  ;;  %v5430_v24 = vand.u32 8388607, %v16249_v57 }
 0x64a   : > { %v5286_v25 = vsel %vm8349_vm1, 0, %v8348_v47  ;;  %v5170_v63 = vsel %vm5168_vm15, %v5169_v48, %v13558_v45  ;;  %v5437_v19 = vand.u32 31, %v5435_v46  ;;  %v13597_v2 = vshrl.u32 %v5435_v46, 5 }
 0x64b   : > { %v5287_v28 = vsub.s32 32, %v5286_v25  ;;  %v5291_v50 = vsub.s32 4294967266, %v5286_v25  ;;  %v5171_v26 = vadd.s32 %v5170_v63, %v5166_v16  ;;  %v5288_v20 = vshll.u32 %v13547_v58, %v5286_v25 }
 0x64c   : > { %v5438_v62 = vsub.s32 32, %v5437_v19  ;;  %v5440_v59 = vshll.u32 %v16540_v33, %v5437_v19  ;;  %v5443_v53 = vshll.u32 %v16694_v4, %v5437_v19  ;;  %v5446_v45 = vshll.u32 %v16695_v10, %v5437_v19 }
 0x64d   : > { %v5289_v18 = vshrl.u32 %v5271_v17, %v5287_v28  ;;  %v5292_v14 = vadd.s32 127, %v5291_v50  ;;  %v5172_v12 = vadd.s32 536870912, %v5171_v26  ;;  %v5449_v47 = vshll.u32 %v16696_v8, %v5437_v19 }
 0x64e   : > { %v5441_v40 = vshrl.u32 %v16694_v4, %v5438_v62  ;;  %v5444_v56 = vshrl.u32 %v16695_v10, %v5438_v62  ;;  %v5447_v27 = vshrl.u32 %v16696_v8, %v5438_v62  ;;  %v13607_v48 = vpop.eup %9328  ;;  %v5450_v17 = vshrl.u32 %v16697_v3, %v5438_v62 }
 0x64f   : > { %16722 = vst [vmem:[#allocation19_spill] sm:$0xff] %v13607_v48  ;;  %v5290_v58 = vor.u32 %v5289_v18, %v5288_v20  ;;  %v5293_v16 = vshll.u32 %v5292_v14, 23  ;;  %v13609_v46 = vshrl.u32 %v5172_v12, 30  ;;  %v13612_v25 = vpop.eup %9330  ;;  %v4988_v63 = vsel %vm16278_vm5, %v4987_v6, %v4986_v21 }
 0x650   : > { %16724 = vst [vmem:[#allocation22_spill] sm:$0xff] %v13612_v25  ;;  %v5442_v28 = vor.u32 %v5441_v40, %v5440_v59  ;;  %v5445_v50 = vor.u32 %v5444_v56, %v5443_v53  ;;  %v5322_v57 = vand.u32 2139095040, %v13586_v41  ;;  %v5448_v42 = vor.u32 %v5447_v27, %v5446_v45 }
 0x651   : > { %16723 = vst [vmem:[#allocation28_spill] sm:$0xff] %v13609_v46  ;;  %v5294_v61 = vor.u32 4788187, %v5293_v16  ;;  %v5174_v29 = vshll.u32 %v13609_v46, 30  ;;  %v5451_v48 = vor.u32 %v5450_v17, %v5449_v47  ;;  %v5431_v20 = vor.u32 8388608, %v5430_v24  ;;  %v4320_v16 = vpop.permute.xlu1 %4319 }
 0x652   : > { %v5439_v18 = vshrl.u32 %v16540_v33, %v5438_v62  ;;  %v5452_v14 = vshll.u32 %v16697_v3, %v5437_v19  ;;  %v5453_v12 = vshrl.u32 %v16545_v36, %v5438_v62  ;;  %v16725_v25 = vand.u32 2147483647, %v13218_v39 }
 0x653   : > { %v16726_v21 = vmov 0  ;;  %v16729_v6 = vand.u32 2147483647, %v13275_v35  ;;  %v16730_v59 = vmov 0  ;;  %v5297_v53 = vcvt.s32.f32 %v5290_v58 }
 0x654   : > { %vm13623_vm12 = vcmp.le.f32.partialorder %v16725_v25, 0.7853982  ;;  %v13633_v24 = vsub.s32 %v5171_v26, %v5174_v29  ;;  %vm5455_vm8 = vcmp.lt.s32.totalorder %v13597_v2, 1  ;;  %vm5458_vm11 = vcmp.lt.s32.totalorder %v13597_v2, 4 }
 0x655   : > { %v16727_v21 = vsel %vm13623_vm12, 4294967295, %v16726_v21  ;;  %vm13629_vm13 = vcmp.le.f32.partialorder %v16729_v6, 0.7853982  ;;  %v5454_v19 = vor.u32 %v5453_v12, %v5452_v14  ;;  %vm5457_vm1 = vcmp.lt.s32.totalorder %v13597_v2, 3 }
 0x656   : > { %16728 = vst [vmem:[#allocation13_spill] sm:$0xff] %v16727_v21  ;;  %v16731_v59 = vsel %vm13629_vm13, 4294967295, %v16730_v59  ;;  %v5463_v62 = vsel %vm5455_vm8, %v5442_v28, %v5445_v50  ;;  %v5464_v45 = vsel %vm5458_vm11, %v5451_v48, 920167782  ;;  %v5295_v40 = vand.u32 2147483647, %v5294_v61 }
 0x657   : > { %16732 = vst [vmem:[#allocation31_spill] sm:$0xff] %v16731_v59  ;;  %v5177_v56 = vsub.s32 0, %v13633_v24  ;;  %v5460_v27 = vsel %vm5458_vm11, %v5448_v42, 2102212464  ;;  %v5465_v47 = vsel %vm5457_vm1, %v5448_v42, %v5464_v45  ;;  %vm5456_vm15 = vcmp.lt.s32.totalorder %v13597_v2, 2 }
 0x658   : > { %v5459_v29 = vsel %vm5455_vm8, %v5439_v18, %v5442_v28  ;;  %v5467_v26 = vsel %vm5455_vm8, %v5445_v50, %v5448_v42  ;;  %v5468_v58 = vsel %vm5458_vm11, %v5454_v19, 1326507024  ;;  %v5466_v25 = vsel %vm5456_vm15, %v5463_v62, %v5465_v47 }
 0x659   : > { %v8343_v17 = vmin.u32 %v5177_v56, %v13633_v24  ;;  %v5469_v61 = vsel %vm5457_vm1, %v5451_v48, %v5468_v58  ;;  %v5471_v14 = vshll.u32 %v5431_v20, 8  ;;  %v5461_v12 = vsel %vm5457_vm1, %v5445_v50, %v5460_v27 }
 0x65a   : > { %v5470_v6 = vsel %vm5456_vm15, %v5467_v26, %v5469_v61  ;;  %v5323_v45 = vshrl.u32 %v5322_v57, 23  ;;  %v13652_v42 = vadd.f32 %v13214_v13, %v4320_v16  ;;  %vm16267_vm8 = vcmp.lt.s32.totalorder %v13285_v60, 0 }
 0x65b   : > { %v5298_v28 = vmul.f32 %v5297_v53, %v5295_v40  ;;  %v5179_v18 = vclz %v8343_v17  ;;  %v13655_v19 = vmul.u32.u64.low %v5471_v14, %v5470_v6  ;;  %v13656_v62 = vmul.u32.u64.high %v5471_v14, %v5470_v6, %v13655_v19 }
 0x65c   : > { %16733 = vst [vmem:[#allocation10_spill] sm:$0xff] %v13652_v42  ;;  %9332 = vcosq.f32 %v13575_v5  ;;  %v13659_v48 = vmul.u32.u64.low %v5471_v14, %v5466_v25  ;;  %v13660_v20 = vmul.u32.u64.high %v5471_v14, %v5466_v25, %v13659_v48  ;;  %v16258_v50 = vand.u32 2147483647, %v13586_v41 }
 0x65d   : > { %9334 = vsinq.f32 %v13575_v5  ;;  %v8344_v57 = vadd.s32 4294967294, %v5179_v18  ;;  %v5462_v13 = vsel %vm5456_vm15, %v5459_v29, %v5461_v12  ;;  %v8350_v56 = vadd.s32 4294967169, %v5323_v45 }
 0x65e   : > { %v5095_v53 = vsel %vm13623_vm12, %v13218_v39, %v13582_v1  ;;  %v13674_v40 = vsel %vm13629_vm13, %v13275_v35, %v4988_v63  ;;  %v5167_v27 = vadd.s32 %v13557_v43, %v13566_v30  ;;  %v5634_v5 = vand.u32 2139095040, %v13652_v42 }
 0x65f   : > { %v5299_v47 = vxor.u32 2147483648, %v5298_v28  ;;  %vm8345_vm11 = vcmp.lt.s32.totalorder %v8344_v57, 0  ;;  %vm5480_vm1 = vc.u32 %v13656_v62, %v13659_v48  ;;  %v5329_v2 = vadd.s32 1, %v8350_v56 }
 0x660   : > { %v5182_v29 = vsel %vm8345_vm11, 0, %v8344_v57  ;;  %v5478_v26 = vmul.u32 %v5471_v14, %v5462_v13  ;;  %v5481_v1 = vadd.s32 1, %v13660_v20  ;;  %v13684_v58 = vand.u32 8388607, %v16258_v50 }
 0x661   : > { %v5183_v63 = vsub.s32 32, %v5182_v29  ;;  %v5187_v16 = vsub.s32 4294967266, %v5182_v29  ;;  %vm5330_vm15 = vcmp.gt.s32.totalorder %v5329_v2, 0  ;;  %v16257_v43 = vand.u32 2147483647, %v13652_v42 }
 0x662   : > { %9336 = vcosq.f32 %v5095_v53  ;;  %v5482_v30 = vsel %vm5480_vm1, %v5481_v1, %v13660_v20  ;;  %v5331_v17 = vsel %vm5330_vm15, %v5329_v2, 0  ;;  %v5635_v25 = vshrl.u32 %v5634_v5, 23 }
 0x663   : > { %9338 = vsinq.f32 %v5095_v53  ;;  %v5185_v61 = vshrl.u32 %v5167_v27, %v5183_v63  ;;  %v5188_v12 = vadd.s32 127, %v5187_v16  ;;  %v5483_v14 = vadd.s32 %v5482_v30, %v5478_v26 }
 0x664   : > { %9340 = vcosq.f32 %v13674_v40  ;;  %v13691_v6 = vsel %vm16267_vm8, %v5299_v47, %v5298_v28  ;;  %v5184_v45 = vshll.u32 %v13633_v24, %v5182_v29  ;;  %v5333_v18 = vand.u32 31, %v5331_v17 }
 0x665   : > { %v5189_v19 = vshll.u32 %v5188_v12, 23  ;;  %v5484_v57 = vadd.s32 536870912, %v5483_v14  ;;  %v5327_v13 = vor.u32 8388608, %v13684_v58  ;;  %v13697_v20 = vand.u32 8388607, %v16257_v43 }
 0x666   : > { %v13699_v56 = vpop.eup %9332  ;;  %v5186_v53 = vor.u32 %v5185_v61, %v5184_v45  ;;  %v5332_v27 = vshrl.u32 %v5331_v17, 5  ;;  %v5334_v5 = vsub.s32 32, %v5333_v18  ;;  %v8362_v2 = vadd.s32 4294967169, %v5635_v25 }
 0x667   : > { %16734 = vst [vmem:[#allocation12_spill] sm:$0xff] %v13699_v56  ;;  %v13701_v26 = vpop.eup %9334  ;;  %v13703_v28 = vshrl.u32 %v5484_v57, 30  ;;  %v5336_v24 = vshll.u32 %v16540_v33, %v5333_v18  ;;  %v5339_v47 = vshll.u32 %v16694_v4, %v5333_v18  ;;  %v5342_v29 = vshll.u32 %v16695_v10, %v5333_v18 }
 0x668   : > { %16735 = vst [vmem:[#allocation24_spill] sm:$0xff] %v13701_v26  ;;  %v5190_v1 = vor.u32 4788187, %v5189_v19  ;;  %v5337_v58 = vshrl.u32 %v16694_v4, %v5334_v5  ;;  %v5340_v63 = vshrl.u32 %v16695_v10, %v5334_v5  ;;  %v5343_v16 = vshrl.u32 %v16696_v8, %v5334_v5 }
 0x669   : > { %16736 = vst [vmem:[#allocation33_spill] sm:$0xff] %v13703_v28  ;;  %v5486_v30 = vshll.u32 %v13703_v28, 30  ;;  %v5345_v17 = vshll.u32 %v16696_v8, %v5333_v18  ;;  %v5346_v25 = vshrl.u32 %v16697_v3, %v5334_v5  ;;  %v5348_v61 = vshll.u32 %v16697_v3, %v5333_v18 }
 0x66a   : > { %v5338_v12 = vor.u32 %v5337_v58, %v5336_v24  ;;  %v5341_v45 = vor.u32 %v5340_v63, %v5339_v47  ;;  %v5344_v57 = vor.u32 %v5343_v16, %v5342_v29  ;;  %v5349_v43 = vshrl.u32 %v16545_v36, %v5334_v5 }
 0x66b   : > { %v16737_v19 = vand.u32 2147483647, %v13285_v60  ;;  %v5193_v21 = vcvt.s32.f32 %v5186_v53  ;;  %v13722_v46 = vsub.s32 %v5483_v14, %v5486_v30  ;;  %v5347_v28 = vor.u32 %v5346_v25, %v5345_v17 }
 0x66c   : > { %vm5351_vm1 = vcmp.lt.s32.totalorder %v5332_v27, 1  ;;  %v13724_v39 = vpop.eup %9336  ;;  %v5191_v59 = vand.u32 2147483647, %v5190_v1  ;;  %v5335_v18 = vshrl.u32 %v16540_v33, %v5334_v5  ;;  %v5350_v24 = vor.u32 %v5349_v43, %v5348_v61 }
 0x66d   : > { %vm13718_vm11 = vcmp.le.f32.partialorder %v16737_v19, 0.7853982  ;;  %16740 = vst [vmem:[#allocation34_spill] sm:$0xff] %v13724_v39  ;;  %vm5354_vm15 = vcmp.lt.s32.totalorder %v5332_v27, 4  ;;  %v13727_v47 = vpop.eup %9338  ;;  %v5489_v29 = vsub.s32 0, %v13722_v46  ;;  %vm5352_vm8 = vcmp.lt.s32.totalorder %v5332_v27, 2 }
 0x66e   : > { %16741 = vst [vmem:[#allocation36_spill] sm:$0xff] %v13727_v47  ;;  %v5356_v58 = vsel %vm5354_vm15, %v5344_v57, 2102212464  ;;  %v5359_v63 = vsel %vm5351_vm1, %v5338_v12, %v5341_v45  ;;  %v13731_v53 = vpop.eup %9340  ;;  %vm5353_vm14 = vcmp.lt.s32.totalorder %v5332_v27, 3  ;;  %v5360_v14 = vsel %vm5354_vm15, %v5347_v28, 920167782  ;;  %v4315_v47 = vpop.permute.xlu0 %4314 }
 0x66f   : > { %16742 = vst [vmem:[#allocation21_spill] sm:$0xff] %v13731_v53  ;;  %v5363_v16 = vsel %vm5351_vm1, %v5341_v45, %v5344_v57  ;;  %v5364_v30 = vsel %vm5354_vm15, %v5350_v24, 1326507024  ;;  %v8355_v1 = vmin.u32 %v5489_v29, %v13722_v46  ;;  %v5355_v43 = vsel %vm5351_vm1, %v5335_v18, %v5338_v12 }
 0x670   : > { %v5357_v5 = vsel %vm5353_vm14, %v5341_v45, %v5356_v58  ;;  %v5361_v17 = vsel %vm5353_vm14, %v5344_v57, %v5360_v14  ;;  %v13736_v25 = vmul.f32 %v5193_v21, %v5191_v59  ;;  %v5365_v19 = vsel %vm5353_vm14, %v5347_v28, %v5364_v30 }
 0x671   : > { %v5362_v61 = vsel %vm5352_vm8, %v5359_v63, %v5361_v17  ;;  %v5367_v39 = vshll.u32 %v5327_v13, 8  ;;  %v5491_v35 = vclz %v8355_v1  ;;  %v5366_v53 = vsel %vm5352_vm8, %v5363_v16, %v5365_v19 }
 0x672   : > { %v5639_v56 = vor.u32 8388608, %v13697_v20  ;;  %v5641_v26 = vadd.s32 1, %v8362_v2  ;;  %v5358_v24 = vsel %vm5352_vm8, %v5355_v43, %v5357_v5  ;;  %v13746_v12 = vadd.f32 %v13253_v22, %v4315_v47 }
 0x673   : > { %v13742_v29 = vmul.u32.u64.low %v5367_v39, %v5366_v53  ;;  %v13743_v38 = vmul.u32.u64.high %v5367_v39, %v5366_v53, %v13742_v29  ;;  %v8356_v21 = vadd.s32 4294967294, %v5491_v35  ;;  %v13756_v13 = vsel %vm13718_vm11, %v13285_v60, %v13691_v6 }
 0x674   : > { %v13748_v59 = vmul.u32.u64.low %v5367_v39, %v5362_v61  ;;  %v13749_v45 = vmul.u32.u64.high %v5367_v39, %v5362_v61, %v13748_v59  ;;  %vm5642_vm14 = vcmp.gt.s32.totalorder %v5641_v26, 0  ;;  %v5195_v20 = vxor.u32 2147483648, %v13736_v25 }
 0x675   : > { %v5479_v27 = vadd.s32 %v13659_v48, %v13656_v62  ;;  %v5643_v2 = vsel %vm5642_vm14, %v5641_v26, 0  ;;  %vm8357_vm8 = vcmp.lt.s32.totalorder %v8356_v21, 0  ;;  %v5374_v22 = vmul.u32 %v5367_v39, %v5358_v24 }
 0x676   : > { %v5645_v35 = vand.u32 31, %v5643_v2  ;;  %v13761_v28 = vshll.u32 %v5639_v56, 8  ;;  %v5494_v57 = vsel %vm8357_vm8, 0, %v8356_v21  ;;  %vm5376_vm1 = vc.u32 %v13743_v38, %v13748_v59 }
 0x677   : > { %v16281_v18 = vand.u32 2147483647, %v13746_v12  ;;  %v5530_v6 = vand.u32 2139095040, %v13746_v12  ;;  %v5495_v47 = vsub.s32 32, %v5494_v57  ;;  %v5499_v58 = vsub.s32 4294967266, %v5494_v57 }
 0x678   : > { %v5377_v63 = vadd.s32 1, %v13749_v45  ;;  %v5644_v53 = vshrl.u32 %v5643_v2, 5  ;;  %v5496_v62 = vshll.u32 %v13722_v46, %v5494_v57  ;;  %v5646_v48 = vsub.s32 32, %v5645_v35 }
 0x679   : > { %v5648_v39 = vshll.u32 %v16540_v33, %v5645_v35  ;;  %v5651_v56 = vshll.u32 %v16694_v4, %v5645_v35  ;;  %v5497_v26 = vshrl.u32 %v5479_v27, %v5495_v47  ;;  %v5500_v14 = vadd.s32 127, %v5499_v58 }
 0x67a   : > { %v5378_v16 = vsel %vm5376_vm1, %v5377_v63, %v13749_v45  ;;  %v5654_v30 = vshll.u32 %v16695_v10, %v5645_v35  ;;  %vm16287_vm15 = vcmp.lt.s32.totalorder %v13382_v49, 0  ;;  %v5649_v43 = vshrl.u32 %v16694_v4, %v5646_v48 }
 0x67b   : > { %v5379_v1 = vadd.s32 %v5378_v16, %v5374_v22  ;;  %v5652_v5 = vshrl.u32 %v16695_v10, %v5646_v48  ;;  %v5657_v46 = vshll.u32 %v16696_v8, %v5645_v35  ;;  %v5498_v17 = vor.u32 %v5497_v26, %v5496_v62 }
 0x67c   : > { %v5501_v61 = vshll.u32 %v5500_v14, 23  ;;  %v5655_v19 = vshrl.u32 %v16696_v8, %v5646_v48  ;;  %v5658_v24 = vshrl.u32 %v16697_v3, %v5646_v48  ;;  %v5647_v21 = vshrl.u32 %v16540_v33, %v5646_v48 }
 0x67d   : > { %v5380_v29 = vadd.s32 536870912, %v5379_v1  ;;  %v5650_v45 = vor.u32 %v5649_v43, %v5648_v39  ;;  %v5653_v27 = vor.u32 %v5652_v5, %v5651_v56  ;;  %v5660_v47 = vshll.u32 %v16697_v3, %v5645_v35 }
 0x67e   : > { %v5502_v2 = vor.u32 4788187, %v5501_v61  ;;  %v5656_v57 = vor.u32 %v5655_v19, %v5654_v30  ;;  %v5659_v22 = vor.u32 %v5658_v24, %v5657_v46  ;;  %v5505_v58 = vcvt.s32.f32 %v5498_v17 }
 0x67f   : > { %v13781_v63 = vshrl.u32 %v5380_v29, 30  ;;  %v5661_v62 = vshrl.u32 %v16545_v36, %v5646_v48  ;;  %vm5663_vm14 = vcmp.lt.s32.totalorder %v5644_v53, 1  ;;  %v16744_v26 = vand.u32 2147483647, %v13382_v49 }
 0x680   : > { %v5503_v16 = vand.u32 2147483647, %v5502_v2  ;;  %vm5665_vm1 = vcmp.lt.s32.totalorder %v5644_v53, 3  ;;  %vm5666_vm5 = vcmp.lt.s32.totalorder %v5644_v53, 4  ;;  %v5667_v39 = vsel %vm5663_vm14, %v5647_v21, %v5650_v45 }
 0x681   : > { %16743 = vst [vmem:[#allocation29_spill] sm:$0xff] %v13781_v63  ;;  %vm13786_vm8 = vcmp.le.f32.partialorder %v16744_v26, 0.7853982  ;;  %v5382_v56 = vshll.u32 %v13781_v63, 30  ;;  %v5662_v30 = vor.u32 %v5661_v62, %v5660_v47  ;;  %v5668_v35 = vsel %vm5666_vm5, %v5656_v57, 2102212464 }
 0x682   : > { %v5671_v43 = vsel %vm5663_vm14, %v5650_v45, %v5653_v27  ;;  %v5506_v5 = vmul.f32 %v5505_v58, %v5503_v16  ;;  %v5669_v46 = vsel %vm5665_vm1, %v5653_v27, %v5668_v35  ;;  %v5672_v48 = vsel %vm5666_vm5, %v5659_v22, 920167782 }
 0x683   : > { %v5675_v17 = vsel %vm5663_vm14, %v5653_v27, %v5656_v57  ;;  %v13792_v61 = vsub.s32 %v5379_v1, %v5382_v56  ;;  %vm5664_vm3 = vcmp.lt.s32.totalorder %v5644_v53, 2  ;;  %v5673_v19 = vsel %vm5665_vm1, %v5656_v57, %v5672_v48  ;;  %v4330_v57 = vpop.permute.xlu1 %4329 }
 0x684   : > { %v5676_v24 = vsel %vm5666_vm5, %v5662_v30, 1326507024  ;;  %v5196_v29 = vsel %vm16287_vm15, %v5195_v20, %v13736_v25  ;;  %v5670_v21 = vsel %vm5664_vm3, %v5667_v39, %v5669_v46  ;;  %v5674_v2 = vsel %vm5664_vm3, %v5671_v43, %v5673_v19 }
 0x685   : > { %v5677_v45 = vsel %vm5665_vm1, %v5659_v22, %v5676_v24  ;;  %v5385_v47 = vsub.s32 0, %v13792_v61  ;;  %v13803_v1 = vmul.u32.u64.low %v13761_v28, %v5674_v2  ;;  %v13804_v27 = vmul.u32.u64.high %v13761_v28, %v5674_v2, %v13803_v1 }
 0x686   : > { %v5678_v58 = vsel %vm5664_vm3, %v5675_v17, %v5677_v45  ;;  %v5507_v62 = vxor.u32 2147483648, %v5506_v5  ;;  %v5531_v56 = vshrl.u32 %v5530_v6, 23  ;;  %9342 = vsinq.f32 %v13674_v40 }
 0x687   : > { %v13808_v26 = vmul.u32.u64.low %v13761_v28, %v5678_v58  ;;  %v13809_v16 = vmul.u32.u64.high %v13761_v28, %v5678_v58, %v13808_v26  ;;  %v8351_v25 = vmin.u32 %v5385_v47, %v13792_v61  ;;  %v5534_v20 = vand.u32 8388607, %v16281_v18 }
 0x688   : > { %v13816_v53 = vadd.f32 %v13334_v31, %v4330_v57  ;;  %9344 = vcosq.f32 %v13756_v13  ;;  %v16747_v22 = vand.u32 2147483647, %v13499_v55  ;;  %v16748_v39 = vmov 0 }
 0x689   : > { %vm16280_vm5 = vcmp.lt.s32.totalorder %v13499_v55, 0  ;;  %v8358_v6 = vadd.s32 4294967169, %v5531_v56  ;;  %v13829_v40 = vsel %vm13786_vm8, %v13382_v49, %v5196_v29  ;;  %v5387_v30 = vclz %v8351_v25 }
 0x68a   : > { %vm13821_vm3 = vcmp.le.f32.partialorder %v16747_v22, 0.7853982  ;;  %v5686_v31 = vmul.u32 %v13761_v28, %v5670_v21  ;;  %v5689_v35 = vadd.s32 1, %v13804_v27  ;;  %v5508_v43 = vsel %vm16280_vm5, %v5507_v62, %v5506_v5 }
 0x68b   : > { %v16749_v39 = vsel %vm13821_vm3, 4294967295, %v16748_v39  ;;  %vm5688_vm14 = vc.u32 %v13809_v16, %v13803_v1  ;;  %v5535_v46 = vor.u32 8388608, %v5534_v20  ;;  %v5537_v48 = vadd.s32 1, %v8358_v6 }
 0x68c   : > { %16750 = vst [vmem:[#allocation9_spill] sm:$0xff] %v16749_v39  ;;  %9346 = vsinq.f32 %v13756_v13  ;;  %v8352_v17 = vadd.s32 4294967294, %v5387_v30  ;;  %v5690_v19 = vsel %vm5688_vm14, %v5689_v35, %v13804_v27  ;;  %v5842_v24 = vand.u32 2139095040, %v13816_v53 }
 0x68d   : > { %9348 = vcosq.f32 %v13829_v40  ;;  %v5375_v28 = vadd.s32 %v13748_v59, %v13743_v38  ;;  %v5691_v29 = vadd.s32 %v5690_v19, %v5686_v31  ;;  %vm5538_vm1 = vcmp.gt.s32.totalorder %v5537_v48, 0 }
 0x68e   : > { %v13846_v5 = vsel %vm13821_vm3, %v13499_v55, %v5508_v43  ;;  %vm8353_vm5 = vcmp.lt.s32.totalorder %v8352_v17, 0  ;;  %v5539_v21 = vsel %vm5538_vm1, %v5537_v48, 0  ;;  %v13849_v58 = vshll.u32 %v5535_v46, 8 }
 0x68f   : > { %v5390_v2 = vsel %vm8353_vm5, 0, %v8352_v17  ;;  %v5692_v45 = vadd.s32 536870912, %v5691_v29  ;;  %v5541_v47 = vand.u32 31, %v5539_v21  ;;  %v13851_v62 = vshrl.u32 %v5539_v21, 5 }
 0x690   : > { %v5391_v27 = vsub.s32 32, %v5390_v2  ;;  %v5395_v57 = vsub.s32 4294967266, %v5390_v2  ;;  %v5843_v38 = vshrl.u32 %v5842_v24, 23  ;;  %v5392_v59 = vshll.u32 %v13792_v61, %v5390_v2  ;;  %v13857_v20 = vpop.eup %9342 }
 0x691   : > { %v13854_v26 = vshrl.u32 %v5692_v45, 30  ;;  %v5542_v56 = vsub.s32 32, %v5541_v47  ;;  %v5544_v25 = vshll.u32 %v16540_v33, %v5541_v47  ;;  %v5547_v30 = vshll.u32 %v16694_v4, %v5541_v47 }
 0x692   : > { %v5393_v22 = vshrl.u32 %v5375_v28, %v5391_v27  ;;  %v5396_v6 = vadd.s32 127, %v5395_v57  ;;  %v5550_v31 = vshll.u32 %v16695_v10, %v5541_v47  ;;  %v13861_v35 = vpop.eup %9344  ;;  %v5553_v48 = vshll.u32 %v16696_v8, %v5541_v47 }
 0x693   : > { %16751 = vst [vmem:[#allocation23_spill] sm:$0xff] %v13854_v26  ;;  %16752 = vst [vmem:[#allocation18_spill] sm:$0xff] %v13861_v35  ;;  %v5694_v43 = vshll.u32 %v13854_v26, 30  ;;  %v5545_v46 = vshrl.u32 %v16694_v4, %v5542_v56  ;;  %v5548_v61 = vshrl.u32 %v16695_v10, %v5542_v56  ;;  %v5551_v24 = vshrl.u32 %v16696_v8, %v5542_v56 }
 0x694   : > { %v5394_v17 = vor.u32 %v5393_v22, %v5392_v59  ;;  %v5397_v19 = vshll.u32 %v5396_v6, 23  ;;  %v5554_v28 = vshrl.u32 %v16697_v3, %v5542_v56  ;;  %v8370_v27 = vadd.s32 4294967169, %v5843_v38 }
 0x695   : > { %v13869_v21 = vsub.s32 %v5691_v29, %v5694_v43  ;;  %v5546_v2 = vor.u32 %v5545_v46, %v5544_v25  ;;  %v5549_v45 = vor.u32 %v5548_v61, %v5547_v30  ;;  %v5543_v13 = vshrl.u32 %v16540_v33, %v5542_v56 }
 0x696   : > { %v13871_v57 = vpop.eup %9346  ;;  %v5398_v18 = vor.u32 4788187, %v5397_v19  ;;  %v5552_v26 = vor.u32 %v5551_v24, %v5550_v31  ;;  %v5555_v39 = vor.u32 %v5554_v28, %v5553_v48  ;;  %v5401_v59 = vcvt.s32.f32 %v5394_v17 }
 0x697   : > { %v13874_v55 = vpop.eup %9348  ;;  %v5697_v22 = vsub.s32 0, %v13869_v21  ;;  %v5556_v6 = vshll.u32 %v16697_v3, %v5541_v47  ;;  %v5557_v29 = vshrl.u32 %v16545_v36, %v5542_v56  ;;  %vm16294_vm5 = vcmp.lt.s32.totalorder %v13586_v41, 0 }
 0x698   : > { %v5399_v25 = vand.u32 2147483647, %v5398_v18  ;;  %vm5559_vm14 = vcmp.lt.s32.totalorder %v13851_v62, 1  ;;  %vm5560_vm1 = vcmp.lt.s32.totalorder %v13851_v62, 2  ;;  %vm5562_vm15 = vcmp.lt.s32.totalorder %v13851_v62, 4 }
 0x699   : > { %v8363_v38 = vmin.u32 %v5697_v22, %v13869_v21  ;;  %v5558_v30 = vor.u32 %v5557_v29, %v5556_v6  ;;  %v5564_v31 = vsel %vm5562_vm15, %v5552_v26, 2102212464  ;;  %v5567_v43 = vsel %vm5559_vm14, %v5546_v2, %v5549_v45 }
 0x69a   : > { %v5402_v46 = vmul.f32 %v5401_v59, %v5399_v25  ;;  %vm5561_vm0 = vcmp.lt.s32.totalorder %v13851_v62, 3  ;;  %v5568_v47 = vsel %vm5562_vm15, %v5555_v39, 920167782  ;;  %v5571_v61 = vsel %vm5559_vm14, %v5549_v45, %v5552_v26 }
 0x69b   : > { %v16753_v56 = vand.u32 2147483647, %v13586_v41  ;;  %v16754_v18 = vmov 0  ;;  %v5699_v48 = vclz %v8363_v38  ;;  %v5563_v17 = vsel %vm5559_vm14, %v5543_v13, %v5546_v2 }
 0x69c   : > { %v5569_v19 = vsel %vm5561_vm0, %v5552_v26, %v5568_v47  ;;  %v5572_v24 = vsel %vm5562_vm15, %v5558_v30, 1326507024  ;;  %v5403_v28 = vxor.u32 2147483648, %v5402_v46  ;;  %v5565_v22 = vsel %vm5561_vm0, %v5549_v45, %v5564_v31  ;;  %v4325_v45 = vpop.permute.xlu0 %4324  ;;  %v4340_v30 = vpop.permute.xlu1 %4339 }
 0x69d   : > { %vm13887_vm10 = vcmp.le.f32.partialorder %v16753_v56, 0.7853982  ;;  %v5570_v6 = vsel %vm5560_vm1, %v5567_v43, %v5569_v19  ;;  %v5573_v59 = vsel %vm5561_vm0, %v5555_v39, %v5572_v24  ;;  %v8364_v29 = vadd.s32 4294967294, %v5699_v48 }
 0x69e   : > { %v16755_v18 = vsel %vm13887_vm10, 4294967295, %v16754_v18  ;;  %v5574_v25 = vsel %vm5560_vm1, %v5571_v61, %v5573_v59  ;;  %v13896_v63 = vmul.u32.u64.low %v13849_v58, %v5570_v6  ;;  %v13897_v56 = vmul.u32.u64.high %v13849_v58, %v5570_v6, %v13896_v63 }
 0x69f   : > { %16756 = vst [vmem:[#allocation25_spill] sm:$0xff] %v16755_v18  ;;  %9350 = vsinq.f32 %v13829_v40  ;;  %v13902_v13 = vmul.u32.u64.low %v13849_v58, %v5574_v25  ;;  %v13903_v26 = vmul.u32.u64.high %v13849_v58, %v5574_v25, %v13902_v13  ;;  %v5849_v2 = vadd.s32 1, %v8370_v27 }
 0x6a0   : > { %9352 = vcosq.f32 %v13846_v5  ;;  %v5687_v39 = vadd.s32 %v13803_v1, %v13809_v16  ;;  %vm8365_vm0 = vcmp.lt.s32.totalorder %v8364_v29, 0  ;;  %v5566_v38 = vsel %vm5560_vm1, %v5563_v17, %v5565_v22 }
 0x6a1   : > { %v5702_v31 = vsel %vm8365_vm0, 0, %v8364_v29  ;;  %v16757_v43 = vand.u32 2147483647, %v13816_v53  ;;  %vm5850_vm15 = vcmp.gt.s32.totalorder %v5849_v2, 0  ;;  %v13915_v47 = vadd.f32 %v13398_v51, %v4325_v45 }
 0x6a2   : > { %v5404_v27 = vsel %vm16294_vm5, %v5403_v28, %v5402_v46  ;;  %v5703_v61 = vsub.s32 32, %v5702_v31  ;;  %v5707_v48 = vsub.s32 4294967266, %v5702_v31  ;;  %v13920_v1 = vadd.f32 %v13501_v9, %v4340_v30 }
 0x6a3   : > { %v13912_v40 = vand.u32 8388607, %v16757_v43  ;;  %v5582_v16 = vmul.u32 %v13849_v58, %v5566_v38  ;;  %vm5584_vm14 = vc.u32 %v13903_v26, %v13896_v63  ;;  %v5585_v62 = vadd.s32 1, %v13897_v56 }
 0x6a4   : > { %v5851_v17 = vsel %vm5850_vm15, %v5849_v2, 0  ;;  %v5704_v19 = vshll.u32 %v13869_v21, %v5702_v31  ;;  %v5705_v51 = vshrl.u32 %v5687_v39, %v5703_v61  ;;  %v5708_v24 = vadd.s32 127, %v5707_v48 }
 0x6a5   : > { %v5853_v22 = vand.u32 31, %v5851_v17  ;;  %v13930_v46 = vsel %vm13887_vm10, %v13586_v41, %v5404_v27  ;;  %v5586_v9 = vsel %vm5584_vm14, %v5585_v62, %v13897_v56  ;;  %v5847_v58 = vor.u32 8388608, %v13912_v40 }
 0x6a6   : > { %v5706_v6 = vor.u32 %v5705_v51, %v5704_v19  ;;  %v5709_v59 = vshll.u32 %v5708_v24, 23  ;;  %v5587_v29 = vadd.s32 %v5586_v9, %v5582_v16  ;;  %v5852_v13 = vshrl.u32 %v5851_v17, 5 }
 0x6a7   : > { %v5854_v25 = vsub.s32 32, %v5853_v22  ;;  %v5856_v21 = vshll.u32 %v16540_v33, %v5853_v22  ;;  %v5859_v2 = vshll.u32 %v16694_v4, %v5853_v22  ;;  %v5862_v45 = vshll.u32 %v16695_v10, %v5853_v22 }
 0x6a8   : > { %v5710_v39 = vor.u32 4788187, %v5709_v59  ;;  %v5713_v38 = vcvt.s32.f32 %v5706_v6  ;;  %v5588_v30 = vadd.s32 536870912, %v5587_v29  ;;  %v5865_v56 = vshll.u32 %v16696_v8, %v5853_v22 }
 0x6a9   : > { %v13939_v31 = vpop.eup %9350  ;;  %vm16307_vm1 = vcmp.lt.s32.totalorder %v13652_v42, 0  ;;  %v5857_v43 = vshrl.u32 %v16694_v4, %v5854_v25  ;;  %v5860_v40 = vshrl.u32 %v16695_v10, %v5854_v25  ;;  %v5863_v27 = vshrl.u32 %v16696_v8, %v5854_v25 }
 0x6aa   : > { %v5866_v61 = vshrl.u32 %v16697_v3, %v5854_v25  ;;  %v13946_v48 = vpop.eup %9352  ;;  %v5711_v16 = vand.u32 2147483647, %v5710_v39  ;;  %v13948_v62 = vshrl.u32 %v5588_v30, 30  ;;  %v5868_v17 = vshll.u32 %v16697_v3, %v5853_v22 }
 0x6ab   : > { %16758 = vst [vmem:[#allocation35_spill] sm:$0xff] %v13946_v48  ;;  %v5869_v19 = vshrl.u32 %v16545_v36, %v5854_v25  ;;  %v5858_v51 = vor.u32 %v5857_v43, %v5856_v21  ;;  %v5861_v24 = vor.u32 %v5860_v40, %v5859_v2  ;;  %v5864_v9 = vor.u32 %v5863_v27, %v5862_v45 }
 0x6ac   : > { %16759 = vst [vmem:[#allocation16_spill] sm:$0xff] %v13948_v62  ;;  %v5867_v6 = vor.u32 %v5866_v61, %v5865_v56  ;;  %v16760_v59 = vand.u32 2147483647, %v13652_v42  ;;  %v16761_v28 = vmov 0  ;;  %v5714_v18 = vmul.f32 %v5713_v38, %v5711_v16 }
 0x6ad   : > { %v5590_v48 = vshll.u32 %v13948_v62, 30  ;;  %v5870_v39 = vor.u32 %v5869_v19, %v5868_v17  ;;  %v5738_v30 = vand.u32 2139095040, %v13915_v47  ;;  %v5855_v22 = vshrl.u32 %v16540_v33, %v5854_v25 }
 0x6ae   : > { %vm13954_vm0 = vcmp.le.f32.partialorder %v16760_v59, 0.7853982  ;;  %vm5871_vm15 = vcmp.lt.s32.totalorder %v5852_v13, 1  ;;  %vm5872_vm14 = vcmp.lt.s32.totalorder %v5852_v13, 2  ;;  %vm5874_vm5 = vcmp.lt.s32.totalorder %v5852_v13, 4 }
 0x6af   : > { %v16762_v28 = vsel %vm13954_vm0, 4294967295, %v16761_v28  ;;  %v5715_v21 = vxor.u32 2147483648, %v5714_v18  ;;  %v13961_v2 = vsub.s32 %v5587_v29, %v5590_v48  ;;  %v5876_v45 = vsel %vm5874_vm5, %v5864_v9, 2102212464 }
 0x6b0   : > { %16763 = vst [vmem:[#allocation20_spill] sm:$0xff] %v16762_v28  ;;  %v5879_v56 = vsel %vm5871_vm15, %v5858_v51, %v5861_v24  ;;  %vm5873_vm4 = vcmp.lt.s32.totalorder %v5852_v13, 3  ;;  %v5880_v43 = vsel %vm5874_vm5, %v5867_v6, 920167782  ;;  %v5883_v40 = vsel %vm5871_vm15, %v5861_v24, %v5864_v9 }
 0x6b1   : > { %v5884_v27 = vsel %vm5874_vm5, %v5870_v39, 1326507024  ;;  %v5593_v38 = vsub.s32 0, %v13961_v2  ;;  %v5875_v61 = vsel %vm5871_vm15, %v5855_v22, %v5858_v51  ;;  %v5877_v16 = vsel %vm5873_vm4, %v5861_v24, %v5876_v45 }
 0x6b2   : > { %v5881_v17 = vsel %vm5873_vm4, %v5864_v9, %v5880_v43  ;;  %v5885_v25 = vsel %vm5873_vm4, %v5867_v6, %v5884_v27  ;;  %v5887_v59 = vshll.u32 %v5847_v58, 8  ;;  %v16764_v62 = vand.u32 2147483647, %v13915_v47 }
 0x6b3   : > { %v5882_v19 = vsel %vm5872_vm14, %v5879_v56, %v5881_v17  ;;  %v5716_v29 = vsel %vm16307_vm1, %v5715_v21, %v5714_v18  ;;  %v8359_v48 = vmin.u32 %v5593_v38, %v13961_v2  ;;  %v5886_v35 = vsel %vm5872_vm14, %v5883_v40, %v5885_v25  ;;  %v4335_v40 = vpop.permute.xlu0 %4334 }
 0x6b4   : > { %v5742_v41 = vand.u32 8388607, %v16764_v62  ;;  %v5739_v39 = vshrl.u32 %v5738_v30, 23  ;;  %9354 = vsinq.f32 %v13846_v5  ;;  %v5878_v51 = vsel %vm5872_vm14, %v5875_v61, %v5877_v16 }
 0x6b5   : > { %v13973_v24 = vmul.u32.u64.low %v5887_v59, %v5886_v35  ;;  %v13974_v9 = vmul.u32.u64.high %v5887_v59, %v5886_v35, %v13973_v24  ;;  %v5595_v6 = vclz %v8359_v48  ;;  %9356 = vcosq.f32 %v13930_v46 }
 0x6b6   : > { %v13976_v58 = vmul.u32.u64.low %v5887_v59, %v5882_v19  ;;  %v13977_v22 = vmul.u32.u64.high %v5887_v59, %v5882_v19, %v13976_v58  ;;  %v8366_v62 = vadd.s32 4294967169, %v5739_v39  ;;  %v13984_v18 = vsel %vm13954_vm0, %v13652_v42, %v5716_v29 }
 0x6b7   : > { %v5743_v30 = vor.u32 8388608, %v5742_v41  ;;  %v6050_v5 = vand.u32 2139095040, %v13920_v1  ;;  %9358 = vsinq.f32 %v13930_v46  ;;  %v5583_v35 = vadd.s32 %v13896_v63, %v13903_v26 }
 0x6b8   : > { %v8360_v13 = vadd.s32 4294967294, %v5595_v6  ;;  %v5745_v21 = vadd.s32 1, %v8366_v62  ;;  %v5894_v45 = vmul.u32 %v5887_v59, %v5878_v51  ;;  %vm5896_vm4 = vc.u32 %v13974_v9, %v13976_v58 }
 0x6b9   : > { %v16301_v56 = vand.u32 2147483647, %v13920_v1  ;;  %v6051_v43 = vshrl.u32 %v6050_v5, 23  ;;  %9360 = vcosq.f32 %v13984_v18  ;;  %v5897_v41 = vadd.s32 1, %v13977_v22 }
 0x6ba   : > { %vm8361_vm5 = vcmp.lt.s32.totalorder %v8360_v13, 0  ;;  %vm5746_vm15 = vcmp.gt.s32.totalorder %v5745_v21, 0  ;;  %v13995_v38 = vshll.u32 %v5743_v30, 8  ;;  %v13999_v17 = vadd.f32 %v13561_v52, %v4335_v40 }
 0x6bb   : > { %v5598_v46 = vsel %vm8361_vm5, 0, %v8360_v13  ;;  %v5747_v27 = vsel %vm5746_vm15, %v5745_v21, 0  ;;  %v8378_v63 = vadd.s32 4294967169, %v6051_v43  ;;  %v5898_v16 = vsel %vm5896_vm4, %v5897_v41, %v13977_v22 }
 0x6bc   : > { %v5599_v26 = vsub.s32 32, %v5598_v46  ;;  %v5603_v61 = vsub.s32 4294967266, %v5598_v46  ;;  %v5600_v19 = vshll.u32 %v13961_v2, %v5598_v46  ;;  %v5899_v25 = vadd.s32 %v5898_v16, %v5894_v45 }
 0x6bd   : > { %v5749_v59 = vand.u32 31, %v5747_v27  ;;  %v14004_v29 = vand.u32 8388607, %v16301_v56  ;;  %v5748_v51 = vshrl.u32 %v5747_v27, 5  ;;  %v14006_v24 = vadd.s32 1, %v8378_v63 }
 0x6be   : > { %v5601_v48 = vshrl.u32 %v5583_v35, %v5599_v26  ;;  %v5604_v39 = vadd.s32 127, %v5603_v61  ;;  %v14008_v6 = vpop.eup %9354  ;;  %v5900_v62 = vadd.s32 536870912, %v5899_v25  ;;  %9362 = vsinq.f32 %v13984_v18 }
 0x6bf   : > { %16765 = vst [vmem:[#allocation6_spill] sm:$0xff] %v14008_v6  ;;  %v5750_v22 = vsub.s32 32, %v5749_v59  ;;  %v5752_v52 = vshll.u32 %v16540_v33, %v5749_v59  ;;  %v5755_v30 = vshll.u32 %v16694_v4, %v5749_v59  ;;  %v5758_v13 = vshll.u32 %v16695_v10, %v5749_v59  ;;  %v14014_v45 = vpop.eup %9356 }
 0x6c0   : > { %v5602_v2 = vor.u32 %v5601_v48, %v5600_v19  ;;  %v5605_v5 = vshll.u32 %v5604_v39, 23  ;;  %v5761_v21 = vshll.u32 %v16696_v8, %v5749_v59  ;;  %16766 = vst [vmem:[#allocation40_spill] sm:$0xff] %v14014_v45  ;;  %v14016_v35 = vshrl.u32 %v5900_v62, 30 }
 0x6c1   : > { %v5751_v43 = vshrl.u32 %v16540_v33, %v5750_v22  ;;  %v5753_v41 = vshrl.u32 %v16694_v4, %v5750_v22  ;;  %v5756_v40 = vshrl.u32 %v16695_v10, %v5750_v22  ;;  %v14021_v46 = vpop.eup %9358  ;;  %v5759_v26 = vshrl.u32 %v16696_v8, %v5750_v22 }
 0x6c2   : > { %v5606_v27 = vor.u32 4788187, %v5605_v5  ;;  %v5609_v63 = vcvt.s32.f32 %v5602_v2  ;;  %v5762_v61 = vshrl.u32 %v16697_v3, %v5750_v22  ;;  %v5902_v16 = vshll.u32 %v14016_v35, 30 }
 0x6c3   : > { %v5754_v19 = vor.u32 %v5753_v41, %v5752_v52  ;;  %v5757_v48 = vor.u32 %v5756_v40, %v5755_v30  ;;  %v5764_v39 = vshll.u32 %v16697_v3, %v5749_v59  ;;  %v14028_v62 = vpop.eup %9360  ;;  %v5760_v28 = vor.u32 %v5759_v26, %v5758_v13 }
 0x6c4   : > { %v5607_v56 = vand.u32 2147483647, %v5606_v27  ;;  %v5763_v42 = vor.u32 %v5762_v61, %v5761_v21  ;;  %v5765_v6 = vshrl.u32 %v16545_v36, %v5750_v22  ;;  %v16767_v5 = vand.u32 2147483647, %v13746_v12  ;;  %v476_v22 = vld [vmem:[%s16035_s7] sm:$0xff] }
 0x6c5   : > { %v16768_v2 = vmov 0  ;;  %v14037_v45 = vsub.s32 %v5899_v25, %v5902_v16  ;;  %vm5767_vm5 = vcmp.lt.s32.totalorder %v5748_v51, 1  ;;  %vm5768_vm15 = vcmp.lt.s32.totalorder %v5748_v51, 2  ;;  %8706 = vmatprep.mubr.f32.mxu0 %v476_v22 }
 0x6c6   : > { %vm14033_vm4 = vcmp.le.f32.partialorder %v16767_v5, 0.7853982  ;;  %vm5769_vm1 = vcmp.lt.s32.totalorder %v5748_v51, 3  ;;  %v5610_v52 = vmul.f32 %v5609_v63, %v5607_v56  ;;  %v5766_v59 = vor.u32 %v5765_v6, %v5764_v39 }
 0x6c7   : > { %v16769_v2 = vsel %vm14033_vm4, 4294967295, %v16768_v2  ;;  %vm5770_vm14 = vcmp.lt.s32.totalorder %v5748_v51, 4  ;;  %v5771_v30 = vsel %vm5767_vm5, %v5751_v43, %v5754_v19  ;;  %v5905_v13 = vsub.s32 0, %v14037_v45 }
 0x6c8   : > { %v5772_v21 = vsel %vm5770_vm14, %v5760_v28, 2102212464  ;;  %v5775_v41 = vsel %vm5767_vm5, %v5754_v19, %v5757_v48  ;;  %v5776_v40 = vsel %vm5770_vm14, %v5763_v42, 920167782  ;;  %v5611_v25 = vxor.u32 2147483648, %v5610_v52 }
 0x6c9   : > { %v5773_v27 = vsel %vm5769_vm1, %v5757_v48, %v5772_v21  ;;  %v5777_v56 = vsel %vm5769_vm1, %v5760_v28, %v5776_v40  ;;  %v5779_v6 = vsel %vm5767_vm5, %v5757_v48, %v5760_v28  ;;  %v8371_v43 = vmin.u32 %v5905_v13, %v14037_v45 }
 0x6ca   : > { %v5778_v63 = vsel %vm5768_vm15, %v5775_v41, %v5777_v56  ;;  %v5780_v26 = vsel %vm5770_vm14, %v5766_v59, 1326507024  ;;  %v6055_v39 = vor.u32 8388608, %v14004_v29  ;;  %vm16770_vm0 = vcmp.lt.s32.totalorder %v13746_v12, 0 }
 0x6cb   : > { %v5781_v61 = vsel %vm5769_vm1, %v5763_v42, %v5780_v26  ;;  %v14053_v16 = vmul.u32.u64.low %v13995_v38, %v5778_v63  ;;  %v14054_v19 = vmul.u32.u64.high %v13995_v38, %v5778_v63, %v14053_v16  ;;  %v5612_v5 = vsel %vm16770_vm0, %v5611_v25, %v5610_v52 }
 0x6cc   : > { %v5907_v28 = vclz %v8371_v43  ;;  %v5774_v18 = vsel %vm5768_vm15, %v5771_v30, %v5773_v27  ;;  %v5782_v48 = vsel %vm5768_vm15, %v5779_v6, %v5781_v61  ;;  %vm6058_vm1 = vcmp.gt.s32.totalorder %v14006_v24, 0 }
 0x6cd   : > { %v14063_v22 = vmul.u32.u64.low %v13995_v38, %v5782_v48  ;;  %v14064_v59 = vmul.u32.u64.high %v13995_v38, %v5782_v48, %v14063_v22  ;;  %v16309_v42 = vand.u32 2147483647, %v13999_v17  ;;  %v5895_v13 = vadd.s32 %v13976_v58, %v13974_v9 }
 0x6ce   : > { %v8372_v29 = vadd.s32 4294967294, %v5907_v28  ;;  %v6059_v21 = vsel %vm6058_vm1, %v14006_v24, 0  ;;  %v4573_v52 = vsub.s32 4, %v13186_v15  ;;  %v14075_v51 = vsel %vm14033_vm4, %v13746_v12, %v5612_v5  ;;  %v14095_v28 = vpop.eup %9362 }
 0x6cf   : > { %v5790_v30 = vmul.u32 %v13995_v38, %v5774_v18  ;;  %v5793_v41 = vadd.s32 1, %v14054_v19  ;;  %v6061_v40 = vand.u32 31, %v6059_v21  ;;  %v14079_v25 = vshrl.u32 %v6059_v21, 5 }
 0x6d0   : > { %vm8373_vm0 = vcmp.lt.s32.totalorder %v8372_v29, 0  ;;  %v14081_v27 = vshll.u32 %v6055_v39, 8  ;;  %vm5792_vm14 = vc.u32 %v14064_v59, %v14053_v16  ;;  %v14088_v56 = vand.u32 8388607, %v16309_v42 }
 0x6d1   : > { %v5910_v58 = vsel %vm8373_vm0, 0, %v8372_v29  ;;  %v6062_v24 = vsub.s32 32, %v6061_v40  ;;  %v5794_v63 = vsel %vm5792_vm14, %v5793_v41, %v14054_v19  ;;  %v6064_v39 = vshll.u32 %v16540_v33, %v6061_v40 }
 0x6d2   : > { %v5911_v38 = vsub.s32 32, %v5910_v58  ;;  %v5912_v6 = vshll.u32 %v14037_v45, %v5910_v58  ;;  %v5915_v43 = vsub.s32 4294967266, %v5910_v58  ;;  %v5795_v26 = vadd.s32 %v5794_v63, %v5790_v30 }
 0x6d3   : > { %v6063_v61 = vshrl.u32 %v16540_v33, %v6062_v24  ;;  %v6065_v5 = vshrl.u32 %v16694_v4, %v6062_v24  ;;  %v6067_v22 = vshll.u32 %v16694_v4, %v6061_v40  ;;  %v6068_v29 = vshrl.u32 %v16695_v10, %v6062_v24 }
 0x6d4   : > { %v5913_v18 = vshrl.u32 %v5895_v13, %v5911_v38  ;;  %v5916_v48 = vadd.s32 127, %v5915_v43  ;;  %v5796_v21 = vadd.s32 536870912, %v5795_v26  ;;  %v6070_v58 = vshll.u32 %v16695_v10, %v6061_v40 }
 0x6d5   : > { %v6066_v45 = vor.u32 %v6065_v5, %v6064_v39  ;;  %v6071_v19 = vshrl.u32 %v16696_v8, %v6062_v24  ;;  %v6069_v63 = vor.u32 %v6068_v29, %v6067_v22  ;;  %v6073_v42 = vshll.u32 %v16696_v8, %v6061_v40 }
 0x6d6   : > { %v5914_v30 = vor.u32 %v5913_v18, %v5912_v6  ;;  %v5917_v41 = vshll.u32 %v5916_v48, 23  ;;  %v14103_v9 = vshrl.u32 %v5796_v21, 30  ;;  %v6074_v38 = vshrl.u32 %v16697_v3, %v6062_v24 }
 0x6d7   : > { %v6072_v13 = vor.u32 %v6071_v19, %v6070_v58  ;;  %v6076_v43 = vshll.u32 %v16697_v3, %v6061_v40  ;;  %v16771_v39 = vand.u32 2147483647, %v13816_v53  ;;  %v16772_v5 = vmov 0 }
 0x6d8   : > { %v5918_v6 = vor.u32 4788187, %v5917_v41  ;;  %v5921_v18 = vcvt.s32.f32 %v5914_v30  ;;  %v6077_v48 = vshrl.u32 %v16545_v36, %v6062_v24  ;;  %vm6079_vm1 = vcmp.lt.s32.totalorder %v14079_v25, 1 }
 0x6d9   : > { %vm14109_vm15 = vcmp.le.f32.partialorder %v16771_v39, 0.7853982  ;;  %v5798_v22 = vshll.u32 %v14103_v9, 30  ;;  %v6075_v29 = vor.u32 %v6074_v38, %v6073_v42  ;;  %vm6080_vm0 = vcmp.lt.s32.totalorder %v14079_v25, 2 }
 0x6da   : > { %v16773_v5 = vsel %vm14109_vm15, 4294967295, %v16772_v5  ;;  %vm6081_vm14 = vcmp.lt.s32.totalorder %v14079_v25, 3  ;;  %v5919_v40 = vand.u32 2147483647, %v5918_v6  ;;  %v6078_v21 = vor.u32 %v6077_v48, %v6076_v43 }
 0x6db   : > { %vm6082_vm5 = vcmp.lt.s32.totalorder %v14079_v25, 4  ;;  %v6083_v58 = vsel %vm6079_vm1, %v6063_v61, %v6066_v45  ;;  %v14121_v19 = vsub.s32 %v5795_v26, %v5798_v22  ;;  %v6087_v24 = vsel %vm6079_vm1, %v6066_v45, %v6069_v63 }
 0x6dc   : > { %v6084_v30 = vsel %vm6082_vm5, %v6072_v13, 2102212464  ;;  %v6088_v41 = vsel %vm6082_vm5, %v6075_v29, 920167782  ;;  %v5922_v39 = vmul.f32 %v5921_v18, %v5919_v40  ;;  %v6091_v43 = vsel %vm6079_vm1, %v6069_v63, %v6072_v13 }
 0x6dd   : > { %v6085_v42 = vsel %vm6081_vm14, %v6069_v63, %v6084_v30  ;;  %v6089_v38 = vsel %vm6081_vm14, %v6072_v13, %v6088_v41  ;;  %v5801_v6 = vsub.s32 0, %v14121_v19  ;;  %v6092_v61 = vsel %vm6082_vm5, %v6078_v21, 1326507024 }
 0x6de   : > { %v6090_v26 = vsel %vm6080_vm0, %v6087_v24, %v6089_v38  ;;  %vm16774_vm4 = vcmp.lt.s32.totalorder %v13050_v11, 0  ;;  %v5923_v18 = vxor.u32 2147483648, %v5922_v39  ;;  %v6093_v48 = vsel %vm6081_vm14, %v6075_v29, %v6092_v61 }
 0x6df   : > { %v4574_v45 = vsel %vm16774_vm4, %v4573_v52, %v13186_v15  ;;  %v14142_v22 = vmul.u32.u64.low %v14081_v27, %v6090_v26  ;;  %v14143_v40 = vmul.u32.u64.high %v14081_v27, %v6090_v26, %v14142_v22  ;;  %v8367_v63 = vmin.u32 %v5801_v6, %v14121_v19 }
 0x6e0   : > { %v6086_v13 = vsel %vm6080_vm0, %v6083_v58, %v6085_v42  ;;  %v6094_v21 = vsel %vm6080_vm0, %v6091_v43, %v6093_v48  ;;  %v16775_v30 = vand.u32 2139095040, %v13999_v17  ;;  %vm16776_vm4 = vcmp.lt.s32.totalorder %v13816_v53, 0 }
 0x6e1   : > { %v5924_v52 = vsel %vm16776_vm4, %v5923_v18, %v5922_v39  ;;  %v14156_v29 = vmul.u32.u64.low %v14081_v27, %v6094_v21  ;;  %v14157_v24 = vmul.u32.u64.high %v14081_v27, %v6094_v21, %v14156_v29  ;;  %v5951_v41 = vor.u32 8388608, %v14088_v56 }
 0x6e2   : > { %v5947_v15 = vshrl.u32 %v16775_v30, 23  ;;  %v5927_v38 = vsel %vm14109_vm15, %v13816_v53, %v5924_v52  ;;  %v5803_v58 = vclz %v8367_v63  ;;  %v4576_v25 = vsel %vm13388_vm2, 0, %v4574_v45 }
 0x6e3   : > { %9364 = vcosq.f32 %v14075_v51  ;;  %v6105_v43 = vadd.s32 1, %v14143_v40  ;;  %v5791_v39 = vadd.s32 %v14053_v16, %v14064_v59  ;;  %v6102_v26 = vmul.u32 %v14081_v27, %v6086_v13 }
 0x6e4   : > { %v8374_v42 = vadd.s32 4294967169, %v5947_v15  ;;  %9366 = vsinq.f32 %v14075_v51  ;;  %v8368_v6 = vadd.s32 4294967294, %v5803_v58  ;;  %vm6104_vm5 = vc.u32 %v14157_v24, %v14142_v22 }
 0x6e5   : > { %9368 = vcosq.f32 %v5927_v38  ;;  %v4580_v61 = vadd.s32 3, %v4576_v25  ;;  %v6106_v54 = vsel %vm6104_vm5, %v6105_v43, %v14143_v40  ;;  %v14174_v45 = vshll.u32 %v5951_v41, 8 }
 0x6e6   : > { %v5953_v56 = vadd.s32 1, %v8374_v42  ;;  %vm8369_vm1 = vcmp.lt.s32.totalorder %v8368_v6, 0  ;;  %9370 = vsinq.f32 %v5927_v38  ;;  %v6107_v18 = vadd.s32 %v6106_v54, %v6102_v26 }
 0x6e7   : > { %v5806_v51 = vsel %vm8369_vm1, 0, %v8368_v6  ;;  %v14179_v30 = vand.u32 3, %v4580_v61  ;;  %vm16782_vm15 = vcmp.lt.s32.totalorder %v13915_v47, 0 }
 0x6e8   : > { %vm5954_vm2 = vcmp.gt.s32.totalorder %v5953_v56, 0  ;;  %v5807_v16 = vsub.s32 32, %v5806_v51  ;;  %v5811_v59 = vsub.s32 4294967266, %v5806_v51  ;;  %v6108_v13 = vadd.s32 536870912, %v6107_v18 }
 0x6e9   : > { %v5955_v48 = vsel %vm5954_vm2, %v5953_v56, 0  ;;  %v5808_v40 = vshll.u32 %v14121_v19, %v5806_v51  ;;  %vm4583_vm4 = vcmp.eq.s32.totalorder %v14179_v30, 0 }
 0x6ea   : > { %v14176_v63 = vshrl.u32 %v5955_v48, 5  ;;  %v5957_v21 = vand.u32 31, %v5955_v48  ;;  %v5809_v52 = vshrl.u32 %v5791_v39, %v5807_v16  ;;  %v5812_v29 = vadd.s32 127, %v5811_v59 }
 0x6eb   : > { %v14184_v38 = vshrl.u32 %v6108_v13, 30 }
 0x6ec   : > { %v5958_v58 = vsub.s32 32, %v5957_v21  ;;  %v5960_v42 = vshll.u32 %v16540_v33, %v5957_v21  ;;  %vm5975_vm0 = vcmp.lt.s32.totalorder %v14176_v63, 1  ;;  %v5810_v25 = vor.u32 %v5809_v52, %v5808_v40 }
 0x6ed   : > { %16777 = vst [vmem:[#allocation39_spill] sm:$0xff] %v14184_v38  ;;  %v5813_v43 = vshll.u32 %v5812_v29, 23  ;;  %v5963_v6 = vshll.u32 %v16694_v4, %v5957_v21  ;;  %v5966_v56 = vshll.u32 %v16695_v10, %v5957_v21  ;;  %vm5976_vm14 = vcmp.lt.s32.totalorder %v14176_v63, 2  ;;  %v14191_v19 = vpop.eup %9364 }
 0x6ee   : > { %v6110_v39 = vshll.u32 %v14184_v38, 30  ;;  %v5961_v26 = vshrl.u32 %v16694_v4, %v5958_v58  ;;  %v5964_v61 = vshrl.u32 %v16695_v10, %v5958_v58  ;;  %v5969_v54 = vshll.u32 %v16696_v8, %v5957_v21  ;;  %v14198_v51 = vpop.eup %9366 }
 0x6ef   : > { %v5814_v48 = vor.u32 4788187, %v5813_v43  ;;  %v5817_v16 = vcvt.s32.f32 %v5810_v25  ;;  %v5967_v59 = vshrl.u32 %v16696_v8, %v5958_v58  ;;  %v5970_v13 = vshrl.u32 %v16697_v3, %v5958_v58  ;;  %v14202_v40 = vpop.eup %9368 }
 0x6f0   : > { %16778 = vst [vmem:[#allocation41_spill] sm:$0xff] %v14202_v40  ;;  %v16779_v52 = vand.u32 2147483647, %v13915_v47  ;;  %v14210_v15 = vsub.s32 %v6107_v18, %v6110_v39  ;;  %v5962_v41 = vor.u32 %v5961_v26, %v5960_v42  ;;  %v5965_v27 = vor.u32 %v5964_v61, %v5963_v6  ;;  %v14214_v38 = vpop.eup %9370 }
 0x6f1   : > { %v5972_v10 = vshll.u32 %v16697_v3, %v5957_v21  ;;  %v5815_v43 = vand.u32 2147483647, %v5814_v48  ;;  %v5968_v25 = vor.u32 %v5967_v59, %v5966_v56  ;;  %v5971_v4 = vor.u32 %v5970_v13, %v5969_v54 }
 0x6f2   : > { %vm14206_vm5 = vcmp.le.f32.partialorder %v16779_v52, 0.7853982  ;;  %v5973_v8 = vshrl.u32 %v16545_v36, %v5958_v58  ;;  %v6113_v40 = vsub.s32 0, %v14210_v15  ;;  %v5959_v52 = vshrl.u32 %v16540_v33, %v5958_v58 }
 0x6f3   : > { %vm5977_vm1 = vcmp.lt.s32.totalorder %v14176_v63, 3  ;;  %vm5978_vm2 = vcmp.lt.s32.totalorder %v14176_v63, 4  ;;  %v5818_v18 = vmul.f32 %v5817_v16, %v5815_v43  ;;  %v5983_v21 = vsel %vm5975_vm0, %v5962_v41, %v5965_v27 }
 0x6f4   : > { %v5974_v42 = vor.u32 %v5973_v8, %v5972_v10  ;;  %v5980_v6 = vsel %vm5978_vm2, %v5968_v25, 2102212464  ;;  %v8379_v56 = vmin.u32 %v6113_v40, %v14210_v15  ;;  %v5979_v39 = vsel %vm5975_vm0, %v5959_v52, %v5962_v41 }
 0x6f5   : > { %v5984_v26 = vsel %vm5978_vm2, %v5971_v4, 920167782  ;;  %v5987_v61 = vsel %vm5975_vm0, %v5965_v27, %v5968_v25  ;;  %v5819_v58 = vxor.u32 2147483648, %v5818_v18  ;;  %v5981_v54 = vsel %vm5977_vm1, %v5965_v27, %v5980_v6 }
 0x6f6   : > { %v5985_v10 = vsel %vm5977_vm1, %v5968_v25, %v5984_v26  ;;  %v5988_v8 = vsel %vm5978_vm2, %v5974_v42, 1326507024  ;;  %v6115_v48 = vclz %v8379_v56  ;;  %v5982_v25 = vsel %vm5976_vm14, %v5979_v39, %v5981_v54 }
 0x6f7   : > { %v5986_v16 = vsel %vm5976_vm14, %v5983_v21, %v5985_v10  ;;  %v5989_v59 = vsel %vm5977_vm1, %v5971_v4, %v5988_v8  ;;  %v5820_v41 = vsel %vm16782_vm15, %v5819_v58, %v5818_v18  ;;  %vm4579_vm0 = vweird.f32 %v13050_v11  ;;  %v16791_v11 = vld [vmem:[#allocation47_spill] sm:$0xff] }
 0x6f8   : > { %v5990_v13 = vsel %vm5976_vm14, %v5987_v61, %v5989_v59  ;;  %v14241_v27 = vmul.u32.u64.low %v14174_v45, %v5986_v16  ;;  %v14242_v40 = vmul.u32.u64.high %v14174_v45, %v5986_v16, %v14241_v27  ;;  %v8380_v43 = vadd.s32 4294967294, %v6115_v48 }
 0x6f9   : > { %v14247_v52 = vmul.u32.u64.low %v14174_v45, %v5990_v13  ;;  %v14248_v42 = vmul.u32.u64.high %v14174_v45, %v5990_v13, %v14247_v52  ;;  %v5823_v4 = vsel %vm14206_vm5, %v13915_v47, %v5820_v41  ;;  %v16783_v18 = vxor.u32 2147483648, %v13534_v23  ;;  %v16787_v41 = vld [vmem:[#allocation44_spill] sm:$0xff] }
 0x6fa   : > { %vm4586_vm15 = vcmp.eq.s32.totalorder %v14179_v30, 2  ;;  %v16784_v63 = vsub.s32 4, %v13156_v44  ;;  %vm16785_vm14 = vcmp.lt.s32.totalorder %v13048_v37, 0  ;;  %v6103_v56 = vadd.s32 %v14142_v22, %v14157_v24 }
 0x6fb   : > { %v4585_v6 = vsel %vm4583_vm4, %v13528_v7, %v16783_v18  ;;  %vm8381_vm1 = vcmp.lt.s32.totalorder %v8380_v43, 0  ;;  %v16786_v39 = vxor.u32 2147483648, %v13528_v7  ;;  %v5998_v54 = vmul.u32 %v14174_v45, %v5982_v25 }
 0x6fc   : > { %v4678_v21 = vsel %vm16785_vm14, %v16784_v63, %v13156_v44  ;;  %v6118_v58 = vsel %vm8381_vm1, 0, %v8380_v43  ;;  %v6001_v10 = vadd.s32 1, %v14242_v40  ;;  %vm4582_vm4 = vcmp.lt.s32.totalorder %v14179_v30, 2 }
 0x6fd   : > { %v4588_v26 = vsel %vm4586_vm15, %v16786_v39, %v13534_v23  ;;  %v4680_v61 = vsel %vm13303_vm9, 0, %v4678_v21  ;;  %9372 = vcosq.f32 %v5823_v4  ;;  %v6119_v44 = vsub.s32 32, %v6118_v58  ;;  %v16793_v39 = vld [vmem:[#allocation27_spill] sm:$0xff] }
 0x6fe   : > { %v6123_v8 = vsub.s32 4294967266, %v6118_v58  ;;  %v4589_v48 = vsel %vm4582_vm4, %v4585_v6, %v4588_v26  ;;  %v6120_v22 = vshll.u32 %v14210_v15, %v6118_v58  ;;  %vm6000_vm2 = vc.u32 %v14248_v42, %v14241_v27 }
 0x6ff   : > { %v4684_v7 = vadd.s32 3, %v4680_v61  ;;  %v4688_v23 = vxor.u32 2147483648, %v13451_v32  ;;  %v6121_v0 = vshrl.u32 %v6103_v56, %v6119_v44  ;;  %v6002_v16 = vsel %vm6000_vm2, %v6001_v10, %v14242_v40 }
 0x700   : > { %v6124_v24 = vadd.s32 127, %v6123_v8  ;;  %v4691_v45 = vxor.u32 2147483648, %v13384_v34  ;;  %9374 = vsinq.f32 %v5823_v4  ;;  %v6003_v59 = vadd.s32 %v6002_v16, %v5998_v54  ;;  %v16798_v16 = vld [vmem:[#allocation12_spill] sm:$0xff] }
 0x701   : > { %v4685_v30 = vand.u32 3, %v4684_v7  ;;  %v4781_v13 = vsub.s32 4, %v16787_v41  ;;  %v6122_v43 = vor.u32 %v6121_v0, %v6120_v22  ;;  %v14280_v15 = vadd.s32 %v14241_v27, %v14248_v42  ;;  %v16797_v0 = vld [vmem:[#allocation24_spill] sm:$0xff] }
 0x702   : > { %v6125_v25 = vshll.u32 %v6124_v24, 23  ;;  %vm4683_vm9 = vweird.f32 %v13048_v37  ;;  %vm6049_vm15 = vcmp.lt.s32.totalorder %v13920_v1, 0  ;;  %v6004_v52 = vadd.s32 536870912, %v6003_v59 }
 0x703   : > { %v4590_v40 = vsel %vm4579_vm0, nan, %v4589_v48  ;;  %vm4687_vm14 = vcmp.eq.s32.totalorder %v4685_v30, 0  ;;  %vm4690_vm1 = vcmp.eq.s32.totalorder %v4685_v30, 2  ;;  %vm4686_vm4 = vcmp.lt.s32.totalorder %v4685_v30, 2  ;;  %v16795_v48 = vld [vmem:[#allocation37_spill] sm:$0xff] }
 0x704   : > { %v6126_v4 = vor.u32 4788187, %v6125_v25  ;;  %v4689_v18 = vsel %vm4687_vm14, %v13384_v34, %v4688_v23  ;;  %v4692_v6 = vsel %vm4690_vm1, %v4691_v45, %v13451_v32  ;;  %v16788_v63 = vand.u32 2147483647, %v13920_v1  ;;  %v16800_v25 = vld [vmem:[#allocation49_spill] sm:$0xff] }
 0x705   : > { %v14294_v42 = vshrl.u32 %v6004_v52, 30  ;;  %v4693_v21 = vsel %vm4686_vm4, %v4689_v18, %v4692_v6  ;;  %vm16792_vm0 = vcmp.lt.s32.totalorder %v16791_v11, 0  ;;  %v4885_v26 = vsub.s32 4, %v16793_v39  ;;  %v16802_v6 = vld [vmem:[#allocation19_spill] sm:$0xff]  ;;  %v16803_v32 = vld [vmem:[#allocation45_spill] sm:$0xff] }
 0x706   : > { %vm14290_vm2 = vcmp.le.f32.partialorder %v16788_v63, 0.7853982  ;;  %v4782_v56 = vsel %vm16792_vm0, %v4781_v13, %v16787_v41  ;;  %v6127_v61 = vand.u32 2147483647, %v6126_v4  ;;  %v6129_v58 = vcvt.s32.f32 %v6122_v43  ;;  %v16801_v4 = vld [vmem:[#allocation22_spill] sm:$0xff] }
 0x707   : > { %v4694_v34 = vsel %vm4683_vm9, nan, %v4693_v21  ;;  %v4784_v54 = vsel %vm13539_vm6, 0, %v4782_v56  ;;  %v6006_v10 = vshll.u32 %v14294_v42, 30  ;;  %vm16796_vm14 = vcmp.lt.s32.totalorder %v16795_v48, 0  ;;  %v14308_v7 = vpop.eup %9372 }
 0x708   : > { %v8829_v44 = vpack.c.bf16 %v4694_v34, %v4590_v40  ;;  %v4788_v8 = vadd.s32 3, %v4784_v54  ;;  %v4886_v22 = vsel %vm16796_vm14, %v4885_v26, %v16793_v39  ;;  %v6130_v23 = vmul.f32 %v6129_v58, %v6127_v61 }
 0x709   : > { %v4792_v24 = vxor.u32 2147483648, %v16797_v0  ;;  %v4795_v45 = vxor.u32 2147483648, %v16798_v16  ;;  %v4888_v30 = vsel %vm13460_vm7, 0, %v4886_v22  ;;  %v14314_v41 = vsub.s32 %v6003_v59, %v6006_v10 }
 0x70a   : > { %8830 = vmatprep.subr.bf16.mxu0 %v8829_v44  ;;  %v4789_v13 = vand.u32 3, %v4788_v8  ;;  %v4892_v43 = vadd.s32 3, %v4888_v30  ;;  %v4989_v52 = vsub.s32 4, %v16800_v25  ;;  %v6131_v40 = vxor.u32 2147483648, %v6130_v23  ;;  %v14320_v21 = vpop.eup %9374  ;;  %v16805_v8 = vld [vmem:[#allocation21_spill] sm:$0xff]  ;;  %v16807_v30 = vld [vmem:[#allocation42_spill] sm:$0xff] }
 0x70b   : > { %8832 = vmatpush3.bf16.msra.mxu0 %v8829_v44  ;;  %vm4787_vm6 = vweird.f32 %v16791_v11  ;;  %v4896_v18 = vxor.u32 2147483648, %v16801_v4  ;;  %v4899_v63 = vxor.u32 2147483648, %v16802_v6  ;;  %v6009_v56 = vsub.s32 0, %v14314_v41 }
 0x70c   : > { %vm4790_vm7 = vcmp.lt.s32.totalorder %v4789_v13, 2  ;;  %vm4791_vm9 = vcmp.eq.s32.totalorder %v4789_v13, 0  ;;  %vm4794_vm1 = vcmp.eq.s32.totalorder %v4789_v13, 2  ;;  %v6132_v59 = vsel %vm6049_vm15, %v6131_v40, %v6130_v23  ;;  %v16808_v40 = vld [vmem:[#allocation46_spill] sm:$0xff] }
 0x70d   : > { %v4793_v39 = vsel %vm4791_vm9, %v16798_v16, %v4792_v24  ;;  %v4796_v26 = vsel %vm4794_vm1, %v4795_v45, %v16797_v0  ;;  %v4893_v61 = vand.u32 3, %v4892_v43  ;;  %v8375_v58 = vmin.u32 %v6009_v56, %v14314_v41 }
 0x70e   : > { %v4797_v34 = vsel %vm4790_vm7, %v4793_v39, %v4796_v26  ;;  %vm4891_vm4 = vweird.f32 %v16795_v48  ;;  %vm16804_vm0 = vcmp.lt.s32.totalorder %v16803_v32, 0  ;;  %v6135_v10 = vsel %vm14290_vm2, %v13920_v1, %v6132_v59 }
 0x70f   : > { %v4990_v54 = vsel %vm16804_vm0, %v4989_v52, %v16800_v25  ;;  %vm4895_vm14 = vcmp.eq.s32.totalorder %v4893_v61, 0  ;;  %v5000_v44 = vxor.u32 2147483648, %v13857_v20  ;;  %v5003_v22 = vxor.u32 2147483648, %v16805_v8 }
 0x710   : > { %v6011_v23 = vclz %v8375_v58  ;;  %v4798_v0 = vsel %vm4787_vm6, nan, %v4797_v34  ;;  %v4897_v24 = vsel %vm4895_vm14, %v16802_v6, %v4896_v18  ;;  %vm4898_vm7 = vcmp.eq.s32.totalorder %v4893_v61, 2  ;;  %v16810_v6 = vld [vmem:[#allocation36_spill] sm:$0xff] }
 0x711   : > { %vm4894_vm9 = vcmp.lt.s32.totalorder %v4893_v61, 2  ;;  %v4900_v16 = vsel %vm4898_vm7, %v4899_v63, %v16801_v4  ;;  %v4992_v37 = vsel %vm13629_vm13, 0, %v4990_v54  ;;  %v5093_v13 = vsub.s32 4, %v16807_v30  ;;  %v16811_v63 = vld [vmem:[#allocation28_spill] sm:$0xff]  ;;  %v16813_v54 = vld [vmem:[#allocation34_spill] sm:$0xff] }
 0x712   : > { %9376 = vcosq.f32 %v6135_v10  ;;  %v8376_v43 = vadd.s32 4294967294, %v6011_v23  ;;  %v4901_v25 = vsel %vm4894_vm9, %v4897_v24, %v4900_v16  ;;  %vm4995_vm1 = vweird.f32 %v16803_v32 }
 0x713   : > { %v4996_v52 = vadd.s32 3, %v4992_v37  ;;  %v4902_v11 = vsel %vm4891_vm4, nan, %v4901_v25  ;;  %vm16809_vm6 = vcmp.lt.s32.totalorder %v16808_v40, 0  ;;  %v5104_v4 = vxor.u32 2147483648, %v16810_v6 }
 0x714   : > { %v5094_v18 = vsel %vm16809_vm6, %v5093_v13, %v16807_v30  ;;  %v5197_v56 = vsub.s32 4, %v16811_v63  ;;  %vm8377_vm13 = vcmp.lt.s32.totalorder %v8376_v43, 0  ;;  %v8833_v59 = vpack.c.bf16 %v4902_v11, %v4798_v0 }
 0x715   : > { %v4997_v39 = vand.u32 3, %v4996_v52  ;;  %v5096_v61 = vsel %vm13623_vm12, 0, %v5094_v18  ;;  %v6014_v58 = vsel %vm8377_vm13, 0, %v8376_v43  ;;  %v5107_v23 = vxor.u32 2147483648, %v16813_v54 }
 0x716   : > { %v5100_v34 = vadd.s32 3, %v5096_v61  ;;  %vm16814_vm4 = vcmp.lt.s32.totalorder %v13382_v49, 0  ;;  %v6015_v24 = vsub.s32 32, %v6014_v58  ;;  %v6016_v16 = vshll.u32 %v14314_v41, %v6014_v58  ;;  %8834 = vmatprep.subr.bf16.mxu0 %v8833_v59 }
 0x717   : > { %v5198_v48 = vsel %vm16814_vm4, %v5197_v56, %v16811_v63  ;;  %v6019_v45 = vsub.s32 4294967266, %v6014_v58  ;;  %vm4998_vm0 = vcmp.lt.s32.totalorder %v4997_v39, 2  ;;  %8836 = vmatpush3.bf16.msra.mxu0 %v8833_v59  ;;  %vm4999_vm14 = vcmp.eq.s32.totalorder %v4997_v39, 0 }
 0x718   : > { %vm5002_vm7 = vcmp.eq.s32.totalorder %v4997_v39, 2  ;;  %v5101_v0 = vand.u32 3, %v5100_v34  ;;  %v5200_v37 = vsel %vm13786_vm8, 0, %v5198_v48  ;;  %v6017_v30 = vshrl.u32 %v14280_v15, %v6015_v24  ;;  %v16818_v39 = vld [vmem:[#allocation11_spill] sm:$0xff] }
 0x719   : > { %v6020_v13 = vadd.s32 127, %v6019_v45  ;;  %v5001_v43 = vsel %vm4999_vm14, %v16805_v8, %v5000_v44  ;;  %v5004_v25 = vsel %vm5002_vm7, %v5003_v22, %v13857_v20  ;;  %vm5099_vm12 = vweird.f32 %v16808_v40 }
 0x71a   : > { %v5005_v52 = vsel %vm4998_vm0, %v5001_v43, %v5004_v25  ;;  %vm5102_vm9 = vcmp.lt.s32.totalorder %v5101_v0, 2  ;;  %vm5103_vm6 = vcmp.eq.s32.totalorder %v5101_v0, 0  ;;  %v6018_v41 = vor.u32 %v6017_v30, %v6016_v16  ;;  %v16821_v30 = vld [vmem:[#allocation29_spill] sm:$0xff] }
 0x71b   : > { %v6021_v11 = vshll.u32 %v6020_v13, 23  ;;  %v5105_v18 = vsel %vm5103_vm6, %v16813_v54, %v5104_v4  ;;  %vm5106_vm13 = vcmp.eq.s32.totalorder %v5101_v0, 2  ;;  %v5006_v14 = vsel %vm4995_vm1, nan, %v5005_v52  ;;  %v16820_v0 = vld [vmem:[#allocation18_spill] sm:$0xff] }
 0x71c   : > { %v5108_v15 = vsel %vm5106_vm13, %v5107_v23, %v16810_v6  ;;  %v5204_v63 = vadd.s32 3, %v5200_v37  ;;  %v5208_v44 = vxor.u32 2147483648, %v13939_v31  ;;  %v14370_v8 = vpop.eup %9376  ;;  %v16815_v20 = vand.u32 2147483647, %v13999_v17 }
 0x71d   : > { %v6022_v56 = vor.u32 4788187, %v6021_v11  ;;  %v5109_v59 = vsel %vm5102_vm9, %v5105_v18, %v5108_v15  ;;  %v5211_v4 = vxor.u32 2147483648, %v13874_v55  ;;  %v5301_v32 = vsub.s32 4, %v16818_v39 }
 0x71e   : > { %vm14374_vm8 = vcmp.le.f32.partialorder %v16815_v20, 0.7853982  ;;  %9378 = vsinq.f32 %v6135_v10  ;;  %vm5945_vm1 = vcmp.lt.s32.totalorder %v13999_v17, 0  ;;  %v5110_v6 = vsel %vm5099_vm12, nan, %v5109_v59  ;;  %v16826_v59 = vld [vmem:[#allocation40_spill] sm:$0xff] }
 0x71f   : > { %v5205_v26 = vand.u32 3, %v5204_v63  ;;  %v6023_v61 = vand.u32 2147483647, %v6022_v56  ;;  %v6025_v58 = vcvt.s32.f32 %v6018_v41  ;;  %v8837_v34 = vpack.c.bf16 %v5110_v6, %v5006_v14  ;;  %v16824_v41 = vld [vmem:[#allocation33_spill] sm:$0xff] }
 0x720   : > { %vm16819_vm4 = vcmp.lt.s32.totalorder %v13285_v60, 0  ;;  %v5312_v45 = vxor.u32 2147483648, %v13871_v57  ;;  %v5315_v37 = vxor.u32 2147483648, %v16820_v0  ;;  %v5405_v13 = vsub.s32 4, %v16821_v30 }
 0x721   : > { %v5302_v54 = vsel %vm16819_vm4, %v5301_v32, %v16818_v39  ;;  %vm5206_vm0 = vcmp.lt.s32.totalorder %v5205_v26, 2  ;;  %vm5207_vm14 = vcmp.eq.s32.totalorder %v5205_v26, 0  ;;  %vm5210_vm7 = vcmp.eq.s32.totalorder %v5205_v26, 2  ;;  %8838 = vmatprep.subr.bf16.mxu0 %v8837_v34  ;;  %v16827_v39 = vld [vmem:[#allocation15_spill] sm:$0xff] }
 0x722   : > { %v5304_v23 = vsel %vm13718_vm11, 0, %v5302_v54  ;;  %v6026_v10 = vmul.f32 %v6025_v58, %v6023_v61  ;;  %v5209_v48 = vsel %vm5207_vm14, %v13874_v55, %v5208_v44  ;;  %v5212_v40 = vsel %vm5210_vm7, %v5211_v4, %v13939_v31  ;;  %8840 = vmatpush3.bf16.msra.mxu0 %v8837_v34  ;;  %v16822_v55 = vld [vmem:[#allocation8_spill] sm:$0xff] }
 0x723   : > { %v5308_v24 = vadd.s32 3, %v5304_v23  ;;  %v5213_v16 = vsel %vm5206_vm0, %v5209_v48, %v5212_v40  ;;  %vm5203_vm12 = vweird.f32 %v13382_v49  ;;  %vm5307_vm11 = vweird.f32 %v13285_v60  ;;  %v16830_v23 = vld [vmem:[#allocation16_spill] sm:$0xff]  ;;  %v16831_v48 = vld [vmem:[#allocation6_spill] sm:$0xff] }
 0x724   : > { %v6027_v43 = vxor.u32 2147483648, %v6026_v10  ;;  %v5214_v25 = vsel %vm5203_vm12, nan, %v5213_v16  ;;  %vm16823_vm9 = vcmp.lt.s32.totalorder %v16822_v55, 0  ;;  %v5416_v52 = vxor.u32 2147483648, %v14021_v46 }
 0x725   : > { %v5309_v50 = vand.u32 3, %v5308_v24  ;;  %v5406_v31 = vsel %vm16823_vm9, %v5405_v13, %v16821_v30  ;;  %v5509_v11 = vsub.s32 4, %v16824_v41  ;;  %vm5411_vm0 = vweird.f32 %v16822_v55  ;;  %v16832_v24 = vld [vmem:[#allocation35_spill] sm:$0xff] }
 0x726   : > { %v6028_v18 = vsel %vm5945_vm1, %v6027_v43, %v6026_v10  ;;  %v5408_v44 = vsel %vm13887_vm10, 0, %v5406_v31  ;;  %v5419_v4 = vxor.u32 2147483648, %v16826_v59  ;;  %vm16828_vm14 = vcmp.lt.s32.totalorder %v16827_v39, 0  ;;  %v16835_v43 = vld [vmem:[#allocation10_spill] sm:$0xff] }
 0x727   : > { %vm5310_vm6 = vcmp.lt.s32.totalorder %v5309_v50, 2  ;;  %vm5311_vm13 = vcmp.eq.s32.totalorder %v5309_v50, 0  ;;  %vm5314_vm4 = vcmp.eq.s32.totalorder %v5309_v50, 2  ;;  %v6031_v49 = vsel %vm14374_vm8, %v13999_v17, %v6028_v18 }
 0x728   : > { %v5313_v14 = vsel %vm5311_vm13, %v16820_v0, %v5312_v45  ;;  %v5316_v15 = vsel %vm5314_vm4, %v5315_v37, %v13871_v57  ;;  %v5412_v56 = vadd.s32 3, %v5408_v44  ;;  %v5510_v32 = vsel %vm16828_vm14, %v5509_v11, %v16824_v41  ;;  %v14414_v6 = vpop.eup %9378  ;;  %v16833_v45 = vld [vmem:[#allocation23_spill] sm:$0xff] }
 0x729   : > { %v5317_v20 = vsel %vm5310_vm6, %v5313_v14, %v5316_v15  ;;  %9380 = vcosq.f32 %v6031_v49  ;;  %v5512_v57 = vsel %vm13821_vm3, 0, %v5510_v32  ;;  %vm5515_vm7 = vweird.f32 %v16827_v39 }
 0x72a   : > { %v5318_v26 = vsel %vm5307_vm11, nan, %v5317_v20  ;;  %v5413_v34 = vand.u32 3, %v5412_v56  ;;  %v5516_v54 = vadd.s32 3, %v5512_v57  ;;  %v5613_v10 = vsub.s32 4, %v16830_v23 }
 0x72b   : > { %v8841_v58 = vpack.c.bf16 %v5318_v26, %v5214_v25  ;;  %9382 = vsinq.f32 %v6031_v49  ;;  %v5520_v40 = vxor.u32 2147483648, %v16831_v48  ;;  %v5523_v16 = vxor.u32 2147483648, %v16832_v24  ;;  %v16838_v49 = vld [vmem:[#allocation20_spill] sm:$0xff] }
 0x72c   : > { %v5717_v0 = vsub.s32 4, %v16833_v45  ;;  %vm5414_vm10 = vcmp.lt.s32.totalorder %v5413_v34, 2  ;;  %vm5415_vm12 = vcmp.eq.s32.totalorder %v5413_v34, 0  ;;  %vm5418_vm11 = vcmp.eq.s32.totalorder %v5413_v34, 2 }
 0x72d   : > { %8842 = vmatprep.subr.bf16.mxu0 %v8841_v58  ;;  %v5517_v60 = vand.u32 3, %v5516_v54  ;;  %v5417_v37 = vsel %vm5415_vm12, %v16826_v59, %v5416_v52  ;;  %v5420_v30 = vsel %vm5418_vm11, %v5419_v4, %v14021_v46  ;;  %vm16834_vm3 = vcmp.lt.s32.totalorder %v13746_v12, 0 }
 0x72e   : > { %8844 = vmatpush3.bf16.msra.mxu0 %v8841_v58  ;;  %v5614_v13 = vsel %vm16834_vm3, %v5613_v10, %v16830_v23  ;;  %vm16836_vm9 = vcmp.lt.s32.totalorder %v16835_v43, 0  ;;  %v5421_v25 = vsel %vm5414_vm10, %v5417_v37, %v5420_v30  ;;  %vm16837_vm14 = vnez %v16769_v2 }
 0x72f   : > { %v5718_v50 = vsel %vm16836_vm9, %v5717_v0, %v16833_v45  ;;  %vm5518_vm6 = vcmp.lt.s32.totalorder %v5517_v60, 2  ;;  %vm5519_vm13 = vcmp.eq.s32.totalorder %v5517_v60, 0  ;;  %vm5522_vm4 = vcmp.eq.s32.totalorder %v5517_v60, 2  ;;  %v16843_v60 = vld [vmem:[#allocation41_spill] sm:$0xff] }
 0x730   : > { %v5422_v31 = vsel %vm5411_vm0, nan, %v5421_v25  ;;  %v5521_v41 = vsel %vm5519_vm13, %v16832_v24, %v5520_v40  ;;  %v5524_v52 = vsel %vm5522_vm4, %v5523_v16, %v16831_v48  ;;  %v5616_v46 = vsel %vm16837_vm14, 0, %v5614_v13 }
 0x731   : > { %v5525_v11 = vsel %vm5518_vm6, %v5521_v41, %v5524_v52  ;;  %vm5619_vm12 = vweird.f32 %v13746_v12  ;;  %v5620_v18 = vadd.s32 3, %v5616_v46  ;;  %vm16839_vm11 = vnez %v16838_v49  ;;  %v16844_v52 = vld [vmem:[#allocation39_spill] sm:$0xff] }
 0x732   : > { %v5720_v14 = vsel %vm16839_vm11, 0, %v5718_v50  ;;  %v5526_v15 = vsel %vm5515_vm7, nan, %v5525_v11  ;;  %v5624_v55 = vxor.u32 2147483648, %v14198_v51  ;;  %v5627_v63 = vxor.u32 2147483648, %v14191_v19 }
 0x733   : > { %v5724_v44 = vadd.s32 3, %v5720_v14  ;;  %v8845_v20 = vpack.c.bf16 %v5526_v15, %v5422_v31  ;;  %v5621_v56 = vand.u32 3, %v5620_v18  ;;  %v5728_v2 = vxor.u32 2147483648, %v14095_v28  ;;  %v14448_v4 = vpop.eup %9380 }
 0x734   : > { %v5821_v59 = vsub.s32 4, %v14103_v9  ;;  %vm5723_vm0 = vweird.f32 %v16835_v43  ;;  %v5731_v26 = vxor.u32 2147483648, %v14028_v62  ;;  %v5925_v39 = vsub.s32 4, %v14016_v35 }
 0x735   : > { %v5725_v32 = vand.u32 3, %v5724_v44  ;;  %8846 = vmatprep.subr.bf16.mxu0 %v8845_v20  ;;  %vm5622_vm7 = vcmp.lt.s32.totalorder %v5621_v56, 2  ;;  %vm5623_vm10 = vcmp.eq.s32.totalorder %v5621_v56, 0  ;;  %vm5626_vm3 = vcmp.eq.s32.totalorder %v5621_v56, 2  ;;  %v14456_v57 = vpop.eup %9382 }
 0x736   : > { %vm16840_vm9 = vcmp.lt.s32.totalorder %v13915_v47, 0  ;;  %8848 = vmatpush3.bf16.msra.mxu0 %v8845_v20  ;;  %v5625_v58 = vsel %vm5623_vm10, %v14191_v19, %v5624_v55  ;;  %v5628_v34 = vsel %vm5626_vm3, %v5627_v63, %v14198_v51  ;;  %vm16841_vm14 = vcmp.lt.s32.totalorder %v13816_v53, 0 }
 0x737   : > { %v5822_v61 = vsel %vm16840_vm9, %v5821_v59, %v14103_v9  ;;  %vm5726_vm6 = vcmp.lt.s32.totalorder %v5725_v32, 2  ;;  %vm5727_vm13 = vcmp.eq.s32.totalorder %v5725_v32, 0  ;;  %v5629_v54 = vsel %vm5622_vm7, %v5625_v58, %v5628_v34  ;;  %v484_v58 = vld [vmem:[%s16035_s7 + $0x40] sm:$0xff]  ;;  %v485_v34 = vld [vmem:[%s16035_s7 + $0x48] sm:$0xff] }
 0x738   : > { %v5729_v23 = vsel %vm5727_vm13, %v14028_v62, %v5728_v2  ;;  %vm5730_vm4 = vcmp.eq.s32.totalorder %v5725_v32, 2  ;;  %v5824_v10 = vsel %vm14206_vm5, 0, %v5822_v61  ;;  %v5630_v48 = vsel %vm5619_vm12, nan, %v5629_v54  ;;  %v482_v61 = vld [vmem:[%s16035_s7 + $0x30] sm:$0xff] }
 0x739   : > { %v5732_v9 = vsel %vm5730_vm4, %v5731_v26, %v14095_v28  ;;  %v5828_v40 = vadd.s32 3, %v5824_v10  ;;  %v5926_v19 = vsel %vm16841_vm14, %v5925_v39, %v14016_v35  ;;  %v5832_v24 = vxor.u32 2147483648, %v14320_v21  ;;  %v477_v39 = vld [vmem:[%s16035_s7 + $0x8] sm:$0xff]  ;;  %v486_v54 = vld [vmem:[%s16035_s7 + $0x50] sm:$0xff]  ;;  %v488_v10 = vld [vmem:[%s16035_s7 + $0x60] sm:$0xff] }
 0x73a   : > { %v5733_v51 = vsel %vm5726_vm6, %v5729_v23, %v5732_v9  ;;  %v5835_v16 = vxor.u32 2147483648, %v14308_v7  ;;  %vm16842_vm11 = vnez %v16773_v5  ;;  %v5936_v28 = vxor.u32 2147483648, %v14214_v38  ;;  %v487_v23 = vld [vmem:[%s16035_s7 + $0x58] sm:$0xff]  ;;  %v490_v9 = vld [vmem:[%s16035_s7 + $0x70] sm:$0xff] }
 0x73b   : > { %v5928_v62 = vsel %vm16842_vm11, 0, %v5926_v19  ;;  %v5734_v29 = vsel %vm5723_vm0, nan, %v5733_v51  ;;  %v5829_v12 = vand.u32 3, %v5828_v40  ;;  %v5939_v37 = vxor.u32 2147483648, %v16843_v60  ;;  %v491_v40 = vld [vmem:[%s16035_s7 + $0x78] sm:$0xff]  ;;  %v6159_v19 = vpop.permute.xlu1 %6158 }
 0x73c   : > { %v5932_v45 = vadd.s32 3, %v5928_v62  ;;  %v8849_v0 = vpack.c.bf16 %v5734_v29, %v5630_v48  ;;  %v6029_v35 = vsub.s32 4, %v14294_v42  ;;  %vm5827_vm5 = vweird.f32 %v13915_v47  ;;  %v489_v48 = vld [vmem:[%s16035_s7 + $0x68] sm:$0xff] }
 0x73d   : > { %vm5831_vm12 = vcmp.eq.s32.totalorder %v5829_v12, 0  ;;  %vm5834_vm7 = vcmp.eq.s32.totalorder %v5829_v12, 2  ;;  %vm5830_vm10 = vcmp.lt.s32.totalorder %v5829_v12, 2  ;;  %vm5931_vm6 = vweird.f32 %v13816_v53 }
 0x73e   : > { %v5933_v30 = vand.u32 3, %v5932_v45  ;;  %8850 = vmatprep.subr.bf16.mxu0 %v8849_v0  ;;  %v5833_v5 = vsel %vm5831_vm12, %v14308_v7, %v5832_v24  ;;  %v5836_v13 = vsel %vm5834_vm7, %v5835_v16, %v14320_v21  ;;  %v6030_v43 = vsel %vm5945_vm1, %v6029_v35, %v14294_v42  ;;  %v6154_v24 = vpop.permute.xlu0 %6153 }
 0x73f   : > { %8852 = vmatpush3.bf16.msra.mxu0 %v8849_v0  ;;  %v5837_v50 = vsel %vm5830_vm10, %v5833_v5, %v5836_v13  ;;  %v6032_v41 = vsel %vm14374_vm8, 0, %v6030_v43  ;;  %v6133_v46 = vsub.s32 4, %v16844_v52  ;;  %v6040_v11 = vxor.u32 2147483648, %v14456_v57  ;;  %v6169_v0 = vpop.permute.xlu1 %6168 }
 0x740   : > { %vm5934_vm0 = vcmp.lt.s32.totalorder %v5933_v30, 2  ;;  %vm5935_vm3 = vcmp.eq.s32.totalorder %v5933_v30, 0  ;;  %vm5938_vm9 = vcmp.eq.s32.totalorder %v5933_v30, 2  ;;  %v5838_v25 = vsel %vm5827_vm5, nan, %v5837_v50 }
 0x741   : > { %v5937_v47 = vsel %vm5935_vm3, %v16843_v60, %v5936_v28  ;;  %v5940_v31 = vsel %vm5938_vm9, %v5939_v37, %v14214_v38  ;;  %v6036_v21 = vadd.s32 3, %v6032_v41  ;;  %v6043_v18 = vxor.u32 2147483648, %v14448_v4 }
 0x742   : > { %v5941_v7 = vsel %vm5934_vm0, %v5937_v47, %v5940_v31  ;;  %v6134_v38 = vsel %vm6049_vm15, %v6133_v46, %v16844_v52  ;;  %v6144_v15 = vxor.u32 2147483648, %v14414_v6  ;;  %v6147_v44 = vxor.u32 2147483648, %v14370_v8 }
 0x743   : > { %v5942_v42 = vsel %vm5931_vm6, nan, %v5941_v7  ;;  %v6037_v14 = vand.u32 3, %v6036_v21  ;;  %v6136_v22 = vsel %vm14290_vm2, 0, %v6134_v38  ;;  %vm6035_vm15 = vweird.f32 %v13999_v17  ;;  %v478_v17 = vld [vmem:[%s16035_s7 + $0x10] sm:$0xff] }
 0x744   : > { %v8853_v49 = vpack.c.bf16 %v5942_v42, %v5838_v25  ;;  %v6140_v53 = vadd.s32 3, %v6136_v22  ;;  %vm6139_vm11 = vweird.f32 %v13920_v1  ;;  %v480_v1 = vld [vmem:[%s16035_s7 + $0x20] sm:$0xff] }
 0x745   : > { %vm6039_vm8 = vcmp.eq.s32.totalorder %v6037_v14, 0  ;;  %vm6042_vm1 = vcmp.eq.s32.totalorder %v6037_v14, 2  ;;  %vm6038_vm13 = vcmp.lt.s32.totalorder %v6037_v14, 2 }
 0x746   : > { %8854 = vmatprep.subr.bf16.mxu0 %v8853_v49  ;;  %v6041_v55 = vsel %vm6039_vm8, %v14448_v4, %v6040_v11  ;;  %v6044_v63 = vsel %vm6042_vm1, %v6043_v18, %v14456_v57  ;;  %v6141_v56 = vand.u32 3, %v6140_v53  ;;  %v483_v57 = vld [vmem:[%s16035_s7 + $0x38] sm:$0xff] }
 0x747   : > { %8856 = vmatpush3.bf16.msra.mxu0 %v8853_v49  ;;  %v6045_v20 = vsel %vm6038_vm13, %v6041_v55, %v6044_v63 }
 0x748   : > { %vm6143_vm4 = vcmp.eq.s32.totalorder %v6141_v56, 0  ;;  %vm6146_vm2 = vcmp.eq.s32.totalorder %v6141_v56, 2  ;;  %v6046_v27 = vsel %vm6035_vm15, nan, %v6045_v20  ;;  %vm6142_vm14 = vcmp.lt.s32.totalorder %v6141_v56, 2 }
 0x749   : > { %v6145_v2 = vsel %vm6143_vm4, %v14370_v8, %v6144_v15  ;;  %v6148_v59 = vsel %vm6146_vm2, %v6147_v44, %v14414_v6  ;;  %v479_v8 = vld [vmem:[%s16035_s7 + $0x18] sm:$0xff]  ;;  %v481_v6 = vld [vmem:[%s16035_s7 + $0x28] sm:$0xff] }
 0x74a   : > { %v6149_v32 = vsel %vm6142_vm14, %v6145_v2, %v6148_v59 }
 0x74b   : > { %v6150_v4 = vsel %vm6139_vm11, nan, %v6149_v32  ;;  %v16846_v32 = vmov 2475754826  }
 0x74c   : > { %v8857_v26 = vpack.c.bf16 %v6150_v4, %v6046_v27 }
 0x74e   : > { %8858 = vmatprep.subr.bf16.mxu0 %v8857_v26 }
 0x74f   : > { %8860 = vmatpush3.bf16.msra.mxu0 %v8857_v26  ;;  %v16847_v26 = vmov 2131351028  }
 0x752   : > { %8707 = vmatmul.mubr.f32.vlgmr.msra.gmra.mrb[16].mxu0 %v477_v39 }
 0x753   : > { %8709 = vmatprep.mubr.f32.mxu0 %v478_v17  ;;  %v16848_v17 = vmov 2102212464  }
 0x756   : > { %8710 = vmatmul.mubr.f32.gmra.mrb[18].mxu0 %v479_v8 }
 0x757   : > { %8712 = vmatprep.mubr.f32.mxu0 %v480_v1 }
 0x75a   : > { %8713 = vmatmul.mubr.f32.gmra.mrb[20].mxu0 %v481_v6 }
 0x75b   : > { %8715 = vmatprep.mubr.f32.mxu0 %v482_v61 }
 0x75e   : > { %8716 = vmatmul.mubr.f32.gmra.mrb[22].mxu0 %v483_v57 }
 0x75f   : > { %8718 = vmatprep.mubr.f32.mxu0 %v484_v58 }
 0x762   : > { %8719 = vmatmul.mubr.f32.gmra.mrb[24].mxu0 %v485_v34 }
 0x763   : > { %8721 = vmatprep.mubr.f32.mxu0 %v486_v54 }
 0x766   : > { %8722 = vmatmul.mubr.f32.gmra.mrb[26].mxu0 %v487_v23 }
 0x767   : > { %8724 = vmatprep.mubr.f32.mxu0 %v488_v10 }
 0x76a   : > { %8725 = vmatmul.mubr.f32.gmra.mrb[28].mxu0 %v489_v48 }
 0x76b   : > { %8727 = vmatprep.mubr.f32.mxu0 %v490_v9 }
 0x76e   : > { %8728 = vmatmul.mubr.f32.gmra.mrb[30].mxu0 %v491_v40 }
 0x825   : > { %v8708_v51 = vpop.f32.mrb[16].mxu0 }
 0x826   : > { %v14550_v16 = vadd.f32 %v8708_v51, %v6159_v19  ;;  %v6297_v62 = vpop.f32.mrb[17].mxu0 }
 0x827   : > { %v14552_v29 = vadd.f32 %v6297_v62, %v6154_v24 }
 0x828   : > { %v6480_v12 = vand.u32 2147483647, %v14550_v16  ;;  %v6483_v45 = vand.u32 2139095040, %v14550_v16 }
 0x829   : > { %v6376_v28 = vand.u32 2147483647, %v14552_v29  ;;  %v6379_v60 = vand.u32 2139095040, %v14552_v29  ;;  %v8711_v37 = vpop.f32.mrb[18].mxu0 }
 0x82a   : > { %v6484_v35 = vshrl.u32 %v6483_v45, 23  ;;  %v14558_v30 = vadd.f32 %v8711_v37, %v6169_v0  ;;  %v14560_v5 = vpop.f32.mrb[19].mxu0  ;;  %v6487_v13 = vand.u32 8388607, %v6480_v12 }
 0x82b   : > { %v6380_v43 = vshrl.u32 %v6379_v60, 23  ;;  %v6383_v50 = vand.u32 8388607, %v6376_v28 }
 0x82c   : > { %16845 = vst [vmem:[#allocation32_spill] sm:$0xff] %v14558_v30  ;;  %v8386_v25 = vadd.s32 4294967169, %v6484_v35  ;;  %v6691_v31 = vand.u32 2139095040, %v14558_v30  ;;  %v6488_v21 = vor.u32 8388608, %v6487_v13  ;;  %v6688_v20 = vand.u32 2147483647, %v14558_v30 }
 0x82d   : > { %v8382_v47 = vadd.s32 4294967169, %v6380_v43  ;;  %v14567_v41 = vpop.f32.mrb[20].mxu0  ;;  %v6384_v52 = vor.u32 8388608, %v6383_v50 }
 0x82e   : > { %v6490_v7 = vadd.s32 1, %v8386_v25  ;;  %v6692_v42 = vshrl.u32 %v6691_v31, 23  ;;  %v14569_v11 = vpop.f32.mrb[21].mxu0  ;;  %v14575_v55 = vshll.u32 %v6488_v21, 8 }
 0x82f   : > { %v6386_v46 = vadd.s32 1, %v8382_v47  ;;  %v14579_v44 = vshll.u32 %v6384_v52, 8 }
 0x830   : > { %vm6491_vm5 = vcmp.gt.s32.totalorder %v6490_v7, 0  ;;  %v8394_v49 = vadd.s32 4294967169, %v6692_v42 }
 0x831   : > { %v6492_v18 = vsel %vm6491_vm5, %v6490_v7, 0  ;;  %vm6387_vm12 = vcmp.gt.s32.totalorder %v6386_v46, 0  ;;  %v14571_v14 = vpop.f32.mrb[22].mxu0 }
 0x832   : > { %v6493_v38 = vshrl.u32 %v6492_v18, 5  ;;  %v6494_v22 = vand.u32 31, %v6492_v18  ;;  %v6388_v53 = vsel %vm6387_vm12, %v6386_v46, 0  ;;  %v14573_v15 = vpop.f32.mrb[23].mxu0  ;;  %v14583_v59 = vadd.s32 1, %v8394_v49 }
 0x833   : > { %v14577_v63 = vshrl.u32 %v6388_v53, 5  ;;  %v6390_v2 = vand.u32 31, %v6388_v53 }
 0x834   : > { %v6495_v56 = vsub.s32 32, %v6494_v22  ;;  %v6497_v27 = vshll.u32 %v16540_v33, %v6494_v22  ;;  %v6500_v4 = vshll.u32 %v16846_v32, %v6494_v22  ;;  %v6503_v39 = vshll.u32 %v16847_v26, %v6494_v22 }
 0x835   : > { %v6506_v8 = vshll.u32 %v16848_v17, %v6494_v22  ;;  %v6509_v1 = vshll.u32 %v16697_v3, %v6494_v22  ;;  %vm6512_vm7 = vcmp.lt.s32.totalorder %v6493_v38, 1  ;;  %vm6513_vm10 = vcmp.lt.s32.totalorder %v6493_v38, 2  ;;  %v14601_v47 = vpop.f32.mrb[24].mxu0 }
 0x836   : > { %v6498_v6 = vshrl.u32 %v16846_v32, %v6495_v56  ;;  %v6501_v61 = vshrl.u32 %v16847_v26, %v6495_v56  ;;  %v6504_v57 = vshrl.u32 %v16848_v17, %v6495_v56  ;;  %v6496_v58 = vshrl.u32 %v16540_v33, %v6495_v56 }
 0x837   : > { %v6507_v34 = vshrl.u32 %v16697_v3, %v6495_v56  ;;  %v6510_v54 = vshrl.u32 %v16545_v36, %v6495_v56  ;;  %v6391_v9 = vsub.s32 32, %v6390_v2  ;;  %vm6514_vm0 = vcmp.lt.s32.totalorder %v6493_v38, 3 }
 0x838   : > { %v6499_v23 = vor.u32 %v6498_v6, %v6497_v27  ;;  %v6502_v10 = vor.u32 %v6501_v61, %v6500_v4  ;;  %v6505_v48 = vor.u32 %v6504_v57, %v6503_v39  ;;  %vm6515_vm3 = vcmp.lt.s32.totalorder %v6493_v38, 4 }
 0x839   : > { %v6508_v40 = vor.u32 %v6507_v34, %v6506_v8  ;;  %v6511_v19 = vor.u32 %v6510_v54, %v6509_v1  ;;  %v6393_v35 = vshll.u32 %v16540_v33, %v6390_v2  ;;  %v6394_v50 = vshrl.u32 %v16846_v32, %v6391_v9 }
 0x83a   : > { %v6516_v51 = vsel %vm6512_vm7, %v6496_v58, %v6499_v23  ;;  %v6517_v24 = vsel %vm6515_vm3, %v6505_v48, 2102212464  ;;  %v6520_v62 = vsel %vm6512_vm7, %v6499_v23, %v6502_v10  ;;  %v6524_v45 = vsel %vm6512_vm7, %v6502_v10, %v6505_v48 }
 0x83b   : > { %v6518_v0 = vsel %vm6514_vm0, %v6502_v10, %v6517_v24  ;;  %v6521_v60 = vsel %vm6515_vm3, %v6508_v40, 920167782  ;;  %v6525_v37 = vsel %vm6515_vm3, %v6511_v19, 1326507024  ;;  %v6396_v25 = vshll.u32 %v16846_v32, %v6390_v2 }
 0x83c   : > { %v6522_v13 = vsel %vm6514_vm0, %v6505_v48, %v6521_v60  ;;  %v6526_v43 = vsel %vm6514_vm0, %v6508_v40, %v6525_v37  ;;  %v6519_v31 = vsel %vm6513_vm10, %v6516_v51, %v6518_v0  ;;  %v6397_v52 = vshrl.u32 %v16847_v26, %v6391_v9 }
 0x83d   : > { %v6523_v7 = vsel %vm6513_vm10, %v6520_v62, %v6522_v13  ;;  %v6527_v21 = vsel %vm6513_vm10, %v6524_v45, %v6526_v43  ;;  %v6395_v22 = vor.u32 %v6394_v50, %v6393_v35  ;;  %v6399_v56 = vshll.u32 %v16847_v26, %v6390_v2  ;;  %v6164_v35 = vpop.permute.xlu0 %6163 }
 0x83e   : > { %v14608_v46 = vmul.u32.u64.low %v14575_v55, %v6527_v21  ;;  %v14609_v42 = vmul.u32.u64.high %v14575_v55, %v6527_v21, %v14608_v46  ;;  %v14612_v18 = vmul.u32.u64.low %v14575_v55, %v6523_v7  ;;  %v14613_v49 = vmul.u32.u64.high %v14575_v55, %v6523_v7, %v14612_v18 }
 0x83f   : > { %v6398_v53 = vor.u32 %v6397_v52, %v6396_v25  ;;  %v6400_v27 = vshrl.u32 %v16848_v17, %v6391_v9  ;;  %v6392_v38 = vshrl.u32 %v16540_v33, %v6391_v9  ;;  %v6402_v4 = vshll.u32 %v16848_v17, %v6390_v2 }
 0x840   : > { %v6403_v39 = vshrl.u32 %v16697_v3, %v6391_v9  ;;  %v6406_v8 = vshrl.u32 %v16545_v36, %v6391_v9  ;;  %v6535_v1 = vmul.u32 %v14575_v55, %v6519_v31  ;;  %v6405_v61 = vshll.u32 %v16697_v3, %v6390_v2 }
 0x841   : > { %v6401_v6 = vor.u32 %v6400_v27, %v6399_v56  ;;  %vm6408_vm9 = vcmp.lt.s32.totalorder %v14577_v63, 1  ;;  %vm6537_vm6 = vc.u32 %v14609_v42, %v14612_v18  ;;  %v6538_v57 = vadd.s32 1, %v14613_v49 }
 0x842   : > { %v6404_v58 = vor.u32 %v6403_v39, %v6402_v4  ;;  %vm6409_vm8 = vcmp.lt.s32.totalorder %v14577_v63, 2  ;;  %v6407_v34 = vor.u32 %v6406_v8, %v6405_v61  ;;  %vm6410_vm1 = vcmp.lt.s32.totalorder %v14577_v63, 3 }
 0x843   : > { %vm6411_vm13 = vcmp.lt.s32.totalorder %v14577_v63, 4  ;;  %v6416_v54 = vsel %vm6408_vm9, %v6395_v22, %v6398_v53  ;;  %v6539_v55 = vsel %vm6537_vm6, %v6538_v57, %v14613_v49  ;;  %v6420_v10 = vsel %vm6408_vm9, %v6398_v53, %v6401_v6 }
 0x844   : > { %v6413_v23 = vsel %vm6411_vm13, %v6401_v6, 2102212464  ;;  %v6417_v2 = vsel %vm6411_vm13, %v6404_v58, 920167782  ;;  %v6540_v48 = vadd.s32 %v6539_v55, %v6535_v1  ;;  %v6412_v9 = vsel %vm6408_vm9, %v6392_v38, %v6395_v22 }
 0x845   : > { %v6418_v40 = vsel %vm6410_vm1, %v6401_v6, %v6417_v2  ;;  %v6421_v19 = vsel %vm6411_vm13, %v6407_v34, 1326507024  ;;  %v6414_v51 = vsel %vm6410_vm1, %v6398_v53, %v6413_v23  ;;  %vm6699_vm15 = vcmp.gt.s32.totalorder %v14583_v59, 0 }
 0x846   : > { %v6419_v24 = vsel %vm6409_vm8, %v6416_v54, %v6418_v40  ;;  %v6422_v62 = vsel %vm6410_vm1, %v6404_v58, %v6421_v19  ;;  %v6541_v45 = vadd.s32 536870912, %v6540_v48  ;;  %v6700_v50 = vsel %vm6699_vm15, %v14583_v59, 0  ;;  %v14661_v59 = vpop.f32.mrb[25].mxu0 }
 0x847   : > { %v6423_v0 = vsel %vm6409_vm8, %v6420_v10, %v6422_v62  ;;  %v14638_v60 = vmul.u32.u64.low %v14579_v44, %v6419_v24  ;;  %v14639_v37 = vmul.u32.u64.high %v14579_v44, %v6419_v24, %v14638_v60  ;;  %v6415_v31 = vsel %vm6409_vm8, %v6412_v9, %v6414_v51 }
 0x848   : > { %v14643_v13 = vmul.u32.u64.low %v14579_v44, %v6423_v0  ;;  %v14644_v43 = vmul.u32.u64.high %v14579_v44, %v6423_v0, %v14643_v13  ;;  %v14647_v25 = vshrl.u32 %v6541_v45, 30  ;;  %v6702_v7 = vand.u32 31, %v6700_v50 }
 0x849   : > { %v14652_v21 = vadd.f32 %v14560_v5, %v6164_v35  ;;  %v6434_v46 = vadd.s32 1, %v14639_v37  ;;  %v6695_v49 = vand.u32 8388607, %v6688_v20  ;;  %v6431_v53 = vmul.u32 %v14579_v44, %v6415_v31 }
 0x84a   : > { %v6543_v52 = vshll.u32 %v14647_v25, 30  ;;  %v6703_v22 = vsub.s32 32, %v6702_v7  ;;  %vm6433_vm4 = vc.u32 %v14644_v43, %v14638_v60  ;;  %v6705_v38 = vshll.u32 %v16540_v33, %v6702_v7 }
 0x84b   : > { %16849 = vst [vmem:[#allocation14_spill] sm:$0xff] %v14652_v21  ;;  %v6435_v5 = vsel %vm6433_vm4, %v6434_v46, %v14639_v37  ;;  %v6587_v56 = vand.u32 2139095040, %v14652_v21  ;;  %v6696_v8 = vor.u32 8388608, %v6695_v49  ;;  %v6708_v1 = vshll.u32 %v16846_v32, %v6702_v7 }
 0x84c   : > { %v14663_v63 = vsub.s32 %v6540_v48, %v6543_v52  ;;  %v6436_v27 = vadd.s32 %v6435_v5, %v6431_v53  ;;  %v6706_v4 = vshrl.u32 %v16846_v32, %v6703_v22  ;;  %v6709_v39 = vshrl.u32 %v16847_v26, %v6703_v22 }
 0x84d   : > { %v6712_v6 = vshrl.u32 %v16848_v17, %v6703_v22  ;;  %v6701_v57 = vshrl.u32 %v6700_v50, 5  ;;  %v6711_v34 = vshll.u32 %v16847_v26, %v6702_v7  ;;  %v6714_v23 = vshll.u32 %v16848_v17, %v6702_v7 }
 0x84e   : > { %v6546_v44 = vsub.s32 0, %v14663_v63  ;;  %v6437_v61 = vadd.s32 536870912, %v6436_v27  ;;  %v6707_v58 = vor.u32 %v6706_v4, %v6705_v38  ;;  %v6710_v55 = vor.u32 %v6709_v39, %v6708_v1 }
 0x84f   : > { %v6715_v2 = vshrl.u32 %v16697_v3, %v6703_v22  ;;  %v6713_v48 = vor.u32 %v6712_v6, %v6711_v34  ;;  %v6718_v9 = vshrl.u32 %v16545_v36, %v6703_v22  ;;  %v6588_v40 = vshrl.u32 %v6587_v56, 23 }
 0x850   : > { %v8387_v54 = vmin.u32 %v6546_v44, %v14663_v63  ;;  %v14677_v10 = vshrl.u32 %v6437_v61, 30  ;;  %v6704_v51 = vshrl.u32 %v16540_v33, %v6703_v22  ;;  %v6717_v62 = vshll.u32 %v16697_v3, %v6702_v7 }
 0x851   : > { %v6716_v24 = vor.u32 %v6715_v2, %v6714_v23  ;;  %vm6720_vm2 = vcmp.lt.s32.totalorder %v6701_v57, 1  ;;  %vm6722_vm14 = vcmp.lt.s32.totalorder %v6701_v57, 3  ;;  %vm6723_vm11 = vcmp.lt.s32.totalorder %v6701_v57, 4 }
 0x852   : > { %v6548_v19 = vclz %v8387_v54  ;;  %v6439_v45 = vshll.u32 %v14677_v10, 30  ;;  %v6719_v37 = vor.u32 %v6718_v9, %v6717_v62  ;;  %v6728_v35 = vsel %vm6720_vm2, %v6707_v58, %v6710_v55 }
 0x853   : > { %v6729_v13 = vsel %vm6723_vm11, %v6716_v24, 920167782  ;;  %vm6721_vm5 = vcmp.lt.s32.totalorder %v6701_v57, 2  ;;  %v6725_v31 = vsel %vm6723_vm11, %v6713_v48, 2102212464  ;;  %v6736_v46 = vshll.u32 %v6696_v8, 8 }
 0x854   : > { %v8388_v0 = vadd.s32 4294967294, %v6548_v19  ;;  %v14685_v50 = vsub.s32 %v6436_v27, %v6439_v45  ;;  %v6730_v52 = vsel %vm6722_vm14, %v6713_v48, %v6729_v13  ;;  %v8390_v49 = vadd.s32 4294967169, %v6588_v40 }
 0x855   : > { %v6731_v7 = vsel %vm6721_vm5, %v6728_v35, %v6730_v52  ;;  %v6724_v5 = vsel %vm6720_vm2, %v6704_v51, %v6707_v58  ;;  %v6732_v56 = vsel %vm6720_vm2, %v6710_v55, %v6713_v48  ;;  %v6726_v4 = vsel %vm6722_vm14, %v6710_v55, %v6725_v31 }
 0x856   : > { %vm8389_vm12 = vcmp.lt.s32.totalorder %v8388_v0, 0  ;;  %v6442_v53 = vsub.s32 0, %v14685_v50  ;;  %v6733_v39 = vsel %vm6723_vm11, %v6719_v37, 1326507024  ;;  %v6536_v61 = vadd.s32 %v14612_v18, %v14609_v42 }
 0x857   : > { %v6551_v22 = vsel %vm8389_vm12, 0, %v8388_v0  ;;  %v6734_v1 = vsel %vm6722_vm14, %v6716_v24, %v6733_v39  ;;  %v14697_v6 = vmul.u32.u64.low %v6736_v46, %v6731_v7  ;;  %v14698_v8 = vmul.u32.u64.high %v6736_v46, %v6731_v7, %v14697_v6 }
 0x858   : > { %v6552_v38 = vsub.s32 32, %v6551_v22  ;;  %v6556_v27 = vsub.s32 4294967266, %v6551_v22  ;;  %v8383_v44 = vmin.u32 %v6442_v53, %v14685_v50  ;;  %v6735_v34 = vsel %vm6721_vm5, %v6732_v56, %v6734_v1 }
 0x859   : > { %v16320_v54 = vand.u32 2147483647, %v14652_v21  ;;  %v14705_v55 = vmul.u32.u64.low %v6736_v46, %v6735_v34  ;;  %v14706_v2 = vmul.u32.u64.high %v6736_v46, %v6735_v34, %v14705_v55  ;;  %v6594_v48 = vadd.s32 1, %v8390_v49  ;;  %v6179_v49 = vpop.permute.xlu1 %6178 }
 0x85a   : > { %v6557_v58 = vadd.s32 127, %v6556_v27  ;;  %v6444_v23 = vclz %v8383_v44  ;;  %v6554_v9 = vshrl.u32 %v6536_v61, %v6552_v38  ;;  %v6727_v19 = vsel %vm6721_vm5, %v6724_v5, %v6726_v4  ;;  %v14726_v61 = vpop.f32.mrb[26].mxu0 }
 0x85b   : > { %v6746_v24 = vadd.s32 1, %v14698_v8  ;;  %vm6595_vm7 = vcmp.gt.s32.totalorder %v6594_v48, 0  ;;  %v6553_v42 = vshll.u32 %v14663_v63, %v6551_v22  ;;  %v6591_v18 = vand.u32 8388607, %v16320_v54  ;;  %v6174_v63 = vpop.permute.xlu0 %6173 }
 0x85c   : > { %v6558_v40 = vshll.u32 %v6557_v58, 23  ;;  %v8384_v51 = vadd.s32 4294967294, %v6444_v23  ;;  %v6596_v62 = vsel %vm6595_vm7, %v6594_v48, 0  ;;  %v6743_v0 = vmul.u32 %v6736_v46, %v6727_v19 }
 0x85d   : > { %vm6745_vm0 = vc.u32 %v14706_v2, %v14697_v6  ;;  %v6555_v37 = vor.u32 %v6554_v9, %v6553_v42  ;;  %v6598_v13 = vand.u32 31, %v6596_v62  ;;  %v6592_v56 = vor.u32 8388608, %v6591_v18 }
 0x85e   : > { %v6559_v45 = vor.u32 4788187, %v6558_v40  ;;  %vm8385_vm10 = vcmp.lt.s32.totalorder %v8384_v51, 0  ;;  %v6747_v57 = vsel %vm6745_vm0, %v6746_v24, %v14698_v8  ;;  %v14717_v46 = vadd.f32 %v14567_v41, %v6179_v49 }
 0x85f   : > { %v6447_v35 = vsel %vm8385_vm10, 0, %v8384_v51  ;;  %v6748_v52 = vadd.s32 %v6747_v57, %v6743_v0  ;;  %v6599_v7 = vsub.s32 32, %v6598_v13  ;;  %v6562_v38 = vcvt.s32.f32 %v6555_v37 }
 0x860   : > { %v6452_v31 = vsub.s32 4294967266, %v6447_v35  ;;  %v6560_v22 = vand.u32 2147483647, %v6559_v45  ;;  %v6448_v27 = vsub.s32 32, %v6447_v35  ;;  %16850 = vst [vmem:[#allocation30_spill] sm:$0xff] %v14717_v46  ;;  %v14720_v4 = vadd.f32 %v14569_v11, %v6174_v63 }
 0x861   : > { %v6749_v5 = vadd.s32 536870912, %v6748_v52  ;;  %v6602_v1 = vshrl.u32 %v16846_v32, %v6599_v7  ;;  %v6605_v8 = vshrl.u32 %v16847_v26, %v6599_v7  ;;  %v6432_v58 = vadd.s32 %v14638_v60, %v14644_v43 }
 0x862   : > { %v6453_v53 = vadd.s32 127, %v6452_v31  ;;  %v6449_v34 = vshll.u32 %v14685_v50, %v6447_v35  ;;  %v6597_v23 = vshrl.u32 %v6596_v62, 5  ;;  %v6608_v41 = vshrl.u32 %v16848_v17, %v6599_v7 }
 0x863   : > { %v14722_v44 = vshrl.u32 %v6749_v5, 30  ;;  %v14732_v55 = vmul.f32 %v6562_v38, %v6560_v22  ;;  %v6601_v48 = vshll.u32 %v16540_v33, %v6598_v13  ;;  %v6604_v9 = vshll.u32 %v16846_v32, %v6598_v13 }
 0x864   : > { %v6454_v39 = vshll.u32 %v6453_v53, 23  ;;  %v6450_v40 = vshrl.u32 %v6432_v58, %v6448_v27  ;;  %v6607_v19 = vshll.u32 %v16847_v26, %v6598_v13  ;;  %v6610_v51 = vshll.u32 %v16848_v17, %v6598_v13 }
 0x865   : > { %v6751_v11 = vshll.u32 %v14722_v44, 30  ;;  %v6611_v60 = vshrl.u32 %v16697_v3, %v6599_v7  ;;  %v6603_v24 = vor.u32 %v6602_v1, %v6601_v48  ;;  %v6606_v42 = vor.u32 %v6605_v8, %v6604_v9 }
 0x866   : > { %v6455_v43 = vor.u32 4788187, %v6454_v39  ;;  %v6609_v18 = vor.u32 %v6608_v41, %v6607_v19  ;;  %v6613_v45 = vshll.u32 %v16697_v3, %v6598_v13  ;;  %v6614_v0 = vshrl.u32 %v16545_v36, %v6599_v7 }
 0x867   : > { %v14740_v50 = vsub.s32 %v6748_v52, %v6751_v11  ;;  %v6612_v62 = vor.u32 %v6611_v60, %v6610_v51  ;;  %v6566_v37 = vsub.s32 4, %v14647_v25  ;;  %v6462_v35 = vsub.s32 4, %v14677_v10 }
 0x868   : > { %v6632_v31 = vshll.u32 %v6592_v56, 8  ;;  %vm6482_vm3 = vcmp.lt.s32.totalorder %v14550_v16, 0  ;;  %v6564_v52 = vxor.u32 2147483648, %v14732_v55  ;;  %vm6378_vm9 = vcmp.lt.s32.totalorder %v14552_v29, 0 }
 0x869   : > { %v6754_v57 = vsub.s32 0, %v14740_v50  ;;  %v6451_v49 = vor.u32 %v6450_v40, %v6449_v34  ;;  %v6600_v63 = vshrl.u32 %v16540_v33, %v6599_v7  ;;  %v6615_v22 = vor.u32 %v6614_v0, %v6613_v45 }
 0x86a   : > { %v6456_v13 = vand.u32 2147483647, %v6455_v43  ;;  %vm6616_vm6 = vcmp.lt.s32.totalorder %v6597_v23, 1  ;;  %vm6619_vm8 = vcmp.lt.s32.totalorder %v6597_v23, 4  ;;  %vm6618_vm1 = vcmp.lt.s32.totalorder %v6597_v23, 3 }
 0x86b   : > { %v8395_v53 = vmin.u32 %v6754_v57, %v14740_v50  ;;  %v6621_v5 = vsel %vm6619_vm8, %v6609_v18, 2102212464  ;;  %v6624_v38 = vsel %vm6616_vm6, %v6603_v24, %v6606_v42  ;;  %v6625_v27 = vsel %vm6619_vm8, %v6612_v62, 920167782 }
 0x86c   : > { %vm6617_vm13 = vcmp.lt.s32.totalorder %v6597_v23, 2  ;;  %v6626_v39 = vsel %vm6618_vm1, %v6609_v18, %v6625_v27  ;;  %v6628_v1 = vsel %vm6616_vm6, %v6606_v42, %v6609_v18  ;;  %v6458_v8 = vcvt.s32.f32 %v6451_v49 }
 0x86d   : > { %v6756_v56 = vclz %v8395_v53  ;;  %v6620_v58 = vsel %vm6616_vm6, %v6600_v63, %v6603_v24  ;;  %v6627_v34 = vsel %vm6617_vm13, %v6624_v38, %v6626_v39  ;;  %v6629_v41 = vsel %vm6619_vm8, %v6615_v22, 1326507024  ;;  %v6189_v53 = vpop.permute.xlu1 %6188 }
 0x86e   : > { %v6622_v11 = vsel %vm6618_vm1, %v6606_v42, %v6621_v5  ;;  %v6630_v48 = vsel %vm6618_vm1, %v6612_v62, %v6629_v41  ;;  %v6899_v9 = vand.u32 2139095040, %v14717_v46  ;;  %v6459_v40 = vmul.f32 %v6458_v8, %v6456_v13 }
 0x86f   : > { %v8396_v7 = vadd.s32 4294967294, %v6756_v56  ;;  %v6631_v19 = vsel %vm6617_vm13, %v6628_v1, %v6630_v48  ;;  %v14755_v51 = vmul.u32.u64.low %v6632_v31, %v6627_v34  ;;  %v14756_v60 = vmul.u32.u64.high %v6632_v31, %v6627_v34, %v14755_v51  ;;  %v14805_v56 = vpop.f32.mrb[27].mxu0 }
 0x870   : > { %v14759_v43 = vmul.u32.u64.low %v6632_v31, %v6631_v19  ;;  %v14760_v18 = vmul.u32.u64.high %v6632_v31, %v6631_v19, %v14759_v43  ;;  %v6900_v24 = vshrl.u32 %v6899_v9, 23  ;;  %vm14764_vm4 = vcmp.le.f32.partialorder %v6480_v12, 0.7853982 }
 0x871   : > { %vm8397_vm15 = vcmp.lt.s32.totalorder %v8396_v7, 0  ;;  %vm14770_vm2 = vcmp.le.f32.partialorder %v6376_v28, 0.7853982  ;;  %v6623_v0 = vsel %vm6617_vm13, %v6620_v58, %v6622_v11  ;;  %v6567_v57 = vsel %vm6482_vm3, %v6566_v37, %v14647_v25 }
 0x872   : > { %v14774_v62 = vsel %vm8397_vm15, 0, %v8396_v7  ;;  %v6463_v12 = vsel %vm6378_vm9, %v6462_v35, %v14677_v10  ;;  %v16319_v49 = vand.u32 2147483647, %v14717_v46  ;;  %v8402_v63 = vadd.s32 4294967169, %v6900_v24 }
 0x873   : > { %v6565_v28 = vsel %vm6482_vm3, %v6564_v52, %v14732_v55  ;;  %v6460_v22 = vxor.u32 2147483648, %v6459_v40  ;;  %v6764_v13 = vsub.s32 4294967266, %v14774_v62  ;;  %v6642_v23 = vadd.s32 1, %v14756_v60 }
 0x874   : > { %vm6690_vm14 = vcmp.lt.s32.totalorder %v14558_v30, 0  ;;  %v6639_v25 = vmul.u32 %v6632_v31, %v6623_v0  ;;  %vm6641_vm11 = vc.u32 %v14760_v18, %v14755_v51  ;;  %v6795_v10 = vand.u32 2139095040, %v14720_v4 }
 0x875   : > { %v6569_v37 = vsel %vm14764_vm4, 0, %v6567_v57  ;;  %v6643_v35 = vsel %vm6641_vm11, %v6642_v23, %v14756_v60  ;;  %v6906_v55 = vadd.s32 1, %v8402_v63  ;;  %v14797_v52 = vadd.f32 %v14571_v14, %v6189_v53 }
 0x876   : > { %v6568_v5 = vsel %vm14764_vm4, %v14550_v16, %v6565_v28  ;;  %v6465_v31 = vsel %vm14770_vm2, 0, %v6463_v12  ;;  %v6774_v38 = vsub.s32 4, %v14722_v44  ;;  %v6644_v27 = vadd.s32 %v6643_v35, %v6639_v25 }
 0x877   : > { %16855 = vst [vmem:[#allocation26_spill] sm:$0xff] %v14797_v52  ;;  %v6461_v39 = vsel %vm6378_vm9, %v6460_v22, %v6459_v40  ;;  %v6765_v1 = vadd.s32 127, %v6764_v13  ;;  %v6903_v14 = vand.u32 8388607, %v16319_v49  ;;  %vm6907_vm5 = vcmp.gt.s32.totalorder %v6906_v55, 0 }
 0x878   : > { %v14811_v8 = vadd.s32 3, %v6569_v37  ;;  %v6645_v58 = vadd.s32 536870912, %v6644_v27  ;;  %v6908_v34 = vsel %vm6907_vm5, %v6906_v55, 0  ;;  %v6796_v41 = vshrl.u32 %v6795_v10, 23 }
 0x879   : > { %9384 = vcosq.f32 %v6568_v5  ;;  %v14813_v7 = vadd.s32 3, %v6465_v31  ;;  %v6744_v11 = vadd.s32 %v14697_v6, %v14706_v2  ;;  %v6910_v48 = vand.u32 31, %v6908_v34 }
 0x87a   : > { %9386 = vsinq.f32 %v6568_v5  ;;  %v14820_v9 = vsel %vm14770_vm2, %v14552_v29, %v6461_v39  ;;  %v14825_v40 = vsel %vm6690_vm14, %v6774_v38, %v14722_v44  ;;  %v14827_v19 = vshrl.u32 %v6645_v58, 30 }
 0x87b   : > { %v6760_v60 = vsub.s32 32, %v14774_v62  ;;  %v6766_v43 = vshll.u32 %v6765_v1, 23  ;;  %v6904_v24 = vor.u32 8388608, %v6903_v14  ;;  %v6911_v45 = vsub.s32 32, %v6910_v48 }
 0x87c   : > { %v6647_v6 = vshll.u32 %v14827_v19, 30  ;;  %v6909_v2 = vshrl.u32 %v6908_v34, 5  ;;  %v6913_v0 = vshll.u32 %v16540_v33, %v6910_v48  ;;  %v8398_v42 = vadd.s32 4294967169, %v6796_v41 }
 0x87d   : > { %v6914_v57 = vshrl.u32 %v16846_v32, %v6911_v45  ;;  %v6916_v12 = vshll.u32 %v16846_v32, %v6910_v48  ;;  %v6917_v44 = vshrl.u32 %v16847_v26, %v6911_v45  ;;  %v6920_v63 = vshrl.u32 %v16848_v17, %v6911_v45 }
 0x87e   : > { %v14836_v28 = vsub.s32 %v6644_v27, %v6647_v6  ;;  %v6919_v22 = vshll.u32 %v16847_v26, %v6910_v48  ;;  %v6922_v13 = vshll.u32 %v16848_v17, %v6910_v48  ;;  %v6923_v23 = vshrl.u32 %v16697_v3, %v6911_v45 }
 0x87f   : > { %v6761_v53 = vshll.u32 %v14740_v50, %v14774_v62  ;;  %v6762_v25 = vshrl.u32 %v6744_v11, %v6760_v60  ;;  %v6915_v10 = vor.u32 %v6914_v57, %v6913_v0  ;;  %v16318_v37 = vand.u32 2147483647, %v14720_v4 }
 0x880   : > { %v6650_v35 = vsub.s32 0, %v14836_v28  ;;  %v6918_v55 = vor.u32 %v6917_v44, %v6916_v12  ;;  %v6921_v5 = vor.u32 %v6920_v63, %v6919_v22  ;;  %v6924_v31 = vor.u32 %v6923_v23, %v6922_v13 }
 0x881   : > { %vm14847_vm12 = vcmp.le.f32.partialorder %v6688_v20, 0.7853982  ;;  %v6767_v27 = vor.u32 4788187, %v6766_v43  ;;  %v6925_v39 = vshll.u32 %v16697_v3, %v6910_v48  ;;  %v6926_v50 = vshrl.u32 %v16545_v36, %v6911_v45 }
 0x882   : > { %v6944_v62 = vshll.u32 %v6904_v24, 8  ;;  %v8391_v1 = vmin.u32 %v6650_v35, %v14836_v28  ;;  %v6912_v14 = vshrl.u32 %v16540_v33, %v6911_v45  ;;  %vm6928_vm7 = vcmp.lt.s32.totalorder %v6909_v2, 1 }
 0x883   : > { %v6802_v58 = vadd.s32 1, %v8398_v42  ;;  %v14855_v34 = vpop.eup %9384  ;;  %v6927_v41 = vor.u32 %v6926_v50, %v6925_v39  ;;  %vm6929_vm10 = vcmp.lt.s32.totalorder %v6909_v2, 2  ;;  %vm6930_vm0 = vcmp.lt.s32.totalorder %v6909_v2, 3 }
 0x884   : > { %vm6931_vm3 = vcmp.lt.s32.totalorder %v6909_v2, 4  ;;  %v14857_v20 = vpop.eup %9386  ;;  %v6652_v11 = vclz %v8391_v1  ;;  %v6936_v48 = vsel %vm6928_vm7, %v6915_v10, %v6918_v55  ;;  %v6932_v6 = vsel %vm6928_vm7, %v6912_v14, %v6915_v10  ;;  %v14875_v1 = vpop.f32.mrb[28].mxu0 }
 0x885   : > { %v6933_v60 = vsel %vm6931_vm3, %v6921_v5, 2102212464  ;;  %v6937_v43 = vsel %vm6931_vm3, %v6924_v31, 920167782  ;;  %v6940_v0 = vsel %vm6928_vm7, %v6918_v55, %v6921_v5  ;;  %v6941_v57 = vsel %vm6931_vm3, %v6927_v41, 1326507024 }
 0x886   : > { %v6938_v24 = vsel %vm6930_vm0, %v6921_v5, %v6937_v43  ;;  %v8392_v12 = vadd.s32 4294967294, %v6652_v11  ;;  %v6934_v45 = vsel %vm6930_vm0, %v6918_v55, %v6933_v60  ;;  %v6942_v44 = vsel %vm6930_vm0, %v6924_v31, %v6941_v57 }
 0x887   : > { %v6939_v42 = vsel %vm6929_vm10, %v6936_v48, %v6938_v24  ;;  %v6763_v63 = vor.u32 %v6762_v25, %v6761_v53  ;;  %v6943_v22 = vsel %vm6929_vm10, %v6940_v0, %v6942_v44  ;;  %vm6803_vm6 = vcmp.gt.s32.totalorder %v6802_v58, 0 }
 0x888   : > { %v14861_v13 = vmul.u32.u64.low %v6944_v62, %v6939_v42  ;;  %v14862_v23 = vmul.u32.u64.high %v6944_v62, %v6939_v42, %v14861_v13  ;;  %vm8393_vm9 = vcmp.lt.s32.totalorder %v8392_v12, 0  ;;  %v6935_v5 = vsel %vm6929_vm10, %v6932_v6, %v6934_v45 }
 0x889   : > { %v14865_v35 = vmul.u32.u64.low %v6944_v62, %v6943_v22  ;;  %v14866_v39 = vmul.u32.u64.high %v6944_v62, %v6943_v22, %v14865_v35  ;;  %v6655_v10 = vsel %vm8393_vm9, 0, %v8392_v12  ;;  %v6799_v55 = vand.u32 8388607, %v16318_v37 }
 0x88a   : > { %v6804_v50 = vsel %vm6803_vm6, %v6802_v58, 0  ;;  %9388 = vcosq.f32 %v14820_v9  ;;  %v6768_v53 = vand.u32 2147483647, %v6767_v27  ;;  %v6660_v31 = vsub.s32 4294967266, %v6655_v10 }
 0x88b   : > { %v6640_v14 = vadd.s32 %v14755_v51, %v14760_v18  ;;  %v6954_v2 = vadd.s32 1, %v14862_v23  ;;  %v6806_v41 = vand.u32 31, %v6804_v50  ;;  %v7107_v11 = vand.u32 2139095040, %v14797_v52 }
 0x88c   : > { %v6770_v60 = vcvt.s32.f32 %v6763_v63  ;;  %vm6586_vm8 = vcmp.lt.s32.totalorder %v14652_v21, 0  ;;  %v6951_v58 = vmul.u32 %v6944_v62, %v6935_v5  ;;  %vm6953_vm1 = vc.u32 %v14866_v39, %v14861_v13 }
 0x88d   : > { %v6661_v48 = vadd.s32 127, %v6660_v31  ;;  %v6955_v43 = vsel %vm6953_vm1, %v6954_v2, %v14862_v23  ;;  %v6800_v6 = vor.u32 8388608, %v6799_v55  ;;  %v6807_v24 = vsub.s32 32, %v6806_v41 }
 0x88e   : > { %v14886_v51 = vmul.f32 %v6770_v60, %v6768_v53  ;;  %v6656_v18 = vsub.s32 32, %v6655_v10  ;;  %v6670_v0 = vsub.s32 4, %v14827_v19  ;;  %v6956_v57 = vadd.s32 %v6955_v43, %v6951_v58 }
 0x88f   : > { %v6810_v12 = vshrl.u32 %v16846_v32, %v6807_v24  ;;  %v6813_v62 = vshrl.u32 %v16847_v26, %v6807_v24  ;;  %v6816_v45 = vshrl.u32 %v16848_v17, %v6807_v24  ;;  %v7108_v42 = vshrl.u32 %v7107_v11, 23 }
 0x890   : > { %v6957_v44 = vadd.s32 536870912, %v6956_v57  ;;  %v6805_v63 = vshrl.u32 %v6804_v50, 5  ;;  %v6809_v22 = vshll.u32 %v16540_v33, %v6806_v41  ;;  %v6812_v23 = vshll.u32 %v16846_v32, %v6806_v41 }
 0x891   : > { %v6662_v35 = vshll.u32 %v6661_v48, 23  ;;  %v6815_v5 = vshll.u32 %v16847_v26, %v6806_v41  ;;  %v6818_v55 = vshll.u32 %v16848_v17, %v6806_v41  ;;  %v6819_v53 = vshrl.u32 %v16697_v3, %v6807_v24 }
 0x892   : > { %v6658_v31 = vshrl.u32 %v6640_v14, %v6656_v18  ;;  %v14897_v2 = vshrl.u32 %v6957_v44, 30  ;;  %v6821_v60 = vshll.u32 %v16697_v3, %v6806_v41  ;;  %v6822_v11 = vshrl.u32 %v16545_v36, %v6807_v24 }
 0x893   : > { %v6811_v58 = vor.u32 %v6810_v12, %v6809_v22  ;;  %v6814_v50 = vor.u32 %v6813_v62, %v6812_v23  ;;  %v6817_v43 = vor.u32 %v6816_v45, %v6815_v5  ;;  %v6820_v37 = vor.u32 %v6819_v53, %v6818_v55 }
 0x894   : > { %v14901_v49 = vpop.eup %9388  ;;  %v6772_v48 = vxor.u32 2147483648, %v14886_v51  ;;  %v6657_v27 = vshll.u32 %v14836_v28, %v6655_v10  ;;  %v6959_v25 = vshll.u32 %v14897_v2, 30  ;;  %v6823_v54 = vor.u32 %v6822_v11, %v6821_v60 }
 0x895   : > { %v6663_v14 = vor.u32 4788187, %v6662_v35  ;;  %v14909_v41 = vsel %vm6586_vm8, %v6670_v0, %v14827_v19  ;;  %v6840_v18 = vshll.u32 %v6800_v6, 8  ;;  %v8410_v12 = vadd.s32 4294967169, %v7108_v42 }
 0x896   : > { %v16858_v62 = vand.u32 2147483647, %v14652_v21  ;;  %v6659_v44 = vor.u32 %v6658_v31, %v6657_v27  ;;  %v14917_v22 = vsub.s32 %v6956_v57, %v6959_v25  ;;  %vm6824_vm15 = vcmp.lt.s32.totalorder %v6805_v63, 1 }
 0x897   : > { %vm6827_vm4 = vcmp.lt.s32.totalorder %v6805_v63, 4  ;;  %v6832_v28 = vsel %vm6824_vm15, %v6811_v58, %v6814_v50  ;;  %v6836_v23 = vsel %vm6824_vm15, %v6814_v50, %v6817_v43  ;;  %v6808_v0 = vshrl.u32 %v16540_v33, %v6807_v24 }
 0x898   : > { %vm14913_vm13 = vcmp.le.f32.partialorder %v16858_v62, 0.7853982  ;;  %v6833_v10 = vsel %vm6827_vm4, %v6820_v37, 920167782  ;;  %v6837_v19 = vsel %vm6827_vm4, %v6823_v54, 1326507024  ;;  %v6666_v57 = vcvt.s32.f32 %v6659_v44 }
 0x899   : > { %v6962_v6 = vsub.s32 0, %v14917_v22  ;;  %vm6826_vm2 = vcmp.lt.s32.totalorder %v6805_v63, 3  ;;  %v6829_v42 = vsel %vm6827_vm4, %v6817_v43, 2102212464  ;;  %v6664_v35 = vand.u32 2147483647, %v6663_v14 }
 0x89a   : > { %vm6898_vm11 = vcmp.lt.s32.totalorder %v14717_v46, 0  ;;  %vm6825_vm5 = vcmp.lt.s32.totalorder %v6805_v63, 2  ;;  %v6834_v25 = vsel %vm6826_vm2, %v6817_v43, %v6833_v10  ;;  %v6838_v27 = vsel %vm6826_vm2, %v6820_v37, %v6837_v19 }
 0x89b   : > { %v8403_v5 = vmin.u32 %v6962_v6, %v14917_v22  ;;  %v6835_v55 = vsel %vm6825_vm5, %v6832_v28, %v6834_v25  ;;  %v6839_v53 = vsel %vm6825_vm5, %v6836_v23, %v6838_v27  ;;  %v6828_v54 = vsel %vm6824_vm15, %v6808_v0, %v6811_v58  ;;  %v6184_v25 = vpop.permute.xlu0 %6183 }
 0x89c   : > { %v6830_v31 = vsel %vm6826_vm2, %v6814_v50, %v6829_v42  ;;  %v14928_v60 = vmul.u32.u64.low %v6840_v18, %v6839_v53  ;;  %v14929_v24 = vmul.u32.u64.high %v6840_v18, %v6839_v53, %v14928_v60  ;;  %v7114_v43 = vadd.s32 1, %v8410_v12 }
 0x89d   : > { %v6964_v11 = vclz %v8403_v5  ;;  %v14931_v14 = vmul.u32.u64.low %v6840_v18, %v6835_v55  ;;  %v14932_v62 = vmul.u32.u64.high %v6840_v18, %v6835_v55, %v14931_v14  ;;  %9390 = vsinq.f32 %v14820_v9  ;;  %v14968_v55 = vpop.f32.mrb[29].mxu0 }
 0x89e   : > { %v6773_v37 = vsel %vm6690_vm14, %v6772_v48, %v14886_v51  ;;  %v16861_v58 = vsel %vm14847_vm12, 0, %v14825_v40  ;;  %v6667_v44 = vmul.f32 %v6666_v57, %v6664_v35  ;;  %v6982_v10 = vsub.s32 4, %v14897_v2 }
 0x89f   : > { %v14943_v50 = vadd.s32 3, %v16861_v58  ;;  %v8404_v28 = vadd.s32 4294967294, %v6964_v11  ;;  %v6831_v23 = vsel %vm6825_vm5, %v6828_v54, %v6830_v31  ;;  %vm7115_vm7 = vcmp.gt.s32.totalorder %v7114_v43, 0 }
 0x8a0   : > { %v6673_v9 = vsel %vm14913_vm13, 0, %v14909_v41  ;;  %vm6849_vm14 = vc.u32 %v14929_v24, %v14931_v14  ;;  %v16863_v51 = vand.u32 2147483647, %v14797_v52  ;;  %v7116_v40 = vsel %vm7115_vm7, %v7114_v43, 0 }
 0x8a1   : > { %16862 = vst [vmem:[#allocation48_spill] sm:$0xff] %v14943_v50  ;;  %v14957_v12 = vsel %vm14847_vm12, %v14558_v30, %v6773_v37  ;;  %vm8405_vm10 = vcmp.lt.s32.totalorder %v8404_v28, 0  ;;  %v6850_v63 = vadd.s32 1, %v14932_v62  ;;  %v7118_v19 = vand.u32 31, %v7116_v40 }
 0x8a2   : > { %v7111_v48 = vand.u32 8388607, %v16863_v51  ;;  %v6668_v6 = vxor.u32 2147483648, %v6667_v44  ;;  %v6952_v0 = vadd.s32 %v14861_v13, %v14866_v39  ;;  %v6967_v42 = vsel %vm8405_vm10, 0, %v8404_v28 }
 0x8a3   : > { %v6847_v35 = vmul.u32 %v6840_v18, %v6831_v23  ;;  %v6968_v27 = vsub.s32 32, %v6967_v42  ;;  %v6972_v57 = vsub.s32 4294967266, %v6967_v42  ;;  %v14965_v5 = vsel %vm6898_vm11, %v6982_v10, %v14897_v2 }
 0x8a4   : > { %v6851_v38 = vsel %vm6849_vm14, %v6850_v63, %v14932_v62  ;;  %v7112_v54 = vor.u32 8388608, %v7111_v48  ;;  %v7119_v31 = vsub.s32 32, %v7118_v19  ;;  %v14971_v60 = vadd.f32 %v14573_v15, %v6184_v25 }
 0x8a5   : > { %v6852_v53 = vadd.s32 %v6851_v38, %v6847_v35  ;;  %v6969_v13 = vshll.u32 %v14917_v22, %v6967_v42  ;;  %v6970_v39 = vshrl.u32 %v6952_v0, %v6968_v27  ;;  %v6973_v18 = vadd.s32 127, %v6972_v57 }
 0x8a6   : > { %v14974_v11 = vshrl.u32 %v7116_v40, 5  ;;  %v7121_v2 = vshll.u32 %v16540_v33, %v7118_v19  ;;  %v7122_v37 = vshrl.u32 %v16846_v32, %v7119_v31  ;;  %v7125_v62 = vshrl.u32 %v16847_v26, %v7119_v31 }
 0x8a7   : > { %v6853_v43 = vadd.s32 536870912, %v6852_v53  ;;  %v6974_v58 = vshll.u32 %v6973_v18, 23  ;;  %v7124_v28 = vshll.u32 %v16846_v32, %v7118_v19  ;;  %v7128_v10 = vshrl.u32 %v16848_v17, %v7119_v31  ;;  %v14982_v23 = vpop.eup %9390 }
 0x8a8   : > { %v7131_v15 = vshrl.u32 %v16697_v3, %v7119_v31  ;;  %v6971_v22 = vor.u32 %v6970_v39, %v6969_v13  ;;  %v7127_v48 = vshll.u32 %v16847_v26, %v7118_v19  ;;  %v7130_v40 = vshll.u32 %v16848_v17, %v7118_v19 }
 0x8a9   : > { %v14984_v51 = vshrl.u32 %v6853_v43, 30  ;;  %v6975_v63 = vor.u32 4788187, %v6974_v58  ;;  %v7123_v0 = vor.u32 %v7122_v37, %v7121_v2  ;;  %v7126_v42 = vor.u32 %v7125_v62, %v7124_v28 }
 0x8aa   : > { %v7133_v35 = vshll.u32 %v16697_v3, %v7118_v19  ;;  %v7129_v27 = vor.u32 %v7128_v10, %v7127_v48  ;;  %v7132_v57 = vor.u32 %v7131_v15, %v7130_v40  ;;  %v7134_v38 = vshrl.u32 %v16545_v36, %v7119_v31 }
 0x8ab   : > { %v6855_v25 = vshll.u32 %v14984_v51, 30  ;;  %v6669_v13 = vsel %vm6586_vm8, %v6668_v6, %v6667_v44  ;;  %v16864_v39 = vand.u32 2147483647, %v14717_v46  ;;  %v6976_v43 = vand.u32 2147483647, %v6975_v63 }
 0x8ac   : > { %v7152_v2 = vshll.u32 %v7112_v54, 8  ;;  %v7003_v37 = vand.u32 2139095040, %v14971_v60  ;;  %v6978_v19 = vcvt.s32.f32 %v6971_v22  ;;  %v7135_v58 = vor.u32 %v7134_v38, %v7133_v35 }
 0x8ad   : > { %vm14995_vm12 = vcmp.le.f32.partialorder %v16864_v39, 0.7853982  ;;  %v15000_v62 = vsub.s32 %v6852_v53, %v6855_v25  ;;  %vm7136_vm0 = vcmp.lt.s32.totalorder %v14974_v11, 1  ;;  %vm6794_vm3 = vcmp.lt.s32.totalorder %v14720_v4, 0 }
 0x8ae   : > { %v7120_v44 = vshrl.u32 %v16540_v33, %v7119_v31  ;;  %vm7138_vm9 = vcmp.lt.s32.totalorder %v14974_v11, 3  ;;  %vm7139_vm6 = vcmp.lt.s32.totalorder %v14974_v11, 4  ;;  %v7144_v6 = vsel %vm7136_vm0, %v7123_v0, %v7126_v42 }
 0x8af   : > { %v6979_v54 = vmul.f32 %v6978_v19, %v6976_v43  ;;  %v6858_v28 = vsub.s32 0, %v15000_v62  ;;  %v7141_v10 = vsel %vm7139_vm6, %v7129_v27, 2102212464  ;;  %v7145_v53 = vsel %vm7139_vm6, %v7132_v57, 920167782 }
 0x8b0   : > { %v6878_v15 = vsub.s32 4, %v14984_v51  ;;  %vm7137_vm8 = vcmp.lt.s32.totalorder %v14974_v11, 2  ;;  %v7146_v22 = vsel %vm7138_vm9, %v7129_v27, %v7145_v53  ;;  %v7148_v31 = vsel %vm7136_vm0, %v7126_v42, %v7129_v27 }
 0x8b1   : > { %v16867_v48 = vand.u32 2147483647, %v14720_v4  ;;  %v8399_v63 = vmin.u32 %v6858_v28, %v15000_v62  ;;  %v7140_v35 = vsel %vm7136_vm0, %v7120_v44, %v7123_v0  ;;  %v7147_v25 = vsel %vm7137_vm8, %v7144_v6, %v7146_v22  ;;  %v6199_v44 = vpop.permute.xlu1 %6198 }
 0x8b2   : > { %v7149_v38 = vsel %vm7139_vm6, %v7135_v58, 1326507024  ;;  %v7142_v39 = vsel %vm7138_vm9, %v7126_v42, %v7141_v10  ;;  %v15031_v43 = vmul.u32.u64.low %v7152_v2, %v7147_v25  ;;  %v15032_v19 = vmul.u32.u64.high %v7152_v2, %v7147_v25, %v15031_v43 }
 0x8b3   : > { %vm15018_vm1 = vcmp.le.f32.partialorder %v16867_v48, 0.7853982  ;;  %v7150_v27 = vsel %vm7138_vm9, %v7132_v57, %v7149_v38  ;;  %v6980_v53 = vxor.u32 2147483648, %v6979_v54  ;;  %v6860_v48 = vclz %v8399_v63 }
 0x8b4   : > { %v7151_v28 = vsel %vm7137_vm8, %v7148_v31, %v7150_v27  ;;  %v7004_v0 = vshrl.u32 %v7003_v37, 23  ;;  %9392 = vcosq.f32 %v14957_v12  ;;  %v15042_v42 = vadd.s32 3, %v6673_v9  ;;  %v6194_v31 = vpop.permute.xlu0 %6193 }
 0x8b5   : > { %v15044_v58 = vmul.u32.u64.low %v7152_v2, %v7151_v28  ;;  %v15045_v57 = vmul.u32.u64.high %v7152_v2, %v7151_v28, %v15044_v58  ;;  %v6985_v6 = vsel %vm14995_vm12, 0, %v14965_v5  ;;  %v8400_v10 = vadd.s32 4294967294, %v6860_v48  ;;  %v6209_v48 = vpop.permute.xlu1 %6208 }
 0x8b6   : > { %v7143_v37 = vsel %vm7137_vm8, %v7140_v35, %v7142_v39  ;;  %v8406_v22 = vadd.s32 4294967169, %v7004_v0  ;;  %v6672_v41 = vsel %vm14913_vm13, %v14652_v21, %v6669_v13  ;;  %v7162_v9 = vadd.s32 1, %v15032_v19 }
 0x8b7   : > { %v16321_v63 = vand.u32 2147483647, %v14971_v60  ;;  %v15058_v25 = vadd.f32 %v14601_v47, %v6199_v44  ;;  %v6981_v5 = vsel %vm6898_vm11, %v6980_v53, %v6979_v54  ;;  %vm8401_vm15 = vcmp.lt.s32.totalorder %v8400_v10, 0 }
 0x8b8   : > { %v6879_v11 = vsel %vm6794_vm3, %v6878_v15, %v14984_v51  ;;  %v7010_v35 = vadd.s32 1, %v8406_v22  ;;  %9394 = vsinq.f32 %v14957_v12  ;;  %v15066_v45 = vsel %vm8401_vm15, 0, %v8400_v10  ;;  %v6204_v28 = vpop.permute.xlu0 %6203 }
 0x8b9   : > { %16870 = vst [vmem:[#allocation43_spill] sm:$0xff] %v15058_v25  ;;  %v7159_v13 = vmul.u32 %v7152_v2, %v7143_v37  ;;  %vm7161_vm13 = vc.u32 %v15045_v57, %v15031_v43  ;;  %9396 = vcosq.f32 %v6672_v41  ;;  %v15070_v47 = vadd.s32 3, %v6985_v6  ;;  %v15097_v37 = vpop.f32.mrb[30].mxu0 }
 0x8ba   : > { %v6868_v38 = vsub.s32 4294967266, %v15066_v45  ;;  %v7163_v54 = vsel %vm7161_vm13, %v7162_v9, %v15032_v19  ;;  %v15077_v51 = vsel %vm14995_vm12, %v14717_v46, %v6981_v5  ;;  %v6881_v12 = vsel %vm15018_vm1, 0, %v6879_v11 }
 0x8bb   : > { %16871 = vst [vmem:[#allocation38_spill] sm:$0xff] %v15070_v47  ;;  %v7164_v15 = vadd.s32 %v7163_v54, %v7159_v13  ;;  %vm7011_vm4 = vcmp.gt.s32.totalorder %v7010_v35, 0  ;;  %v7007_v39 = vand.u32 8388607, %v16321_v63  ;;  %v7315_v53 = vand.u32 2139095040, %v15058_v25 }
 0x8bc   : > { %v6869_v2 = vadd.s32 127, %v6868_v38  ;;  %v7012_v27 = vsel %vm7011_vm4, %v7010_v35, 0  ;;  %9398 = vsinq.f32 %v6672_v41  ;;  %v15085_v18 = vadd.f32 %v14661_v59, %v6194_v31 }
 0x8bd   : > { %v7165_v19 = vadd.s32 536870912, %v7164_v15  ;;  %v7014_v0 = vand.u32 31, %v7012_v27  ;;  %v6848_v58 = vadd.s32 %v14931_v14, %v14929_v24  ;;  %v15089_v44 = vadd.s32 3, %v6881_v12 }
 0x8be   : > { %16872 = vst [vmem:[#allocation44_spill] sm:$0xff] %v15085_v18  ;;  %v15092_v6 = vadd.f32 %v14726_v61, %v6209_v48  ;;  %v15095_v10 = vadd.f32 %v14805_v56, %v6204_v28  ;;  %v15099_v22 = vpop.eup %9392  ;;  %9400 = vcosq.f32 %v15077_v51  ;;  %v16326_v31 = vand.u32 2147483647, %v15058_v25 }
 0x8bf   : > { %16873 = vst [vmem:[#allocation47_spill] sm:$0xff] %v15089_v44  ;;  %16876 = vst [vmem:[#allocation37_spill] sm:$0xff] %v15099_v22  ;;  %v15102_v41 = vshrl.u32 %v7165_v19, 30  ;;  %v7015_v59 = vsub.s32 32, %v7014_v0  ;;  %v6864_v24 = vsub.s32 32, %v15066_v45  ;;  %v6870_v14 = vshll.u32 %v6869_v2, 23 }
 0x8c0   : > { %16874 = vst [vmem:[#allocation27_spill] sm:$0xff] %v15092_v6  ;;  %16875 = vst [vmem:[#allocation17_spill] sm:$0xff] %v15095_v10  ;;  %v7008_v9 = vor.u32 8388608, %v7007_v39  ;;  %v7316_v61 = vshrl.u32 %v7315_v53, 23  ;;  %v7017_v56 = vshll.u32 %v16540_v33, %v7014_v0  ;;  %v7020_v35 = vshll.u32 %v16846_v32, %v7014_v0 }
 0x8c1   : > { %v7167_v5 = vshll.u32 %v15102_v41, 30  ;;  %v7018_v11 = vshrl.u32 %v16846_v32, %v7015_v59  ;;  %v7021_v13 = vshrl.u32 %v16847_v26, %v7015_v59  ;;  %v7023_v38 = vshll.u32 %v16847_v26, %v7014_v0 }
 0x8c2   : > { %v7024_v54 = vshrl.u32 %v16848_v17, %v7015_v59  ;;  %v7027_v12 = vshrl.u32 %v16697_v3, %v7015_v59  ;;  %v15114_v48 = vpop.eup %9394  ;;  %v7013_v39 = vshrl.u32 %v7012_v27, 5  ;;  %v7026_v53 = vshll.u32 %v16848_v17, %v7014_v0 }
 0x8c3   : > { %16877 = vst [vmem:[#allocation24_spill] sm:$0xff] %v15114_v48  ;;  %v15116_v2 = vsub.s32 %v7164_v15, %v7167_v5  ;;  %v7319_v28 = vand.u32 8388607, %v16326_v31  ;;  %v15121_v19 = vpop.eup %9396  ;;  %v7019_v63 = vor.u32 %v7018_v11, %v7017_v56  ;;  %v7022_v46 = vor.u32 %v7021_v13, %v7020_v35 }
 0x8c4   : > { %v7025_v47 = vor.u32 %v7024_v54, %v7023_v38  ;;  %v15123_v44 = vshll.u32 %v7008_v9, 8  ;;  %v7028_v22 = vor.u32 %v7027_v12, %v7026_v53  ;;  %v7029_v48 = vshll.u32 %v16697_v3, %v7014_v0 }
 0x8c5   : > { %v7170_v30 = vsub.s32 0, %v15116_v2  ;;  %v7030_v15 = vshrl.u32 %v16545_v36, %v7015_v59  ;;  %v6865_v27 = vshll.u32 %v15000_v62, %v15066_v45  ;;  %v6866_v5 = vshrl.u32 %v6848_v58, %v6864_v24 }
 0x8c6   : > { %v6871_v50 = vor.u32 4788187, %v6870_v14  ;;  %v8418_v31 = vadd.s32 4294967169, %v7316_v61  ;;  %v15130_v21 = vpop.eup %9398  ;;  %vm7032_vm2 = vcmp.lt.s32.totalorder %v7013_v39, 1  ;;  %vm7035_vm11 = vcmp.lt.s32.totalorder %v7013_v39, 4 }
 0x8c7   : > { %v8411_v56 = vmin.u32 %v7170_v30, %v15116_v2  ;;  %v7031_v11 = vor.u32 %v7030_v15, %v7029_v48  ;;  %vm7034_vm5 = vcmp.lt.s32.totalorder %v7013_v39, 3  ;;  %v7037_v9 = vsel %vm7035_vm11, %v7025_v47, 2102212464 }
 0x8c8   : > { %v7040_v0 = vsel %vm7032_vm2, %v7019_v63, %v7022_v46  ;;  %v7041_v35 = vsel %vm7035_vm11, %v7028_v22, 920167782  ;;  %v15136_v13 = vpop.eup %9400  ;;  %v7016_v45 = vshrl.u32 %v16540_v33, %v7015_v59  ;;  %vm7033_vm7 = vcmp.lt.s32.totalorder %v7013_v39, 2 }
 0x8c9   : > { %16878 = vst [vmem:[#allocation12_spill] sm:$0xff] %v15136_v13  ;;  %v7172_v62 = vclz %v8411_v56  ;;  %v7042_v58 = vsel %vm7034_vm5, %v7025_v47, %v7041_v35  ;;  %v6867_v24 = vor.u32 %v6866_v5, %v6865_v27  ;;  %vm7106_vm14 = vcmp.lt.s32.totalorder %v14797_v52, 0  ;;  %v15159_v35 = vpop.f32.mrb[31].mxu0 }
 0x8ca   : > { %v7043_v30 = vsel %vm7033_vm7, %v7040_v0, %v7042_v58  ;;  %v7044_v14 = vsel %vm7032_vm2, %v7022_v46, %v7025_v47  ;;  %v7320_v61 = vor.u32 8388608, %v7319_v28  ;;  %v7036_v54 = vsel %vm7032_vm2, %v7016_v45, %v7019_v63 }
 0x8cb   : > { %v8412_v38 = vadd.s32 4294967294, %v7172_v62  ;;  %v7038_v12 = vsel %vm7034_vm5, %v7022_v46, %v7037_v9  ;;  %v7045_v48 = vsel %vm7035_vm11, %v7031_v11, 1326507024  ;;  %v7322_v27 = vadd.s32 1, %v8418_v31 }
 0x8cc   : > { %v7046_v59 = vsel %vm7034_vm5, %v7028_v22, %v7045_v48  ;;  %v15148_v53 = vmul.u32.u64.low %v15123_v44, %v7043_v30  ;;  %v15149_v15 = vmul.u32.u64.high %v15123_v44, %v7043_v30, %v15148_v53  ;;  %v6872_v5 = vand.u32 2147483647, %v6871_v50 }
 0x8cd   : > { %vm8413_vm10 = vcmp.lt.s32.totalorder %v8412_v38, 0  ;;  %v7190_v47 = vsub.s32 4, %v15102_v41  ;;  %v7047_v28 = vsel %vm7033_vm7, %v7044_v14, %v7046_v59  ;;  %vm7323_vm12 = vcmp.gt.s32.totalorder %v7322_v27, 0 }
 0x8ce   : > { %v7175_v56 = vsel %vm8413_vm10, 0, %v8412_v38  ;;  %v15155_v63 = vmul.u32.u64.low %v15123_v44, %v7047_v28  ;;  %v15156_v46 = vmul.u32.u64.high %v15123_v44, %v7047_v28, %v15155_v63  ;;  %v7039_v9 = vsel %vm7033_vm7, %v7036_v54, %v7038_v12 }
 0x8cf   : > { %v7176_v11 = vsub.s32 32, %v7175_v56  ;;  %v7180_v22 = vsub.s32 4294967266, %v7175_v56  ;;  %v7324_v0 = vsel %vm7323_vm12, %v7322_v27, 0  ;;  %9402 = vsinq.f32 %v15077_v51 }
 0x8d0   : > { %v7160_v50 = vadd.s32 %v15031_v43, %v15045_v57  ;;  %v7058_v31 = vadd.s32 1, %v15149_v15  ;;  %v7326_v62 = vand.u32 31, %v7324_v0  ;;  %v6874_v45 = vcvt.s32.f32 %v6867_v24 }
 0x8d1   : > { %v7181_v58 = vadd.s32 127, %v7180_v22  ;;  %v15165_v30 = vshll.u32 %v7320_v61, 8  ;;  %v7055_v39 = vmul.u32 %v15123_v44, %v7039_v9  ;;  %vm7057_vm0 = vc.u32 %v15156_v46, %v15148_v53 }
 0x8d2   : > { %v7178_v38 = vshrl.u32 %v7160_v50, %v7176_v11  ;;  %v7327_v54 = vsub.s32 32, %v7326_v62  ;;  %v6875_v51 = vmul.f32 %v6874_v45, %v6872_v5  ;;  %v15174_v43 = vsel %vm7106_vm14, %v7190_v47, %v15102_v41 }
 0x8d3   : > { %v7182_v12 = vshll.u32 %v7181_v58, 23  ;;  %v7059_v57 = vsel %vm7057_vm0, %v7058_v31, %v15149_v15  ;;  %v7177_v24 = vshll.u32 %v15116_v2, %v7175_v56  ;;  %v7329_v27 = vshll.u32 %v16540_v33, %v7326_v62 }
 0x8d4   : > { %v7060_v61 = vadd.s32 %v7059_v57, %v7055_v39  ;;  %v7330_v48 = vshrl.u32 %v16846_v32, %v7327_v54  ;;  %v7333_v44 = vshrl.u32 %v16847_v26, %v7327_v54  ;;  %v7332_v5 = vshll.u32 %v16846_v32, %v7326_v62 }
 0x8d5   : > { %v7183_v59 = vor.u32 4788187, %v7182_v12  ;;  %v7336_v28 = vshrl.u32 %v16848_v17, %v7327_v54  ;;  %v7179_v63 = vor.u32 %v7178_v38, %v7177_v24  ;;  %v7325_v41 = vshrl.u32 %v7324_v0, 5 }
 0x8d6   : > { %v7061_v11 = vadd.s32 536870912, %v7060_v61  ;;  %v7335_v47 = vshll.u32 %v16847_v26, %v7326_v62  ;;  %v7331_v15 = vor.u32 %v7330_v48, %v7329_v27  ;;  %v7334_v22 = vor.u32 %v7333_v44, %v7332_v5 }
 0x8d7   : > { %v7338_v2 = vshll.u32 %v16848_v17, %v7326_v62  ;;  %v7339_v56 = vshrl.u32 %v16697_v3, %v7327_v54  ;;  %v6876_v9 = vxor.u32 2147483648, %v6875_v51  ;;  %v16879_v50 = vand.u32 2147483647, %v14797_v52 }
 0x8d8   : > { %v7062_v45 = vshrl.u32 %v7061_v11, 30  ;;  %v7337_v58 = vor.u32 %v7336_v28, %v7335_v47  ;;  %v7342_v38 = vshrl.u32 %v16545_v36, %v7327_v54  ;;  %v7184_v0 = vand.u32 2147483647, %v7183_v59 }
 0x8d9   : > { %vm15188_vm9 = vcmp.le.f32.partialorder %v16879_v50, 0.7853982  ;;  %vm7002_vm6 = vcmp.lt.s32.totalorder %v14971_v60, 0  ;;  %v7340_v39 = vor.u32 %v7339_v56, %v7338_v2  ;;  %v7341_v12 = vshll.u32 %v16697_v3, %v7326_v62  ;;  %v15196_v24 = vpop.eup %9402 }
 0x8da   : > { %v7211_v57 = vand.u32 2139095040, %v15085_v18  ;;  %16882 = vst [vmem:[#allocation7_spill] sm:$0xff] %v15196_v24  ;;  %v7186_v48 = vcvt.s32.f32 %v7179_v63  ;;  %v7063_v44 = vshll.u32 %v7062_v45, 30  ;;  %vm7344_vm8 = vcmp.lt.s32.totalorder %v7325_v41, 1 }
 0x8db   : > { %vm7347_vm15 = vcmp.lt.s32.totalorder %v7325_v41, 4  ;;  %v7343_v27 = vor.u32 %v7342_v38, %v7341_v12  ;;  %vm7346_vm13 = vcmp.lt.s32.totalorder %v7325_v41, 3  ;;  %v7352_v5 = vsel %vm7344_vm8, %v7331_v15, %v7334_v22 }
 0x8dc   : > { %v7353_v28 = vsel %vm7347_vm15, %v7340_v39, 920167782  ;;  %v6877_v59 = vsel %vm6794_vm3, %v6876_v9, %v6875_v51  ;;  %v16883_v11 = vand.u32 2147483647, %v14971_v60  ;;  %v15208_v47 = vsub.s32 %v7060_v61, %v7063_v44 }
 0x8dd   : > { %vm7345_vm2 = vcmp.lt.s32.totalorder %v7325_v41, 2  ;;  %v7354_v63 = vsel %vm7346_vm13, %v7337_v58, %v7353_v28  ;;  %v7187_v2 = vmul.f32 %v7186_v48, %v7184_v0  ;;  %v7349_v56 = vsel %vm7347_vm15, %v7337_v58, 2102212464 }
 0x8de   : > { %vm15204_vm4 = vcmp.le.f32.partialorder %v16883_v11, 0.7853982  ;;  %v7355_v50 = vsel %vm7345_vm2, %v7352_v5, %v7354_v63  ;;  %v7212_v38 = vshrl.u32 %v7211_v57, 23  ;;  %v7066_v12 = vsub.s32 0, %v15208_v47 }
 0x8df   : > { %v7086_v51 = vsub.s32 4, %v7062_v45  ;;  %v7328_v9 = vshrl.u32 %v16540_v33, %v7327_v54  ;;  %v7356_v11 = vsel %vm7344_vm8, %v7334_v22, %v7337_v58  ;;  %v6880_v61 = vsel %vm15018_vm1, %v14720_v4, %v6877_v59 }
 0x8e0   : > { %v7357_v44 = vsel %vm7347_vm15, %v7343_v27, 1326507024  ;;  %v15221_v0 = vmul.u32.u64.low %v15165_v30, %v7355_v50  ;;  %v15222_v48 = vmul.u32.u64.high %v15165_v30, %v7355_v50, %v15221_v0  ;;  %v8407_v57 = vmin.u32 %v7066_v12, %v15208_v47 }
 0x8e1   : > { %v7348_v5 = vsel %vm7344_vm8, %v7328_v9, %v7331_v15  ;;  %v7350_v28 = vsel %vm7346_vm13, %v7334_v22, %v7349_v56  ;;  %v7358_v54 = vsel %vm7346_vm13, %v7340_v39, %v7357_v44  ;;  %v7188_v58 = vxor.u32 2147483648, %v7187_v2 }
 0x8e2   : > { %v7193_v40 = vsel %vm15188_vm9, 0, %v15174_v43  ;;  %v7359_v27 = vsel %vm7345_vm2, %v7356_v11, %v7358_v54  ;;  %v8414_v59 = vadd.s32 4294967169, %v7212_v38  ;;  %v7068_v63 = vclz %v8407_v57 }
 0x8e3   : > { %v7087_v50 = vsel %vm7002_vm6, %v7086_v51, %v7062_v45  ;;  %v15236_v12 = vmul.u32.u64.low %v15165_v30, %v7359_v27  ;;  %v15237_v14 = vmul.u32.u64.high %v15165_v30, %v7359_v27, %v15236_v12  ;;  %9404 = vcosq.f32 %v6880_v61 }
 0x8e4   : > { %v7351_v15 = vsel %vm7345_vm2, %v7348_v5, %v7350_v28  ;;  %v7370_v22 = vadd.s32 1, %v15222_v48  ;;  %v7218_v39 = vadd.s32 1, %v8414_v59  ;;  %9406 = vsinq.f32 %v6880_v61 }
 0x8e5   : > { %v15241_v56 = vadd.s32 3, %v7193_v40  ;;  %v8408_v43 = vadd.s32 4294967294, %v7068_v63  ;;  %v16887_v38 = vand.u32 2147483647, %v15085_v18  ;;  %v7189_v45 = vsel %vm7106_vm14, %v7188_v58, %v7187_v2 }
 0x8e6   : > { %v7089_v51 = vsel %vm15204_vm4, 0, %v7087_v50  ;;  %vm7219_vm3 = vcmp.gt.s32.totalorder %v7218_v39, 0  ;;  %v7367_v11 = vmul.u32 %v15165_v30, %v7351_v15  ;;  %vm7369_vm11 = vc.u32 %v15237_v14, %v15221_v0 }
 0x8e7   : > { %16886 = vst [vmem:[#allocation49_spill] sm:$0xff] %v15241_v56  ;;  %v7215_v9 = vand.u32 8388607, %v16887_v38  ;;  %vm8409_vm1 = vcmp.lt.s32.totalorder %v8408_v43, 0  ;;  %v7220_v61 = vsel %vm7219_vm3, %v7218_v39, 0  ;;  %v7056_v44 = vadd.s32 %v15148_v53, %v15156_v46 }
 0x8e8   : > { %v7071_v57 = vsel %vm8409_vm1, 0, %v8408_v43  ;;  %v7371_v5 = vsel %vm7369_vm11, %v7370_v22, %v15222_v48  ;;  %v7222_v2 = vand.u32 31, %v7220_v61  ;;  %v15259_v28 = vsel %vm15188_vm9, %v14797_v52, %v7189_v45 }
 0x8e9   : > { %v7072_v54 = vsub.s32 32, %v7071_v57  ;;  %v7076_v58 = vsub.s32 4294967266, %v7071_v57  ;;  %v7372_v40 = vadd.s32 %v7371_v5, %v7367_v11  ;;  %v7073_v30 = vshll.u32 %v15208_v47, %v7071_v57 }
 0x8ea   : > { %v15262_v27 = vadd.s32 3, %v7089_v51  ;;  %v7216_v59 = vor.u32 8388608, %v7215_v9  ;;  %v7223_v63 = vsub.s32 32, %v7222_v2  ;;  %v7225_v48 = vshll.u32 %v16540_v33, %v7222_v2 }
 0x8eb   : > { %v7074_v50 = vshrl.u32 %v7056_v44, %v7072_v54  ;;  %v7077_v53 = vadd.s32 127, %v7076_v58  ;;  %v7373_v46 = vadd.s32 536870912, %v7372_v40  ;;  %v7228_v31 = vshll.u32 %v16846_v32, %v7222_v2 }
 0x8ec   : > { %16888 = vst [vmem:[#allocation22_spill] sm:$0xff] %v15262_v27  ;;  %v7226_v12 = vshrl.u32 %v16846_v32, %v7223_v63  ;;  %v7229_v15 = vshrl.u32 %v16847_v26, %v7223_v63  ;;  %v7232_v22 = vshrl.u32 %v16848_v17, %v7223_v63  ;;  %v7235_v38 = vshrl.u32 %v16697_v3, %v7223_v63 }
 0x8ed   : > { %v7075_v39 = vor.u32 %v7074_v50, %v7073_v30  ;;  %v7078_v43 = vshll.u32 %v7077_v53, 23  ;;  %v7374_v47 = vshrl.u32 %v7373_v46, 30  ;;  %v15270_v9 = vpop.eup %9404  ;;  %v7221_v45 = vshrl.u32 %v7220_v61, 5 }
 0x8ee   : > { %16889 = vst [vmem:[#allocation19_spill] sm:$0xff] %v15270_v9  ;;  %v7231_v51 = vshll.u32 %v16847_v26, %v7222_v2  ;;  %v7234_v11 = vshll.u32 %v16848_v17, %v7222_v2  ;;  %v7523_v44 = vand.u32 2139095040, %v15092_v6  ;;  %v15275_v57 = vpop.eup %9406  ;;  %v7227_v58 = vor.u32 %v7226_v12, %v7225_v48 }
 0x8ef   : > { %v7079_v5 = vor.u32 4788187, %v7078_v43  ;;  %v7375_v54 = vshll.u32 %v7374_v47, 30  ;;  %v7230_v41 = vor.u32 %v7229_v15, %v7228_v31  ;;  %v7237_v53 = vshll.u32 %v16697_v3, %v7222_v2 }
 0x8f0   : > { %v7233_v30 = vor.u32 %v7232_v22, %v7231_v51  ;;  %v7236_v50 = vor.u32 %v7235_v38, %v7234_v11  ;;  %v7238_v46 = vshrl.u32 %v16545_v36, %v7223_v63  ;;  %v7082_v61 = vcvt.s32.f32 %v7075_v39 }
 0x8f1   : > { %v7080_v52 = vand.u32 2147483647, %v7079_v5  ;;  %vm7314_vm5 = vcmp.lt.s32.totalorder %v15058_v25, 0  ;;  %v15280_v56 = vsub.s32 %v7372_v40, %v7375_v54  ;;  %v7256_v27 = vshll.u32 %v7216_v59, 8 }
 0x8f2   : > { %v7398_v13 = vsub.s32 4, %v7374_v47  ;;  %v7224_v24 = vshrl.u32 %v16540_v33, %v7223_v63  ;;  %v7239_v43 = vor.u32 %v7238_v46, %v7237_v53  ;;  %v7524_v9 = vshrl.u32 %v7523_v44, 23 }
 0x8f3   : > { %v7083_v48 = vmul.f32 %v7082_v61, %v7080_v52  ;;  %v7378_v12 = vsub.s32 0, %v15280_v56  ;;  %vm7240_vm7 = vcmp.lt.s32.totalorder %v7221_v45, 1  ;;  %vm7243_vm14 = vcmp.lt.s32.totalorder %v7221_v45, 4 }
 0x8f4   : > { %v16890_v2 = vand.u32 2147483647, %v15058_v25  ;;  %vm7242_vm12 = vcmp.lt.s32.totalorder %v7221_v45, 3  ;;  %v7245_v40 = vsel %vm7243_vm14, %v7233_v30, 2102212464  ;;  %v7248_v15 = vsel %vm7240_vm7, %v7227_v58, %v7230_v41 }
 0x8f5   : > { %v7249_v59 = vsel %vm7243_vm14, %v7236_v50, 920167782  ;;  %v8419_v22 = vmin.u32 %v7378_v12, %v15280_v56  ;;  %vm7241_vm0 = vcmp.lt.s32.totalorder %v7221_v45, 2  ;;  %v7252_v39 = vsel %vm7240_vm7, %v7230_v41, %v7233_v30 }
 0x8f6   : > { %vm15286_vm10 = vcmp.le.f32.partialorder %v16890_v2, 0.7853982  ;;  %v7250_v63 = vsel %vm7242_vm12, %v7233_v30, %v7249_v59  ;;  %v7244_v52 = vsel %vm7240_vm7, %v7224_v24, %v7227_v58  ;;  %v7253_v51 = vsel %vm7243_vm14, %v7239_v43, 1326507024 }
 0x8f7   : > { %v7251_v38 = vsel %vm7241_vm0, %v7248_v15, %v7250_v63  ;;  %v8426_v11 = vadd.s32 4294967169, %v7524_v9  ;;  %v7084_v44 = vxor.u32 2147483648, %v7083_v48  ;;  %v7380_v5 = vclz %v8419_v22 }
 0x8f8   : > { %v7246_v54 = vsel %vm7242_vm12, %v7230_v41, %v7245_v40  ;;  %v7254_v53 = vsel %vm7242_vm12, %v7236_v50, %v7253_v51  ;;  %9408 = vcosq.f32 %v15259_v28  ;;  %v7399_v9 = vsel %vm7314_vm5, %v7398_v13, %v7374_v47 }
 0x8f9   : > { %v7255_v46 = vsel %vm7241_vm0, %v7252_v39, %v7254_v53  ;;  %v15294_v61 = vmul.u32.u64.low %v7256_v27, %v7251_v38  ;;  %v15295_v2 = vmul.u32.u64.high %v7256_v27, %v7251_v38, %v15294_v61  ;;  %9410 = vsinq.f32 %v15259_v28 }
 0x8fa   : > { %v8420_v30 = vadd.s32 4294967294, %v7380_v5  ;;  %v15299_v24 = vmul.u32.u64.low %v7256_v27, %v7255_v46  ;;  %v15300_v58 = vmul.u32.u64.high %v7256_v27, %v7255_v46, %v15299_v24  ;;  %v7247_v41 = vsel %vm7241_vm0, %v7244_v52, %v7246_v54 }
 0x8fb   : > { %v7530_v50 = vadd.s32 1, %v8426_v11  ;;  %v7419_v43 = vand.u32 2139095040, %v15095_v10  ;;  %v7085_v12 = vsel %vm7002_vm6, %v7084_v44, %v7083_v48  ;;  %v16893_v40 = vand.u32 2147483647, %v15092_v6  ;;  %v6219_v48 = vpop.permute.xlu1 %6218 }
 0x8fc   : > { %vm8421_vm9 = vcmp.lt.s32.totalorder %v8420_v30, 0  ;;  %v16334_v28 = vand.u32 2147483647, %v15095_v10  ;;  %v7368_v59 = vadd.s32 %v15221_v0, %v15237_v14  ;;  %v7266_v13 = vadd.s32 1, %v15295_v2 }
 0x8fd   : > { %v7527_v15 = vand.u32 8388607, %v16893_v40  ;;  %v7383_v22 = vsel %vm8421_vm9, 0, %v8420_v30  ;;  %vm7531_vm8 = vcmp.gt.s32.totalorder %v7530_v50, 0  ;;  %v7401_v63 = vsel %vm15286_vm10, 0, %v7399_v9 }
 0x8fe   : > { %v7384_v47 = vsub.s32 32, %v7383_v22  ;;  %v7388_v45 = vsub.s32 4294967266, %v7383_v22  ;;  %v7263_v39 = vmul.u32 %v7256_v27, %v7247_v41  ;;  %v15319_v52 = vsel %vm15204_vm4, %v14971_v60, %v7085_v12 }
 0x8ff   : > { %vm7265_vm6 = vc.u32 %v15300_v58, %v15294_v61  ;;  %v7532_v14 = vsel %vm7531_vm8, %v7530_v50, 0  ;;  %v7420_v0 = vshrl.u32 %v7419_v43, 23  ;;  %v15325_v44 = vadd.f32 %v14875_v1, %v6219_v48 }
 0x900   : > { %v7386_v38 = vshrl.u32 %v7368_v59, %v7384_v47  ;;  %v7389_v51 = vadd.s32 127, %v7388_v45  ;;  %v7267_v11 = vsel %vm7265_vm6, %v7266_v13, %v15295_v2  ;;  %v7385_v27 = vshll.u32 %v15280_v56, %v7383_v22 }
 0x901   : > { %16894 = vst [vmem:[#allocation45_spill] sm:$0xff] %v15325_v44  ;;  %v15328_v5 = vadd.s32 3, %v7401_v63  ;;  %v7268_v54 = vadd.s32 %v7267_v11, %v7263_v39  ;;  %v7534_v62 = vand.u32 31, %v7532_v14  ;;  %9412 = vcosq.f32 %v15319_v52 }
 0x902   : > { %v7390_v53 = vshll.u32 %v7389_v51, 23  ;;  %v7528_v46 = vor.u32 8388608, %v7527_v15  ;;  %v15333_v30 = vand.u32 8388607, %v16334_v28  ;;  %v15335_v24 = vpop.eup %9408  ;;  %v7387_v2 = vor.u32 %v7386_v38, %v7385_v27 }
 0x903   : > { %16895 = vst [vmem:[#allocation21_spill] sm:$0xff] %v15328_v5  ;;  %16896 = vst [vmem:[#allocation31_spill] sm:$0xff] %v15335_v24  ;;  %v7269_v9 = vadd.s32 536870912, %v7268_v54  ;;  %v7535_v1 = vsub.s32 32, %v7534_v62  ;;  %v8422_v41 = vadd.s32 4294967169, %v7420_v0  ;;  %v15337_v50 = vpop.eup %9410  ;;  %v7533_v43 = vshrl.u32 %v7532_v14, 5 }
 0x904   : > { %16897 = vst [vmem:[#allocation42_spill] sm:$0xff] %v15337_v50  ;;  %v7391_v56 = vor.u32 4788187, %v7390_v53  ;;  %v7537_v12 = vshll.u32 %v16540_v33, %v7534_v62  ;;  %v7540_v40 = vshll.u32 %v16846_v32, %v7534_v62  ;;  %v7543_v13 = vshll.u32 %v16847_v26, %v7534_v62 }
 0x905   : > { %v7270_v59 = vshrl.u32 %v7269_v9, 30  ;;  %v7538_v15 = vshrl.u32 %v16846_v32, %v7535_v1  ;;  %v7541_v22 = vshrl.u32 %v16847_v26, %v7535_v1  ;;  %v7544_v45 = vshrl.u32 %v16848_v17, %v7535_v1 }
 0x906   : > { %v7392_v47 = vand.u32 2147483647, %v7391_v56  ;;  %v7546_v63 = vshll.u32 %v16848_v17, %v7534_v62  ;;  %v7547_v39 = vshrl.u32 %v16697_v3, %v7535_v1  ;;  %v7394_v48 = vcvt.s32.f32 %v7387_v2 }
 0x907   : > { %v7271_v14 = vshll.u32 %v7270_v59, 30  ;;  %v7539_v0 = vor.u32 %v7538_v15, %v7537_v12  ;;  %v7542_v38 = vor.u32 %v7541_v22, %v7540_v40  ;;  %v7545_v51 = vor.u32 %v7544_v45, %v7543_v13 }
 0x908   : > { %v7548_v11 = vor.u32 %v7547_v39, %v7546_v63  ;;  %v7549_v27 = vshll.u32 %v16697_v3, %v7534_v62  ;;  %v7550_v53 = vshrl.u32 %v16545_v36, %v7535_v1  ;;  %vm7552_vm15 = vcmp.lt.s32.totalorder %v7533_v43, 1 }
 0x909   : > { %v15349_v9 = vsub.s32 %v7268_v54, %v7271_v14  ;;  %v7568_v56 = vshll.u32 %v7528_v46, 8  ;;  %v7426_v28 = vadd.s32 1, %v8422_v41  ;;  %v7395_v5 = vmul.f32 %v7394_v48, %v7392_v47 }
 0x90a   : > { %vm7210_vm13 = vcmp.lt.s32.totalorder %v15085_v18, 0  ;;  %v7536_v24 = vshrl.u32 %v16540_v33, %v7535_v1  ;;  %v7551_v2 = vor.u32 %v7550_v53, %v7549_v27  ;;  %vm7555_vm4 = vcmp.lt.s32.totalorder %v7533_v43, 4 }
 0x90b   : > { %v7274_v12 = vsub.s32 0, %v15349_v9  ;;  %vm7554_vm2 = vcmp.lt.s32.totalorder %v7533_v43, 3  ;;  %v7557_v40 = vsel %vm7555_vm4, %v7545_v51, 2102212464  ;;  %v7560_v62 = vsel %vm7552_vm15, %v7539_v0, %v7542_v38  ;;  %v15356_v15 = vpop.eup %9412 }
 0x90c   : > { %v7556_v54 = vsel %vm7552_vm15, %v7536_v24, %v7539_v0  ;;  %v7558_v46 = vsel %vm7554_vm2, %v7542_v38, %v7557_v40  ;;  %v7561_v41 = vsel %vm7555_vm4, %v7548_v11, 920167782  ;;  %v7424_v22 = vor.u32 8388608, %v15333_v30 }
 0x90d   : > { %v8415_v1 = vmin.u32 %v7274_v12, %v15349_v9  ;;  %vm7553_vm3 = vcmp.lt.s32.totalorder %v7533_v43, 2  ;;  %v7562_v13 = vsel %vm7554_vm2, %v7545_v51, %v7561_v41  ;;  %v7564_v47 = vsel %vm7552_vm15, %v7542_v38, %v7545_v51 }
 0x90e   : > { %v7396_v45 = vxor.u32 2147483648, %v7395_v5  ;;  %v7294_v63 = vsub.s32 4, %v7270_v59  ;;  %v7563_v39 = vsel %vm7553_vm3, %v7560_v62, %v7562_v13  ;;  %v7565_v48 = vsel %vm7555_vm4, %v7551_v2, 1326507024 }
 0x90f   : > { %v7276_v14 = vclz %v8415_v1  ;;  %v7559_v24 = vsel %vm7553_vm3, %v7556_v54, %v7558_v46  ;;  %v7566_v0 = vsel %vm7554_vm2, %v7548_v11, %v7565_v48  ;;  %vm7427_vm1 = vcmp.gt.s32.totalorder %v7426_v28, 0 }
 0x910   : > { %v7567_v27 = vsel %vm7553_vm3, %v7564_v47, %v7566_v0  ;;  %v15367_v53 = vmul.u32.u64.low %v7568_v56, %v7563_v39  ;;  %v15368_v30 = vmul.u32.u64.high %v7568_v56, %v7563_v39, %v15367_v53  ;;  %v7428_v12 = vsel %vm7427_vm1, %v7426_v28, 0 }
 0x911   : > { %v8416_v40 = vadd.s32 4294967294, %v7276_v14  ;;  %v15371_v41 = vmul.u32.u64.low %v7568_v56, %v7567_v27  ;;  %v15372_v50 = vmul.u32.u64.high %v7568_v56, %v7567_v27, %v15371_v41  ;;  %v15374_v38 = vshrl.u32 %v7428_v12, 5 }
 0x912   : > { %v7264_v51 = vadd.s32 %v15294_v61, %v15300_v58  ;;  %v7430_v2 = vand.u32 31, %v7428_v12  ;;  %v15378_v62 = vshll.u32 %v7424_v22, 8  ;;  %v16337_v43 = vand.u32 2147483647, %v15325_v44 }
 0x913   : > { %v7397_v11 = vsel %vm7314_vm5, %v7396_v45, %v7395_v5  ;;  %vm8417_vm11 = vcmp.lt.s32.totalorder %v8416_v40, 0  ;;  %v15385_v28 = vsel %vm7210_vm13, %v7294_v63, %v7270_v59  ;;  %v7575_v54 = vmul.u32 %v7568_v56, %v7559_v24  ;;  %v6229_v63 = vpop.permute.xlu1 %6228 }
 0x914   : > { %v7279_v46 = vsel %vm8417_vm11, 0, %v8416_v40  ;;  %v7578_v1 = vadd.s32 1, %v15368_v30  ;;  %v7431_v13 = vsub.s32 32, %v7430_v2  ;;  %v7731_v61 = vand.u32 2139095040, %v15325_v44 }
 0x915   : > { %v7280_v58 = vsub.s32 32, %v7279_v46  ;;  %v7284_v22 = vsub.s32 4294967266, %v7279_v46  ;;  %v7433_v47 = vshll.u32 %v16540_v33, %v7430_v2  ;;  %vm7448_vm7 = vcmp.lt.s32.totalorder %v15374_v38, 1 }
 0x916   : > { %v7281_v5 = vshll.u32 %v15349_v9, %v7279_v46  ;;  %vm7577_vm5 = vc.u32 %v15372_v50, %v15367_v53  ;;  %v7434_v59 = vshrl.u32 %v16846_v32, %v7431_v13  ;;  %v7436_v56 = vshll.u32 %v16846_v32, %v7430_v2 }
 0x917   : > { %v16898_v45 = vand.u32 2147483647, %v15085_v18  ;;  %v7282_v39 = vshrl.u32 %v7264_v51, %v7280_v58  ;;  %v7285_v48 = vadd.s32 127, %v7284_v22  ;;  %v7579_v14 = vsel %vm7577_vm5, %v7578_v1, %v15368_v30 }
 0x918   : > { %v7437_v24 = vshrl.u32 %v16847_v26, %v7431_v13  ;;  %v7580_v9 = vadd.s32 %v7579_v14, %v7575_v54  ;;  %v7439_v0 = vshll.u32 %v16847_v26, %v7430_v2  ;;  %v7440_v27 = vshrl.u32 %v16848_v17, %v7431_v13 }
 0x919   : > { %vm15398_vm14 = vcmp.le.f32.partialorder %v16898_v45, 0.7853982  ;;  %vm7449_vm12 = vcmp.lt.s32.totalorder %v15374_v38, 2  ;;  %v7283_v12 = vor.u32 %v7282_v39, %v7281_v5  ;;  %v7286_v40 = vshll.u32 %v7285_v48, 23 }
 0x91a   : > { %v7435_v41 = vor.u32 %v7434_v59, %v7433_v47  ;;  %v7438_v46 = vor.u32 %v7437_v24, %v7436_v56  ;;  %vm7522_vm0 = vcmp.lt.s32.totalorder %v15092_v6, 0  ;;  %v7581_v45 = vadd.s32 536870912, %v7580_v9 }
 0x91b   : > { %v7441_v51 = vor.u32 %v7440_v27, %v7439_v0  ;;  %v7442_v58 = vshll.u32 %v16848_v17, %v7430_v2  ;;  %v7443_v30 = vshrl.u32 %v16697_v3, %v7431_v13  ;;  %v7287_v1 = vor.u32 4788187, %v7286_v40 }
 0x91c   : > { %v7445_v54 = vshll.u32 %v16697_v3, %v7430_v2  ;;  %v7446_v22 = vshrl.u32 %v16545_v36, %v7431_v13  ;;  %vm7450_vm9 = vcmp.lt.s32.totalorder %v15374_v38, 3  ;;  %v7290_v14 = vcvt.s32.f32 %v7283_v12 }
 0x91d   : > { %v7582_v5 = vshrl.u32 %v7581_v45, 30  ;;  %v7432_v47 = vshrl.u32 %v16540_v33, %v7431_v13  ;;  %v7444_v59 = vor.u32 %v7443_v30, %v7442_v58  ;;  %v7288_v56 = vand.u32 2147483647, %v7287_v1 }
 0x91e   : > { %v16901_v39 = vand.u32 2147483647, %v15092_v6  ;;  %v7447_v24 = vor.u32 %v7446_v22, %v7445_v54  ;;  %vm7451_vm6 = vcmp.lt.s32.totalorder %v15374_v38, 4  ;;  %v7456_v2 = vsel %vm7448_vm7, %v7435_v41, %v7438_v46 }
 0x91f   : > { %v7583_v0 = vshll.u32 %v7582_v5, 30  ;;  %v7606_v27 = vsub.s32 4, %v7582_v5  ;;  %v7453_v12 = vsel %vm7451_vm6, %v7441_v51, 2102212464  ;;  %v7457_v40 = vsel %vm7451_vm6, %v7444_v59, 920167782 }
 0x920   : > { %vm15416_vm8 = vcmp.le.f32.partialorder %v16901_v39, 0.7853982  ;;  %v7291_v45 = vmul.f32 %v7290_v14, %v7288_v56  ;;  %v7458_v13 = vsel %vm7450_vm9, %v7441_v51, %v7457_v40  ;;  %v7460_v58 = vsel %vm7448_vm7, %v7438_v46, %v7441_v51 }
 0x921   : > { %v7461_v30 = vsel %vm7451_vm6, %v7447_v24, 1326507024  ;;  %v7297_v1 = vsel %vm15398_vm14, 0, %v15385_v28  ;;  %v15430_v54 = vsub.s32 %v7580_v9, %v7583_v0  ;;  %v7459_v22 = vsel %vm7449_vm12, %v7456_v2, %v7458_v13 }
 0x922   : > { %v7462_v39 = vsel %vm7450_vm9, %v7444_v59, %v7461_v30  ;;  %v7400_v14 = vsel %vm15286_vm10, %v15058_v25, %v7397_v11  ;;  %v7292_v56 = vxor.u32 2147483648, %v7291_v45  ;;  %v7452_v51 = vsel %vm7448_vm7, %v7432_v47, %v7435_v41  ;;  %v6214_v47 = vpop.permute.xlu0 %6213 }
 0x923   : > { %v7463_v24 = vsel %vm7449_vm12, %v7460_v58, %v7462_v39  ;;  %v7586_v28 = vsub.s32 0, %v15430_v54  ;;  %v7454_v9 = vsel %vm7450_vm9, %v7438_v46, %v7453_v12  ;;  %v7607_v31 = vsel %vm7522_vm0, %v7606_v27, %v7582_v5 }
 0x924   : > { %v15447_v2 = vmul.u32.u64.low %v15378_v62, %v7463_v24  ;;  %v15448_v0 = vmul.u32.u64.high %v15378_v62, %v7463_v24, %v15447_v2  ;;  %v15453_v11 = vmul.u32.u64.low %v15378_v62, %v7459_v22  ;;  %v15454_v59 = vmul.u32.u64.high %v15378_v62, %v7459_v22, %v15453_v11 }
 0x925   : > { %v7732_v41 = vshrl.u32 %v7731_v61, 23  ;;  %9414 = vsinq.f32 %v15319_v52  ;;  %v7293_v40 = vsel %vm7210_vm13, %v7292_v56, %v7291_v45  ;;  %v8427_v46 = vmin.u32 %v7586_v28, %v15430_v54 }
 0x926   : > { %v7735_v12 = vand.u32 8388607, %v16337_v43  ;;  %v15462_v13 = vadd.s32 3, %v7297_v1  ;;  %v7455_v5 = vsel %vm7449_vm12, %v7452_v51, %v7454_v9  ;;  %v15467_v58 = vadd.f32 %v14968_v55, %v6214_v47 }
 0x927   : > { %v8434_v27 = vadd.s32 4294967169, %v7732_v41  ;;  %9416 = vcosq.f32 %v7400_v14  ;;  %v7588_v61 = vclz %v8427_v46  ;;  %v7609_v52 = vsel %vm15416_vm8, 0, %v7607_v31 }
 0x928   : > { %vm7473_vm10 = vc.u32 %v15448_v0, %v15453_v11  ;;  %9418 = vsinq.f32 %v7400_v14  ;;  %v15475_v45 = vsel %vm15398_vm14, %v15085_v18, %v7293_v40  ;;  %v7474_v38 = vadd.s32 1, %v15454_v59 }
 0x929   : > { %v7738_v30 = vadd.s32 1, %v8434_v27  ;;  %v7576_v55 = vadd.s32 %v15367_v53, %v15372_v50  ;;  %v8428_v1 = vadd.s32 4294967294, %v7588_v61  ;;  %v7471_v22 = vmul.u32 %v15378_v62, %v7455_v5 }
 0x92a   : > { %v7736_v39 = vor.u32 8388608, %v7735_v12  ;;  %v15481_v56 = vadd.s32 3, %v7609_v52  ;;  %v7475_v51 = vsel %vm7473_vm10, %v7474_v38, %v15454_v59  ;;  %v7627_v14 = vand.u32 2139095040, %v15467_v58 }
 0x92b   : > { %vm7739_vm15 = vcmp.gt.s32.totalorder %v7738_v30, 0  ;;  %9420 = vcosq.f32 %v15475_v45  ;;  %vm8429_vm13 = vcmp.lt.s32.totalorder %v8428_v1, 0  ;;  %v7476_v24 = vadd.s32 %v7475_v51, %v7471_v22 }
 0x92c   : > { %16904 = vst [vmem:[#allocation46_spill] sm:$0xff] %v15481_v56  ;;  %v7740_v28 = vsel %vm7739_vm15, %v7738_v30, 0  ;;  %v7591_v9 = vsel %vm8429_vm13, 0, %v8428_v1  ;;  %v15487_v50 = vadd.s32 %v15453_v11, %v15448_v0  ;;  %v15490_v62 = vadd.f32 %v15097_v37, %v6229_v63 }
 0x92d   : > { %v7742_v53 = vand.u32 31, %v7740_v28  ;;  %v7592_v2 = vsub.s32 32, %v7591_v9  ;;  %v7596_v31 = vsub.s32 4294967266, %v7591_v9  ;;  %v7477_v59 = vadd.s32 536870912, %v7476_v24 }
 0x92e   : > { %v15492_v41 = vshll.u32 %v7736_v39, 8  ;;  %v15494_v47 = vshrl.u32 %v7740_v28, 5  ;;  %v7628_v12 = vshrl.u32 %v7627_v14, 23  ;;  %v7593_v0 = vshll.u32 %v15430_v54, %v7591_v9 }
 0x92f   : > { %v7743_v40 = vsub.s32 32, %v7742_v53  ;;  %v15497_v5 = vpop.eup %9414  ;;  %v7594_v11 = vshrl.u32 %v7576_v55, %v7592_v2  ;;  %v7597_v27 = vadd.s32 127, %v7596_v31  ;;  %v7478_v61 = vshrl.u32 %v7477_v59, 30 }
 0x930   : > { %v7745_v37 = vshll.u32 %v16540_v33, %v7742_v53  ;;  %v7751_v14 = vshll.u32 %v16847_v26, %v7742_v53  ;;  %vm7418_vm4 = vcmp.lt.s32.totalorder %v15095_v10, 0  ;;  %v7748_v55 = vshll.u32 %v16846_v32, %v7742_v53 }
 0x931   : > { %v7746_v52 = vshrl.u32 %v16846_v32, %v7743_v40  ;;  %v7749_v38 = vshrl.u32 %v16847_v26, %v7743_v40  ;;  %v7752_v30 = vshrl.u32 %v16848_v17, %v7743_v40  ;;  %v15504_v1 = vpop.eup %9416  ;;  %v7595_v22 = vor.u32 %v7594_v11, %v7593_v0 }
 0x932   : > { %16905 = vst [vmem:[#allocation36_spill] sm:$0xff] %v15504_v1  ;;  %v7598_v39 = vshll.u32 %v7597_v27, 23  ;;  %v7479_v51 = vshll.u32 %v7478_v61, 30  ;;  %v15507_v63 = vpop.eup %9418  ;;  %v7744_v54 = vshrl.u32 %v16540_v33, %v7743_v40  ;;  %v7754_v28 = vshll.u32 %v16848_v17, %v7742_v53 }
 0x933   : > { %16906 = vst [vmem:[#allocation28_spill] sm:$0xff] %v15507_v63  ;;  %v7755_v9 = vshrl.u32 %v16697_v3, %v7743_v40  ;;  %v7747_v59 = vor.u32 %v7746_v52, %v7745_v37  ;;  %v7753_v0 = vor.u32 %v7752_v30, %v7751_v14  ;;  %v7750_v11 = vor.u32 %v7749_v38, %v7748_v55 }
 0x934   : > { %v7599_v2 = vor.u32 4788187, %v7598_v39  ;;  %v15514_v31 = vsub.s32 %v7476_v24, %v7479_v51  ;;  %v7757_v43 = vshll.u32 %v16697_v3, %v7742_v53  ;;  %v7758_v46 = vshrl.u32 %v16545_v36, %v7743_v40 }
 0x935   : > { %v7756_v27 = vor.u32 %v7755_v9, %v7754_v28  ;;  %v15518_v56 = vpop.eup %9420  ;;  %v7602_v1 = vcvt.s32.f32 %v7595_v22  ;;  %v16907_v63 = vand.u32 2147483647, %v15095_v10  ;;  %v7502_v37 = vsub.s32 4, %v7478_v61 }
 0x936   : > { %v7600_v25 = vand.u32 2147483647, %v7599_v2  ;;  %v7482_v24 = vsub.s32 0, %v15514_v31  ;;  %v7759_v52 = vor.u32 %v7758_v46, %v7757_v43  ;;  %vm7760_vm3 = vcmp.lt.s32.totalorder %v15494_v47, 1 }
 0x937   : > { %vm15522_vm2 = vcmp.le.f32.partialorder %v16907_v63, 0.7853982  ;;  %vm7761_vm1 = vcmp.lt.s32.totalorder %v15494_v47, 2  ;;  %vm7763_vm11 = vcmp.lt.s32.totalorder %v15494_v47, 4  ;;  %vm7762_vm7 = vcmp.lt.s32.totalorder %v15494_v47, 3 }
 0x938   : > { %v7603_v53 = vmul.f32 %v7602_v1, %v7600_v25  ;;  %v8423_v40 = vmin.u32 %v7482_v24, %v15514_v31  ;;  %v7765_v38 = vsel %vm7763_vm11, %v7753_v0, 2102212464  ;;  %v7764_v30 = vsel %vm7760_vm3, %v7744_v54, %v7747_v59 }
 0x939   : > { %v7766_v22 = vsel %vm7762_vm7, %v7750_v11, %v7765_v38  ;;  %v7768_v39 = vsel %vm7760_vm3, %v7747_v59, %v7750_v11  ;;  %v7769_v51 = vsel %vm7763_vm11, %v7756_v27, 920167782  ;;  %v7772_v63 = vsel %vm7760_vm3, %v7750_v11, %v7753_v0 }
 0x93a   : > { %v7604_v14 = vxor.u32 2147483648, %v7603_v53  ;;  %v7484_v43 = vclz %v8423_v40  ;;  %v7770_v46 = vsel %vm7762_vm7, %v7753_v0, %v7769_v51  ;;  %v7773_v1 = vsel %vm7763_vm11, %v7759_v52, 1326507024 }
 0x93b   : > { %v7771_v25 = vsel %vm7761_vm1, %v7768_v39, %v7770_v46  ;;  %v8430_v55 = vadd.s32 4294967169, %v7628_v12  ;;  %v16910_v28 = vand.u32 2147483647, %v15467_v58  ;;  %v7503_v2 = vsel %vm7418_vm4, %v7502_v37, %v7478_v61 }
 0x93c   : > { %v8424_v54 = vadd.s32 4294967294, %v7484_v43  ;;  %v7767_v59 = vsel %vm7761_vm1, %v7764_v30, %v7766_v22  ;;  %v7774_v24 = vsel %vm7762_vm7, %v7756_v27, %v7773_v1  ;;  %v7605_v0 = vsel %vm7522_vm0, %v7604_v14, %v7603_v53 }
 0x93d   : > { %v7631_v9 = vand.u32 8388607, %v16910_v28  ;;  %v7775_v11 = vsel %vm7761_vm1, %v7772_v63, %v7774_v24  ;;  %v15551_v12 = vmul.u32.u64.low %v15492_v41, %v7771_v25  ;;  %v15552_v52 = vmul.u32.u64.high %v15492_v41, %v7771_v25, %v15551_v12  ;;  %v6224_v63 = vpop.permute.xlu0 %6223 }
 0x93e   : > { %vm8425_vm5 = vcmp.lt.s32.totalorder %v8424_v54, 0  ;;  %v15556_v61 = vmul.u32.u64.low %v15492_v41, %v7775_v11  ;;  %v15557_v37 = vmul.u32.u64.high %v15492_v41, %v7775_v11, %v15556_v61  ;;  %v16342_v40 = vand.u32 2147483647, %v15490_v62 }
 0x93f   : > { %v7487_v38 = vsel %vm8425_vm5, 0, %v8424_v54  ;;  %v7505_v27 = vsel %vm15522_vm2, 0, %v7503_v2  ;;  %v7632_v53 = vor.u32 8388608, %v7631_v9  ;;  %v7634_v30 = vadd.s32 1, %v8430_v55 }
 0x940   : > { %v7608_v47 = vsel %vm15416_vm8, %v15092_v6, %v7605_v0  ;;  %v7488_v22 = vsub.s32 32, %v7487_v38  ;;  %v7492_v39 = vsub.s32 4294967266, %v7487_v38  ;;  %v7783_v51 = vmul.u32 %v15492_v41, %v7767_v59 }
 0x941   : > { %v7489_v14 = vshll.u32 %v15514_v31, %v7487_v38  ;;  %v7786_v43 = vadd.s32 1, %v15552_v52  ;;  %vm7635_vm14 = vcmp.gt.s32.totalorder %v7634_v30, 0  ;;  %v7939_v46 = vand.u32 2139095040, %v15490_v62 }
 0x942   : > { %v7490_v25 = vshrl.u32 %v15487_v50, %v7488_v22  ;;  %v7493_v1 = vadd.s32 127, %v7492_v39  ;;  %vm7785_vm12 = vc.u32 %v15557_v37, %v15551_v12  ;;  %v7943_v48 = vand.u32 8388607, %v16342_v40 }
 0x943   : > { %9422 = vsinq.f32 %v15475_v45  ;;  %vm7730_vm0 = vcmp.lt.s32.totalorder %v15325_v44, 0  ;;  %v7787_v41 = vsel %vm7785_vm12, %v7786_v43, %v15552_v52  ;;  %v7636_v31 = vsel %vm7635_vm14, %v7634_v30, 0 }
 0x944   : > { %v15578_v55 = vadd.f32 %v15159_v35, %v6224_v63  ;;  %9424 = vcosq.f32 %v7608_v47  ;;  %v7491_v28 = vor.u32 %v7490_v25, %v7489_v14  ;;  %v7494_v50 = vshll.u32 %v7493_v1, 23 }
 0x945   : > { %v7788_v9 = vadd.s32 %v7787_v41, %v7783_v51  ;;  %9426 = vsinq.f32 %v7608_v47  ;;  %v15580_v54 = vadd.s32 3, %v7505_v27  ;;  %v7638_v2 = vand.u32 31, %v7636_v31 }
 0x946   : > { %v15582_v59 = vshll.u32 %v7632_v53, 8  ;;  %v7495_v24 = vor.u32 4788187, %v7494_v50  ;;  %v16912_v45 = vand.u32 2147483647, %v15325_v44  ;;  %v7940_v35 = vshrl.u32 %v7939_v46, 23 }
 0x947   : > { %16911 = vst [vmem:[#allocation13_spill] sm:$0xff] %v15580_v54  ;;  %v7789_v11 = vadd.s32 536870912, %v7788_v9  ;;  %v7944_v52 = vor.u32 8388608, %v7943_v48  ;;  %v7498_v61 = vcvt.s32.f32 %v7491_v28  ;;  %v7637_v38 = vshrl.u32 %v7636_v31, 5 }
 0x948   : > { %vm15586_vm9 = vcmp.le.f32.partialorder %v16912_v45, 0.7853982  ;;  %v7639_v30 = vsub.s32 32, %v7638_v2  ;;  %v7641_v47 = vshll.u32 %v16540_v33, %v7638_v2  ;;  %v7496_v27 = vand.u32 2147483647, %v7495_v24 }
 0x949   : > { %v7790_v22 = vshrl.u32 %v7789_v11, 30  ;;  %v7644_v53 = vshll.u32 %v16846_v32, %v7638_v2  ;;  %v7647_v39 = vshll.u32 %v16847_v26, %v7638_v2  ;;  %v7650_v46 = vshll.u32 %v16848_v17, %v7638_v2 }
 0x94a   : > { %v7642_v51 = vshrl.u32 %v16846_v32, %v7639_v30  ;;  %v7645_v14 = vshrl.u32 %v16847_v26, %v7639_v30  ;;  %v7648_v43 = vshrl.u32 %v16848_v17, %v7639_v30  ;;  %v7499_v63 = vmul.f32 %v7498_v61, %v7496_v27 }
 0x94b   : > { %v7791_v25 = vshll.u32 %v7790_v22, 30  ;;  %v7814_v1 = vsub.s32 4, %v7790_v22  ;;  %v7651_v48 = vshrl.u32 %v16697_v3, %v7639_v30  ;;  %v7654_v50 = vshrl.u32 %v16545_v36, %v7639_v30 }
 0x94c   : > { %v7643_v41 = vor.u32 %v7642_v51, %v7641_v47  ;;  %v7646_v31 = vor.u32 %v7645_v14, %v7644_v53  ;;  %v7649_v28 = vor.u32 %v7648_v43, %v7647_v39  ;;  %v7653_v40 = vshll.u32 %v16697_v3, %v7638_v2 }
 0x94d   : > { %v15599_v24 = vsub.s32 %v7788_v9, %v7791_v25  ;;  %v7815_v45 = vsel %vm7730_vm0, %v7814_v1, %v7790_v22  ;;  %v7652_v11 = vor.u32 %v7651_v48, %v7650_v46  ;;  %v15604_v6 = vpop.eup %9422  ;;  %v7500_v61 = vxor.u32 2147483648, %v7499_v63 }
 0x94e   : > { %v7784_v27 = vadd.s32 %v15551_v12, %v15557_v37  ;;  %v8442_v54 = vadd.s32 4294967169, %v7940_v35  ;;  %v15608_v47 = vshll.u32 %v7944_v52, 8  ;;  %v15610_v53 = vpop.eup %9424  ;;  %v7655_v39 = vor.u32 %v7654_v50, %v7653_v40 }
 0x94f   : > { %16915 = vst [vmem:[#allocation34_spill] sm:$0xff] %v15610_v53  ;;  %v7794_v9 = vsub.s32 0, %v15599_v24  ;;  %vm7656_vm8 = vcmp.lt.s32.totalorder %v7637_v38, 1  ;;  %vm7659_vm6 = vcmp.lt.s32.totalorder %v7637_v38, 4  ;;  %v15613_v22 = vpop.eup %9426  ;;  %v7817_v2 = vsel %vm15586_vm9, 0, %v7815_v45 }
 0x950   : > { %16916 = vst [vmem:[#allocation11_spill] sm:$0xff] %v15613_v22  ;;  %v7640_v51 = vshrl.u32 %v16540_v33, %v7639_v30  ;;  %v7661_v14 = vsel %vm7659_vm6, %v7649_v28, 2102212464  ;;  %v7664_v12 = vsel %vm7656_vm8, %v7643_v41, %v7646_v31  ;;  %vm7657_vm10 = vcmp.lt.s32.totalorder %v7637_v38, 2 }
 0x951   : > { %v8435_v37 = vmin.u32 %v7794_v9, %v15599_v24  ;;  %vm7658_vm15 = vcmp.lt.s32.totalorder %v7637_v38, 3  ;;  %v7665_v35 = vsel %vm7659_vm6, %v7652_v11, 920167782  ;;  %v7501_v40 = vsel %vm7418_vm4, %v7500_v61, %v7499_v63 }
 0x952   : > { %v7660_v52 = vsel %vm7656_vm8, %v7640_v51, %v7643_v41  ;;  %v7666_v43 = vsel %vm7658_vm15, %v7649_v28, %v7665_v35  ;;  %v7668_v46 = vsel %vm7656_vm8, %v7646_v31, %v7649_v28  ;;  %v7662_v1 = vsel %vm7658_vm15, %v7646_v31, %v7661_v14 }
 0x953   : > { %v7796_v25 = vclz %v8435_v37  ;;  %v7667_v48 = vsel %vm7657_vm10, %v7664_v12, %v7666_v43  ;;  %v7669_v30 = vsel %vm7659_vm6, %v7655_v39, 1326507024  ;;  %v7946_v53 = vadd.s32 1, %v8442_v54 }
 0x954   : > { %v7670_v50 = vsel %vm7658_vm15, %v7652_v11, %v7669_v30  ;;  %v15626_v45 = vmul.u32.u64.low %v15582_v59, %v7667_v48  ;;  %v15627_v9 = vmul.u32.u64.high %v15582_v59, %v7667_v48, %v15626_v45  ;;  %v15633_v63 = vsel %vm15522_vm2, %v15095_v10, %v7501_v40 }
 0x955   : > { %v8436_v41 = vadd.s32 4294967294, %v7796_v25  ;;  %v7671_v28 = vsel %vm7657_vm10, %v7668_v46, %v7670_v50  ;;  %v16347_v31 = vand.u32 2147483647, %v15578_v55  ;;  %v7663_v61 = vsel %vm7657_vm10, %v7660_v52, %v7662_v1 }
 0x956   : > { %v15639_v11 = vmul.u32.u64.low %v15582_v59, %v7671_v28  ;;  %v15640_v39 = vmul.u32.u64.high %v15582_v59, %v7671_v28, %v15639_v11  ;;  %vm7947_vm13 = vcmp.gt.s32.totalorder %v7946_v53, 0  ;;  %v15642_v51 = vadd.s32 3, %v7817_v2 }
 0x957   : > { %vm8437_vm4 = vcmp.lt.s32.totalorder %v8436_v41, 0  ;;  %v7948_v54 = vsel %vm7947_vm13, %v7946_v53, 0  ;;  %9428 = vcosq.f32 %v15633_v63  ;;  %v7682_v14 = vadd.s32 1, %v15627_v9 }
 0x958   : > { %16917 = vst [vmem:[#allocation18_spill] sm:$0xff] %v15642_v51  ;;  %v7799_v18 = vsel %vm8437_vm4, 0, %v8436_v41  ;;  %v7950_v12 = vand.u32 31, %v7948_v54  ;;  %v16345_v37 = vmov 0.0|0.0   ;;  %v7679_v40 = vmul.u32 %v15582_v59, %v7663_v61 }
 0x959   : > { %8861 = vmatprep.subr.bf16.mxu1 %v16345_v37  ;;  %v7800_v38 = vsub.s32 32, %v7799_v18  ;;  %v7804_v35 = vsub.s32 4294967266, %v7799_v18  ;;  %v7835_v52 = vand.u32 2139095040, %v15578_v55  ;;  %v7801_v43 = vshll.u32 %v15599_v24, %v7799_v18 }
 0x95a   : > { %vm7681_vm2 = vc.u32 %v15640_v39, %v15626_v45  ;;  %v7951_v53 = vsub.s32 32, %v7950_v12  ;;  %v15654_v2 = vand.u32 8388607, %v16347_v31  ;;  %v7953_v48 = vshll.u32 %v16540_v33, %v7950_v12 }
 0x95b   : > { %v7802_v46 = vshrl.u32 %v7784_v27, %v7800_v38  ;;  %v7805_v25 = vadd.s32 127, %v7804_v35  ;;  %v7683_v1 = vsel %vm7681_vm2, %v7682_v14, %v15627_v9  ;;  %vm7626_vm3 = vcmp.lt.s32.totalorder %v15467_v58, 0 }
 0x95c   : > { %v7684_v59 = vadd.s32 %v7683_v1, %v7679_v40  ;;  %v7954_v30 = vshrl.u32 %v16846_v32, %v7951_v53  ;;  %v7956_v24 = vshll.u32 %v16846_v32, %v7950_v12  ;;  %v7957_v50 = vshrl.u32 %v16847_v26, %v7951_v53 }
 0x95d   : > { %v7803_v41 = vor.u32 %v7802_v46, %v7801_v43  ;;  %v7806_v28 = vshll.u32 %v7805_v25, 23  ;;  %v7959_v61 = vshll.u32 %v16847_v26, %v7950_v12  ;;  %v7960_v27 = vshrl.u32 %v16848_v17, %v7951_v53 }
 0x95e   : > { %v7685_v11 = vadd.s32 536870912, %v7684_v59  ;;  %v7949_v18 = vshrl.u32 %v7948_v54, 5  ;;  %v7955_v9 = vor.u32 %v7954_v30, %v7953_v48  ;;  %v7958_v14 = vor.u32 %v7957_v50, %v7956_v24 }
 0x95f   : > { %v7807_v38 = vor.u32 4788187, %v7806_v28  ;;  %v16918_v35 = vand.u32 2147483647, %v15467_v58  ;;  %v7961_v1 = vor.u32 %v7960_v27, %v7959_v61  ;;  %v7962_v37 = vshll.u32 %v16848_v17, %v7950_v12 }
 0x960   : > { %v7963_v43 = vshrl.u32 %v16697_v3, %v7951_v53  ;;  %v7686_v46 = vshrl.u32 %v7685_v11, 30  ;;  %v7952_v25 = vshrl.u32 %v16540_v33, %v7951_v53  ;;  %v7966_v31 = vshrl.u32 %v16545_v36, %v7951_v53 }
 0x961   : > { %vm15666_vm1 = vcmp.le.f32.partialorder %v16918_v35, 0.7853982  ;;  %v7836_v54 = vshrl.u32 %v7835_v52, 23  ;;  %v7808_v48 = vand.u32 2147483647, %v7807_v38  ;;  %v7810_v30 = vcvt.s32.f32 %v7803_v41  ;;  %v15675_v28 = vpop.eup %9428 }
 0x962   : > { %v7964_v24 = vor.u32 %v7963_v43, %v7962_v37  ;;  %v7965_v50 = vshll.u32 %v16697_v3, %v7950_v12  ;;  %v7687_v35 = vshll.u32 %v7686_v46, 30  ;;  %v7710_v51 = vsub.s32 4, %v7686_v46 }
 0x963   : > { %vm7968_vm11 = vcmp.lt.s32.totalorder %v7949_v18, 1  ;;  %vm7971_vm7 = vcmp.lt.s32.totalorder %v7949_v18, 4  ;;  %v7811_v61 = vmul.f32 %v7810_v30, %v7808_v48  ;;  %vm7969_vm5 = vcmp.lt.s32.totalorder %v7949_v18, 2 }
 0x964   : > { %v7967_v27 = vor.u32 %v7966_v31, %v7965_v50  ;;  %v7973_v11 = vsel %vm7971_vm7, %v7961_v1, 2102212464  ;;  %v7976_v10 = vsel %vm7968_vm11, %v7955_v9, %v7958_v14  ;;  %v15679_v22 = vsub.s32 %v7684_v59, %v7687_v35 }
 0x965   : > { %vm7970_vm14 = vcmp.lt.s32.totalorder %v7949_v18, 3  ;;  %v7977_v37 = vsel %vm7971_vm7, %v7964_v24, 920167782  ;;  %v7812_v52 = vxor.u32 2147483648, %v7811_v61  ;;  %v7711_v12 = vsel %vm7626_vm3, %v7710_v51, %v7686_v46 }
 0x966   : > { %v7972_v53 = vsel %vm7968_vm11, %v7952_v25, %v7955_v9  ;;  %v7978_v41 = vsel %vm7970_vm14, %v7961_v1, %v7977_v37  ;;  %v7690_v31 = vsub.s32 0, %v15679_v22  ;;  %v7974_v38 = vsel %vm7970_vm14, %v7958_v14, %v7973_v11 }
 0x967   : > { %v7979_v43 = vsel %vm7969_vm5, %v7976_v10, %v7978_v41  ;;  %v7980_v59 = vsel %vm7968_vm11, %v7958_v14, %v7961_v1  ;;  %v7813_v48 = vsel %vm7730_vm0, %v7812_v52, %v7811_v61  ;;  %v7981_v30 = vsel %vm7971_vm7, %v7967_v27, 1326507024 }
 0x968   : > { %v15694_v50 = vmul.u32.u64.low %v15608_v47, %v7979_v43  ;;  %v15695_v51 = vmul.u32.u64.high %v15608_v47, %v7979_v43, %v15694_v50  ;;  %v7816_v9 = vsel %vm15586_vm9, %v15325_v44, %v7813_v48  ;;  %v8431_v46 = vmin.u32 %v7690_v31, %v15679_v22 }
 0x969   : > { %v7713_v10 = vsel %vm15666_vm1, 0, %v7711_v12  ;;  %v7982_v14 = vsel %vm7970_vm14, %v7964_v24, %v7981_v30  ;;  %v7975_v1 = vsel %vm7969_vm5, %v7972_v53, %v7974_v38  ;;  %v8438_v35 = vadd.s32 4294967169, %v7836_v54 }
 0x96a   : > { %v7983_v25 = vsel %vm7969_vm5, %v7980_v59, %v7982_v14  ;;  %v7840_v61 = vor.u32 8388608, %v15654_v2  ;;  %9430 = vsinq.f32 %v15633_v63  ;;  %v7692_v27 = vclz %v8431_v46 }
 0x96b   : > { %v15710_v0 = vmul.u32.u64.low %v15608_v47, %v7983_v25  ;;  %v15711_v11 = vmul.u32.u64.high %v15608_v47, %v7983_v25, %v15710_v0  ;;  %9432 = vcosq.f32 %v7816_v9  ;;  %v7680_v37 = vadd.s32 %v15626_v45, %v15640_v39 }
 0x96c   : > { %v7994_v24 = vadd.s32 1, %v15695_v51  ;;  %v7842_v52 = vadd.s32 1, %v8438_v35  ;;  %9434 = vsinq.f32 %v7816_v9  ;;  %v8432_v18 = vadd.s32 4294967294, %v7692_v27 }
 0x96d   : > { %v15716_v12 = vadd.s32 3, %v7713_v10  ;;  %v7991_v2 = vmul.u32 %v15608_v47, %v7975_v1  ;;  %v15719_v63 = vshll.u32 %v7840_v61, 8  ;;  %v15722_v54 = vand.u32 3, %v14813_v7 }
 0x96e   : > { %vm7843_vm12 = vcmp.gt.s32.totalorder %v7842_v52, 0  ;;  %vm8433_vm0 = vcmp.lt.s32.totalorder %v8432_v18, 0  ;;  %vm7993_vm9 = vc.u32 %v15711_v11, %v15694_v50  ;;  %v15730_v47 = vand.u32 3, %v14811_v8 }
 0x96f   : > { %v7844_v45 = vsel %vm7843_vm12, %v7842_v52, 0  ;;  %v7695_v41 = vsel %vm8433_vm0, 0, %v8432_v18  ;;  %v7995_v31 = vsel %vm7993_vm9, %v7994_v24, %v15695_v51  ;;  %vm7938_vm8 = vcmp.lt.s32.totalorder %v15490_v62, 0 }
 0x970   : > { %v7846_v38 = vand.u32 31, %v7844_v45  ;;  %v7696_v43 = vsub.s32 32, %v7695_v41  ;;  %v7700_v59 = vsub.s32 4294967266, %v7695_v41  ;;  %v7996_v7 = vadd.s32 %v7995_v31, %v7991_v2 }
 0x971   : > { %v7697_v30 = vshll.u32 %v15679_v22, %v7695_v41  ;;  %v15735_v9 = vshrl.u32 %v7844_v45, 5  ;;  %v16921_v52 = vand.u32 2147483647, %v15490_v62  ;;  %vm6468_vm2 = vweird.f32 %v14552_v29 }
 0x972   : > { %v7847_v46 = vsub.s32 32, %v7846_v38  ;;  %v7849_v10 = vshll.u32 %v16540_v33, %v7846_v38  ;;  %v7698_v14 = vshrl.u32 %v7680_v37, %v7696_v43  ;;  %v7701_v51 = vadd.s32 127, %v7700_v59 }
 0x973   : > { %v7997_v1 = vadd.s32 536870912, %v7996_v7  ;;  %v7852_v8 = vshll.u32 %v16846_v32, %v7846_v38  ;;  %v7855_v61 = vshll.u32 %v16847_v26, %v7846_v38  ;;  %vm15747_vm6 = vcmp.le.f32.partialorder %v16921_v52, 0.7853982 }
 0x974   : > { %v7850_v25 = vshrl.u32 %v16846_v32, %v7847_v46  ;;  %v7853_v35 = vshrl.u32 %v16847_v26, %v7847_v46  ;;  %v7856_v27 = vshrl.u32 %v16848_v17, %v7847_v46  ;;  %v15743_v0 = vpop.eup %9430  ;;  %v7699_v22 = vor.u32 %v7698_v14, %v7697_v30 }
 0x975   : > { %v7702_v24 = vshll.u32 %v7701_v51, 23  ;;  %v7998_v18 = vshrl.u32 %v7997_v1, 30  ;;  %v7859_v2 = vshrl.u32 %v16697_v3, %v7847_v46  ;;  %v15752_v32 = vpop.eup %9432  ;;  %v7848_v45 = vshrl.u32 %v16540_v33, %v7847_v46 }
 0x976   : > { %v7851_v26 = vor.u32 %v7850_v25, %v7849_v10  ;;  %v7854_v41 = vor.u32 %v7853_v35, %v7852_v8  ;;  %v7858_v31 = vshll.u32 %v16848_v17, %v7846_v38  ;;  %v15756_v43 = vpop.eup %9434  ;;  %v7857_v51 = vor.u32 %v7856_v27, %v7855_v61 }
 0x977   : > { %v7703_v59 = vor.u32 4788187, %v7702_v24  ;;  %v7999_v30 = vshll.u32 %v7998_v18, 30  ;;  %v8022_v14 = vsub.s32 4, %v7998_v18  ;;  %v7706_v52 = vcvt.s32.f32 %v7699_v22 }
 0x978   : > { %v7860_v48 = vor.u32 %v7859_v2, %v7858_v31  ;;  %v7861_v1 = vshll.u32 %v16697_v3, %v7846_v38  ;;  %v7862_v39 = vshrl.u32 %v16545_v36, %v7847_v46  ;;  %vm7864_vm10 = vcmp.lt.s32.totalorder %v15735_v9, 1 }
 0x979   : > { %v7704_v53 = vand.u32 2147483647, %v7703_v59  ;;  %v15760_v44 = vsub.s32 %v7996_v7, %v7999_v30  ;;  %vm7865_vm15 = vcmp.lt.s32.totalorder %v15735_v9, 2  ;;  %v15766_v33 = vsel %vm7938_vm8, %v8022_v14, %v7998_v18 }
 0x97a   : > { %v7863_v17 = vor.u32 %v7862_v39, %v7861_v1  ;;  %vm7867_vm13 = vcmp.lt.s32.totalorder %v15735_v9, 4  ;;  %v7868_v10 = vsel %vm7864_vm10, %v7848_v45, %v7851_v26  ;;  %vm7866_vm4 = vcmp.lt.s32.totalorder %v15735_v9, 3 }
 0x97b   : > { %v7707_v8 = vmul.f32 %v7706_v52, %v7704_v53  ;;  %v8002_v3 = vsub.s32 0, %v15760_v44  ;;  %v7869_v36 = vsel %vm7867_vm13, %v7857_v51, 2102212464  ;;  %v7872_v7 = vsel %vm7864_vm10, %v7851_v26, %v7854_v41 }
 0x97c   : > { %v7870_v38 = vsel %vm7866_vm4, %v7854_v41, %v7869_v36  ;;  %v7873_v46 = vsel %vm7867_vm13, %v7860_v48, 920167782  ;;  %v7876_v25 = vsel %vm7864_vm10, %v7854_v41, %v7857_v51  ;;  %v7992_v27 = vadd.s32 %v15694_v50, %v15711_v11 }
 0x97d   : > { %v7708_v39 = vxor.u32 2147483648, %v7707_v8  ;;  %v8443_v35 = vmin.u32 %v8002_v3, %v15760_v44  ;;  %v7871_v53 = vsel %vm7865_vm15, %v7868_v10, %v7870_v38  ;;  %v7874_v61 = vsel %vm7866_vm4, %v7857_v51, %v7873_v46 }
 0x97e   : > { %v8025_v22 = vsel %vm15747_vm6, 0, %v15766_v33  ;;  %v7875_v24 = vsel %vm7865_vm15, %v7872_v7, %v7874_v61  ;;  %v7877_v18 = vsel %vm7867_vm13, %v7863_v17, 1326507024  ;;  %v7887_v41 = vmul.u32 %v15719_v63, %v7871_v53 }
 0x97f   : > { %v7709_v2 = vsel %vm7626_vm3, %v7708_v39, %v7707_v8  ;;  %v8004_v45 = vclz %v8443_v35  ;;  %v7878_v26 = vsel %vm7866_vm4, %v7860_v48, %v7877_v18  ;;  %vm6472_vm3 = vcmp.eq.s32.totalorder %v15722_v54, 0  ;;  %v16930_v18 = vld [vmem:[#allocation14_spill] sm:$0xff] }
 0x980   : > { %v7712_v50 = vsel %vm15666_vm1, %v15467_v58, %v7709_v2  ;;  %v7879_v11 = vsel %vm7865_vm15, %v7876_v25, %v7878_v26  ;;  %v15803_v31 = vmul.u32.u64.low %v15719_v63, %v7875_v24  ;;  %v15804_v59 = vmul.u32.u64.high %v15719_v63, %v7875_v24, %v15803_v31 }
 0x981   : > { %v8444_v30 = vadd.s32 4294967294, %v8004_v45  ;;  %v15808_v14 = vmul.u32.u64.low %v15719_v63, %v7879_v11  ;;  %v15809_v51 = vmul.u32.u64.high %v15719_v63, %v7879_v11, %v15808_v14  ;;  %vm6572_vm11 = vweird.f32 %v14550_v16 }
 0x982   : > { %9436 = vcosq.f32 %v7712_v50  ;;  %vm6471_vm1 = vcmp.lt.s32.totalorder %v15722_v54, 2  ;;  %v16924_v40 = vxor.u32 2147483648, %v14982_v23  ;;  %vm6475_vm7 = vcmp.eq.s32.totalorder %v15722_v54, 2 }
 0x983   : > { %9438 = vsinq.f32 %v7712_v50  ;;  %vm8445_vm5 = vcmp.lt.s32.totalorder %v8444_v30, 0  ;;  %v16925_v9 = vxor.u32 2147483648, %v14901_v49  ;;  %vm6575_vm14 = vcmp.lt.s32.totalorder %v15730_v47, 2 }
 0x984   : > { %v6474_v48 = vsel %vm6472_vm3, %v14901_v49, %v16924_v40  ;;  %v8007_v52 = vsel %vm8445_vm5, 0, %v8444_v30  ;;  %v7890_v1 = vadd.s32 1, %v15804_v59  ;;  %vm6576_vm12 = vcmp.eq.s32.totalorder %v15730_v47, 0 }
 0x985   : > { %v6477_v63 = vsel %vm6475_vm7, %v16925_v9, %v14982_v23  ;;  %v8008_v10 = vsub.s32 32, %v8007_v52  ;;  %v8012_v8 = vsub.s32 4294967266, %v8007_v52  ;;  %v16926_v3 = vxor.u32 2147483648, %v14857_v20 }
 0x986   : > { %v6478_v17 = vsel %vm6471_vm1, %v6474_v48, %v6477_v63  ;;  %vm6579_vm0 = vcmp.eq.s32.totalorder %v15730_v47, 2  ;;  %v8009_v36 = vshll.u32 %v15760_v44, %v8007_v52  ;;  %vm7889_vm9 = vc.u32 %v15809_v51, %v15803_v31  ;;  %v16932_v48 = vld [vmem:[#allocation24_spill] sm:$0xff]  ;;  %v16933_v63 = vld [vmem:[#allocation37_spill] sm:$0xff] }
 0x987   : > { %v6578_v54 = vsel %vm6576_vm12, %v14855_v34, %v16926_v3  ;;  %v6479_v49 = vsel %vm6468_vm2, nan, %v6478_v17  ;;  %v6580_v23 = vxor.u32 2147483648, %v14855_v34  ;;  %v8010_v38 = vshrl.u32 %v7992_v27, %v8008_v10 }
 0x988   : > { %v8013_v7 = vadd.s32 127, %v8012_v8  ;;  %vm7834_vm10 = vcmp.lt.s32.totalorder %v15578_v55, 0  ;;  %v7891_v46 = vsel %vm7889_vm9, %v7890_v1, %v15804_v59  ;;  %v6678_v25 = vand.u32 3, %v15042_v42  ;;  %v16931_v59 = vld [vmem:[#allocation48_spill] sm:$0xff] }
 0x989   : > { %v16927_v39 = vand.u32 2147483647, %v15578_v55  ;;  %v7892_v35 = vadd.s32 %v7891_v46, %v7887_v41  ;;  %v6581_v29 = vsel %vm6579_vm0, %v6580_v23, %v14857_v20  ;;  %v6681_v53 = vxor.u32 2147483648, %v15130_v21  ;;  %v16935_v8 = vld [vmem:[#allocation32_spill] sm:$0xff]  ;;  %v16936_v46 = vld [vmem:[#allocation47_spill] sm:$0xff] }
 0x98a   : > { %v6684_v34 = vxor.u32 2147483648, %v15121_v19  ;;  %v8011_v61 = vor.u32 %v8010_v38, %v8009_v36  ;;  %v8014_v27 = vshll.u32 %v8013_v7, 23  ;;  %v6582_v24 = vsel %vm6575_vm14, %v6578_v54, %v6581_v29 }
 0x98b   : > { %vm15839_vm15 = vcmp.le.f32.partialorder %v16927_v39, 0.7853982  ;;  %vm6676_vm13 = vweird.f32 %v16930_v18  ;;  %v7893_v42 = vadd.s32 536870912, %v7892_v35  ;;  %v6583_v2 = vsel %vm6572_vm11, nan, %v6582_v24 }
 0x98c   : > { %vm6679_vm4 = vcmp.lt.s32.totalorder %v6678_v25, 2  ;;  %vm6680_vm2 = vcmp.eq.s32.totalorder %v6678_v25, 0  ;;  %v8015_v45 = vor.u32 4788187, %v8014_v27  ;;  %v8862_v26 = vpack.c.bf16 %v6583_v2, %v6479_v49  ;;  %v15852_v41 = vpop.eup %9436  ;;  %v16938_v2 = vld [vmem:[#allocation38_spill] sm:$0xff] }
 0x98d   : > { %v6682_v20 = vsel %vm6680_vm2, %v15121_v19, %v6681_v53  ;;  %vm6683_vm3 = vcmp.eq.s32.totalorder %v6678_v25, 2  ;;  %v8018_v50 = vcvt.s32.f32 %v8011_v61  ;;  %v7894_v11 = vshrl.u32 %v7893_v42, 30  ;;  %v15856_v14 = vpop.eup %9438 }
 0x98e   : > { %v6685_v47 = vsel %vm6683_vm3, %v6684_v34, %v15130_v21  ;;  %v6782_v30 = vand.u32 3, %v16931_v59  ;;  %v8016_v40 = vand.u32 2147483647, %v8015_v45  ;;  %8863 = vmatpush3.bf16.msra.mxu1 %v8862_v26  ;;  %v6785_v9 = vxor.u32 2147483648, %v16932_v48 }
 0x98f   : > { %v6686_v16 = vsel %vm6679_vm4, %v6682_v20, %v6685_v47  ;;  %v6788_v52 = vxor.u32 2147483648, %v16933_v63  ;;  %v7895_v1 = vshll.u32 %v7894_v11, 30  ;;  %v7918_v19 = vsub.s32 4, %v7894_v11  ;;  %v16939_v20 = vld [vmem:[#allocation7_spill] sm:$0xff] }
 0x990   : > { %v16934_v17 = vmov 0.0|0.0   ;;  %v6687_v10 = vsel %vm6676_vm13, nan, %v6686_v16  ;;  %vm6780_vm11 = vweird.f32 %v16935_v8  ;;  %v8019_v21 = vmul.f32 %v8018_v50, %v8016_v40 }
 0x991   : > { %8864 = vmatprep.subr.bf16.mxu1 %v16934_v17  ;;  %vm6783_vm1 = vcmp.lt.s32.totalorder %v6782_v30, 2  ;;  %vm6784_vm7 = vcmp.eq.s32.totalorder %v6782_v30, 0  ;;  %vm6787_vm5 = vcmp.eq.s32.totalorder %v6782_v30, 2  ;;  %v15864_v3 = vsub.s32 %v7892_v35, %v7895_v1  ;;  %v16942_v1 = vld [vmem:[#allocation22_spill] sm:$0xff] }
 0x992   : > { %v7919_v54 = vsel %vm7834_vm10, %v7918_v19, %v7894_v11  ;;  %v6786_v36 = vsel %vm6784_vm7, %v16933_v63, %v6785_v9  ;;  %v6789_v49 = vsel %vm6787_vm5, %v6788_v52, %v16932_v48  ;;  %v8020_v23 = vxor.u32 2147483648, %v8019_v21  ;;  %v16940_v11 = vld [vmem:[#allocation12_spill] sm:$0xff]  ;;  %v16941_v63 = vld [vmem:[#allocation30_spill] sm:$0xff] }
 0x993   : > { %v7921_v38 = vsel %vm15839_vm15, 0, %v7919_v54  ;;  %v6790_v7 = vsel %vm6783_vm1, %v6786_v36, %v6789_v49  ;;  %v6886_v25 = vand.u32 3, %v16936_v46  ;;  %v7888_v39 = vadd.s32 %v15803_v31, %v15809_v51  ;;  %v16937_v51 = vld [vmem:[#allocation19_spill] sm:$0xff]  ;;  %v16944_v46 = vld [vmem:[#allocation42_spill] sm:$0xff] }
 0x994   : > { %v7898_v35 = vsub.s32 0, %v15864_v3  ;;  %v6791_v29 = vsel %vm6780_vm11, nan, %v6790_v7  ;;  %v6889_v53 = vxor.u32 2147483648, %v15275_v57  ;;  %v8021_v34 = vsel %vm7938_vm8, %v8020_v23, %v8019_v21 }
 0x995   : > { %v15879_v61 = vadd.s32 3, %v7921_v38  ;;  %v8865_v27 = vpack.c.bf16 %v6791_v29, %v6687_v10  ;;  %vm6884_vm14 = vweird.f32 %v14720_v4  ;;  %v15885_v24 = vsel %vm15747_vm6, %v15490_v62, %v8021_v34  ;;  %v16943_v38 = vld [vmem:[#allocation49_spill] sm:$0xff]  ;;  %v16945_v34 = vld [vmem:[#allocation31_spill] sm:$0xff] }
 0x996   : > { %v8439_v31 = vmin.u32 %v7898_v35, %v15864_v3  ;;  %vm6887_vm12 = vcmp.lt.s32.totalorder %v6886_v25, 2  ;;  %vm6888_vm0 = vcmp.eq.s32.totalorder %v6886_v25, 0  ;;  %vm6891_vm9 = vcmp.eq.s32.totalorder %v6886_v25, 2 }
 0x997   : > { %8866 = vmatpush3.bf16.msra.mxu1 %v8865_v27  ;;  %v6890_v18 = vsel %vm6888_vm0, %v16937_v51, %v6889_v53  ;;  %v6892_v42 = vxor.u32 2147483648, %v16937_v51  ;;  %v6990_v45 = vand.u32 3, %v16938_v2  ;;  %9440 = vcosq.f32 %v15885_v24  ;;  %v16946_v51 = vld [vmem:[#allocation26_spill] sm:$0xff] }
 0x998   : > { %v7900_v26 = vclz %v8439_v31  ;;  %8867 = vmatprep.subr.bf16.mxu1 %v16934_v17  ;;  %v6993_v50 = vxor.u32 2147483648, %v16939_v20  ;;  %v6996_v47 = vxor.u32 2147483648, %v16940_v11  ;;  %vm6988_vm2 = vweird.f32 %v16941_v63  ;;  %v16949_v63 = vld [vmem:[#allocation28_spill] sm:$0xff] }
 0x999   : > { %v6893_v59 = vsel %vm6891_vm9, %v6892_v42, %v15275_v57  ;;  %vm6991_vm8 = vcmp.lt.s32.totalorder %v6990_v45, 2  ;;  %vm6992_vm13 = vcmp.eq.s32.totalorder %v6990_v45, 0  ;;  %vm6995_vm4 = vcmp.eq.s32.totalorder %v6990_v45, 2 }
 0x99a   : > { %v8440_v30 = vadd.s32 4294967294, %v7900_v26  ;;  %v6894_v40 = vsel %vm6887_vm12, %v6890_v18, %v6893_v59  ;;  %v6994_v16 = vsel %vm6992_vm13, %v16940_v11, %v6993_v50  ;;  %v6997_v48 = vsel %vm6995_vm4, %v6996_v47, %v16939_v20 }
 0x99b   : > { %v6895_v9 = vsel %vm6884_vm14, nan, %v6894_v40  ;;  %v6998_v52 = vsel %vm6991_vm8, %v6994_v16, %v6997_v48  ;;  %v7094_v19 = vand.u32 3, %v16942_v1  ;;  %v7097_v10 = vxor.u32 2147483648, %v15497_v5  ;;  %v16948_v48 = vld [vmem:[#allocation21_spill] sm:$0xff] }
 0x99c   : > { %vm8441_vm3 = vcmp.lt.s32.totalorder %v8440_v30, 0  ;;  %v6999_v57 = vsel %vm6988_vm2, nan, %v6998_v52  ;;  %v7100_v8 = vxor.u32 2147483648, %v15356_v15  ;;  %vm7092_vm11 = vweird.f32 %v14971_v60 }
 0x99d   : > { %v7903_v21 = vsel %vm8441_vm3, 0, %v8440_v30  ;;  %v8868_v54 = vpack.c.bf16 %v6999_v57, %v6895_v9  ;;  %vm7096_vm1 = vcmp.eq.s32.totalorder %v7094_v19, 0  ;;  %vm7095_vm7 = vcmp.lt.s32.totalorder %v7094_v19, 2  ;;  %v16950_v57 = vld [vmem:[#allocation36_spill] sm:$0xff] }
 0x99e   : > { %v7904_v36 = vsub.s32 32, %v7903_v21  ;;  %v7908_v49 = vsub.s32 4294967266, %v7903_v21  ;;  %v7098_v4 = vsel %vm7096_vm1, %v15356_v15, %v7097_v10  ;;  %v7905_v23 = vshll.u32 %v15864_v3, %v7903_v21 }
 0x99f   : > { %8869 = vmatpush3.bf16.msra.mxu1 %v8868_v54  ;;  %vm7099_vm5 = vcmp.eq.s32.totalorder %v7094_v19, 2  ;;  %v7198_v7 = vand.u32 3, %v16943_v38  ;;  %v7201_v25 = vxor.u32 2147483648, %v16944_v46  ;;  %v7204_v27 = vxor.u32 2147483648, %v16945_v34 }
 0x9a0   : > { %v7906_v35 = vshrl.u32 %v7888_v39, %v7904_v36  ;;  %v7909_v29 = vadd.s32 127, %v7908_v49  ;;  %8870 = vmatprep.subr.bf16.mxu1 %v16934_v17  ;;  %v7101_v53 = vsel %vm7099_vm5, %v7100_v8, %v15497_v5  ;;  %vm7196_vm14 = vweird.f32 %v16946_v51 }
 0x9a1   : > { %v7102_v31 = vsel %vm7095_vm7, %v7098_v4, %v7101_v53  ;;  %vm7199_vm12 = vcmp.lt.s32.totalorder %v7198_v7, 2  ;;  %vm7200_vm0 = vcmp.eq.s32.totalorder %v7198_v7, 0  ;;  %v15914_v15 = vpop.eup %9440  ;;  %vm7203_vm9 = vcmp.eq.s32.totalorder %v7198_v7, 2 }
 0x9a2   : > { %v7907_v3 = vor.u32 %v7906_v35, %v7905_v23  ;;  %v7910_v18 = vshll.u32 %v7909_v29, 23  ;;  %v7202_v42 = vsel %vm7200_vm0, %v16945_v34, %v7201_v25  ;;  %v7103_v39 = vsel %vm7092_vm11, nan, %v7102_v31  ;;  %v16953_v35 = vld [vmem:[#allocation46_spill] sm:$0xff]  ;;  %v16954_v34 = vld [vmem:[#allocation11_spill] sm:$0xff] }
 0x9a3   : > { %v7205_v2 = vsel %vm7203_vm9, %v7204_v27, %v16944_v46  ;;  %v7302_v5 = vand.u32 3, %v15462_v13  ;;  %v7305_v45 = vxor.u32 2147483648, %v15604_v6  ;;  %v7308_v11 = vxor.u32 2147483648, %v15518_v56  ;;  %v16947_v13 = vld [vmem:[#allocation44_spill] sm:$0xff]  ;;  %v16955_v31 = vld [vmem:[#allocation34_spill] sm:$0xff] }
 0x9a4   : > { %v7911_v26 = vor.u32 4788187, %v7910_v18  ;;  %v7914_v20 = vcvt.s32.f32 %v7907_v3  ;;  %v7206_v50 = vsel %vm7199_vm12, %v7202_v42, %v7205_v2  ;;  %vm7300_vm2 = vweird.f32 %v16947_v13  ;;  %v16956_v3 = vld [vmem:[#allocation17_spill] sm:$0xff] }
 0x9a5   : > { %v7207_v47 = vsel %vm7196_vm14, nan, %v7206_v50  ;;  %vm7303_vm8 = vcmp.lt.s32.totalorder %v7302_v5, 2  ;;  %vm7304_vm13 = vcmp.eq.s32.totalorder %v7302_v5, 0  ;;  %vm7307_vm4 = vcmp.eq.s32.totalorder %v7302_v5, 2 }
 0x9a6   : > { %v7912_v59 = vand.u32 2147483647, %v7911_v26  ;;  %v8871_v60 = vpack.c.bf16 %v7207_v47, %v7103_v39  ;;  %v7306_v30 = vsel %vm7304_vm13, %v15518_v56, %v7305_v45  ;;  %v7309_v40 = vsel %vm7307_vm4, %v7308_v11, %v15604_v6  ;;  %v16951_v6 = vld [vmem:[#allocation13_spill] sm:$0xff]  ;;  %v16957_v45 = vld [vmem:[#allocation27_spill] sm:$0xff] }
 0x9a7   : > { %v7310_v16 = vsel %vm7303_vm8, %v7306_v30, %v7309_v40  ;;  %v7406_v9 = vand.u32 3, %v16948_v48  ;;  %v7409_v52 = vxor.u32 2147483648, %v16949_v63  ;;  %9442 = vsinq.f32 %v15885_v24  ;;  %v16952_v24 = vld [vmem:[#allocation43_spill] sm:$0xff] }
 0x9a8   : > { %v7915_v1 = vmul.f32 %v7914_v20, %v7912_v59  ;;  %8872 = vmatpush3.bf16.msra.mxu1 %v8871_v60  ;;  %v7311_v19 = vsel %vm7300_vm2, nan, %v7310_v16  ;;  %v7412_v10 = vxor.u32 2147483648, %v16950_v57  ;;  %v7510_v56 = vand.u32 3, %v16951_v6  ;;  %v16958_v20 = vld [vmem:[#allocation18_spill] sm:$0xff] }
 0x9a9   : > { %8873 = vmatprep.subr.bf16.mxu1 %v16934_v17  ;;  %vm7407_vm3 = vcmp.lt.s32.totalorder %v7406_v9, 2  ;;  %vm7408_vm11 = vcmp.eq.s32.totalorder %v7406_v9, 0  ;;  %vm7411_vm1 = vcmp.eq.s32.totalorder %v7406_v9, 2  ;;  %v7513_v36 = vxor.u32 2147483648, %v15743_v0 }
 0x9aa   : > { %v7916_v8 = vxor.u32 2147483648, %v7915_v1  ;;  %v7410_v21 = vsel %vm7408_vm11, %v16950_v57, %v7409_v52  ;;  %v7413_v54 = vsel %vm7411_vm1, %v7412_v10, %v16949_v63  ;;  %vm7404_vm7 = vweird.f32 %v16952_v24  ;;  %v508_v24 = vld [vmem:[%s16037_s9] sm:$0x1] }
 0x9ab   : > { %v7414_v49 = vsel %vm7407_vm3, %v7410_v21, %v7413_v54  ;;  %vm7511_vm5 = vcmp.lt.s32.totalorder %v7510_v56, 2  ;;  %vm7512_vm14 = vcmp.eq.s32.totalorder %v7510_v56, 0  ;;  %v7516_v7 = vxor.u32 2147483648, %v15675_v28 }
 0x9ac   : > { %v7917_v4 = vsel %vm7834_vm10, %v7916_v8, %v7915_v1  ;;  %v7415_v23 = vsel %vm7404_vm7, nan, %v7414_v49  ;;  %v7514_v38 = vsel %vm7512_vm14, %v15675_v28, %v7513_v36  ;;  %vm7515_vm12 = vcmp.eq.s32.totalorder %v7510_v56, 2 }
 0x9ad   : > { %v7920_v46 = vsel %vm15839_vm15, %v15578_v55, %v7917_v4  ;;  %v8874_v25 = vpack.c.bf16 %v7415_v23, %v7311_v19  ;;  %v7614_v29 = vand.u32 3, %v16953_v35  ;;  %v7517_v53 = vsel %vm7515_vm12, %v7516_v7, %v15743_v0  ;;  %v8043_v4 = vpop.permute.xlu0 %8042 }
 0x9ae   : > { %9444 = vcosq.f32 %v7920_v46  ;;  %v7617_v27 = vxor.u32 2147483648, %v16954_v34  ;;  %v7620_v51 = vxor.u32 2147483648, %v16955_v31  ;;  %vm7508_vm10 = vweird.f32 %v16956_v3 }
 0x9af   : > { %9446 = vsinq.f32 %v7920_v46  ;;  %8875 = vmatpush3.bf16.msra.mxu1 %v8874_v25  ;;  %v7518_v28 = vsel %vm7511_vm5, %v7514_v38, %v7517_v53  ;;  %vm7616_vm0 = vcmp.eq.s32.totalorder %v7614_v29, 0  ;;  %vm7615_vm15 = vcmp.lt.s32.totalorder %v7614_v29, 2 }
 0x9b0   : > { %8876 = vmatprep.subr.bf16.mxu1 %v16934_v17  ;;  %v7519_v44 = vsel %vm7508_vm10, nan, %v7518_v28  ;;  %v7618_v18 = vsel %vm7616_vm0, %v16955_v31, %v7617_v27  ;;  %vm7619_vm9 = vcmp.eq.s32.totalorder %v7614_v29, 2  ;;  %v7718_v42 = vand.u32 3, %v15716_v12 }
 0x9b1   : > { %v7621_v0 = vsel %vm7619_vm9, %v7620_v51, %v16954_v34  ;;  %v7721_v39 = vxor.u32 2147483648, %v15856_v14  ;;  %v7724_v2 = vxor.u32 2147483648, %v15852_v41  ;;  %v9443_v5 = vpop.eup %9442  ;;  %vm7612_vm8 = vweird.f32 %v16957_v45 }
 0x9b2   : > { %v7622_v26 = vsel %vm7615_vm15, %v7618_v18, %v7621_v0  ;;  %v7822_v50 = vand.u32 3, %v16958_v20  ;;  %v7825_v11 = vxor.u32 2147483648, %v15756_v43  ;;  %v8029_v47 = vadd.s32 3, %v8025_v22 }
 0x9b3   : > { %v7623_v59 = vsel %vm7612_vm8, nan, %v7622_v26  ;;  %vm7720_vm13 = vcmp.eq.s32.totalorder %v7718_v42, 0  ;;  %vm7723_vm4 = vcmp.eq.s32.totalorder %v7718_v42, 2  ;;  %vm7719_vm2 = vcmp.lt.s32.totalorder %v7718_v42, 2 }
 0x9b4   : > { %v8877_v12 = vpack.c.bf16 %v7623_v59, %v7519_v44  ;;  %v7722_v60 = vsel %vm7720_vm13, %v15852_v41, %v7721_v39  ;;  %v7725_v30 = vsel %vm7723_vm4, %v7724_v2, %v15856_v14  ;;  %vm7716_vm3 = vweird.f32 %v15467_v58  ;;  %v16959_v58 = vld [vmem:[#allocation45_spill] sm:$0xff] }
 0x9b5   : > { %v7726_v40 = vsel %vm7719_vm2, %v7722_v60, %v7725_v30  ;;  %vm7824_vm11 = vcmp.eq.s32.totalorder %v7822_v50, 0  ;;  %v7828_v13 = vxor.u32 2147483648, %v15752_v32  ;;  %vm7823_vm1 = vcmp.lt.s32.totalorder %v7822_v50, 2 }
 0x9b6   : > { %8878 = vmatpush3.bf16.msra.mxu1 %v8877_v12  ;;  %v7826_v37 = vsel %vm7824_vm11, %v15752_v32, %v7825_v11  ;;  %vm7827_vm6 = vcmp.eq.s32.totalorder %v7822_v50, 2  ;;  %v7926_v33 = vand.u32 3, %v15879_v61  ;;  %v7727_v22 = vsel %vm7716_vm3, nan, %v7726_v40 }
 0x9b7   : > { %8879 = vmatprep.subr.bf16.mxu1 %v16934_v17  ;;  %v7829_v41 = vsel %vm7827_vm6, %v7828_v13, %v15756_v43  ;;  %v8030_v16 = vand.u32 3, %v8029_v47  ;;  %v8033_v14 = vxor.u32 2147483648, %v9443_v5  ;;  %vm7820_vm7 = vweird.f32 %v16959_v58 }
 0x9b8   : > { %v9445_v48 = vpop.eup %9444  ;;  %v7830_v9 = vsel %vm7823_vm1, %v7826_v37, %v7829_v41  ;;  %vm7928_vm5 = vcmp.eq.s32.totalorder %v7926_v33, 0  ;;  %vm7931_vm12 = vcmp.eq.s32.totalorder %v7926_v33, 2  ;;  %v8036_v10 = vxor.u32 2147483648, %v15914_v15 }
 0x9b9   : > { %v9447_v63 = vpop.eup %9446  ;;  %v7831_v52 = vsel %vm7820_vm7, nan, %v7830_v9  ;;  %v7932_v1 = vxor.u32 2147483648, %v9445_v48  ;;  %vm8032_vm14 = vcmp.eq.s32.totalorder %v8030_v16, 0  ;;  %vm7927_vm10 = vcmp.lt.s32.totalorder %v7926_v33, 2 }
 0x9ba   : > { %v8880_v32 = vpack.c.bf16 %v7831_v52, %v7727_v22  ;;  %v7929_v19 = vxor.u32 2147483648, %v9447_v63  ;;  %v8034_v61 = vsel %vm8032_vm14, %v15914_v15, %v8033_v14  ;;  %vm8035_vm0 = vcmp.eq.s32.totalorder %v8030_v16, 2 }
 0x9bb   : > { %v7933_v57 = vsel %vm7931_vm12, %v7932_v1, %v9447_v63  ;;  %vm9521_vm15 = vmmov 0   ;;  %v9522_v6 = vmov 0.0   ;;  %vm7924_vm9 = vweird.f32 %v15578_v55 }
 0x9bc   : > { %8881 = vmatpush3.bf16.msra.mxu1 %v8880_v32  ;;  %v7930_v43 = vsel %vm7928_vm5, %v9445_v48, %v7929_v19  ;;  %8762 = vmatprep.mubr.msk.f32.mxu1 %vm9521_vm15, %v9522_v6  ;;  %vm8031_vm8 = vcmp.lt.s32.totalorder %v8030_v16, 2  ;;  %v8037_v8 = vsel %vm8035_vm0, %v8036_v10, %v9443_v5  ;;  %vm8028_vm13 = vweird.f32 %v15490_v62 }
 0x9bd   : > { %8882 = vmatprep.subr.bf16.mxu1 %v16934_v17  ;;  %v7934_v56 = vsel %vm7927_vm10, %v7930_v43, %v7933_v57  ;;  %v8038_v15 = vsel %vm8031_vm8, %v8034_v61, %v8037_v8  ;;  %v8045_v49 = vlaneseq }
 0x9be   : > { %v7935_v21 = vsel %vm7924_vm9, nan, %v7934_v56  ;;  %v8039_v54 = vsel %vm8028_vm13, nan, %v8038_v15 }
 0x9bf   : > { %v8883_v36 = vpack.c.bf16 %v8039_v54, %v7935_v21  ;;  %v8046_v17 = vshrl.u32 %v8045_v49, 7 }
 0x9c1   : > { %8884 = vmatpush3.bf16.msra.mxu1 %v8883_v36  ;;  %v8047_v55 = vsub.s32 0, %v8046_v17 }
 0x9c3   : > { %v8048_v23 = vrot.slane %v8043_v4, %v8047_v55 }
 0x9c4   : > { %8763 = vmatmul.mubr.f32.vlgmr.msra.gmra.mrb[16].mxu1 %v508_v24 }
 0xa97   : > { %v8115_v62 = vpop.f32.mrb[16].mxu1 }
 0xa98   : > { %v8116_v38 = vadd.f32 %v8115_v62, %v8048_v23  ;;  %v8764_v7 = vpop.f32.mrb[17].mxu1 }
 0xa9a   : > { %8119 = vst [vmem:[%s376_s12] sm:$0x1] %v8116_v38 }
 0xa9b   : > { %9462 = shalt.err (!%p9459_p3)
}
 0xa9c   : > { %s9463_s30 = scalar_lea.hbm %s15986_s17, 16  ;;  %s9467_s15 = scalar_lea.hbm %s16039_s11, 32 }
 0xa9d   : > { %p9464_p4 = scmp.ne.s32.totalorder %s15986_s17, %s9463_s30  ;;  %p9468_p9 = scmp.lt.u32.totalorder %s15986_s17, %s16039_s11 }
 0xa9e   : > { %p9469_p10 = scmp.lt.u32.totalorder %s9467_s15, %s9463_s30  ;;  %p9471_p12 = scmp.lt.u32.totalorder %s9463_s30, %s15986_s17 }
 0xa9f   : > { %p9465_p7 = pnand %p9464_p4, %p9625_p5 }
 0xaa0   : > { %p9470_p11 = por %p9469_p10, %p9468_p9 }
 0xaa1   : > { %p9466_p8 = pneg %p9465_p7 }
 0xaa2   : > { %p9472_p13 = por %p9471_p12, %p9470_p11 }
 0xaa4   : > { %p9473_p0 = pnand %p9472_p13, %p9466_p8 }
 0xaa6   : > { %9476 = shalt.err (!%p9473_p0)
}
 0xaa7   : > { %9141 = dma.vmem_to_hbm [thread:$0]  (%p9625_p5), %s15988_s13, 16, %s15986_s17, %s8121_s23  }
 0xaa8 PF: > { %p9147_p1 = scmp.ge.s32.totalorder %s9511_s22, 2  ;;  %s8145_s25 = sand.u32 1, %s9499_s19  }
 0xaa9   : > { %s8146_s18 = scalar_lea.sflag [#allocation4], %s8145_s25 }
 0xaaa   : > { %p9144_p2 = pnand %p9147_p1, %p9629_p6 }
 0xaac   : > { %9494 = dma.done.wait (!%p9144_p2), %s8146_s18, 16  }
 0xaad   : > { %9496 = vsyncadd (!%p9144_p2), %s8146_s18, 4294967280  ;;  %p23_p3 = scmp.ge.s32.totalorder %s9612_s24, 4   ;;  %s16960_s19 = smov %s9503_s20 }
 0xaae   : > { %s16961_s20 = smov %s9507_s21  ;;  %s16962_s21 = smov %s9623_s27 }
 0xaaf   : > { %s16963_s22 = smov %s9612_s24  ;;  %25 = sbr.rel (!%p23_p3) target bundleno = 6 (0x6), region = 99 }
 0xab6   :  { %8150 = vsyncpa [#allocation4], 1 }
 0xab7   :  { %8152 = vsyncpa [#allocation4 + $0x1], 1 }

</bundles_post_ra>
